<compile_context>
chip_gen: v7x
topology: tpu7x:2x2x1
jax: 0.10.0
libtpu: 0.0.40
codegen_flags: <defaults>
</compile_context>

<pallas_src>
import functools

import jax
import jax.numpy as jnp
from jax.experimental import pallas as pl
from jax.experimental.pallas import tpu as pltpu

NC = 3
NDF = 64


# ---------------------------------------------------------------------------
# Pallas kernels
# ---------------------------------------------------------------------------
def _matmul_act_kernel(a_ref, b_ref, *rest, alpha, has_bias):
    """Single-K-step fused matmul: o = leaky_relu(a @ b + bias), bf16 out."""
    if has_bias:
        bias_ref, o_ref = rest
    else:
        (o_ref,) = rest
    y = jnp.dot(a_ref[...], b_ref[...], preferred_element_type=jnp.float32)
    if has_bias:
        y = y + bias_ref[...]
    if alpha is not None:
        y = jnp.maximum(y, alpha * y)          # LeakyReLU, alpha in (0,1)
    o_ref[...] = y.astype(o_ref.dtype)


def fused_matmul(a, w, bias, *, alpha, m_split=1, n_split=1,
                 out_dtype=jnp.bfloat16):
    """a: (M, K) bf16, w: (K, N) bf16 (BN scale folded), bias: (1, N) f32 or
    None.  K is always a single full block (all layers have K <= 8192); the
    grid is just (m_split, n_split) parallel blocks (2 total per layer) so a
    v7x chip can put one block on each TensorCore."""
    M, K = a.shape
    K2, N = w.shape
    assert K == K2
    assert M % m_split == 0 and N % n_split == 0
    TM, TN = M // m_split, N // n_split
    assert TM % 8 == 0 or TM == M
    assert TN % 128 == 0 or TN == N
    has_bias = bias is not None

    in_specs = [
        pl.BlockSpec((TM, K), lambda i, j: (i, 0)),
        pl.BlockSpec((K, TN), lambda i, j: (0, j)),
    ]
    args = [a, w]
    if has_bias:
        in_specs.append(pl.BlockSpec((1, TN), lambda i, j: (0, j)))
        args.append(bias)

    return pl.pallas_call(
        functools.partial(_matmul_act_kernel, alpha=alpha, has_bias=has_bias),
        out_shape=jax.ShapeDtypeStruct((M, N), out_dtype),
        grid_spec=pltpu.PrefetchScalarGridSpec(
            num_scalar_prefetch=0,
            grid=(m_split, n_split),
            in_specs=in_specs,
            out_specs=pl.BlockSpec((TM, TN), lambda i, j: (i, j)),
        ),
        compiler_params=pltpu.CompilerParams(
            dimension_semantics=("parallel", "parallel")),
    )(*args)


def _final_dot_kernel(a_ref, w_ref, o_ref):
    """Last conv (4x4 valid on a 4x4 map, C_out=1): per-row dot product.
    VPU multiply + lane reduce instead of a lane-padded MXU matmul."""
    prod = a_ref[...].astype(jnp.float32) * w_ref[...].astype(jnp.float32)
    o_ref[...] = jnp.sum(prod, axis=-1, keepdims=True)


def final_dot(a, w_row):
    """a: (M, K) bf16, w_row: (1, K) bf16 -> (M, 1) f32 logits."""
    M, K = a.shape
    return pl.pallas_call(
        _final_dot_kernel,
        out_shape=jax.ShapeDtypeStruct((M, 1), jnp.float32),
        grid_spec=pltpu.PrefetchScalarGridSpec(
            num_scalar_prefetch=0,
            grid=(1,),
            in_specs=[pl.BlockSpec((M, K), lambda i: (0, 0)),
                      pl.BlockSpec((1, K), lambda i: (0, 0))],
            out_specs=pl.BlockSpec((M, 1), lambda i: (0, 0)),
        ),
    )(a, w_row)


# ---------------------------------------------------------------------------
# im2col glue (XLA).  Stride-2 window extraction cannot be expressed by a
# BlockSpec index_map, so it stays as cheap slicing that fuses under jit.
# ---------------------------------------------------------------------------
def extract_patches(x_nhwc, ksize, stride, pad):
    n, h, w, c = x_nhwc.shape
    if pad:
        x_nhwc = jnp.pad(x_nhwc, ((0, 0), (pad, pad), (pad, pad), (0, 0)))
    ho = (h + 2 * pad - ksize) // stride + 1
    wo = (w + 2 * pad - ksize) // stride + 1
    parts = [x_nhwc[:, kh:kh + stride * ho:stride,
                    kw:kw + stride * wo:stride, :]
             for kh in range(ksize) for kw in range(ksize)]
    patches = jnp.concatenate(parts, axis=-1)      # (n, ho, wo, k*k*c)
    return patches.reshape(n * ho * wo, ksize * ksize * c), ho, wo


# ---------------------------------------------------------------------------
# Parameters: synthetic, deterministic; BatchNorm in inference mode with its
# running stats folded into (scale, bias).  `fold_params` runs once, outside
# the jitted forward.
# ---------------------------------------------------------------------------
def init_params(key):
    chans = [NC, NDF, NDF * 2, NDF * 4, NDF * 8, 1]
    params = []
    for li in range(5):
        cin, cout = chans[li], chans[li + 1]
        key, kw_, kg, kb, km, kv = jax.random.split(key, 6)
        w = 0.02 * jax.random.normal(kw_, (cout, cin, 4, 4), jnp.float32)
        if 1 <= li <= 3:                      # layers with BatchNorm
            gamma = 1.0 + 0.1 * jax.random.normal(kg, (cout,), jnp.float32)
            beta = 0.1 * jax.random.normal(kb, (cout,), jnp.float32)
            mean = 0.1 * jax.random.normal(km, (cout,), jnp.float32)
            var = 1.0 + jnp.abs(jax.random.normal(kv, (cout,), jnp.float32))
            scale = gamma / jnp.sqrt(var + 1e-5)
            bias = beta - mean * scale
        else:
            scale = jnp.ones((cout,), jnp.float32)
            bias = jnp.zeros((cout,), jnp.float32)
        params.append((w, scale, bias))
    return params


def fold_params(params):
    """PyTorch-layout (C_out, C_in, kh, kw) weights -> matmul-ready bf16
    matrices with the BN scale folded in, plus an f32 bias row (or None)."""
    folded = []
    for li, (w_pt, scale, bias) in enumerate(params):
        cout, cin, kh, kw = w_pt.shape
        if li == 4:
            # Final conv: flatten to a single (1, kh*kw*cin) row in the same
            # (h, w, c) order as the flattened NHWC activation.
            wrow = jnp.transpose(w_pt, (0, 2, 3, 1)).reshape(
                cout, kh * kw * cin).astype(jnp.bfloat16)
            folded.append((wrow, None))
        else:
            wmat = jnp.transpose(w_pt, (2, 3, 1, 0)) * scale[None, None, None, :]
            wmat = wmat.reshape(kh * kw * cin, cout).astype(jnp.bfloat16)
            b = None if li == 0 else bias.reshape(1, cout).astype(jnp.float32)
            folded.append((wmat, b))
    return folded


# ---------------------------------------------------------------------------
# Forward pass
# ---------------------------------------------------------------------------
def discriminator_forward(x_nchw, folded):
    # NCHW (PyTorch) -> NHWC, bf16 once up front.
    x = jnp.transpose(x_nchw, (0, 2, 3, 1)).astype(jnp.bfloat16)
    n = x.shape[0]
    # (stride, pad, m_split, n_split) per conv layer; exactly 2 grid blocks
    # along one parallel axis so v7x can use both TensorCores.
    layer_cfg = [(2, 1, 2, 1),   # L1: M=2048, K=48,   N=64
                 (2, 1, 2, 1),   # L2: M=512,  K=1024, N=128
                 (2, 1, 1, 2),   # L3: M=128,  K=2048, N=256
                 (2, 1, 1, 2)]   # L4: M=32,   K=4096, N=512
    for li in range(4):
        wmat, bias = folded[li]
        stride, pad, ms, ns = layer_cfg[li]
        patches, ho, wo = extract_patches(x, 4, stride, pad)
        y = fused_matmul(patches, wmat, bias, alpha=0.2,
                         m_split=ms, n_split=ns)
        x = y.reshape(n, ho, wo, wmat.shape[1])
    # Final conv covers the whole 4x4 map (stride 1, no pad): im2col is just a
    # reshape; compute as a per-row dot product.
    w5, _ = folded[4]
    logits = final_dot(x.reshape(n, -1), w5)       # (n, 1) f32
    return jnp.squeeze(logits)                     # matches torch.squeeze


if __name__ == "__main__":
    key = jax.random.PRNGKey(0)
    kp, kx = jax.random.split(key)
    params = init_params(kp)
    folded = fold_params(params)
    # DCGAN discriminator needs 64x64 input to reach a 1x1 final conv.
    x = jax.random.normal(kx, (2, NC, 64, 64), jnp.float32)

    fwd = jax.jit(discriminator_forward)
    out = jax.block_until_ready(fwd(x, folded))
    assert out.shape == (2,), out.shape
    assert bool(jnp.all(jnp.isfinite(out)))
    print("KERNEL_OK")
</pallas_src>

<mosaic_0001>
module attributes {stable_mosaic.version = 11 : i64} {
  func.func @_matmul_act_kernel(%arg0: i32, %arg1: i32, %arg2: memref<1024x48xbf16, #tpu.memory_space<vmem>>, %arg3: memref<48x64xbf16, #tpu.memory_space<vmem>>, %arg4: memref<1024x64xbf16, #tpu.memory_space<vmem>>) attributes {dimension_semantics = [#tpu.dimension_semantics<parallel>, #tpu.dimension_semantics<parallel>], iteration_bounds = array<i64: 2, 1>, scalar_prefetch = 0 : i64, scratch_operands = 0 : i64, tpu.core_type = #tpu.core_type<tc>, window_params = [{transform_indices = @transform_0, window_bounds = array<i64: 1024, 48>}, {transform_indices = @transform_1, window_bounds = array<i64: 48, 64>}, {transform_indices = @transform_2, window_bounds = array<i64: 1024, 64>}]} {
    %c0 = arith.constant 0 : index
    %c0_0 = arith.constant 0 : index
    %0 = vector.load %arg2[%c0, %c0_0] : memref<1024x48xbf16, #tpu.memory_space<vmem>>, vector<1024x48xbf16>
    %c0_1 = arith.constant 0 : index
    %c0_2 = arith.constant 0 : index
    %1 = vector.load %arg3[%c0_1, %c0_2] : memref<48x64xbf16, #tpu.memory_space<vmem>>, vector<48x64xbf16>
    %cst = arith.constant dense<0.000000e+00> : vector<1024x64xf32>
    %2 = tpu.matmul %0, %1, %cst {dimension_numbers = #tpu.dot_dimension_numbers<[1], [0], [0], [1], [0, 0, 1, 1], [], []>} : vector<1024x48xbf16>, vector<48x64xbf16>, vector<1024x64xf32> -> vector<1024x64xf32>
    %cst_3 = arith.constant 2.000000e-01 : f32
    %3 = vector.broadcast %cst_3 : f32 to vector<1024x64xf32>
    %4 = arith.mulf %3, %2 : vector<1024x64xf32>
    %5 = arith.maximumf %2, %4 : vector<1024x64xf32>
    %6 = arith.truncf %5 : vector<1024x64xf32> to vector<1024x64xbf16>
    %c0_4 = arith.constant 0 : index
    %c0_5 = arith.constant 0 : index
    %7 = vector.load %arg4[%c0_4, %c0_5] : memref<1024x64xbf16, #tpu.memory_space<vmem>>, vector<1024x64xbf16>
    tpu.vector_store %arg4[%c0_4, %c0_5], %6 {strides = array<i32>} : memref<1024x64xbf16, #tpu.memory_space<vmem>>, vector<1024x64xbf16>,
    return
  }
  func.func @transform_0(%arg0: i32, %arg1: i32) -> (i32, i32) {
    %c0_i32 = arith.constant 0 : i32
    %c0_i32_0 = arith.constant 0 : i32
    return %arg0, %c0_i32 : i32, i32
  }
  func.func @transform_1(%arg0: i32, %arg1: i32) -> (i32, i32) {
    %c0_i32 = arith.constant 0 : i32
    %c0_i32_0 = arith.constant 0 : i32
    return %c0_i32, %arg1 : i32, i32
  }
  func.func @transform_2(%arg0: i32, %arg1: i32) -> (i32, i32) {
    %c0_i32 = arith.constant 0 : i32
    return %arg0, %arg1 : i32, i32
  }
}

module attributes {stable_mosaic.version = 11 : i64} {
  func.func @_matmul_act_kernel(%arg0: i32, %arg1: i32, %arg2: memref<256x1024xbf16, #tpu.memory_space<vmem>>, %arg3: memref<1024x128xbf16, #tpu.memory_space<vmem>>, %arg4: memref<1x128xf32, #tpu.memory_space<vmem>>, %arg5: memref<256x128xbf16, #tpu.memory_space<vmem>>) attributes {dimension_semantics = [#tpu.dimension_semantics<parallel>, #tpu.dimension_semantics<parallel>], iteration_bounds = array<i64: 2, 1>, scalar_prefetch = 0 : i64, scratch_operands = 0 : i64, tpu.core_type = #tpu.core_type<tc>, window_params = [{transform_indices = @transform_0, window_bounds = array<i64: 256, 1024>}, {transform_indices = @transform_1, window_bounds = array<i64: 1024, 128>}, {transform_indices = @transform_2, window_bounds = array<i64: 1, 128>}, {transform_indices = @transform_3, window_bounds = array<i64: 256, 128>}]} {
    %c0 = arith.constant 0 : index
    %c0_0 = arith.constant 0 : index
    %0 = vector.load %arg2[%c0, %c0_0] : memref<256x1024xbf16, #tpu.memory_space<vmem>>, vector<256x1024xbf16>
    %c0_1 = arith.constant 0 : index
    %c0_2 = arith.constant 0 : index
    %1 = vector.load %arg3[%c0_1, %c0_2] : memref<1024x128xbf16, #tpu.memory_space<vmem>>, vector<1024x128xbf16>
    %cst = arith.constant dense<0.000000e+00> : vector<256x128xf32>
    %2 = tpu.matmul %0, %1, %cst {dimension_numbers = #tpu.dot_dimension_numbers<[1], [0], [0], [1], [0, 0, 1, 1], [], []>} : vector<256x1024xbf16>, vector<1024x128xbf16>, vector<256x128xf32> -> vector<256x128xf32>
    %c0_3 = arith.constant 0 : index
    %c0_4 = arith.constant 0 : index
    %3 = vector.load %arg4[%c0_3, %c0_4] : memref<1x128xf32, #tpu.memory_space<vmem>>, vector<1x128xf32>
    %4 = vector.broadcast %3 : vector<1x128xf32> to vector<256x128xf32>
    %5 = arith.addf %2, %4 : vector<256x128xf32>
    %cst_5 = arith.constant 2.000000e-01 : f32
    %6 = vector.broadcast %cst_5 : f32 to vector<256x128xf32>
    %7 = arith.mulf %6, %5 : vector<256x128xf32>
    %8 = arith.maximumf %5, %7 : vector<256x128xf32>
    %9 = arith.truncf %8 : vector<256x128xf32> to vector<256x128xbf16>
    %c0_6 = arith.constant 0 : index
    %c0_7 = arith.constant 0 : index
    %10 = vector.load %arg5[%c0_6, %c0_7] : memref<256x128xbf16, #tpu.memory_space<vmem>>, vector<256x128xbf16>
    tpu.vector_store %arg5[%c0_6, %c0_7], %9 {strides = array<i32>} : memref<256x128xbf16, #tpu.memory_space<vmem>>, vector<256x128xbf16>,
    return
  }
  func.func @transform_0(%arg0: i32, %arg1: i32) -> (i32, i32) {
    %c0_i32 = arith.constant 0 : i32
    %c0_i32_0 = arith.constant 0 : i32
    return %arg0, %c0_i32 : i32, i32
  }
  func.func @transform_1(%arg0: i32, %arg1: i32) -> (i32, i32) {
    %c0_i32 = arith.constant 0 : i32
    %c0_i32_0 = arith.constant 0 : i32
    return %c0_i32, %arg1 : i32, i32
  }
  func.func @transform_2(%arg0: i32, %arg1: i32) -> (i32, i32) {
    %c0_i32 = arith.constant 0 : i32
    %c0_i32_0 = arith.constant 0 : i32
    return %c0_i32, %arg1 : i32, i32
  }
  func.func @transform_3(%arg0: i32, %arg1: i32) -> (i32, i32) {
    %c0_i32 = arith.constant 0 : i32
    return %arg0, %arg1 : i32, i32
  }
}

module attributes {stable_mosaic.version = 11 : i64} {
  func.func @_matmul_act_kernel(%arg0: i32, %arg1: i32, %arg2: memref<128x2048xbf16, #tpu.memory_space<vmem>>, %arg3: memref<2048x128xbf16, #tpu.memory_space<vmem>>, %arg4: memref<1x128xf32, #tpu.memory_space<vmem>>, %arg5: memref<128x128xbf16, #tpu.memory_space<vmem>>) attributes {dimension_semantics = [#tpu.dimension_semantics<parallel>, #tpu.dimension_semantics<parallel>], iteration_bounds = array<i64: 1, 2>, scalar_prefetch = 0 : i64, scratch_operands = 0 : i64, tpu.core_type = #tpu.core_type<tc>, window_params = [{transform_indices = @transform_0, window_bounds = array<i64: 128, 2048>}, {transform_indices = @transform_1, window_bounds = array<i64: 2048, 128>}, {transform_indices = @transform_2, window_bounds = array<i64: 1, 128>}, {transform_indices = @transform_3, window_bounds = array<i64: 128, 128>}]} {
    %c0 = arith.constant 0 : index
    %c0_0 = arith.constant 0 : index
    %0 = vector.load %arg2[%c0, %c0_0] : memref<128x2048xbf16, #tpu.memory_space<vmem>>, vector<128x2048xbf16>
    %c0_1 = arith.constant 0 : index
    %c0_2 = arith.constant 0 : index
    %1 = vector.load %arg3[%c0_1, %c0_2] : memref<2048x128xbf16, #tpu.memory_space<vmem>>, vector<2048x128xbf16>
    %cst = arith.constant dense<0.000000e+00> : vector<128x128xf32>
    %2 = tpu.matmul %0, %1, %cst {dimension_numbers = #tpu.dot_dimension_numbers<[1], [0], [0], [1], [0, 0, 1, 1], [], []>} : vector<128x2048xbf16>, vector<2048x128xbf16>, vector<128x128xf32> -> vector<128x128xf32>
    %c0_3 = arith.constant 0 : index
    %c0_4 = arith.constant 0 : index
    %3 = vector.load %arg4[%c0_3, %c0_4] : memref<1x128xf32, #tpu.memory_space<vmem>>, vector<1x128xf32>
    %4 = vector.broadcast %3 : vector<1x128xf32> to vector<128x128xf32>
    %5 = arith.addf %2, %4 : vector<128x128xf32>
    %cst_5 = arith.constant 2.000000e-01 : f32
    %6 = vector.broadcast %cst_5 : f32 to vector<128x128xf32>
    %7 = arith.mulf %6, %5 : vector<128x128xf32>
    %8 = arith.maximumf %5, %7 : vector<128x128xf32>
    %9 = arith.truncf %8 : vector<128x128xf32> to vector<128x128xbf16>
    %c0_6 = arith.constant 0 : index
    %c0_7 = arith.constant 0 : index
    %10 = vector.load %arg5[%c0_6, %c0_7] : memref<128x128xbf16, #tpu.memory_space<vmem>>, vector<128x128xbf16>
    tpu.vector_store %arg5[%c0_6, %c0_7], %9 {strides = array<i32>} : memref<128x128xbf16, #tpu.memory_space<vmem>>, vector<128x128xbf16>,
    return
  }
  func.func @transform_0(%arg0: i32, %arg1: i32) -> (i32, i32) {
    %c0_i32 = arith.constant 0 : i32
    %c0_i32_0 = arith.constant 0 : i32
    return %arg0, %c0_i32 : i32, i32
  }
  func.func @transform_1(%arg0: i32, %arg1: i32) -> (i32, i32) {
    %c0_i32 = arith.constant 0 : i32
    %c0_i32_0 = arith.constant 0 : i32
    return %c0_i32, %arg1 : i32, i32
  }
  func.func @transform_2(%arg0: i32, %arg1: i32) -> (i32, i32) {
    %c0_i32 = arith.constant 0 : i32
    %c0_i32_0 = arith.constant 0 : i32
    return %c0_i32, %arg1 : i32, i32
  }
  func.func @transform_3(%arg0: i32, %arg1: i32) -> (i32, i32) {
    %c0_i32 = arith.constant 0 : i32
    return %arg0, %arg1 : i32, i32
  }
}

module attributes {stable_mosaic.version = 11 : i64} {
  func.func @_matmul_act_kernel(%arg0: i32, %arg1: i32, %arg2: memref<32x4096xbf16, #tpu.memory_space<vmem>>, %arg3: memref<4096x256xbf16, #tpu.memory_space<vmem>>, %arg4: memref<1x256xf32, #tpu.memory_space<vmem>>, %arg5: memref<32x256xbf16, #tpu.memory_space<vmem>>) attributes {dimension_semantics = [#tpu.dimension_semantics<parallel>, #tpu.dimension_semantics<parallel>], iteration_bounds = array<i64: 1, 2>, scalar_prefetch = 0 : i64, scratch_operands = 0 : i64, tpu.core_type = #tpu.core_type<tc>, window_params = [{transform_indices = @transform_0, window_bounds = array<i64: 32, 4096>}, {transform_indices = @transform_1, window_bounds = array<i64: 4096, 256>}, {transform_indices = @transform_2, window_bounds = array<i64: 1, 256>}, {transform_indices = @transform_3, window_bounds = array<i64: 32, 256>}]} {
    %c0 = arith.constant 0 : index
    %c0_0 = arith.constant 0 : index
    %0 = vector.load %arg2[%c0, %c0_0] : memref<32x4096xbf16, #tpu.memory_space<vmem>>, vector<32x4096xbf16>
    %c0_1 = arith.constant 0 : index
    %c0_2 = arith.constant 0 : index
    %1 = vector.load %arg3[%c0_1, %c0_2] : memref<4096x256xbf16, #tpu.memory_space<vmem>>, vector<4096x256xbf16>
    %cst = arith.constant dense<0.000000e+00> : vector<32x256xf32>
    %2 = tpu.matmul %0, %1, %cst {dimension_numbers = #tpu.dot_dimension_numbers<[1], [0], [0], [1], [0, 0, 1, 1], [], []>} : vector<32x4096xbf16>, vector<4096x256xbf16>, vector<32x256xf32> -> vector<32x256xf32>
    %c0_3 = arith.constant 0 : index
    %c0_4 = arith.constant 0 : index
    %3 = vector.load %arg4[%c0_3, %c0_4] : memref<1x256xf32, #tpu.memory_space<vmem>>, vector<1x256xf32>
    %4 = vector.broadcast %3 : vector<1x256xf32> to vector<32x256xf32>
    %5 = arith.addf %2, %4 : vector<32x256xf32>
    %cst_5 = arith.constant 2.000000e-01 : f32
    %6 = vector.broadcast %cst_5 : f32 to vector<32x256xf32>
    %7 = arith.mulf %6, %5 : vector<32x256xf32>
    %8 = arith.maximumf %5, %7 : vector<32x256xf32>
    %9 = arith.truncf %8 : vector<32x256xf32> to vector<32x256xbf16>
    %c0_6 = arith.constant 0 : index
    %c0_7 = arith.constant 0 : index
    %10 = vector.load %arg5[%c0_6, %c0_7] : memref<32x256xbf16, #tpu.memory_space<vmem>>, vector<32x256xbf16>
    tpu.vector_store %arg5[%c0_6, %c0_7], %9 {strides = array<i32>} : memref<32x256xbf16, #tpu.memory_space<vmem>>, vector<32x256xbf16>,
    return
  }
  func.func @transform_0(%arg0: i32, %arg1: i32) -> (i32, i32) {
    %c0_i32 = arith.constant 0 : i32
    %c0_i32_0 = arith.constant 0 : i32
    return %arg0, %c0_i32 : i32, i32
  }
  func.func @transform_1(%arg0: i32, %arg1: i32) -> (i32, i32) {
    %c0_i32 = arith.constant 0 : i32
    %c0_i32_0 = arith.constant 0 : i32
    return %c0_i32, %arg1 : i32, i32
  }
  func.func @transform_2(%arg0: i32, %arg1: i32) -> (i32, i32) {
    %c0_i32 = arith.constant 0 : i32
    %c0_i32_0 = arith.constant 0 : i32
    return %c0_i32, %arg1 : i32, i32
  }
  func.func @transform_3(%arg0: i32, %arg1: i32) -> (i32, i32) {
    %c0_i32 = arith.constant 0 : i32
    return %arg0, %arg1 : i32, i32
  }
}

module attributes {stable_mosaic.version = 11 : i64} {
  func.func @_final_dot_kernel(%arg0: i32, %arg1: memref<2x8192xbf16, #tpu.memory_space<vmem>>, %arg2: memref<1x8192xbf16, #tpu.memory_space<vmem>>, %arg3: memref<2x1xf32, #tpu.memory_space<vmem>>) attributes {dimension_semantics = [#tpu.dimension_semantics<arbitrary>], iteration_bounds = array<i64: 1>, scalar_prefetch = 0 : i64, scratch_operands = 0 : i64, tpu.core_type = #tpu.core_type<tc>, window_params = [{pipeline_mode = #tpu.pipeline_mode<synchronous>, transform_indices = @transform_0, window_bounds = array<i64: 2, 8192>}, {pipeline_mode = #tpu.pipeline_mode<synchronous>, transform_indices = @transform_1, window_bounds = array<i64: 1, 8192>}, {pipeline_mode = #tpu.pipeline_mode<synchronous>, transform_indices = @transform_2, window_bounds = array<i64: 2, 1>}]} {
    %c0 = arith.constant 0 : index
    %c0_0 = arith.constant 0 : index
    %0 = vector.load %arg1[%c0, %c0_0] : memref<2x8192xbf16, #tpu.memory_space<vmem>>, vector<2x8192xbf16>
    %1 = arith.extf %0 : vector<2x8192xbf16> to vector<2x8192xf32>
    %c0_1 = arith.constant 0 : index
    %c0_2 = arith.constant 0 : index
    %2 = vector.load %arg2[%c0_1, %c0_2] : memref<1x8192xbf16, #tpu.memory_space<vmem>>, vector<1x8192xbf16>
    %3 = arith.extf %2 : vector<1x8192xbf16> to vector<1x8192xf32>
    %4 = vector.broadcast %3 : vector<1x8192xf32> to vector<2x8192xf32>
    %5 = arith.mulf %1, %4 : vector<2x8192xf32>
    %cst = arith.constant dense<0.000000e+00> : vector<2xf32>
    %6 = vector.multi_reduction <add>, %5, %cst [1] : vector<2x8192xf32> to vector<2xf32>
    %7 = vector.shape_cast %6 : vector<2xf32> to vector<2x1xf32>
    %c0_3 = arith.constant 0 : index
    %c0_4 = arith.constant 0 : index
    %8 = vector.load %arg3[%c0_3, %c0_4] : memref<2x1xf32, #tpu.memory_space<vmem>>, vector<2x1xf32>
    tpu.vector_store %arg3[%c0_3, %c0_4], %7 {strides = array<i32>} : memref<2x1xf32, #tpu.memory_space<vmem>>, vector<2x1xf32>,
    return
  }
  func.func @transform_0(%arg0: i32) -> (i32, i32) {
    %c0_i32 = arith.constant 0 : i32
    %c0_i32_0 = arith.constant 0 : i32
    %c0_i32_1 = arith.constant 0 : i32
    return %c0_i32, %c0_i32_0 : i32, i32
  }
  func.func @transform_1(%arg0: i32) -> (i32, i32) {
    %c0_i32 = arith.constant 0 : i32
    %c0_i32_0 = arith.constant 0 : i32
    %c0_i32_1 = arith.constant 0 : i32
    return %c0_i32, %c0_i32_0 : i32, i32
  }
  func.func @transform_2(%arg0: i32) -> (i32, i32) {
    %c0_i32 = arith.constant 0 : i32
    %c0_i32_0 = arith.constant 0 : i32
    %c0_i32_1 = arith.constant 0 : i32
    return %c0_i32, %c0_i32_0 : i32, i32
  }
}

</mosaic_0001>

<bundles_post_ra>
// kernel: discriminator_forward.5
= control target key start
LH: loop header
LB: loop body
LE: loop exit
PB: predicated region body
PF: predicated region fallthrough
CT: control target
= control target key end

     0   :  { %s3118_s9 = smov 0   ;;  %s3120_s10 = smov 0   ;;  %s3555_s0 = inlined_call_operand.vmem [shape: bf16[2048,48], index: 0, kind: input, shape index: {}]   ;;  %s3556_s1 = inlined_call_operand.vmem [shape: bf16[48,64], index: 1, kind: input, shape index: {}]   ;;  %s3557_s2 = inlined_call_operand.vmem [shape: bf16[2048,64], index: 2, kind: output, shape index: {}]  }
   0x1   :  { %s3122_s11 = smov 0  }
   0x2 LB: > { %s24_s12 = sadd.s32 1, %s3097_s10  ;;  %p2387_p0 = scmp.ge.s32.totalorder %s3101_s11, 1  ;;  %s3101_s11 = sphi %s3122_s11, %s12_s11   ;;  %s3097_s10 = sphi %s3120_s10, %s3559_s10   ;;  %s3093_s9 = sphi %s3118_s9, %s3558_s9  }
   0x3   : > { %p26_p1 = scmp.ge.s32.totalorder %s24_s12, 2  ;;  %p136_p2 = scmp.lt.s32.totalorder %s3101_s11, 3 }
   0x5   : > { %s3561_s12 = smov (%p26_p1, %s24_s12), 0  ;;  %p137_p3 = pnand %p2387_p0, %p136_p2 }
   0x6   : > { %v3012_v0 = vld [vmem:[%s3556_s1] sm:$0xff] (!%p137_p3)   ;;  %s2388_s15 = sshll.u32 (!%p137_p3), %s3093_s9, 7  ;;  %v3013_v1 = vld [vmem:[%s3556_s1 + $0x8] sm:$0xff] (!%p137_p3)   ;;  %v3014_v2 = vld [vmem:[%s3556_s1 + $0x10] sm:$0xff] (!%p137_p3)   ;;  %vm657_vm0 = vcmask (!%p137_p3), 392192   ;;  %vm2163_vm1 = vcmask (!%p137_p3), 519168  }
   0x7   : > { %140 = sbr.rel (%p137_p3) target bundleno = 364 (0x16c), region = 28  ;;  %p166_p4 = scmp.lt.s32.totalorder (!%p137_p3), %s2388_s15, 255  ;;  %2848 = vmatprep.subr.bf16.mxu0 (!%p137_p3), %v3012_v0  ;;  %2982 = vmatprep.subr.bf16.mxu1 (!%p137_p3), %v3012_v0 }
   0x8   : > { %2849 = vmatpush3.bf16.msra.mxu0 (!%p137_p3), %v3012_v0  ;;  %2985 = vmatpush3.bf16.msra.mxu1 (!%p137_p3), %v3012_v0 }
   0x9   : > { %2850 = vmatprep.subr.bf16.mxu0 (!%p137_p3), %v3013_v1  ;;  %2983 = vmatprep.subr.bf16.mxu1 (!%p137_p3), %v3013_v1 }
   0xc   : > { %2851 = vmatpush3.bf16.msra.mxu0 (!%p137_p3), %v3013_v1  ;;  %2986 = vmatpush3.bf16.msra.mxu1 (!%p137_p3), %v3013_v1 }
   0xd   : > { %2852 = vmatprep.subr.bf16.mxu0 (!%p137_p3), %v3014_v2  ;;  %2984 = vmatprep.subr.bf16.mxu1 (!%p137_p3), %v3014_v2 }
   0xe   : > { %s3563_s15 = smov (!%p166_p4, %s2388_s15), 255 }
   0xf   : > { %s2389_s20 = sshll.u32 %s3563_s15, 2 }
  0x10   : > { %s3153_s23 = scalar_lea.vmem %s3555_s0, %s2389_s20  ;;  %2853 = vmatpush3.bf16.msra.mxu0 %v3014_v2  ;;  %2987 = vmatpush3.bf16.msra.mxu1 %v3014_v2  ;;  %s3288_s26 = scalar_lea.vmem %s3557_s2, %s2389_s20 }
  0x11   : > { %v3015_v3 = vld [vmem:[%s3153_s23] sm:$0xff]   ;;  %v3017_v5 = vld [vmem:[%s3153_s23 + $0x8] sm:$0xff]   ;;  %v3019_v7 = vld [vmem:[%s3153_s23 + $0x10] sm:$0xff]  }
  0x12   : > { %v3016_v4 = vld [vmem:[%s3153_s23 + $0x100] sm:$0xff]   ;;  %2854 = vmatprep.mubr.msk.bf16.mxu0 %vm657_vm0, %v3015_v3  ;;  %v3018_v6 = vld [vmem:[%s3153_s23 + $0x108] sm:$0xff]   ;;  %v3020_v8 = vld [vmem:[%s3153_s23 + $0x110] sm:$0xff]  }
  0x13   : > { %2918 = vmatprep.mubr.msk.bf16.mxu1 %vm657_vm0, %v3016_v4  ;;  %2855 = vmatmul.mubr.msk.bf16.vlgmr.msra.gmra.mrb[0].mxu0 %vm657_vm0, %v3017_v5  ;;  %v3021_v9 = vld [vmem:[%s3153_s23 + $0x18] sm:$0xff]   ;;  %v3023_v11 = vld [vmem:[%s3153_s23 + $0x20] sm:$0xff]   ;;  %v3025_v13 = vld [vmem:[%s3153_s23 + $0x28] sm:$0xff]  }
  0x14   : > { %2919 = vmatmul.mubr.msk.bf16.vlgmr.msra.gmra.mrb[0].mxu1 %vm657_vm0, %v3018_v6  ;;  %2858 = vmatprep.mubr.msk.bf16.mxu0 %vm657_vm0, %v3019_v7  ;;  %v3022_v10 = vld [vmem:[%s3153_s23 + $0x118] sm:$0xff]   ;;  %v3024_v12 = vld [vmem:[%s3153_s23 + $0x120] sm:$0xff]   ;;  %v3026_v14 = vld [vmem:[%s3153_s23 + $0x128] sm:$0xff]  }
  0x15   : > { %2922 = vmatprep.mubr.msk.bf16.mxu1 %vm657_vm0, %v3020_v8  ;;  %v3027_v15 = vld [vmem:[%s3153_s23 + $0x30] sm:$0xff]   ;;  %v3029_v17 = vld [vmem:[%s3153_s23 + $0x38] sm:$0xff]   ;;  %v3031_v19 = vld [vmem:[%s3153_s23 + $0x40] sm:$0xff]  }
  0x16   : > { %v3028_v16 = vld [vmem:[%s3153_s23 + $0x130] sm:$0xff]   ;;  %v3030_v18 = vld [vmem:[%s3153_s23 + $0x138] sm:$0xff]   ;;  %v3032_v20 = vld [vmem:[%s3153_s23 + $0x140] sm:$0xff]  }
  0x17   : > { %v3033_v21 = vld [vmem:[%s3153_s23 + $0x48] sm:$0xff]   ;;  %v3035_v23 = vld [vmem:[%s3153_s23 + $0x50] sm:$0xff]   ;;  %v3037_v25 = vld [vmem:[%s3153_s23 + $0x58] sm:$0xff]  }
  0x18   : > { %v3034_v22 = vld [vmem:[%s3153_s23 + $0x148] sm:$0xff]   ;;  %v3036_v24 = vld [vmem:[%s3153_s23 + $0x150] sm:$0xff]   ;;  %v3038_v26 = vld [vmem:[%s3153_s23 + $0x158] sm:$0xff]  }
  0x19   : > { %v3039_v27 = vld [vmem:[%s3153_s23 + $0x60] sm:$0xff]   ;;  %v3041_v29 = vld [vmem:[%s3153_s23 + $0x68] sm:$0xff]   ;;  %v3043_v31 = vld [vmem:[%s3153_s23 + $0x70] sm:$0xff]  }
  0x1a   : > { %v3040_v28 = vld [vmem:[%s3153_s23 + $0x160] sm:$0xff]   ;;  %v3042_v30 = vld [vmem:[%s3153_s23 + $0x168] sm:$0xff]   ;;  %v3044_v32 = vld [vmem:[%s3153_s23 + $0x170] sm:$0xff]  }
  0x1b   : > { %2859 = vmatmul.mubr.msk.bf16.gmra.mrb[4].mxu0 %vm657_vm0, %v3021_v9  ;;  %v3045_v33 = vld [vmem:[%s3153_s23 + $0x78] sm:$0xff]   ;;  %v3047_v35 = vld [vmem:[%s3153_s23 + $0x80] sm:$0xff]   ;;  %v3049_v37 = vld [vmem:[%s3153_s23 + $0x88] sm:$0xff]  }
  0x1c   : > { %2923 = vmatmul.mubr.msk.bf16.gmra.mrb[4].mxu1 %vm657_vm0, %v3022_v10  ;;  %2862 = vmatprep.mubr.msk.bf16.mxu0 %vm657_vm0, %v3023_v11  ;;  %v3046_v34 = vld [vmem:[%s3153_s23 + $0x178] sm:$0xff]   ;;  %v3048_v36 = vld [vmem:[%s3153_s23 + $0x180] sm:$0xff]   ;;  %v3050_v38 = vld [vmem:[%s3153_s23 + $0x188] sm:$0xff]  }
  0x1d   : > { %2926 = vmatprep.mubr.msk.bf16.mxu1 %vm657_vm0, %v3024_v12  ;;  %v3051_v39 = vld [vmem:[%s3153_s23 + $0x90] sm:$0xff]   ;;  %v3053_v41 = vld [vmem:[%s3153_s23 + $0x98] sm:$0xff]   ;;  %v3055_v43 = vld [vmem:[%s3153_s23 + $0xa0] sm:$0xff]  }
  0x1e   : > { %v3052_v40 = vld [vmem:[%s3153_s23 + $0x190] sm:$0xff]   ;;  %v3054_v42 = vld [vmem:[%s3153_s23 + $0x198] sm:$0xff]   ;;  %v3056_v44 = vld [vmem:[%s3153_s23 + $0x1a0] sm:$0xff]  }
  0x1f   : > { %v3057_v45 = vld [vmem:[%s3153_s23 + $0xa8] sm:$0xff]   ;;  %v3059_v47 = vld [vmem:[%s3153_s23 + $0xb0] sm:$0xff]   ;;  %v3061_v49 = vld [vmem:[%s3153_s23 + $0xb8] sm:$0xff]  }
  0x20   : > { %v3058_v46 = vld [vmem:[%s3153_s23 + $0x1a8] sm:$0xff]   ;;  %v3060_v48 = vld [vmem:[%s3153_s23 + $0x1b0] sm:$0xff]   ;;  %v3062_v50 = vld [vmem:[%s3153_s23 + $0x1b8] sm:$0xff]  }
  0x21   : > { %v3063_v51 = vld [vmem:[%s3153_s23 + $0xc0] sm:$0xff]   ;;  %v3065_v53 = vld [vmem:[%s3153_s23 + $0xc8] sm:$0xff]   ;;  %v3067_v55 = vld [vmem:[%s3153_s23 + $0xd0] sm:$0xff]  }
  0x22   : > { %v3064_v52 = vld [vmem:[%s3153_s23 + $0x1c0] sm:$0xff]   ;;  %v3066_v54 = vld [vmem:[%s3153_s23 + $0x1c8] sm:$0xff]   ;;  %v3068_v56 = vld [vmem:[%s3153_s23 + $0x1d0] sm:$0xff]  }
  0x23   : > { %2863 = vmatmul.mubr.msk.bf16.gmra.mrb[8].mxu0 %vm657_vm0, %v3025_v13  ;;  %v3069_v57 = vld [vmem:[%s3153_s23 + $0xd8] sm:$0xff]   ;;  %v3071_v59 = vld [vmem:[%s3153_s23 + $0xe0] sm:$0xff]   ;;  %v3073_v61 = vld [vmem:[%s3153_s23 + $0xe8] sm:$0xff]  }
  0x24   : > { %2927 = vmatmul.mubr.msk.bf16.gmra.mrb[8].mxu1 %vm657_vm0, %v3026_v14  ;;  %2866 = vmatprep.mubr.msk.bf16.mxu0 %vm657_vm0, %v3027_v15  ;;  %v3070_v58 = vld [vmem:[%s3153_s23 + $0x1d8] sm:$0xff]   ;;  %v3072_v60 = vld [vmem:[%s3153_s23 + $0x1e0] sm:$0xff]   ;;  %v3074_v62 = vld [vmem:[%s3153_s23 + $0x1e8] sm:$0xff]  }
  0x25   : > { %2930 = vmatprep.mubr.msk.bf16.mxu1 %vm657_vm0, %v3028_v16  ;;  %v3075_v63 = vld [vmem:[%s3153_s23 + $0xf0] sm:$0xff]   ;;  %v3077_v1 = vld [vmem:[%s3153_s23 + $0xf8] sm:$0xff]  }
  0x26   : > { %v3076_v0 = vld [vmem:[%s3153_s23 + $0x1f0] sm:$0xff]   ;;  %v3078_v2 = vld [vmem:[%s3153_s23 + $0x1f8] sm:$0xff]  }
  0x2b   : > { %2867 = vmatmul.mubr.msk.bf16.gmra.mrb[12].mxu0 %vm657_vm0, %v3029_v17 }
  0x2c   : > { %2931 = vmatmul.mubr.msk.bf16.gmra.mrb[12].mxu1 %vm657_vm0, %v3030_v18  ;;  %2870 = vmatprep.mubr.msk.bf16.mxu0 %vm657_vm0, %v3031_v19 }
  0x2d   : > { %2934 = vmatprep.mubr.msk.bf16.mxu1 %vm657_vm0, %v3032_v20 }
  0x33   : > { %2871 = vmatmul.mubr.msk.bf16.gmra.mrb[16].mxu0 %vm657_vm0, %v3033_v21 }
  0x34   : > { %2935 = vmatmul.mubr.msk.bf16.gmra.mrb[16].mxu1 %vm657_vm0, %v3034_v22  ;;  %2874 = vmatprep.mubr.msk.bf16.mxu0 %vm657_vm0, %v3035_v23 }
  0x35   : > { %2938 = vmatprep.mubr.msk.bf16.mxu1 %vm657_vm0, %v3036_v24 }
  0x3b   : > { %2875 = vmatmul.mubr.msk.bf16.gmra.mrb[20].mxu0 %vm657_vm0, %v3037_v25 }
  0x3c   : > { %2939 = vmatmul.mubr.msk.bf16.gmra.mrb[20].mxu1 %vm657_vm0, %v3038_v26  ;;  %2878 = vmatprep.mubr.msk.bf16.mxu0 %vm657_vm0, %v3039_v27 }
  0x3d   : > { %2942 = vmatprep.mubr.msk.bf16.mxu1 %vm657_vm0, %v3040_v28 }
  0x43   : > { %2879 = vmatmul.mubr.msk.bf16.gmra.mrb[24].mxu0 %vm657_vm0, %v3041_v29 }
  0x44   : > { %2943 = vmatmul.mubr.msk.bf16.gmra.mrb[24].mxu1 %vm657_vm0, %v3042_v30  ;;  %2882 = vmatprep.mubr.msk.bf16.mxu0 %vm657_vm0, %v3043_v31 }
  0x45   : > { %2946 = vmatprep.mubr.msk.bf16.mxu1 %vm657_vm0, %v3044_v32 }
  0x4b   : > { %2883 = vmatmul.mubr.msk.bf16.gmra.mrb[28].mxu0 %vm657_vm0, %v3045_v33 }
  0x4c   : > { %2947 = vmatmul.mubr.msk.bf16.gmra.mrb[28].mxu1 %vm657_vm0, %v3046_v34  ;;  %2886 = vmatprep.mubr.msk.bf16.mxu0 %vm657_vm0, %v3047_v35 }
  0x4d   : > { %2950 = vmatprep.mubr.msk.bf16.mxu1 %vm657_vm0, %v3048_v36 }
  0x53   : > { %2887 = vmatmul.mubr.msk.bf16.gmra.mrb[32].mxu0 %vm657_vm0, %v3049_v37 }
  0x54   : > { %2951 = vmatmul.mubr.msk.bf16.gmra.mrb[32].mxu1 %vm657_vm0, %v3050_v38  ;;  %2890 = vmatprep.mubr.msk.bf16.mxu0 %vm657_vm0, %v3051_v39 }
  0x55   : > { %2954 = vmatprep.mubr.msk.bf16.mxu1 %vm657_vm0, %v3052_v40 }
  0x5b   : > { %2891 = vmatmul.mubr.msk.bf16.gmra.mrb[36].mxu0 %vm657_vm0, %v3053_v41 }
  0x5c   : > { %2955 = vmatmul.mubr.msk.bf16.gmra.mrb[36].mxu1 %vm657_vm0, %v3054_v42  ;;  %2894 = vmatprep.mubr.msk.bf16.mxu0 %vm657_vm0, %v3055_v43 }
  0x5d   : > { %2958 = vmatprep.mubr.msk.bf16.mxu1 %vm657_vm0, %v3056_v44 }
  0x63   : > { %2895 = vmatmul.mubr.msk.bf16.gmra.mrb[40].mxu0 %vm657_vm0, %v3057_v45 }
  0x64   : > { %2959 = vmatmul.mubr.msk.bf16.gmra.mrb[40].mxu1 %vm657_vm0, %v3058_v46  ;;  %2898 = vmatprep.mubr.msk.bf16.mxu0 %vm657_vm0, %v3059_v47 }
  0x65   : > { %2962 = vmatprep.mubr.msk.bf16.mxu1 %vm657_vm0, %v3060_v48 }
  0x6b   : > { %2899 = vmatmul.mubr.msk.bf16.gmra.mrb[44].mxu0 %vm657_vm0, %v3061_v49 }
  0x6c   : > { %2963 = vmatmul.mubr.msk.bf16.gmra.mrb[44].mxu1 %vm657_vm0, %v3062_v50  ;;  %2902 = vmatprep.mubr.msk.bf16.mxu0 %vm657_vm0, %v3063_v51 }
  0x6d   : > { %2966 = vmatprep.mubr.msk.bf16.mxu1 %vm657_vm0, %v3064_v52 }
  0x73   : > { %2903 = vmatmul.mubr.msk.bf16.gmra.mrb[48].mxu0 %vm657_vm0, %v3065_v53 }
  0x74   : > { %2967 = vmatmul.mubr.msk.bf16.gmra.mrb[48].mxu1 %vm657_vm0, %v3066_v54  ;;  %2906 = vmatprep.mubr.msk.bf16.mxu0 %vm657_vm0, %v3067_v55 }
  0x75   : > { %2970 = vmatprep.mubr.msk.bf16.mxu1 %vm657_vm0, %v3068_v56 }
  0x7b   : > { %2907 = vmatmul.mubr.msk.bf16.gmra.mrb[52].mxu0 %vm657_vm0, %v3069_v57 }
  0x7c   : > { %2971 = vmatmul.mubr.msk.bf16.gmra.mrb[52].mxu1 %vm657_vm0, %v3070_v58  ;;  %2910 = vmatprep.mubr.msk.bf16.mxu0 %vm657_vm0, %v3071_v59 }
  0x7d   : > { %2974 = vmatprep.mubr.msk.bf16.mxu1 %vm657_vm0, %v3072_v60 }
  0x83   : > { %2911 = vmatmul.mubr.msk.bf16.gmra.mrb[56].mxu0 %vm657_vm0, %v3073_v61 }
  0x84   : > { %2975 = vmatmul.mubr.msk.bf16.gmra.mrb[56].mxu1 %vm657_vm0, %v3074_v62  ;;  %2914 = vmatprep.mubr.msk.bf16.mxu0 %vm657_vm0, %v3075_v63 }
  0x85   : > { %2978 = vmatprep.mubr.msk.bf16.mxu1 %vm657_vm0, %v3076_v0 }
  0x8b   : > { %2915 = vmatmul.mubr.msk.bf16.gmra.mrb[60].mxu0 %vm657_vm0, %v3077_v1 }
  0x8c   : > { %2979 = vmatmul.mubr.msk.bf16.gmra.mrb[60].mxu1 %vm657_vm0, %v3078_v2 }
  0xe6   : > { %v2856_v3 = vpop.f32.mrb[0].mxu0 }
  0xe7   : > { %v2920_v4 = vpop.f32.mrb[0].mxu1  ;;  %v1397_v5 = vmul.f32 0.2, %v2856_v3  ;;  %v884_v7 = vpop.f32.mrb[1].mxu0 }
  0xe8   : > { %v1461_v6 = vmul.f32 0.2, %v2920_v4  ;;  %v1140_v8 = vpop.f32.mrb[1].mxu1  ;;  %v1395_v9 = vmul.f32 0.2, %v884_v7  ;;  %v2857_v11 = vpop.f32.mrb[2].mxu0 }
  0xe9   : > { %v1459_v10 = vmul.f32 0.2, %v1140_v8  ;;  %v2921_v12 = vpop.f32.mrb[2].mxu1  ;;  %v1525_v13 = vmax.f32 %v2856_v3, %v1397_v5  ;;  %v1398_v15 = vmul.f32 0.2, %v2857_v11  ;;  %v887_v17 = vpop.f32.mrb[3].mxu0 }
  0xea   : > { %v1589_v14 = vmax.f32 %v2920_v4, %v1461_v6  ;;  %v1462_v16 = vmul.f32 0.2, %v2921_v12  ;;  %v1143_v18 = vpop.f32.mrb[3].mxu1  ;;  %v1523_v19 = vmax.f32 %v884_v7, %v1395_v9  ;;  %v1396_v21 = vmul.f32 0.2, %v887_v17 }
  0xeb   : > { %v1587_v20 = vmax.f32 %v1140_v8, %v1459_v10  ;;  %v1460_v22 = vmul.f32 0.2, %v1143_v18  ;;  %v2655_v23 = vpack.c.bf16 %v1525_v13, %v1525_v13  ;;  %v1526_v25 = vmax.f32 %v2857_v11, %v1398_v15 }
  0xec   : > { %v2719_v24 = vpack.c.bf16 %v1589_v14, %v1589_v14  ;;  %v1590_v26 = vmax.f32 %v2921_v12, %v1462_v16  ;;  %v2653_v27 = vpack.c.bf16 %v1523_v19, %v1523_v19  ;;  %v1524_v29 = vmax.f32 %v887_v17, %v1396_v21 }
  0xed   : > { %v2717_v28 = vpack.c.bf16 %v1587_v20, %v1587_v20  ;;  %v1588_v30 = vmax.f32 %v1143_v18, %v1460_v22  ;;  %2166 = vst.msk [vmem:[%s3288_s26 + $0x8] sm:$0xf] %vm2163_vm1, %v2655_v23  ;;  %v2656_v31 = vpack.c.bf16 %v1526_v25, %v1526_v25 }
  0xee   : > { %2230 = vst.msk [vmem:[%s3288_s26 + $0x108] sm:$0xf] %vm2163_vm1, %v2719_v24  ;;  %v2720_v32 = vpack.c.bf16 %v1590_v26, %v1590_v26  ;;  %2164 = vst.msk [vmem:[%s3288_s26] sm:$0xf] %vm2163_vm1, %v2653_v27  ;;  %v2654_v33 = vpack.c.bf16 %v1524_v29, %v1524_v29  ;;  %v2860_v35 = vpop.f32.mrb[4].mxu0 }
  0xef   : > { %2228 = vst.msk [vmem:[%s3288_s26 + $0x100] sm:$0xf] %vm2163_vm1, %v2717_v28  ;;  %v2718_v34 = vpack.c.bf16 %v1588_v30, %v1588_v30  ;;  %v2924_v36 = vpop.f32.mrb[4].mxu1  ;;  %2167 = vst.msk [vmem:[%s3288_s26 + $0xc] sm:$0xf] %vm2163_vm1, %v2656_v31  ;;  %v900_v39 = vpop.f32.mrb[5].mxu0 }
  0xf0   : > { %2231 = vst.msk [vmem:[%s3288_s26 + $0x10c] sm:$0xf] %vm2163_vm1, %v2720_v32  ;;  %v1401_v37 = vmul.f32 0.2, %v2860_v35  ;;  %v1465_v38 = vmul.f32 0.2, %v2924_v36 }
  0xf1   : > { %v1156_v40 = vpop.f32.mrb[5].mxu1  ;;  %2165 = vst.msk [vmem:[%s3288_s26 + $0x4] sm:$0xf] %vm2163_vm1, %v2654_v33  ;;  %2229 = vst.msk [vmem:[%s3288_s26 + $0x104] sm:$0xf] %vm2163_vm1, %v2718_v34  ;;  %v2861_v43 = vpop.f32.mrb[6].mxu0 }
  0xf2   : > { %v1399_v41 = vmul.f32 0.2, %v900_v39  ;;  %v1463_v42 = vmul.f32 0.2, %v1156_v40  ;;  %v2925_v44 = vpop.f32.mrb[6].mxu1  ;;  %v1529_v45 = vmax.f32 %v2860_v35, %v1401_v37  ;;  %v1593_v46 = vmax.f32 %v2924_v36, %v1465_v38  ;;  %v903_v49 = vpop.f32.mrb[7].mxu0 }
  0xf3   : > { %v1402_v47 = vmul.f32 0.2, %v2861_v43  ;;  %v1466_v48 = vmul.f32 0.2, %v2925_v44  ;;  %v1159_v50 = vpop.f32.mrb[7].mxu1 }
  0xf4   : > { %v1527_v51 = vmax.f32 %v900_v39, %v1399_v41  ;;  %v1591_v52 = vmax.f32 %v1156_v40, %v1463_v42  ;;  %v1400_v53 = vmul.f32 0.2, %v903_v49  ;;  %v1464_v54 = vmul.f32 0.2, %v1159_v50 }
  0xf5   : > { %v2659_v55 = vpack.c.bf16 %v1529_v45, %v1529_v45  ;;  %v2723_v56 = vpack.c.bf16 %v1593_v46, %v1593_v46  ;;  %v1530_v57 = vmax.f32 %v2861_v43, %v1402_v47  ;;  %v1594_v58 = vmax.f32 %v2925_v44, %v1466_v48 }
  0xf6   : > { %v2657_v59 = vpack.c.bf16 %v1527_v51, %v1527_v51  ;;  %v2721_v60 = vpack.c.bf16 %v1591_v52, %v1591_v52  ;;  %v1528_v61 = vmax.f32 %v903_v49, %v1400_v53  ;;  %v1592_v62 = vmax.f32 %v1159_v50, %v1464_v54  ;;  %v2864_v3 = vpop.f32.mrb[8].mxu0 }
  0xf7   : > { %2170 = vst.msk [vmem:[%s3288_s26 + $0x18] sm:$0xf] %vm2163_vm1, %v2659_v55  ;;  %2234 = vst.msk [vmem:[%s3288_s26 + $0x118] sm:$0xf] %vm2163_vm1, %v2723_v56  ;;  %v2660_v63 = vpack.c.bf16 %v1530_v57, %v1530_v57  ;;  %v2724_v0 = vpack.c.bf16 %v1594_v58, %v1594_v58  ;;  %v2928_v4 = vpop.f32.mrb[8].mxu1  ;;  %v916_v7 = vpop.f32.mrb[9].mxu0 }
  0xf8   : > { %2168 = vst.msk [vmem:[%s3288_s26 + $0x10] sm:$0xf] %vm2163_vm1, %v2657_v59  ;;  %2232 = vst.msk [vmem:[%s3288_s26 + $0x110] sm:$0xf] %vm2163_vm1, %v2721_v60  ;;  %v2658_v1 = vpack.c.bf16 %v1528_v61, %v1528_v61  ;;  %v2722_v2 = vpack.c.bf16 %v1592_v62, %v1592_v62  ;;  %v1405_v5 = vmul.f32 0.2, %v2864_v3 }
  0xf9   : > { %2171 = vst.msk [vmem:[%s3288_s26 + $0x1c] sm:$0xf] %vm2163_vm1, %v2660_v63  ;;  %2235 = vst.msk [vmem:[%s3288_s26 + $0x11c] sm:$0xf] %vm2163_vm1, %v2724_v0  ;;  %v1469_v6 = vmul.f32 0.2, %v2928_v4 }
  0xfa   : > { %v1172_v8 = vpop.f32.mrb[9].mxu1  ;;  %2169 = vst.msk [vmem:[%s3288_s26 + $0x14] sm:$0xf] %vm2163_vm1, %v2658_v1  ;;  %2233 = vst.msk [vmem:[%s3288_s26 + $0x114] sm:$0xf] %vm2163_vm1, %v2722_v2  ;;  %v2865_v11 = vpop.f32.mrb[10].mxu0  ;;  %v1533_v13 = vmax.f32 %v2864_v3, %v1405_v5 }
  0xfb   : > { %v1403_v9 = vmul.f32 0.2, %v916_v7  ;;  %v1467_v10 = vmul.f32 0.2, %v1172_v8  ;;  %v2929_v12 = vpop.f32.mrb[10].mxu1  ;;  %v1597_v14 = vmax.f32 %v2928_v4, %v1469_v6  ;;  %v919_v17 = vpop.f32.mrb[11].mxu0 }
  0xfc   : > { %v1406_v15 = vmul.f32 0.2, %v2865_v11  ;;  %v1470_v16 = vmul.f32 0.2, %v2929_v12  ;;  %v1175_v18 = vpop.f32.mrb[11].mxu1  ;;  %v2663_v23 = vpack.c.bf16 %v1533_v13, %v1533_v13 }
  0xfd   : > { %v1531_v19 = vmax.f32 %v916_v7, %v1403_v9  ;;  %v1595_v20 = vmax.f32 %v1172_v8, %v1467_v10  ;;  %v1404_v21 = vmul.f32 0.2, %v919_v17  ;;  %v1468_v22 = vmul.f32 0.2, %v1175_v18 }
  0xfe   : > { %v2727_v24 = vpack.c.bf16 %v1597_v14, %v1597_v14  ;;  %v1534_v25 = vmax.f32 %v2865_v11, %v1406_v15  ;;  %v1598_v26 = vmax.f32 %v2929_v12, %v1470_v16  ;;  %2174 = vst.msk [vmem:[%s3288_s26 + $0x28] sm:$0xf] %vm2163_vm1, %v2663_v23  ;;  %v2868_v35 = vpop.f32.mrb[12].mxu0 }
  0xff   : > { %v2661_v27 = vpack.c.bf16 %v1531_v19, %v1531_v19  ;;  %v2725_v28 = vpack.c.bf16 %v1595_v20, %v1595_v20  ;;  %v1532_v29 = vmax.f32 %v919_v17, %v1404_v21  ;;  %v1596_v30 = vmax.f32 %v1175_v18, %v1468_v22  ;;  %v2932_v36 = vpop.f32.mrb[12].mxu1  ;;  %v932_v39 = vpop.f32.mrb[13].mxu0 }
 0x100   : > { %2238 = vst.msk [vmem:[%s3288_s26 + $0x128] sm:$0xf] %vm2163_vm1, %v2727_v24  ;;  %v2664_v31 = vpack.c.bf16 %v1534_v25, %v1534_v25  ;;  %v2728_v32 = vpack.c.bf16 %v1598_v26, %v1598_v26  ;;  %v1409_v37 = vmul.f32 0.2, %v2868_v35  ;;  %v1473_v38 = vmul.f32 0.2, %v2932_v36 }
 0x101   : > { %2172 = vst.msk [vmem:[%s3288_s26 + $0x20] sm:$0xf] %vm2163_vm1, %v2661_v27  ;;  %2236 = vst.msk [vmem:[%s3288_s26 + $0x120] sm:$0xf] %vm2163_vm1, %v2725_v28  ;;  %v2662_v33 = vpack.c.bf16 %v1532_v29, %v1532_v29  ;;  %v2726_v34 = vpack.c.bf16 %v1596_v30, %v1596_v30  ;;  %v1188_v40 = vpop.f32.mrb[13].mxu1  ;;  %v2869_v43 = vpop.f32.mrb[14].mxu0 }
 0x102   : > { %2175 = vst.msk [vmem:[%s3288_s26 + $0x2c] sm:$0xf] %vm2163_vm1, %v2664_v31  ;;  %2239 = vst.msk [vmem:[%s3288_s26 + $0x12c] sm:$0xf] %vm2163_vm1, %v2728_v32  ;;  %v1407_v41 = vmul.f32 0.2, %v932_v39  ;;  %v1537_v45 = vmax.f32 %v2868_v35, %v1409_v37  ;;  %v1601_v46 = vmax.f32 %v2932_v36, %v1473_v38 }
 0x103   : > { %2173 = vst.msk [vmem:[%s3288_s26 + $0x24] sm:$0xf] %vm2163_vm1, %v2662_v33  ;;  %2237 = vst.msk [vmem:[%s3288_s26 + $0x124] sm:$0xf] %vm2163_vm1, %v2726_v34  ;;  %v1471_v42 = vmul.f32 0.2, %v1188_v40 }
 0x104   : > { %v2933_v44 = vpop.f32.mrb[14].mxu1  ;;  %v1410_v47 = vmul.f32 0.2, %v2869_v43  ;;  %v935_v49 = vpop.f32.mrb[15].mxu0  ;;  %v1535_v51 = vmax.f32 %v932_v39, %v1407_v41  ;;  %v2667_v55 = vpack.c.bf16 %v1537_v45, %v1537_v45  ;;  %v2731_v56 = vpack.c.bf16 %v1601_v46, %v1601_v46 }
 0x105   : > { %v1474_v48 = vmul.f32 0.2, %v2933_v44  ;;  %v1191_v50 = vpop.f32.mrb[15].mxu1  ;;  %v1599_v52 = vmax.f32 %v1188_v40, %v1471_v42  ;;  %v1408_v53 = vmul.f32 0.2, %v935_v49 }
 0x106   : > { %v1472_v54 = vmul.f32 0.2, %v1191_v50  ;;  %v1538_v57 = vmax.f32 %v2869_v43, %v1410_v47  ;;  %v2665_v59 = vpack.c.bf16 %v1535_v51, %v1535_v51  ;;  %2178 = vst.msk [vmem:[%s3288_s26 + $0x38] sm:$0xf] %vm2163_vm1, %v2667_v55  ;;  %2242 = vst.msk [vmem:[%s3288_s26 + $0x138] sm:$0xf] %vm2163_vm1, %v2731_v56 }
 0x107   : > { %v1602_v58 = vmax.f32 %v2933_v44, %v1474_v48  ;;  %v2729_v60 = vpack.c.bf16 %v1599_v52, %v1599_v52  ;;  %v1536_v61 = vmax.f32 %v935_v49, %v1408_v53  ;;  %v2872_v3 = vpop.f32.mrb[16].mxu0  ;;  %v2936_v4 = vpop.f32.mrb[16].mxu1 }
 0x108   : > { %v1600_v62 = vmax.f32 %v1191_v50, %v1472_v54  ;;  %v2668_v63 = vpack.c.bf16 %v1538_v57, %v1538_v57  ;;  %2176 = vst.msk [vmem:[%s3288_s26 + $0x30] sm:$0xf] %vm2163_vm1, %v2665_v59  ;;  %v1413_v5 = vmul.f32 0.2, %v2872_v3  ;;  %v1477_v6 = vmul.f32 0.2, %v2936_v4 }
 0x109   : > { %v2732_v0 = vpack.c.bf16 %v1602_v58, %v1602_v58  ;;  %2240 = vst.msk [vmem:[%s3288_s26 + $0x130] sm:$0xf] %vm2163_vm1, %v2729_v60  ;;  %v2666_v1 = vpack.c.bf16 %v1536_v61, %v1536_v61  ;;  %v948_v7 = vpop.f32.mrb[17].mxu0  ;;  %v1204_v8 = vpop.f32.mrb[17].mxu1 }
 0x10a   : > { %v2730_v2 = vpack.c.bf16 %v1600_v62, %v1600_v62  ;;  %2179 = vst.msk [vmem:[%s3288_s26 + $0x3c] sm:$0xf] %vm2163_vm1, %v2668_v63  ;;  %v1411_v9 = vmul.f32 0.2, %v948_v7  ;;  %v1475_v10 = vmul.f32 0.2, %v1204_v8  ;;  %v1541_v13 = vmax.f32 %v2872_v3, %v1413_v5 }
 0x10b   : > { %2243 = vst.msk [vmem:[%s3288_s26 + $0x13c] sm:$0xf] %vm2163_vm1, %v2732_v0  ;;  %2177 = vst.msk [vmem:[%s3288_s26 + $0x34] sm:$0xf] %vm2163_vm1, %v2666_v1  ;;  %v2873_v11 = vpop.f32.mrb[18].mxu0  ;;  %v2937_v12 = vpop.f32.mrb[18].mxu1  ;;  %v1605_v14 = vmax.f32 %v2936_v4, %v1477_v6 }
 0x10c   : > { %2241 = vst.msk [vmem:[%s3288_s26 + $0x134] sm:$0xf] %vm2163_vm1, %v2730_v2  ;;  %v1414_v15 = vmul.f32 0.2, %v2873_v11  ;;  %v1478_v16 = vmul.f32 0.2, %v2937_v12  ;;  %v1539_v19 = vmax.f32 %v948_v7, %v1411_v9  ;;  %v1603_v20 = vmax.f32 %v1204_v8, %v1475_v10 }
 0x10d   : > { %v951_v17 = vpop.f32.mrb[19].mxu0  ;;  %v1207_v18 = vpop.f32.mrb[19].mxu1  ;;  %v2671_v23 = vpack.c.bf16 %v1541_v13, %v1541_v13  ;;  %v2735_v24 = vpack.c.bf16 %v1605_v14, %v1605_v14 }
 0x10e   : > { %v1412_v21 = vmul.f32 0.2, %v951_v17  ;;  %v1476_v22 = vmul.f32 0.2, %v1207_v18  ;;  %v1542_v25 = vmax.f32 %v2873_v11, %v1414_v15  ;;  %v1606_v26 = vmax.f32 %v2937_v12, %v1478_v16  ;;  %v2876_v35 = vpop.f32.mrb[20].mxu0 }
 0x10f   : > { %v2669_v27 = vpack.c.bf16 %v1539_v19, %v1539_v19  ;;  %v2733_v28 = vpack.c.bf16 %v1603_v20, %v1603_v20  ;;  %2182 = vst.msk [vmem:[%s3288_s26 + $0x48] sm:$0xf] %vm2163_vm1, %v2671_v23  ;;  %2246 = vst.msk [vmem:[%s3288_s26 + $0x148] sm:$0xf] %vm2163_vm1, %v2735_v24  ;;  %v2940_v36 = vpop.f32.mrb[20].mxu1  ;;  %v964_v39 = vpop.f32.mrb[21].mxu0 }
 0x110   : > { %v1540_v29 = vmax.f32 %v951_v17, %v1412_v21  ;;  %v1604_v30 = vmax.f32 %v1207_v18, %v1476_v22  ;;  %v2672_v31 = vpack.c.bf16 %v1542_v25, %v1542_v25  ;;  %v2736_v32 = vpack.c.bf16 %v1606_v26, %v1606_v26  ;;  %v1220_v40 = vpop.f32.mrb[21].mxu1  ;;  %v2877_v43 = vpop.f32.mrb[22].mxu0 }
 0x111   : > { %2180 = vst.msk [vmem:[%s3288_s26 + $0x40] sm:$0xf] %vm2163_vm1, %v2669_v27  ;;  %2244 = vst.msk [vmem:[%s3288_s26 + $0x140] sm:$0xf] %vm2163_vm1, %v2733_v28  ;;  %v1417_v37 = vmul.f32 0.2, %v2876_v35 }
 0x112   : > { %v2670_v33 = vpack.c.bf16 %v1540_v29, %v1540_v29  ;;  %v2734_v34 = vpack.c.bf16 %v1604_v30, %v1604_v30  ;;  %2183 = vst.msk [vmem:[%s3288_s26 + $0x4c] sm:$0xf] %vm2163_vm1, %v2672_v31  ;;  %2247 = vst.msk [vmem:[%s3288_s26 + $0x14c] sm:$0xf] %vm2163_vm1, %v2736_v32  ;;  %v1481_v38 = vmul.f32 0.2, %v2940_v36 }
 0x113   : > { %v1415_v41 = vmul.f32 0.2, %v964_v39  ;;  %v1479_v42 = vmul.f32 0.2, %v1220_v40  ;;  %v2941_v44 = vpop.f32.mrb[22].mxu1  ;;  %v1545_v45 = vmax.f32 %v2876_v35, %v1417_v37  ;;  %v967_v49 = vpop.f32.mrb[23].mxu0 }
 0x114   : > { %2181 = vst.msk [vmem:[%s3288_s26 + $0x44] sm:$0xf] %vm2163_vm1, %v2670_v33  ;;  %2245 = vst.msk [vmem:[%s3288_s26 + $0x144] sm:$0xf] %vm2163_vm1, %v2734_v34  ;;  %v1609_v46 = vmax.f32 %v2940_v36, %v1481_v38  ;;  %v1418_v47 = vmul.f32 0.2, %v2877_v43 }
 0x115   : > { %v1482_v48 = vmul.f32 0.2, %v2941_v44  ;;  %v1223_v50 = vpop.f32.mrb[23].mxu1  ;;  %v1543_v51 = vmax.f32 %v964_v39, %v1415_v41  ;;  %v1607_v52 = vmax.f32 %v1220_v40, %v1479_v42  ;;  %v1416_v53 = vmul.f32 0.2, %v967_v49 }
 0x116   : > { %v1480_v54 = vmul.f32 0.2, %v1223_v50  ;;  %v2675_v55 = vpack.c.bf16 %v1545_v45, %v1545_v45  ;;  %v2739_v56 = vpack.c.bf16 %v1609_v46, %v1609_v46  ;;  %v1546_v57 = vmax.f32 %v2877_v43, %v1418_v47  ;;  %v2880_v3 = vpop.f32.mrb[24].mxu0 }
 0x117   : > { %v1610_v58 = vmax.f32 %v2941_v44, %v1482_v48  ;;  %v2673_v59 = vpack.c.bf16 %v1543_v51, %v1543_v51  ;;  %v2737_v60 = vpack.c.bf16 %v1607_v52, %v1607_v52  ;;  %v1544_v61 = vmax.f32 %v967_v49, %v1416_v53  ;;  %v2944_v4 = vpop.f32.mrb[24].mxu1  ;;  %v980_v7 = vpop.f32.mrb[25].mxu0 }
 0x118   : > { %v1608_v62 = vmax.f32 %v1223_v50, %v1480_v54  ;;  %2186 = vst.msk [vmem:[%s3288_s26 + $0x58] sm:$0xf] %vm2163_vm1, %v2675_v55  ;;  %2250 = vst.msk [vmem:[%s3288_s26 + $0x158] sm:$0xf] %vm2163_vm1, %v2739_v56  ;;  %v2676_v63 = vpack.c.bf16 %v1546_v57, %v1546_v57  ;;  %v1421_v5 = vmul.f32 0.2, %v2880_v3 }
 0x119   : > { %v2740_v0 = vpack.c.bf16 %v1610_v58, %v1610_v58  ;;  %2184 = vst.msk [vmem:[%s3288_s26 + $0x50] sm:$0xf] %vm2163_vm1, %v2673_v59  ;;  %2248 = vst.msk [vmem:[%s3288_s26 + $0x150] sm:$0xf] %vm2163_vm1, %v2737_v60  ;;  %v2674_v1 = vpack.c.bf16 %v1544_v61, %v1544_v61  ;;  %v1485_v6 = vmul.f32 0.2, %v2944_v4 }
 0x11a   : > { %v2738_v2 = vpack.c.bf16 %v1608_v62, %v1608_v62  ;;  %2187 = vst.msk [vmem:[%s3288_s26 + $0x5c] sm:$0xf] %vm2163_vm1, %v2676_v63  ;;  %v1236_v8 = vpop.f32.mrb[25].mxu1  ;;  %v1419_v9 = vmul.f32 0.2, %v980_v7  ;;  %v2881_v11 = vpop.f32.mrb[26].mxu0  ;;  %v1549_v13 = vmax.f32 %v2880_v3, %v1421_v5 }
 0x11b   : > { %2251 = vst.msk [vmem:[%s3288_s26 + $0x15c] sm:$0xf] %vm2163_vm1, %v2740_v0  ;;  %2185 = vst.msk [vmem:[%s3288_s26 + $0x54] sm:$0xf] %vm2163_vm1, %v2674_v1  ;;  %v1483_v10 = vmul.f32 0.2, %v1236_v8  ;;  %v1613_v14 = vmax.f32 %v2944_v4, %v1485_v6 }
 0x11c   : > { %2249 = vst.msk [vmem:[%s3288_s26 + $0x154] sm:$0xf] %vm2163_vm1, %v2738_v2  ;;  %v2945_v12 = vpop.f32.mrb[26].mxu1  ;;  %v1422_v15 = vmul.f32 0.2, %v2881_v11  ;;  %v983_v17 = vpop.f32.mrb[27].mxu0  ;;  %v1547_v19 = vmax.f32 %v980_v7, %v1419_v9  ;;  %v2679_v23 = vpack.c.bf16 %v1549_v13, %v1549_v13 }
 0x11d   : > { %v1486_v16 = vmul.f32 0.2, %v2945_v12  ;;  %v1239_v18 = vpop.f32.mrb[27].mxu1  ;;  %v1611_v20 = vmax.f32 %v1236_v8, %v1483_v10  ;;  %v1420_v21 = vmul.f32 0.2, %v983_v17  ;;  %v2743_v24 = vpack.c.bf16 %v1613_v14, %v1613_v14 }
 0x11e   : > { %v1484_v22 = vmul.f32 0.2, %v1239_v18  ;;  %v1550_v25 = vmax.f32 %v2881_v11, %v1422_v15  ;;  %v2677_v27 = vpack.c.bf16 %v1547_v19, %v1547_v19  ;;  %2190 = vst.msk [vmem:[%s3288_s26 + $0x68] sm:$0xf] %vm2163_vm1, %v2679_v23  ;;  %v2884_v35 = vpop.f32.mrb[28].mxu0 }
 0x11f   : > { %v1614_v26 = vmax.f32 %v2945_v12, %v1486_v16  ;;  %v2741_v28 = vpack.c.bf16 %v1611_v20, %v1611_v20  ;;  %v1548_v29 = vmax.f32 %v983_v17, %v1420_v21  ;;  %2254 = vst.msk [vmem:[%s3288_s26 + $0x168] sm:$0xf] %vm2163_vm1, %v2743_v24  ;;  %v2948_v36 = vpop.f32.mrb[28].mxu1  ;;  %v1425_v37 = vmul.f32 0.2, %v2884_v35  ;;  %v996_v39 = vpop.f32.mrb[29].mxu0 }
 0x120   : > { %v1612_v30 = vmax.f32 %v1239_v18, %v1484_v22  ;;  %v2680_v31 = vpack.c.bf16 %v1550_v25, %v1550_v25  ;;  %2188 = vst.msk [vmem:[%s3288_s26 + $0x60] sm:$0xf] %vm2163_vm1, %v2677_v27  ;;  %v1489_v38 = vmul.f32 0.2, %v2948_v36  ;;  %v1252_v40 = vpop.f32.mrb[29].mxu1  ;;  %v2885_v43 = vpop.f32.mrb[30].mxu0 }
 0x121   : > { %v2744_v32 = vpack.c.bf16 %v1614_v26, %v1614_v26  ;;  %2252 = vst.msk [vmem:[%s3288_s26 + $0x160] sm:$0xf] %vm2163_vm1, %v2741_v28  ;;  %v2678_v33 = vpack.c.bf16 %v1548_v29, %v1548_v29  ;;  %v1423_v41 = vmul.f32 0.2, %v996_v39  ;;  %v1487_v42 = vmul.f32 0.2, %v1252_v40 }
 0x122   : > { %v2742_v34 = vpack.c.bf16 %v1612_v30, %v1612_v30  ;;  %2191 = vst.msk [vmem:[%s3288_s26 + $0x6c] sm:$0xf] %vm2163_vm1, %v2680_v31  ;;  %v2949_v44 = vpop.f32.mrb[30].mxu1  ;;  %v1553_v45 = vmax.f32 %v2884_v35, %v1425_v37  ;;  %v1617_v46 = vmax.f32 %v2948_v36, %v1489_v38  ;;  %v1426_v47 = vmul.f32 0.2, %v2885_v43  ;;  %v999_v49 = vpop.f32.mrb[31].mxu0 }
 0x123   : > { %2255 = vst.msk [vmem:[%s3288_s26 + $0x16c] sm:$0xf] %vm2163_vm1, %v2744_v32  ;;  %2189 = vst.msk [vmem:[%s3288_s26 + $0x64] sm:$0xf] %vm2163_vm1, %v2678_v33  ;;  %v1490_v48 = vmul.f32 0.2, %v2949_v44  ;;  %v1551_v51 = vmax.f32 %v996_v39, %v1423_v41  ;;  %v1615_v52 = vmax.f32 %v1252_v40, %v1487_v42 }
 0x124   : > { %2253 = vst.msk [vmem:[%s3288_s26 + $0x164] sm:$0xf] %vm2163_vm1, %v2742_v34  ;;  %v1255_v50 = vpop.f32.mrb[31].mxu1  ;;  %v1424_v53 = vmul.f32 0.2, %v999_v49  ;;  %v2683_v55 = vpack.c.bf16 %v1553_v45, %v1553_v45  ;;  %v2747_v56 = vpack.c.bf16 %v1617_v46, %v1617_v46  ;;  %v1554_v57 = vmax.f32 %v2885_v43, %v1426_v47 }
 0x125   : > { %v1488_v54 = vmul.f32 0.2, %v1255_v50  ;;  %v1618_v58 = vmax.f32 %v2949_v44, %v1490_v48  ;;  %v2681_v59 = vpack.c.bf16 %v1551_v51, %v1551_v51  ;;  %v2745_v60 = vpack.c.bf16 %v1615_v52, %v1615_v52 }
 0x126   : > { %v1552_v61 = vmax.f32 %v999_v49, %v1424_v53  ;;  %2194 = vst.msk [vmem:[%s3288_s26 + $0x78] sm:$0xf] %vm2163_vm1, %v2683_v55  ;;  %2258 = vst.msk [vmem:[%s3288_s26 + $0x178] sm:$0xf] %vm2163_vm1, %v2747_v56  ;;  %v2684_v63 = vpack.c.bf16 %v1554_v57, %v1554_v57  ;;  %v2888_v3 = vpop.f32.mrb[32].mxu0 }
 0x127   : > { %v1616_v62 = vmax.f32 %v1255_v50, %v1488_v54  ;;  %v2748_v0 = vpack.c.bf16 %v1618_v58, %v1618_v58  ;;  %2192 = vst.msk [vmem:[%s3288_s26 + $0x70] sm:$0xf] %vm2163_vm1, %v2681_v59  ;;  %2256 = vst.msk [vmem:[%s3288_s26 + $0x170] sm:$0xf] %vm2163_vm1, %v2745_v60  ;;  %v2952_v4 = vpop.f32.mrb[32].mxu1  ;;  %v1012_v7 = vpop.f32.mrb[33].mxu0 }
 0x128   : > { %v2682_v1 = vpack.c.bf16 %v1552_v61, %v1552_v61  ;;  %2195 = vst.msk [vmem:[%s3288_s26 + $0x7c] sm:$0xf] %vm2163_vm1, %v2684_v63  ;;  %v1429_v5 = vmul.f32 0.2, %v2888_v3  ;;  %v1493_v6 = vmul.f32 0.2, %v2952_v4 }
 0x129   : > { %v2746_v2 = vpack.c.bf16 %v1616_v62, %v1616_v62  ;;  %2259 = vst.msk [vmem:[%s3288_s26 + $0x17c] sm:$0xf] %vm2163_vm1, %v2748_v0  ;;  %v1268_v8 = vpop.f32.mrb[33].mxu1  ;;  %v1427_v9 = vmul.f32 0.2, %v1012_v7  ;;  %v2889_v11 = vpop.f32.mrb[34].mxu0 }
 0x12a   : > { %2193 = vst.msk [vmem:[%s3288_s26 + $0x74] sm:$0xf] %vm2163_vm1, %v2682_v1  ;;  %v1491_v10 = vmul.f32 0.2, %v1268_v8  ;;  %v2953_v12 = vpop.f32.mrb[34].mxu1  ;;  %v1557_v13 = vmax.f32 %v2888_v3, %v1429_v5  ;;  %v1621_v14 = vmax.f32 %v2952_v4, %v1493_v6  ;;  %v1015_v17 = vpop.f32.mrb[35].mxu0 }
 0x12b   : > { %2257 = vst.msk [vmem:[%s3288_s26 + $0x174] sm:$0xf] %vm2163_vm1, %v2746_v2  ;;  %v1430_v15 = vmul.f32 0.2, %v2889_v11  ;;  %v1494_v16 = vmul.f32 0.2, %v2953_v12  ;;  %v1555_v19 = vmax.f32 %v1012_v7, %v1427_v9 }
 0x12c   : > { %v1271_v18 = vpop.f32.mrb[35].mxu1  ;;  %v1619_v20 = vmax.f32 %v1268_v8, %v1491_v10  ;;  %v1428_v21 = vmul.f32 0.2, %v1015_v17  ;;  %v2687_v23 = vpack.c.bf16 %v1557_v13, %v1557_v13  ;;  %v2751_v24 = vpack.c.bf16 %v1621_v14, %v1621_v14 }
 0x12d   : > { %v1492_v22 = vmul.f32 0.2, %v1271_v18  ;;  %v1558_v25 = vmax.f32 %v2889_v11, %v1430_v15  ;;  %v1622_v26 = vmax.f32 %v2953_v12, %v1494_v16  ;;  %v2685_v27 = vpack.c.bf16 %v1555_v19, %v1555_v19 }
 0x12e   : > { %v2749_v28 = vpack.c.bf16 %v1619_v20, %v1619_v20  ;;  %v1556_v29 = vmax.f32 %v1015_v17, %v1428_v21  ;;  %2198 = vst.msk [vmem:[%s3288_s26 + $0x88] sm:$0xf] %vm2163_vm1, %v2687_v23  ;;  %2262 = vst.msk [vmem:[%s3288_s26 + $0x188] sm:$0xf] %vm2163_vm1, %v2751_v24  ;;  %v2892_v35 = vpop.f32.mrb[36].mxu0 }
 0x12f   : > { %v1620_v30 = vmax.f32 %v1271_v18, %v1492_v22  ;;  %v2688_v31 = vpack.c.bf16 %v1558_v25, %v1558_v25  ;;  %v2752_v32 = vpack.c.bf16 %v1622_v26, %v1622_v26  ;;  %2196 = vst.msk [vmem:[%s3288_s26 + $0x80] sm:$0xf] %vm2163_vm1, %v2685_v27  ;;  %v2956_v36 = vpop.f32.mrb[36].mxu1  ;;  %v1433_v37 = vmul.f32 0.2, %v2892_v35  ;;  %v1028_v39 = vpop.f32.mrb[37].mxu0 }
 0x130   : > { %2260 = vst.msk [vmem:[%s3288_s26 + $0x180] sm:$0xf] %vm2163_vm1, %v2749_v28  ;;  %v2686_v33 = vpack.c.bf16 %v1556_v29, %v1556_v29  ;;  %v1497_v38 = vmul.f32 0.2, %v2956_v36  ;;  %v1284_v40 = vpop.f32.mrb[37].mxu1  ;;  %v2893_v43 = vpop.f32.mrb[38].mxu0 }
 0x131   : > { %v2750_v34 = vpack.c.bf16 %v1620_v30, %v1620_v30  ;;  %2199 = vst.msk [vmem:[%s3288_s26 + $0x8c] sm:$0xf] %vm2163_vm1, %v2688_v31  ;;  %2263 = vst.msk [vmem:[%s3288_s26 + $0x18c] sm:$0xf] %vm2163_vm1, %v2752_v32  ;;  %v1431_v41 = vmul.f32 0.2, %v1028_v39  ;;  %v1561_v45 = vmax.f32 %v2892_v35, %v1433_v37 }
 0x132   : > { %2197 = vst.msk [vmem:[%s3288_s26 + $0x84] sm:$0xf] %vm2163_vm1, %v2686_v33  ;;  %v1495_v42 = vmul.f32 0.2, %v1284_v40  ;;  %v2957_v44 = vpop.f32.mrb[38].mxu1  ;;  %v1625_v46 = vmax.f32 %v2956_v36, %v1497_v38  ;;  %v1031_v49 = vpop.f32.mrb[39].mxu0 }
 0x133   : > { %2261 = vst.msk [vmem:[%s3288_s26 + $0x184] sm:$0xf] %vm2163_vm1, %v2750_v34  ;;  %v1434_v47 = vmul.f32 0.2, %v2893_v43  ;;  %v1498_v48 = vmul.f32 0.2, %v2957_v44  ;;  %v1559_v51 = vmax.f32 %v1028_v39, %v1431_v41  ;;  %v2691_v55 = vpack.c.bf16 %v1561_v45, %v1561_v45 }
 0x134   : > { %v1287_v50 = vpop.f32.mrb[39].mxu1  ;;  %v1623_v52 = vmax.f32 %v1284_v40, %v1495_v42  ;;  %v1432_v53 = vmul.f32 0.2, %v1031_v49  ;;  %v2755_v56 = vpack.c.bf16 %v1625_v46, %v1625_v46 }
 0x135   : > { %v1496_v54 = vmul.f32 0.2, %v1287_v50  ;;  %v1562_v57 = vmax.f32 %v2893_v43, %v1434_v47  ;;  %v1626_v58 = vmax.f32 %v2957_v44, %v1498_v48  ;;  %v2689_v59 = vpack.c.bf16 %v1559_v51, %v1559_v51  ;;  %2202 = vst.msk [vmem:[%s3288_s26 + $0x98] sm:$0xf] %vm2163_vm1, %v2691_v55 }
 0x136   : > { %v2753_v60 = vpack.c.bf16 %v1623_v52, %v1623_v52  ;;  %v1560_v61 = vmax.f32 %v1031_v49, %v1432_v53  ;;  %2266 = vst.msk [vmem:[%s3288_s26 + $0x198] sm:$0xf] %vm2163_vm1, %v2755_v56  ;;  %v2896_v3 = vpop.f32.mrb[40].mxu0 }
 0x137   : > { %v1624_v62 = vmax.f32 %v1287_v50, %v1496_v54  ;;  %v2692_v63 = vpack.c.bf16 %v1562_v57, %v1562_v57  ;;  %v2756_v0 = vpack.c.bf16 %v1626_v58, %v1626_v58  ;;  %2200 = vst.msk [vmem:[%s3288_s26 + $0x90] sm:$0xf] %vm2163_vm1, %v2689_v59  ;;  %v2960_v4 = vpop.f32.mrb[40].mxu1  ;;  %v1437_v5 = vmul.f32 0.2, %v2896_v3  ;;  %v1044_v7 = vpop.f32.mrb[41].mxu0 }
 0x138   : > { %2264 = vst.msk [vmem:[%s3288_s26 + $0x190] sm:$0xf] %vm2163_vm1, %v2753_v60  ;;  %v2690_v1 = vpack.c.bf16 %v1560_v61, %v1560_v61  ;;  %v1501_v6 = vmul.f32 0.2, %v2960_v4  ;;  %v1300_v8 = vpop.f32.mrb[41].mxu1  ;;  %v2897_v11 = vpop.f32.mrb[42].mxu0 }
 0x139   : > { %v2754_v2 = vpack.c.bf16 %v1624_v62, %v1624_v62  ;;  %2203 = vst.msk [vmem:[%s3288_s26 + $0x9c] sm:$0xf] %vm2163_vm1, %v2692_v63  ;;  %2267 = vst.msk [vmem:[%s3288_s26 + $0x19c] sm:$0xf] %vm2163_vm1, %v2756_v0  ;;  %v1435_v9 = vmul.f32 0.2, %v1044_v7  ;;  %v1565_v13 = vmax.f32 %v2896_v3, %v1437_v5 }
 0x13a   : > { %2201 = vst.msk [vmem:[%s3288_s26 + $0x94] sm:$0xf] %vm2163_vm1, %v2690_v1  ;;  %v1499_v10 = vmul.f32 0.2, %v1300_v8  ;;  %v2961_v12 = vpop.f32.mrb[42].mxu1  ;;  %v1629_v14 = vmax.f32 %v2960_v4, %v1501_v6  ;;  %v1047_v17 = vpop.f32.mrb[43].mxu0 }
 0x13b   : > { %2265 = vst.msk [vmem:[%s3288_s26 + $0x194] sm:$0xf] %vm2163_vm1, %v2754_v2  ;;  %v1438_v15 = vmul.f32 0.2, %v2897_v11  ;;  %v1502_v16 = vmul.f32 0.2, %v2961_v12  ;;  %v1563_v19 = vmax.f32 %v1044_v7, %v1435_v9  ;;  %v2695_v23 = vpack.c.bf16 %v1565_v13, %v1565_v13 }
 0x13c   : > { %v1303_v18 = vpop.f32.mrb[43].mxu1  ;;  %v1627_v20 = vmax.f32 %v1300_v8, %v1499_v10  ;;  %v1436_v21 = vmul.f32 0.2, %v1047_v17  ;;  %v2759_v24 = vpack.c.bf16 %v1629_v14, %v1629_v14 }
 0x13d   : > { %v1500_v22 = vmul.f32 0.2, %v1303_v18  ;;  %v1566_v25 = vmax.f32 %v2897_v11, %v1438_v15  ;;  %v1630_v26 = vmax.f32 %v2961_v12, %v1502_v16  ;;  %v2693_v27 = vpack.c.bf16 %v1563_v19, %v1563_v19  ;;  %2206 = vst.msk [vmem:[%s3288_s26 + $0xa8] sm:$0xf] %vm2163_vm1, %v2695_v23 }
 0x13e   : > { %v2757_v28 = vpack.c.bf16 %v1627_v20, %v1627_v20  ;;  %v1564_v29 = vmax.f32 %v1047_v17, %v1436_v21  ;;  %2270 = vst.msk [vmem:[%s3288_s26 + $0x1a8] sm:$0xf] %vm2163_vm1, %v2759_v24  ;;  %v2900_v35 = vpop.f32.mrb[44].mxu0 }
 0x13f   : > { %v1628_v30 = vmax.f32 %v1303_v18, %v1500_v22  ;;  %v2696_v31 = vpack.c.bf16 %v1566_v25, %v1566_v25  ;;  %v2760_v32 = vpack.c.bf16 %v1630_v26, %v1630_v26  ;;  %2204 = vst.msk [vmem:[%s3288_s26 + $0xa0] sm:$0xf] %vm2163_vm1, %v2693_v27  ;;  %v2964_v36 = vpop.f32.mrb[44].mxu1  ;;  %v1441_v37 = vmul.f32 0.2, %v2900_v35  ;;  %v1060_v39 = vpop.f32.mrb[45].mxu0 }
 0x140   : > { %2268 = vst.msk [vmem:[%s3288_s26 + $0x1a0] sm:$0xf] %vm2163_vm1, %v2757_v28  ;;  %v2694_v33 = vpack.c.bf16 %v1564_v29, %v1564_v29  ;;  %v1505_v38 = vmul.f32 0.2, %v2964_v36  ;;  %v1316_v40 = vpop.f32.mrb[45].mxu1  ;;  %v2901_v43 = vpop.f32.mrb[46].mxu0 }
 0x141   : > { %v2758_v34 = vpack.c.bf16 %v1628_v30, %v1628_v30  ;;  %2207 = vst.msk [vmem:[%s3288_s26 + $0xac] sm:$0xf] %vm2163_vm1, %v2696_v31  ;;  %2271 = vst.msk [vmem:[%s3288_s26 + $0x1ac] sm:$0xf] %vm2163_vm1, %v2760_v32  ;;  %v1439_v41 = vmul.f32 0.2, %v1060_v39  ;;  %v1569_v45 = vmax.f32 %v2900_v35, %v1441_v37 }
 0x142   : > { %2205 = vst.msk [vmem:[%s3288_s26 + $0xa4] sm:$0xf] %vm2163_vm1, %v2694_v33  ;;  %v1503_v42 = vmul.f32 0.2, %v1316_v40  ;;  %v2965_v44 = vpop.f32.mrb[46].mxu1  ;;  %v1633_v46 = vmax.f32 %v2964_v36, %v1505_v38  ;;  %v1063_v49 = vpop.f32.mrb[47].mxu0 }
 0x143   : > { %2269 = vst.msk [vmem:[%s3288_s26 + $0x1a4] sm:$0xf] %vm2163_vm1, %v2758_v34  ;;  %v1442_v47 = vmul.f32 0.2, %v2901_v43  ;;  %v1506_v48 = vmul.f32 0.2, %v2965_v44  ;;  %v1567_v51 = vmax.f32 %v1060_v39, %v1439_v41  ;;  %v2699_v55 = vpack.c.bf16 %v1569_v45, %v1569_v45 }
 0x144   : > { %v1319_v50 = vpop.f32.mrb[47].mxu1  ;;  %v1631_v52 = vmax.f32 %v1316_v40, %v1503_v42  ;;  %v1440_v53 = vmul.f32 0.2, %v1063_v49  ;;  %v2763_v56 = vpack.c.bf16 %v1633_v46, %v1633_v46 }
 0x145   : > { %v1504_v54 = vmul.f32 0.2, %v1319_v50  ;;  %v1570_v57 = vmax.f32 %v2901_v43, %v1442_v47  ;;  %v1634_v58 = vmax.f32 %v2965_v44, %v1506_v48  ;;  %v2697_v59 = vpack.c.bf16 %v1567_v51, %v1567_v51  ;;  %2210 = vst.msk [vmem:[%s3288_s26 + $0xb8] sm:$0xf] %vm2163_vm1, %v2699_v55 }
 0x146   : > { %v2761_v60 = vpack.c.bf16 %v1631_v52, %v1631_v52  ;;  %v1568_v61 = vmax.f32 %v1063_v49, %v1440_v53  ;;  %2274 = vst.msk [vmem:[%s3288_s26 + $0x1b8] sm:$0xf] %vm2163_vm1, %v2763_v56  ;;  %v2904_v3 = vpop.f32.mrb[48].mxu0 }
 0x147   : > { %v1632_v62 = vmax.f32 %v1319_v50, %v1504_v54  ;;  %v2700_v63 = vpack.c.bf16 %v1570_v57, %v1570_v57  ;;  %v2764_v0 = vpack.c.bf16 %v1634_v58, %v1634_v58  ;;  %2208 = vst.msk [vmem:[%s3288_s26 + $0xb0] sm:$0xf] %vm2163_vm1, %v2697_v59  ;;  %v2968_v4 = vpop.f32.mrb[48].mxu1  ;;  %v1445_v5 = vmul.f32 0.2, %v2904_v3  ;;  %v1076_v7 = vpop.f32.mrb[49].mxu0 }
 0x148   : > { %2272 = vst.msk [vmem:[%s3288_s26 + $0x1b0] sm:$0xf] %vm2163_vm1, %v2761_v60  ;;  %v2698_v1 = vpack.c.bf16 %v1568_v61, %v1568_v61  ;;  %v1509_v6 = vmul.f32 0.2, %v2968_v4  ;;  %v1332_v8 = vpop.f32.mrb[49].mxu1  ;;  %v2905_v11 = vpop.f32.mrb[50].mxu0 }
 0x149   : > { %v2762_v2 = vpack.c.bf16 %v1632_v62, %v1632_v62  ;;  %2211 = vst.msk [vmem:[%s3288_s26 + $0xbc] sm:$0xf] %vm2163_vm1, %v2700_v63  ;;  %2275 = vst.msk [vmem:[%s3288_s26 + $0x1bc] sm:$0xf] %vm2163_vm1, %v2764_v0  ;;  %v1443_v9 = vmul.f32 0.2, %v1076_v7  ;;  %v1573_v13 = vmax.f32 %v2904_v3, %v1445_v5 }
 0x14a   : > { %2209 = vst.msk [vmem:[%s3288_s26 + $0xb4] sm:$0xf] %vm2163_vm1, %v2698_v1  ;;  %v1507_v10 = vmul.f32 0.2, %v1332_v8  ;;  %v2969_v12 = vpop.f32.mrb[50].mxu1  ;;  %v1637_v14 = vmax.f32 %v2968_v4, %v1509_v6  ;;  %v1079_v17 = vpop.f32.mrb[51].mxu0 }
 0x14b   : > { %2273 = vst.msk [vmem:[%s3288_s26 + $0x1b4] sm:$0xf] %vm2163_vm1, %v2762_v2  ;;  %v1446_v15 = vmul.f32 0.2, %v2905_v11  ;;  %v1510_v16 = vmul.f32 0.2, %v2969_v12  ;;  %v1571_v19 = vmax.f32 %v1076_v7, %v1443_v9  ;;  %v2703_v23 = vpack.c.bf16 %v1573_v13, %v1573_v13 }
 0x14c   : > { %v1335_v18 = vpop.f32.mrb[51].mxu1  ;;  %v1635_v20 = vmax.f32 %v1332_v8, %v1507_v10  ;;  %v1444_v21 = vmul.f32 0.2, %v1079_v17  ;;  %v2767_v24 = vpack.c.bf16 %v1637_v14, %v1637_v14 }
 0x14d   : > { %v1508_v22 = vmul.f32 0.2, %v1335_v18  ;;  %v1574_v25 = vmax.f32 %v2905_v11, %v1446_v15  ;;  %v1638_v26 = vmax.f32 %v2969_v12, %v1510_v16  ;;  %v2701_v27 = vpack.c.bf16 %v1571_v19, %v1571_v19  ;;  %2214 = vst.msk [vmem:[%s3288_s26 + $0xc8] sm:$0xf] %vm2163_vm1, %v2703_v23 }
 0x14e   : > { %v2765_v28 = vpack.c.bf16 %v1635_v20, %v1635_v20  ;;  %v1572_v29 = vmax.f32 %v1079_v17, %v1444_v21  ;;  %2278 = vst.msk [vmem:[%s3288_s26 + $0x1c8] sm:$0xf] %vm2163_vm1, %v2767_v24  ;;  %v2908_v35 = vpop.f32.mrb[52].mxu0 }
 0x14f   : > { %v1636_v30 = vmax.f32 %v1335_v18, %v1508_v22  ;;  %v2704_v31 = vpack.c.bf16 %v1574_v25, %v1574_v25  ;;  %v2768_v32 = vpack.c.bf16 %v1638_v26, %v1638_v26  ;;  %2212 = vst.msk [vmem:[%s3288_s26 + $0xc0] sm:$0xf] %vm2163_vm1, %v2701_v27  ;;  %v2972_v36 = vpop.f32.mrb[52].mxu1  ;;  %v1449_v37 = vmul.f32 0.2, %v2908_v35  ;;  %v1092_v39 = vpop.f32.mrb[53].mxu0 }
 0x150   : > { %2276 = vst.msk [vmem:[%s3288_s26 + $0x1c0] sm:$0xf] %vm2163_vm1, %v2765_v28  ;;  %v2702_v33 = vpack.c.bf16 %v1572_v29, %v1572_v29  ;;  %v1513_v38 = vmul.f32 0.2, %v2972_v36  ;;  %v1348_v40 = vpop.f32.mrb[53].mxu1  ;;  %v2909_v43 = vpop.f32.mrb[54].mxu0 }
 0x151   : > { %v2766_v34 = vpack.c.bf16 %v1636_v30, %v1636_v30  ;;  %2215 = vst.msk [vmem:[%s3288_s26 + $0xcc] sm:$0xf] %vm2163_vm1, %v2704_v31  ;;  %2279 = vst.msk [vmem:[%s3288_s26 + $0x1cc] sm:$0xf] %vm2163_vm1, %v2768_v32  ;;  %v1447_v41 = vmul.f32 0.2, %v1092_v39  ;;  %v1577_v45 = vmax.f32 %v2908_v35, %v1449_v37 }
 0x152   : > { %2213 = vst.msk [vmem:[%s3288_s26 + $0xc4] sm:$0xf] %vm2163_vm1, %v2702_v33  ;;  %v1511_v42 = vmul.f32 0.2, %v1348_v40  ;;  %v2973_v44 = vpop.f32.mrb[54].mxu1  ;;  %v1641_v46 = vmax.f32 %v2972_v36, %v1513_v38  ;;  %v1095_v49 = vpop.f32.mrb[55].mxu0 }
 0x153   : > { %2277 = vst.msk [vmem:[%s3288_s26 + $0x1c4] sm:$0xf] %vm2163_vm1, %v2766_v34  ;;  %v1450_v47 = vmul.f32 0.2, %v2909_v43  ;;  %v1514_v48 = vmul.f32 0.2, %v2973_v44  ;;  %v1575_v51 = vmax.f32 %v1092_v39, %v1447_v41  ;;  %v2707_v55 = vpack.c.bf16 %v1577_v45, %v1577_v45 }
 0x154   : > { %v1351_v50 = vpop.f32.mrb[55].mxu1  ;;  %v1639_v52 = vmax.f32 %v1348_v40, %v1511_v42  ;;  %v1448_v53 = vmul.f32 0.2, %v1095_v49  ;;  %v2771_v56 = vpack.c.bf16 %v1641_v46, %v1641_v46 }
 0x155   : > { %v1512_v54 = vmul.f32 0.2, %v1351_v50  ;;  %v1578_v57 = vmax.f32 %v2909_v43, %v1450_v47  ;;  %v1642_v58 = vmax.f32 %v2973_v44, %v1514_v48  ;;  %v2705_v59 = vpack.c.bf16 %v1575_v51, %v1575_v51  ;;  %2218 = vst.msk [vmem:[%s3288_s26 + $0xd8] sm:$0xf] %vm2163_vm1, %v2707_v55 }
 0x156   : > { %v2769_v60 = vpack.c.bf16 %v1639_v52, %v1639_v52  ;;  %v1576_v61 = vmax.f32 %v1095_v49, %v1448_v53  ;;  %2282 = vst.msk [vmem:[%s3288_s26 + $0x1d8] sm:$0xf] %vm2163_vm1, %v2771_v56  ;;  %v2912_v3 = vpop.f32.mrb[56].mxu0 }
 0x157   : > { %v1640_v62 = vmax.f32 %v1351_v50, %v1512_v54  ;;  %v2708_v63 = vpack.c.bf16 %v1578_v57, %v1578_v57  ;;  %v2772_v0 = vpack.c.bf16 %v1642_v58, %v1642_v58  ;;  %2216 = vst.msk [vmem:[%s3288_s26 + $0xd0] sm:$0xf] %vm2163_vm1, %v2705_v59  ;;  %v2976_v4 = vpop.f32.mrb[56].mxu1  ;;  %v1453_v5 = vmul.f32 0.2, %v2912_v3  ;;  %v1108_v7 = vpop.f32.mrb[57].mxu0 }
 0x158   : > { %2280 = vst.msk [vmem:[%s3288_s26 + $0x1d0] sm:$0xf] %vm2163_vm1, %v2769_v60  ;;  %v2706_v1 = vpack.c.bf16 %v1576_v61, %v1576_v61  ;;  %v1517_v6 = vmul.f32 0.2, %v2976_v4  ;;  %v1364_v8 = vpop.f32.mrb[57].mxu1  ;;  %v2913_v11 = vpop.f32.mrb[58].mxu0 }
 0x159   : > { %v2770_v2 = vpack.c.bf16 %v1640_v62, %v1640_v62  ;;  %2219 = vst.msk [vmem:[%s3288_s26 + $0xdc] sm:$0xf] %vm2163_vm1, %v2708_v63  ;;  %2283 = vst.msk [vmem:[%s3288_s26 + $0x1dc] sm:$0xf] %vm2163_vm1, %v2772_v0  ;;  %v1451_v9 = vmul.f32 0.2, %v1108_v7  ;;  %v1581_v13 = vmax.f32 %v2912_v3, %v1453_v5 }
 0x15a   : > { %2217 = vst.msk [vmem:[%s3288_s26 + $0xd4] sm:$0xf] %vm2163_vm1, %v2706_v1  ;;  %v1515_v10 = vmul.f32 0.2, %v1364_v8  ;;  %v2977_v12 = vpop.f32.mrb[58].mxu1  ;;  %v1645_v14 = vmax.f32 %v2976_v4, %v1517_v6  ;;  %v1111_v17 = vpop.f32.mrb[59].mxu0 }
 0x15b   : > { %2281 = vst.msk [vmem:[%s3288_s26 + $0x1d4] sm:$0xf] %vm2163_vm1, %v2770_v2  ;;  %v1454_v15 = vmul.f32 0.2, %v2913_v11  ;;  %v1518_v16 = vmul.f32 0.2, %v2977_v12  ;;  %v1579_v19 = vmax.f32 %v1108_v7, %v1451_v9  ;;  %v2711_v23 = vpack.c.bf16 %v1581_v13, %v1581_v13 }
 0x15c   : > { %v1367_v18 = vpop.f32.mrb[59].mxu1  ;;  %v1643_v20 = vmax.f32 %v1364_v8, %v1515_v10  ;;  %v1452_v21 = vmul.f32 0.2, %v1111_v17  ;;  %v2775_v24 = vpack.c.bf16 %v1645_v14, %v1645_v14 }
 0x15d   : > { %v1516_v22 = vmul.f32 0.2, %v1367_v18  ;;  %v1582_v25 = vmax.f32 %v2913_v11, %v1454_v15  ;;  %v1646_v26 = vmax.f32 %v2977_v12, %v1518_v16  ;;  %v2709_v27 = vpack.c.bf16 %v1579_v19, %v1579_v19  ;;  %2222 = vst.msk [vmem:[%s3288_s26 + $0xe8] sm:$0xf] %vm2163_vm1, %v2711_v23 }
 0x15e   : > { %v2773_v28 = vpack.c.bf16 %v1643_v20, %v1643_v20  ;;  %v1580_v29 = vmax.f32 %v1111_v17, %v1452_v21  ;;  %2286 = vst.msk [vmem:[%s3288_s26 + $0x1e8] sm:$0xf] %vm2163_vm1, %v2775_v24  ;;  %v2916_v35 = vpop.f32.mrb[60].mxu0 }
 0x15f   : > { %v1644_v30 = vmax.f32 %v1367_v18, %v1516_v22  ;;  %v2712_v31 = vpack.c.bf16 %v1582_v25, %v1582_v25  ;;  %v2776_v32 = vpack.c.bf16 %v1646_v26, %v1646_v26  ;;  %2220 = vst.msk [vmem:[%s3288_s26 + $0xe0] sm:$0xf] %vm2163_vm1, %v2709_v27  ;;  %v2980_v36 = vpop.f32.mrb[60].mxu1  ;;  %v1457_v37 = vmul.f32 0.2, %v2916_v35  ;;  %v1124_v39 = vpop.f32.mrb[61].mxu0 }
 0x160   : > { %2284 = vst.msk [vmem:[%s3288_s26 + $0x1e0] sm:$0xf] %vm2163_vm1, %v2773_v28  ;;  %v2710_v33 = vpack.c.bf16 %v1580_v29, %v1580_v29  ;;  %v1521_v38 = vmul.f32 0.2, %v2980_v36  ;;  %v1380_v40 = vpop.f32.mrb[61].mxu1  ;;  %v2917_v43 = vpop.f32.mrb[62].mxu0 }
 0x161   : > { %v2774_v34 = vpack.c.bf16 %v1644_v30, %v1644_v30  ;;  %2223 = vst.msk [vmem:[%s3288_s26 + $0xec] sm:$0xf] %vm2163_vm1, %v2712_v31  ;;  %2287 = vst.msk [vmem:[%s3288_s26 + $0x1ec] sm:$0xf] %vm2163_vm1, %v2776_v32  ;;  %v1455_v41 = vmul.f32 0.2, %v1124_v39  ;;  %v1585_v45 = vmax.f32 %v2916_v35, %v1457_v37 }
 0x162   : > { %2221 = vst.msk [vmem:[%s3288_s26 + $0xe4] sm:$0xf] %vm2163_vm1, %v2710_v33  ;;  %v1519_v42 = vmul.f32 0.2, %v1380_v40  ;;  %v2981_v44 = vpop.f32.mrb[62].mxu1  ;;  %v1649_v46 = vmax.f32 %v2980_v36, %v1521_v38  ;;  %v1127_v49 = vpop.f32.mrb[63].mxu0 }
 0x163   : > { %2285 = vst.msk [vmem:[%s3288_s26 + $0x1e4] sm:$0xf] %vm2163_vm1, %v2774_v34  ;;  %v1458_v47 = vmul.f32 0.2, %v2917_v43  ;;  %v1522_v48 = vmul.f32 0.2, %v2981_v44  ;;  %v1583_v51 = vmax.f32 %v1124_v39, %v1455_v41  ;;  %v2715_v55 = vpack.c.bf16 %v1585_v45, %v1585_v45 }
 0x164   : > { %v1383_v50 = vpop.f32.mrb[63].mxu1  ;;  %v1647_v52 = vmax.f32 %v1380_v40, %v1519_v42  ;;  %v1456_v53 = vmul.f32 0.2, %v1127_v49  ;;  %v2779_v56 = vpack.c.bf16 %v1649_v46, %v1649_v46 }
 0x165   : > { %v1520_v54 = vmul.f32 0.2, %v1383_v50  ;;  %v1586_v57 = vmax.f32 %v2917_v43, %v1458_v47  ;;  %v1650_v58 = vmax.f32 %v2981_v44, %v1522_v48  ;;  %v2713_v59 = vpack.c.bf16 %v1583_v51, %v1583_v51  ;;  %2226 = vst.msk [vmem:[%s3288_s26 + $0xf8] sm:$0xf] %vm2163_vm1, %v2715_v55 }
 0x166   : > { %v2777_v60 = vpack.c.bf16 %v1647_v52, %v1647_v52  ;;  %v1584_v61 = vmax.f32 %v1127_v49, %v1456_v53  ;;  %2290 = vst.msk [vmem:[%s3288_s26 + $0x1f8] sm:$0xf] %vm2163_vm1, %v2779_v56 }
 0x167   : > { %v1648_v62 = vmax.f32 %v1383_v50, %v1520_v54  ;;  %v2716_v63 = vpack.c.bf16 %v1586_v57, %v1586_v57  ;;  %v2780_v0 = vpack.c.bf16 %v1650_v58, %v1650_v58  ;;  %2224 = vst.msk [vmem:[%s3288_s26 + $0xf0] sm:$0xf] %vm2163_vm1, %v2713_v59 }
 0x168   : > { %2288 = vst.msk [vmem:[%s3288_s26 + $0x1f0] sm:$0xf] %vm2163_vm1, %v2777_v60  ;;  %v2714_v1 = vpack.c.bf16 %v1584_v61, %v1584_v61 }
 0x169   : > { %v2778_v2 = vpack.c.bf16 %v1648_v62, %v1648_v62  ;;  %2227 = vst.msk [vmem:[%s3288_s26 + $0xfc] sm:$0xf] %vm2163_vm1, %v2716_v63  ;;  %2291 = vst.msk [vmem:[%s3288_s26 + $0x1fc] sm:$0xf] %vm2163_vm1, %v2780_v0 }
 0x16a   : > { %2225 = vst.msk [vmem:[%s3288_s26 + $0xf4] sm:$0xf] %vm2163_vm1, %v2714_v1 }
 0x16b   : > { %2289 = vst.msk [vmem:[%s3288_s26 + $0x1f4] sm:$0xf] %vm2163_vm1, %v2778_v2 }
 0x16c PF: > { %s12_s11 = sadd.s32 1, %s3101_s11   ;;  %s3558_s9 = smov %s3097_s10 }
 0x16d   : > { %p9_p5 = scmp.ge.s32.totalorder %s12_s11, 4   ;;  %s3559_s10 = smov %s3561_s12 }
 0x16f   :  { %11 = sbr.rel (!%p9_p5) target bundleno = 2 (0x2), region = 61 }

// kernel: discriminator_forward.6
= control target key start
LH: loop header
LB: loop body
LE: loop exit
PB: predicated region body
PF: predicated region fallthrough
CT: control target
= control target key end

     0   :  { %s3433_s12 = smov 0   ;;  %s3435_s13 = smov 0   ;;  %s3946_s0 = inlined_call_operand.vmem [shape: bf16[512,1024], index: 0, kind: input, shape index: {}]   ;;  %s3947_s1 = inlined_call_operand.vmem [shape: bf16[1024,128], index: 1, kind: input, shape index: {}]   ;;  %s3948_s2 = inlined_call_operand.vmem [shape: f32[1,128], index: 2, kind: input, shape index: {}]   ;;  %s3949_s3 = inlined_call_operand.vmem [shape: bf16[512,128], index: 3, kind: output, shape index: {}]  }
   0x1   :  { %s3437_s14 = smov 0  }
   0x2 LB: > { %s25_s15 = sadd.s32 1, %s3407_s13  ;;  %p2492_p0 = scmp.ge.s32.totalorder %s3411_s14, 1  ;;  %s3411_s14 = sphi %s3437_s14, %s13_s14   ;;  %s3407_s13 = sphi %s3435_s13, %s3951_s13   ;;  %s3403_s12 = sphi %s3433_s12, %s3950_s12  }
   0x3   : > { %p27_p1 = scmp.ge.s32.totalorder %s25_s15, 2  ;;  %p170_p2 = scmp.lt.s32.totalorder %s3411_s14, 3 }
   0x5   : > { %s3953_s15 = smov (%p27_p1, %s25_s15), 0  ;;  %p171_p3 = pnand %p2492_p0, %p170_p2 }
   0x6   : > { %v3325_v0 = vld [vmem:[%s3947_s1 + $0x40] sm:$0xff] (!%p171_p3)   ;;  %v3329_v4 = vld [vmem:[%s3947_s1 + $0x48] sm:$0xff] (!%p171_p3)   ;;  %v3333_v8 = vld [vmem:[%s3947_s1 + $0x50] sm:$0xff] (!%p171_p3)   ;;  %s2493_s25 = sshll.u32 (!%p171_p3), %s3403_s12, 5 }
   0x7   : > { %174 = sbr.rel (%p171_p3) target bundleno = 516 (0x204), region = 32  ;;  %v3326_v1 = vld [vmem:[%s3947_s1 + $0xc0] sm:$0xff] (!%p171_p3)   ;;  %2853 = vmatprep.subr.bf16.mxu0 (!%p171_p3), %v3325_v0  ;;  %v3330_v5 = vld [vmem:[%s3947_s1 + $0xc8] sm:$0xff] (!%p171_p3)   ;;  %v3334_v9 = vld [vmem:[%s3947_s1 + $0xd0] sm:$0xff] (!%p171_p3)   ;;  %p206_p4 = scmp.lt.s32.totalorder (!%p171_p3), %s2493_s25, 63 }
   0x8   : > { %v3327_v2 = vld [vmem:[%s3947_s1] sm:$0xff] (!%p171_p3)   ;;  %2965 = vmatprep.subr.bf16.mxu1 (!%p171_p3), %v3326_v1  ;;  %v3331_v6 = vld [vmem:[%s3947_s1 + $0x8] sm:$0xff] (!%p171_p3)   ;;  %v3335_v10 = vld [vmem:[%s3947_s1 + $0x10] sm:$0xff] (!%p171_p3)  }
   0x9   : > { %v3328_v3 = vld [vmem:[%s3947_s1 + $0x80] sm:$0xff] (!%p171_p3)   ;;  %2854 = vmatpush3.bf16.msra.mxu0 (!%p171_p3), %v3327_v2  ;;  %v3332_v7 = vld [vmem:[%s3947_s1 + $0x88] sm:$0xff] (!%p171_p3)   ;;  %v3336_v11 = vld [vmem:[%s3947_s1 + $0x90] sm:$0xff] (!%p171_p3)  }
   0xa   : > { %2966 = vmatpush3.bf16.msra.mxu1 (!%p171_p3), %v3328_v3  ;;  %2855 = vmatprep.subr.bf16.mxu0 (!%p171_p3), %v3329_v4  ;;  %v3337_v12 = vld [vmem:[%s3947_s1 + $0x58] sm:$0xff] (!%p171_p3)   ;;  %v3341_v16 = vld [vmem:[%s3947_s1 + $0x60] sm:$0xff] (!%p171_p3)   ;;  %v3345_v20 = vld [vmem:[%s3947_s1 + $0x68] sm:$0xff] (!%p171_p3)  }
   0xb   : > { %2967 = vmatprep.subr.bf16.mxu1 (!%p171_p3), %v3330_v5  ;;  %v3338_v13 = vld [vmem:[%s3947_s1 + $0xd8] sm:$0xff] (!%p171_p3)   ;;  %v3342_v17 = vld [vmem:[%s3947_s1 + $0xe0] sm:$0xff] (!%p171_p3)   ;;  %v3346_v21 = vld [vmem:[%s3947_s1 + $0xe8] sm:$0xff] (!%p171_p3)  }
   0xc   : > { %v3339_v14 = vld [vmem:[%s3947_s1 + $0x18] sm:$0xff] (!%p171_p3)   ;;  %v3343_v18 = vld [vmem:[%s3947_s1 + $0x20] sm:$0xff] (!%p171_p3)   ;;  %v3347_v22 = vld [vmem:[%s3947_s1 + $0x28] sm:$0xff] (!%p171_p3)  }
   0xd   : > { %2856 = vmatpush3.bf16.msra.mxu0 (!%p171_p3), %v3331_v6  ;;  %v3340_v15 = vld [vmem:[%s3947_s1 + $0x98] sm:$0xff] (!%p171_p3)   ;;  %v3344_v19 = vld [vmem:[%s3947_s1 + $0xa0] sm:$0xff] (!%p171_p3)   ;;  %v3348_v23 = vld [vmem:[%s3947_s1 + $0xa8] sm:$0xff] (!%p171_p3)  }
   0xe   : > { %2968 = vmatpush3.bf16.msra.mxu1 %v3332_v7  ;;  %2857 = vmatprep.subr.bf16.mxu0 %v3333_v8  ;;  %s3955_s25 = smov (!%p206_p4, %s2493_s25), 63  ;;  %v3349_v24 = vld [vmem:[%s3947_s1 + $0x70] sm:$0xff]   ;;  %v3353_v28 = vld [vmem:[%s3947_s1 + $0x78] sm:$0xff]   ;;  %v3357_v40 = vld [vmem:[%s3947_s1 + $0x140] sm:$0xff]  }
   0xf   : > { %2969 = vmatprep.subr.bf16.mxu1 %v3334_v9  ;;  %v3350_v25 = vld [vmem:[%s3947_s1 + $0xf0] sm:$0xff]   ;;  %s2725_s24 = sshll.u32 %s3955_s25, 5  ;;  %v3354_v29 = vld [vmem:[%s3947_s1 + $0xf8] sm:$0xff]   ;;  %v3358_v41 = vld [vmem:[%s3947_s1 + $0x100] sm:$0xff]  }
  0x10   : > { %v3351_v26 = vld [vmem:[%s3947_s1 + $0x30] sm:$0xff]   ;;  %s3550_s12 = scalar_lea.vmem %s3946_s0, %s2725_s24  ;;  %v3355_v30 = vld [vmem:[%s3947_s1 + $0x38] sm:$0xff]   ;;  %v3359_v42 = vld [vmem:[%s3947_s1 + $0x1c0] sm:$0xff]  }
  0x11   : > { %2858 = vmatpush3.bf16.msra.mxu0 %v3335_v10  ;;  %v3352_v27 = vld [vmem:[%s3947_s1 + $0xb0] sm:$0xff]   ;;  %v3356_v31 = vld [vmem:[%s3947_s1 + $0xb8] sm:$0xff]   ;;  %v229_v32 = vld [vmem:[%s3550_s12] sm:$0xff] }
  0x12   : > { %2970 = vmatpush3.bf16.msra.mxu1 %v3336_v11  ;;  %2859 = vmatprep.subr.bf16.mxu0 %v3337_v12  ;;  %v233_v33 = vld [vmem:[%s3550_s12 + $0x20] sm:$0xff]  ;;  %v230_v34 = vld [vmem:[%s3550_s12 + $0x8] sm:$0xff]  ;;  %v3365_v2 = vld [vmem:[%s3947_s1 + $0x150] sm:$0xff]  }
  0x13   : > { %2971 = vmatprep.subr.bf16.mxu1 %v3338_v13  ;;  %v2499_v35 = vcombine.low %v229_v32, %v233_v33  ;;  %v2500_v36 = vcombine.high %v229_v32, %v233_v33  ;;  %v234_v37 = vld [vmem:[%s3550_s12 + $0x28] sm:$0xff]  ;;  %v3360_v43 = vld [vmem:[%s3947_s1 + $0x180] sm:$0xff]   ;;  %v3366_v4 = vld [vmem:[%s3947_s1 + $0x110] sm:$0xff]  }
  0x14   : > { %v2501_v38 = vcombine.low %v230_v34, %v234_v37  ;;  %v2502_v39 = vcombine.high %v230_v34, %v234_v37  ;;  %v237_v44 = vld [vmem:[%s3550_s12 + $0x40] sm:$0xff]  ;;  %v238_v47 = vld [vmem:[%s3550_s12 + $0x48] sm:$0xff]  ;;  %v3367_v7 = vld [vmem:[%s3947_s1 + $0x1d0] sm:$0xff]  }
  0x15   : > { %2860 = vmatpush3.bf16.msra.mxu0 %v3339_v14  ;;  %1548 = vmatprep.mubr.bf16.mxu0 %v2500_v36  ;;  %v241_v45 = vld [vmem:[%s3550_s12 + $0x60] sm:$0xff]  ;;  %v242_v48 = vld [vmem:[%s3550_s12 + $0x68] sm:$0xff]  ;;  %v3368_v9 = vld [vmem:[%s3947_s1 + $0x190] sm:$0xff]  }
  0x16   : > { %2972 = vmatpush3.bf16.msra.mxu1 %v3340_v15  ;;  %2861 = vmatprep.subr.bf16.mxu0 %v3341_v16  ;;  %v2508_v46 = vcombine.high %v237_v44, %v241_v45  ;;  %v245_v49 = vld [vmem:[%s3550_s12 + $0x80] sm:$0xff]  ;;  %v2510_v50 = vcombine.high %v238_v47, %v242_v48  ;;  %v246_v52 = vld [vmem:[%s3550_s12 + $0x88] sm:$0xff]  ;;  %v2507_v54 = vcombine.low %v237_v44, %v241_v45  ;;  %v3369_v14 = vld [vmem:[%s3947_s1 + $0x158] sm:$0xff]  }
  0x17   : > { %2973 = vmatprep.subr.bf16.mxu1 %v3342_v17  ;;  %1709 = vmatprep.mubr.bf16.mxu1 %v2502_v39  ;;  %v249_v51 = vld [vmem:[%s3550_s12 + $0xa0] sm:$0xff]  ;;  %v250_v53 = vld [vmem:[%s3550_s12 + $0xa8] sm:$0xff]  ;;  %v2509_v56 = vcombine.low %v238_v47, %v242_v48  ;;  %v3370_v15 = vld [vmem:[%s3947_s1 + $0x118] sm:$0xff]  }
  0x18   : > { %v3361_v55 = vld [vmem:[%s3947_s1 + $0x148] sm:$0xff]   ;;  %v2516_v57 = vcombine.high %v245_v49, %v249_v51  ;;  %v2518_v59 = vcombine.high %v246_v52, %v250_v53  ;;  %v253_v62 = vld [vmem:[%s3550_s12 + $0xc0] sm:$0xff]  ;;  %v2515_v3 = vcombine.low %v245_v49, %v249_v51  ;;  %v2517_v5 = vcombine.low %v246_v52, %v250_v53  ;;  %v3371_v17 = vld [vmem:[%s3947_s1 + $0x1d8] sm:$0xff]  }
  0x19   : > { %2862 = vmatpush3.bf16.msra.mxu0 %v3343_v18  ;;  %v3362_v58 = vld [vmem:[%s3947_s1 + $0x108] sm:$0xff]   ;;  %v257_v63 = vld [vmem:[%s3550_s12 + $0xe0] sm:$0xff]  ;;  %v3382_v47 = vld [vmem:[%s3947_s1 + $0x130] sm:$0xff]  }
  0x1a   : > { %2974 = vmatpush3.bf16.msra.mxu1 %v3344_v19  ;;  %2863 = vmatprep.subr.bf16.mxu0 %v3345_v20  ;;  %v3363_v60 = vld [vmem:[%s3947_s1 + $0x1c8] sm:$0xff]   ;;  %v2524_v6 = vcombine.high %v253_v62, %v257_v63  ;;  %v261_v10 = vld [vmem:[%s3550_s12 + $0x100] sm:$0xff]  ;;  %v2523_v16 = vcombine.low %v253_v62, %v257_v63  ;;  %v3372_v20 = vld [vmem:[%s3947_s1 + $0x198] sm:$0xff]  }
  0x1b   : > { %2975 = vmatprep.subr.bf16.mxu1 %v3346_v21  ;;  %v3364_v61 = vld [vmem:[%s3947_s1 + $0x188] sm:$0xff]   ;;  %v265_v11 = vld [vmem:[%s3550_s12 + $0x120] sm:$0xff]  ;;  %v3383_v48 = vld [vmem:[%s3947_s1 + $0x1f0] sm:$0xff]  }
  0x1c   : > { %v254_v0 = vld [vmem:[%s3550_s12 + $0xc8] sm:$0xff]  ;;  %v2532_v19 = vcombine.high %v261_v10, %v265_v11  ;;  %v3384_v49 = vld [vmem:[%s3947_s1 + $0x1b0] sm:$0xff]   ;;  %v289_v51 = vld [vmem:[%s3550_s12 + $0x1e0] sm:$0xff] }
  0x1d   : > { %2864 = vmatpush3.bf16.msra.mxu0 %v3347_v22  ;;  %v258_v1 = vld [vmem:[%s3550_s12 + $0xe8] sm:$0xff]  ;;  %v269_v22 = vld [vmem:[%s3550_s12 + $0x140] sm:$0xff] }
  0x1e   : > { %2976 = vmatpush3.bf16.msra.mxu1 %v3348_v23  ;;  %2865 = vmatprep.subr.bf16.mxu0 %v3349_v24  ;;  %v2526_v8 = vcombine.high %v254_v0, %v258_v1  ;;  %v262_v12 = vld [vmem:[%s3550_s12 + $0x108] sm:$0xff]  ;;  %v2525_v18 = vcombine.low %v254_v0, %v258_v1  ;;  %v273_v23 = vld [vmem:[%s3550_s12 + $0x160] sm:$0xff] }
  0x1f   : > { %2977 = vmatprep.subr.bf16.mxu1 %v3350_v25  ;;  %v266_v13 = vld [vmem:[%s3550_s12 + $0x128] sm:$0xff]  ;;  %v3373_v24 = vld [vmem:[%s3947_s1 + $0x160] sm:$0xff]   ;;  %v2540_v32 = vcombine.high %v269_v22, %v273_v23 }
  0x20   : > { %v2534_v21 = vcombine.high %v262_v12, %v266_v13  ;;  %v270_v25 = vld [vmem:[%s3550_s12 + $0x148] sm:$0xff]  ;;  %v293_v62 = vld [vmem:[%s3550_s12 + $0x200] sm:$0xff] }
  0x21   : > { %2866 = vmatpush3.bf16.msra.mxu0 %v3351_v26  ;;  %v274_v26 = vld [vmem:[%s3550_s12 + $0x168] sm:$0xff]  ;;  %v297_v63 = vld [vmem:[%s3550_s12 + $0x220] sm:$0xff] }
  0x22   : > { %2978 = vmatpush3.bf16.msra.mxu1 %v3352_v27  ;;  %2867 = vmatprep.subr.bf16.mxu0 %v3353_v28  ;;  %v3374_v27 = vld [vmem:[%s3947_s1 + $0x120] sm:$0xff]   ;;  %v2542_v33 = vcombine.high %v270_v25, %v274_v26  ;;  %v3377_v34 = vld [vmem:[%s3947_s1 + $0x168] sm:$0xff]  }
  0x23   : > { %2979 = vmatprep.subr.bf16.mxu1 %v3354_v29  ;;  %v3375_v28 = vld [vmem:[%s3947_s1 + $0x1e0] sm:$0xff]   ;;  %v3378_v36 = vld [vmem:[%s3947_s1 + $0x128] sm:$0xff]  }
  0x24   : > { %v3376_v29 = vld [vmem:[%s3947_s1 + $0x1a0] sm:$0xff]   ;;  %v3379_v37 = vld [vmem:[%s3947_s1 + $0x1e8] sm:$0xff]  }
  0x25   : > { %2868 = vmatpush3.bf16.msra.mxu0 %v3355_v30  ;;  %v2531_v30 = vcombine.low %v261_v10, %v265_v11  ;;  %v3380_v39 = vld [vmem:[%s3947_s1 + $0x1a8] sm:$0xff]   ;;  %v2563_v10 = vcombine.low %v293_v62, %v297_v63 }
  0x26   : > { %2980 = vmatpush3.bf16.msra.mxu1 %v3356_v31  ;;  %3077 = vmatprep.subr.bf16.mxu0 %v3357_v40  ;;  %v2533_v31 = vcombine.low %v262_v12, %v266_v13  ;;  %v278_v40 = vld [vmem:[%s3550_s12 + $0x188] sm:$0xff] }
  0x27   : > { %3189 = vmatprep.subr.bf16.mxu1 %v3359_v42  ;;  %v2539_v42 = vcombine.low %v269_v22, %v273_v23  ;;  %v286_v52 = vld [vmem:[%s3550_s12 + $0x1c8] sm:$0xff]  ;;  %v317_v22 = vld [vmem:[%s3550_s12 + $0x2c0] sm:$0xff] }
  0x28   : > { %1549 = vmatmul.mubr.bf16.vlgmr.msra.gmra.mrb[0].mxu0 %v2499_v35  ;;  %v277_v35 = vld [vmem:[%s3550_s12 + $0x180] sm:$0xff]  ;;  %v290_v53 = vld [vmem:[%s3550_s12 + $0x1e8] sm:$0xff] }
  0x29   : > { %1710 = vmatmul.mubr.bf16.vlgmr.msra.gmra.mrb[0].mxu1 %v2501_v38  ;;  %3078 = vmatpush3.bf16.msra.mxu0 %v3358_v41  ;;  %v281_v38 = vld [vmem:[%s3550_s12 + $0x1a0] sm:$0xff]  ;;  %v282_v41 = vld [vmem:[%s3550_s12 + $0x1a8] sm:$0xff] }
  0x2a   : > { %3190 = vmatpush3.bf16.msra.mxu1 %v3360_v43  ;;  %1556 = vmatprep.mubr.bf16.mxu0 %v2508_v46  ;;  %v2541_v43 = vcombine.low %v270_v25, %v274_v26  ;;  %v2548_v44 = vcombine.high %v277_v35, %v281_v38  ;;  %v2550_v45 = vcombine.high %v278_v40, %v282_v41  ;;  %v3381_v46 = vld [vmem:[%s3947_s1 + $0x170] sm:$0xff]   ;;  %v294_v0 = vld [vmem:[%s3550_s12 + $0x208] sm:$0xff]  ;;  %v321_v23 = vld [vmem:[%s3550_s12 + $0x2e0] sm:$0xff] }
  0x2b   : > { %1717 = vmatprep.mubr.bf16.mxu1 %v2510_v50  ;;  %3079 = vmatprep.subr.bf16.mxu0 %v3361_v55  ;;  %v285_v50 = vld [vmem:[%s3550_s12 + $0x1c0] sm:$0xff]  ;;  %v3385_v55 = vld [vmem:[%s3947_s1 + $0x178] sm:$0xff]   ;;  %v298_v1 = vld [vmem:[%s3550_s12 + $0x228] sm:$0xff] }
  0x2c   : > { %3191 = vmatprep.subr.bf16.mxu1 %v3363_v60  ;;  %v3387_v60 = vld [vmem:[%s3947_s1 + $0x1f8] sm:$0xff]   ;;  %v2565_v11 = vcombine.low %v294_v0, %v298_v1  ;;  %v322_v25 = vld [vmem:[%s3550_s12 + $0x2e8] sm:$0xff] }
  0x2d   : > { %3080 = vmatpush3.bf16.msra.mxu0 %v3362_v58  ;;  %v3386_v58 = vld [vmem:[%s3947_s1 + $0x138] sm:$0xff]  }
  0x2e   : > { %3192 = vmatpush3.bf16.msra.mxu1 %v3364_v61  ;;  %3081 = vmatprep.subr.bf16.mxu0 %v3365_v2  ;;  %v3388_v61 = vld [vmem:[%s3947_s1 + $0x1b8] sm:$0xff]   ;;  %v2555_v2 = vcombine.low %v285_v50, %v289_v51 }
  0x2f   : > { %3193 = vmatprep.subr.bf16.mxu1 %v3367_v7  ;;  %v305_v7 = vld [vmem:[%s3550_s12 + $0x260] sm:$0xff] }
  0x30   : > { %1557 = vmatmul.mubr.bf16.gmra.mrb[4].mxu0 %v2507_v54  ;;  %v2547_v54 = vcombine.low %v277_v35, %v281_v38  ;;  %v333_v38 = vld [vmem:[%s3550_s12 + $0x340] sm:$0xff] }
  0x31   : > { %1718 = vmatmul.mubr.bf16.gmra.mrb[4].mxu1 %v2509_v56  ;;  %1564 = vmatprep.mubr.bf16.mxu0 %v2516_v57  ;;  %v2549_v56 = vcombine.low %v278_v40, %v282_v41  ;;  %v2556_v57 = vcombine.high %v285_v50, %v289_v51  ;;  %v334_v40 = vld [vmem:[%s3550_s12 + $0x348] sm:$0xff] }
  0x32   : > { %1725 = vmatprep.mubr.bf16.mxu1 %v2518_v59  ;;  %3082 = vmatpush3.bf16.msra.mxu0 %v3366_v4  ;;  %v2558_v59 = vcombine.high %v286_v52, %v290_v53  ;;  %v2564_v4 = vcombine.high %v293_v62, %v297_v63  ;;  %v338_v41 = vld [vmem:[%s3550_s12 + $0x368] sm:$0xff]  ;;  %v231_v62 = vld [vmem:[%s3550_s12 + $0x10] sm:$0xff] }
  0x33   : > { %3194 = vmatpush3.bf16.msra.mxu1 %v3368_v9  ;;  %3083 = vmatprep.subr.bf16.mxu0 %v3369_v14  ;;  %v306_v9 = vld [vmem:[%s3550_s12 + $0x268] sm:$0xff]  ;;  %v309_v14 = vld [vmem:[%s3550_s12 + $0x280] sm:$0xff]  ;;  %v2605_v51 = vcombine.low %v334_v40, %v338_v41  ;;  %v235_v63 = vld [vmem:[%s3550_s12 + $0x30] sm:$0xff] }
  0x34   : > { %3195 = vmatprep.subr.bf16.mxu1 %v3371_v17  ;;  %v314_v17 = vld [vmem:[%s3550_s12 + $0x2a8] sm:$0xff] }
  0x36   : > { %3084 = vmatpush3.bf16.msra.mxu0 %v3370_v15  ;;  %v313_v15 = vld [vmem:[%s3550_s12 + $0x2a0] sm:$0xff] }
  0x37   : > { %3196 = vmatpush3.bf16.msra.mxu1 %v3372_v20  ;;  %3085 = vmatprep.subr.bf16.mxu0 %v3373_v24  ;;  %v2580_v20 = vcombine.high %v309_v14, %v313_v15  ;;  %v318_v24 = vld [vmem:[%s3550_s12 + $0x2c8] sm:$0xff]  ;;  %v2579_v26 = vcombine.low %v309_v14, %v313_v15  ;;  %v247_v14 = vld [vmem:[%s3550_s12 + $0x90] sm:$0xff] }
  0x38   : > { %1565 = vmatmul.mubr.bf16.gmra.mrb[8].mxu0 %v2515_v3  ;;  %3197 = vmatprep.subr.bf16.mxu1 %v3375_v28  ;;  %v2557_v3 = vcombine.low %v286_v52, %v290_v53  ;;  %v2588_v28 = vcombine.high %v317_v22, %v321_v23  ;;  %v2589_v35 = vcombine.low %v318_v24, %v322_v25  ;;  %v251_v15 = vld [vmem:[%s3550_s12 + $0xb0] sm:$0xff] }
  0x39   : > { %1726 = vmatmul.mubr.bf16.gmra.mrb[8].mxu1 %v2517_v5  ;;  %1572 = vmatprep.mubr.bf16.mxu0 %v2524_v6  ;;  %v2566_v5 = vcombine.high %v294_v0, %v298_v1  ;;  %v301_v6 = vld [vmem:[%s3550_s12 + $0x240] sm:$0xff]  ;;  %v232_v0 = vld [vmem:[%s3550_s12 + $0x18] sm:$0xff] }
  0x3a   : > { %1733 = vmatprep.mubr.bf16.mxu1 %v2526_v8  ;;  %3086 = vmatpush3.bf16.msra.mxu0 %v3374_v27  ;;  %v302_v8 = vld [vmem:[%s3550_s12 + $0x248] sm:$0xff]  ;;  %v2572_v12 = vcombine.high %v301_v6, %v305_v7  ;;  %v236_v1 = vld [vmem:[%s3550_s12 + $0x38] sm:$0xff] }
  0x3b   : > { %3198 = vmatpush3.bf16.msra.mxu1 %v3376_v29  ;;  %3087 = vmatprep.subr.bf16.mxu0 %v3377_v34  ;;  %v2574_v13 = vcombine.high %v302_v8, %v306_v9  ;;  %v2590_v29 = vcombine.high %v318_v24, %v322_v25  ;;  %v2587_v34 = vcombine.low %v317_v22, %v321_v23  ;;  %v255_v22 = vld [vmem:[%s3550_s12 + $0xd0] sm:$0xff]  ;;  %v256_v24 = vld [vmem:[%s3550_s12 + $0xd8] sm:$0xff] }
  0x3c   : > { %3199 = vmatprep.subr.bf16.mxu1 %v3379_v37  ;;  %v259_v23 = vld [vmem:[%s3550_s12 + $0xf0] sm:$0xff]  ;;  %v260_v25 = vld [vmem:[%s3550_s12 + $0xf8] sm:$0xff] }
  0x3e   : > { %3088 = vmatpush3.bf16.msra.mxu0 %v3378_v36 }
  0x3f   : > { %3200 = vmatpush3.bf16.msra.mxu1 %v3380_v39  ;;  %3089 = vmatprep.subr.bf16.mxu0 %v3381_v46  ;;  %v337_v39 = vld [vmem:[%s3550_s12 + $0x360] sm:$0xff] }
  0x40   : > { %1573 = vmatmul.mubr.bf16.gmra.mrb[12].mxu0 %v2523_v16  ;;  %3201 = vmatprep.subr.bf16.mxu1 %v3383_v48  ;;  %v310_v16 = vld [vmem:[%s3550_s12 + $0x288] sm:$0xff]  ;;  %v341_v46 = vld [vmem:[%s3550_s12 + $0x380] sm:$0xff]  ;;  %v2603_v50 = vcombine.low %v333_v38, %v337_v39 }
  0x41   : > { %1734 = vmatmul.mubr.bf16.gmra.mrb[12].mxu1 %v2525_v18  ;;  %1580 = vmatprep.mubr.bf16.mxu0 %v2532_v19  ;;  %v2571_v18 = vcombine.low %v301_v6, %v305_v7  ;;  %v2573_v19 = vcombine.low %v302_v8, %v306_v9  ;;  %v2581_v27 = vcombine.low %v310_v16, %v314_v17  ;;  %v342_v48 = vld [vmem:[%s3550_s12 + $0x388] sm:$0xff]  ;;  %v239_v6 = vld [vmem:[%s3550_s12 + $0x50] sm:$0xff]  ;;  %v240_v8 = vld [vmem:[%s3550_s12 + $0x58] sm:$0xff] }
  0x42   : > { %1741 = vmatprep.mubr.bf16.mxu1 %v2534_v21  ;;  %3090 = vmatpush3.bf16.msra.mxu0 %v3382_v47  ;;  %v2582_v21 = vcombine.high %v310_v16, %v314_v17  ;;  %v345_v47 = vld [vmem:[%s3550_s12 + $0x3a0] sm:$0xff]  ;;  %v243_v7 = vld [vmem:[%s3550_s12 + $0x70] sm:$0xff]  ;;  %v244_v9 = vld [vmem:[%s3550_s12 + $0x78] sm:$0xff] }
  0x43   : > { %3202 = vmatpush3.bf16.msra.mxu1 %v3384_v49  ;;  %3091 = vmatprep.subr.bf16.mxu0 %v3385_v55  ;;  %v346_v49 = vld [vmem:[%s3550_s12 + $0x3a8] sm:$0xff]  ;;  %v2612_v52 = vcombine.high %v341_v46, %v345_v47  ;;  %v353_v55 = vld [vmem:[%s3550_s12 + $0x3e0] sm:$0xff]  ;;  %v248_v16 = vld [vmem:[%s3550_s12 + $0x98] sm:$0xff] }
  0x44   : > { %3203 = vmatprep.subr.bf16.mxu1 %v3387_v60  ;;  %v2614_v53 = vcombine.high %v342_v48, %v346_v49  ;;  %v252_v17 = vld [vmem:[%s3550_s12 + $0xb8] sm:$0xff] }
  0x46   : > { %3092 = vmatpush3.bf16.msra.mxu0 %v3386_v58  ;;  %v2611_v58 = vcombine.low %v341_v46, %v345_v47  ;;  %v279_v46 = vld [vmem:[%s3550_s12 + $0x190] sm:$0xff] }
  0x47   : > { %3204 = vmatpush3.bf16.msra.mxu1 %v3388_v61  ;;  %v283_v47 = vld [vmem:[%s3550_s12 + $0x1b0] sm:$0xff] }
  0x48   : > { %1581 = vmatmul.mubr.bf16.gmra.mrb[16].mxu0 %v2531_v30  ;;  %v325_v30 = vld [vmem:[%s3550_s12 + $0x300] sm:$0xff] }
  0x49   : > { %1742 = vmatmul.mubr.bf16.gmra.mrb[16].mxu1 %v2533_v31  ;;  %1588 = vmatprep.mubr.bf16.mxu0 %v2540_v32  ;;  %v329_v31 = vld [vmem:[%s3550_s12 + $0x320] sm:$0xff]  ;;  %v326_v32 = vld [vmem:[%s3550_s12 + $0x308] sm:$0xff] }
  0x4a   : > { %1749 = vmatprep.mubr.bf16.mxu1 %v2542_v33  ;;  %v330_v33 = vld [vmem:[%s3550_s12 + $0x328] sm:$0xff]  ;;  %v2596_v36 = vcombine.high %v325_v30, %v329_v31 }
  0x4b   : > { %v2598_v37 = vcombine.high %v326_v32, %v330_v33 }
  0x50   : > { %1589 = vmatmul.mubr.bf16.gmra.mrb[20].mxu0 %v2539_v42  ;;  %v2595_v42 = vcombine.low %v325_v30, %v329_v31  ;;  %v263_v30 = vld [vmem:[%s3550_s12 + $0x110] sm:$0xff] }
  0x51   : > { %1750 = vmatmul.mubr.bf16.gmra.mrb[20].mxu1 %v2541_v43  ;;  %1596 = vmatprep.mubr.bf16.mxu0 %v2548_v44  ;;  %v2597_v43 = vcombine.low %v326_v32, %v330_v33  ;;  %v2604_v44 = vcombine.high %v333_v38, %v337_v39  ;;  %v267_v31 = vld [vmem:[%s3550_s12 + $0x130] sm:$0xff]  ;;  %v264_v32 = vld [vmem:[%s3550_s12 + $0x118] sm:$0xff] }
  0x52   : > { %1757 = vmatprep.mubr.bf16.mxu1 %v2550_v45  ;;  %v2606_v45 = vcombine.high %v334_v40, %v338_v41  ;;  %v268_v33 = vld [vmem:[%s3550_s12 + $0x138] sm:$0xff]  ;;  %v271_v38 = vld [vmem:[%s3550_s12 + $0x150] sm:$0xff] }
  0x53   : > { %v275_v39 = vld [vmem:[%s3550_s12 + $0x170] sm:$0xff]  ;;  %v272_v40 = vld [vmem:[%s3550_s12 + $0x158] sm:$0xff] }
  0x54   : > { %v276_v41 = vld [vmem:[%s3550_s12 + $0x178] sm:$0xff] }
  0x58   : > { %1597 = vmatmul.mubr.bf16.gmra.mrb[24].mxu0 %v2547_v54  ;;  %v349_v54 = vld [vmem:[%s3550_s12 + $0x3c0] sm:$0xff] }
  0x59   : > { %1758 = vmatmul.mubr.bf16.gmra.mrb[24].mxu1 %v2549_v56  ;;  %1604 = vmatprep.mubr.bf16.mxu0 %v2556_v57  ;;  %v350_v56 = vld [vmem:[%s3550_s12 + $0x3c8] sm:$0xff]  ;;  %v2620_v60 = vcombine.high %v349_v54, %v353_v55 }
  0x5a   : > { %1765 = vmatprep.mubr.bf16.mxu1 %v2558_v59  ;;  %v354_v57 = vld [vmem:[%s3550_s12 + $0x3e8] sm:$0xff]  ;;  %v2613_v59 = vcombine.low %v342_v48, %v346_v49  ;;  %v280_v48 = vld [vmem:[%s3550_s12 + $0x198] sm:$0xff] }
  0x5b   : > { %v2622_v61 = vcombine.high %v350_v56, %v354_v57  ;;  %v284_v49 = vld [vmem:[%s3550_s12 + $0x1b8] sm:$0xff] }
  0x60   : > { %1605 = vmatmul.mubr.bf16.gmra.mrb[28].mxu0 %v2555_v2  ;;  %v2619_v2 = vcombine.low %v349_v54, %v353_v55  ;;  %v287_v54 = vld [vmem:[%s3550_s12 + $0x1d0] sm:$0xff] }
  0x61   : > { %1766 = vmatmul.mubr.bf16.gmra.mrb[28].mxu1 %v2557_v3  ;;  %1612 = vmatprep.mubr.bf16.mxu0 %v2564_v4  ;;  %v2621_v3 = vcombine.low %v350_v56, %v354_v57  ;;  %v2504_v4 = vcombine.high %v231_v62, %v235_v63  ;;  %v291_v55 = vld [vmem:[%s3550_s12 + $0x1f0] sm:$0xff]  ;;  %v288_v56 = vld [vmem:[%s3550_s12 + $0x1d8] sm:$0xff] }
  0x62   : > { %1773 = vmatprep.mubr.bf16.mxu1 %v2566_v5  ;;  %v2506_v5 = vcombine.high %v232_v0, %v236_v1  ;;  %v292_v57 = vld [vmem:[%s3550_s12 + $0x1f8] sm:$0xff] }
  0x68   : > { %1613 = vmatmul.mubr.bf16.gmra.mrb[32].mxu0 %v2563_v10  ;;  %v2503_v10 = vcombine.low %v231_v62, %v235_v63  ;;  %v295_v62 = vld [vmem:[%s3550_s12 + $0x210] sm:$0xff] }
  0x69   : > { %1774 = vmatmul.mubr.bf16.gmra.mrb[32].mxu1 %v2565_v11  ;;  %1620 = vmatprep.mubr.bf16.mxu0 %v2572_v12  ;;  %v2505_v11 = vcombine.low %v232_v0, %v236_v1  ;;  %v2512_v12 = vcombine.high %v239_v6, %v243_v7  ;;  %v299_v63 = vld [vmem:[%s3550_s12 + $0x230] sm:$0xff]  ;;  %v296_v0 = vld [vmem:[%s3550_s12 + $0x218] sm:$0xff] }
  0x6a   : > { %1781 = vmatprep.mubr.bf16.mxu1 %v2574_v13  ;;  %v2514_v13 = vcombine.high %v240_v8, %v244_v9  ;;  %v300_v1 = vld [vmem:[%s3550_s12 + $0x238] sm:$0xff] }
  0x70   : > { %1621 = vmatmul.mubr.bf16.gmra.mrb[36].mxu0 %v2571_v18  ;;  %v2511_v18 = vcombine.low %v239_v6, %v243_v7  ;;  %v303_v6 = vld [vmem:[%s3550_s12 + $0x250] sm:$0xff] }
  0x71   : > { %1782 = vmatmul.mubr.bf16.gmra.mrb[36].mxu1 %v2573_v19  ;;  %1628 = vmatprep.mubr.bf16.mxu0 %v2580_v20  ;;  %v2513_v19 = vcombine.low %v240_v8, %v244_v9  ;;  %v2520_v20 = vcombine.high %v247_v14, %v251_v15  ;;  %v307_v7 = vld [vmem:[%s3550_s12 + $0x270] sm:$0xff]  ;;  %v304_v8 = vld [vmem:[%s3550_s12 + $0x258] sm:$0xff] }
  0x72   : > { %1789 = vmatprep.mubr.bf16.mxu1 %v2582_v21  ;;  %v2522_v21 = vcombine.high %v248_v16, %v252_v17  ;;  %v308_v9 = vld [vmem:[%s3550_s12 + $0x278] sm:$0xff] }
  0x78   : > { %1629 = vmatmul.mubr.bf16.gmra.mrb[40].mxu0 %v2579_v26  ;;  %v2519_v26 = vcombine.low %v247_v14, %v251_v15  ;;  %v311_v14 = vld [vmem:[%s3550_s12 + $0x290] sm:$0xff] }
  0x79   : > { %1790 = vmatmul.mubr.bf16.gmra.mrb[40].mxu1 %v2581_v27  ;;  %1636 = vmatprep.mubr.bf16.mxu0 %v2588_v28  ;;  %v2521_v27 = vcombine.low %v248_v16, %v252_v17  ;;  %v2528_v28 = vcombine.high %v255_v22, %v259_v23  ;;  %v315_v15 = vld [vmem:[%s3550_s12 + $0x2b0] sm:$0xff]  ;;  %v312_v16 = vld [vmem:[%s3550_s12 + $0x298] sm:$0xff] }
  0x7a   : > { %1797 = vmatprep.mubr.bf16.mxu1 %v2590_v29  ;;  %v2530_v29 = vcombine.high %v256_v24, %v260_v25  ;;  %v316_v17 = vld [vmem:[%s3550_s12 + $0x2b8] sm:$0xff] }
  0x80   : > { %1637 = vmatmul.mubr.bf16.gmra.mrb[44].mxu0 %v2587_v34  ;;  %v2527_v34 = vcombine.low %v255_v22, %v259_v23  ;;  %v319_v22 = vld [vmem:[%s3550_s12 + $0x2d0] sm:$0xff] }
  0x81   : > { %1798 = vmatmul.mubr.bf16.gmra.mrb[44].mxu1 %v2589_v35  ;;  %1644 = vmatprep.mubr.bf16.mxu0 %v2596_v36  ;;  %v2529_v35 = vcombine.low %v256_v24, %v260_v25  ;;  %v2536_v36 = vcombine.high %v263_v30, %v267_v31  ;;  %v323_v23 = vld [vmem:[%s3550_s12 + $0x2f0] sm:$0xff]  ;;  %v320_v24 = vld [vmem:[%s3550_s12 + $0x2d8] sm:$0xff] }
  0x82   : > { %1805 = vmatprep.mubr.bf16.mxu1 %v2598_v37  ;;  %v2538_v37 = vcombine.high %v264_v32, %v268_v33  ;;  %v324_v25 = vld [vmem:[%s3550_s12 + $0x2f8] sm:$0xff] }
  0x88   : > { %1645 = vmatmul.mubr.bf16.gmra.mrb[48].mxu0 %v2595_v42  ;;  %v2535_v42 = vcombine.low %v263_v30, %v267_v31  ;;  %v327_v30 = vld [vmem:[%s3550_s12 + $0x310] sm:$0xff] }
  0x89   : > { %1806 = vmatmul.mubr.bf16.gmra.mrb[48].mxu1 %v2597_v43  ;;  %1652 = vmatprep.mubr.bf16.mxu0 %v2604_v44  ;;  %v2537_v43 = vcombine.low %v264_v32, %v268_v33  ;;  %v2544_v44 = vcombine.high %v271_v38, %v275_v39  ;;  %v331_v31 = vld [vmem:[%s3550_s12 + $0x330] sm:$0xff]  ;;  %v328_v33 = vld [vmem:[%s3550_s12 + $0x318] sm:$0xff] }
  0x8a   : > { %1813 = vmatprep.mubr.bf16.mxu1 %v2606_v45  ;;  %v2546_v45 = vcombine.high %v272_v40, %v276_v41 }
  0x90   : > { %1653 = vmatmul.mubr.bf16.gmra.mrb[52].mxu0 %v2603_v50  ;;  %v2543_v50 = vcombine.low %v271_v38, %v275_v39  ;;  %v2591_v38 = vcombine.low %v319_v22, %v323_v23 }
  0x91   : > { %1814 = vmatmul.mubr.bf16.gmra.mrb[52].mxu1 %v2605_v51  ;;  %1660 = vmatprep.mubr.bf16.mxu0 %v2612_v52  ;;  %v2545_v51 = vcombine.low %v272_v40, %v276_v41  ;;  %v2552_v52 = vcombine.high %v279_v46, %v283_v47 }
  0x92   : > { %1821 = vmatprep.mubr.bf16.mxu1 %v2614_v53  ;;  %v2554_v53 = vcombine.high %v280_v48, %v284_v49 }
  0x98   : > { %1661 = vmatmul.mubr.bf16.gmra.mrb[56].mxu0 %v2611_v58  ;;  %v2551_v58 = vcombine.low %v279_v46, %v283_v47 }
  0x99   : > { %1822 = vmatmul.mubr.bf16.gmra.mrb[56].mxu1 %v2613_v59  ;;  %1668 = vmatprep.mubr.bf16.mxu0 %v2620_v60  ;;  %v2553_v59 = vcombine.low %v280_v48, %v284_v49  ;;  %v2560_v60 = vcombine.high %v287_v54, %v291_v55 }
  0x9a   : > { %1829 = vmatprep.mubr.bf16.mxu1 %v2622_v61  ;;  %v2562_v61 = vcombine.high %v288_v56, %v292_v57 }
  0xa0   : > { %1669 = vmatmul.mubr.bf16.gmra.mrb[60].mxu0 %v2619_v2  ;;  %v2559_v2 = vcombine.low %v287_v54, %v291_v55  ;;  %v335_v54 = vld [vmem:[%s3550_s12 + $0x350] sm:$0xff] }
  0xa1   : > { %1830 = vmatmul.mubr.bf16.gmra.mrb[60].mxu1 %v2621_v3  ;;  %1870 = vmatprep.mubr.bf16.mxu0 %v2504_v4  ;;  %v2561_v3 = vcombine.low %v288_v56, %v292_v57  ;;  %v2568_v4 = vcombine.high %v295_v62, %v299_v63  ;;  %v339_v55 = vld [vmem:[%s3550_s12 + $0x370] sm:$0xff] }
  0xa2   : > { %2031 = vmatprep.mubr.bf16.mxu1 %v2506_v5  ;;  %v2570_v5 = vcombine.high %v296_v0, %v300_v1 }
  0xa8   : > { %1871 = vmatmul.mubr.bf16.vlgmr.msra.gmra.mrb[64].mxu0 %v2503_v10  ;;  %v2567_v10 = vcombine.low %v295_v62, %v299_v63  ;;  %v2599_v62 = vcombine.low %v327_v30, %v331_v31 }
  0xa9   : > { %2032 = vmatmul.mubr.bf16.vlgmr.msra.gmra.mrb[64].mxu1 %v2505_v11  ;;  %1878 = vmatprep.mubr.bf16.mxu0 %v2512_v12  ;;  %v2569_v11 = vcombine.low %v296_v0, %v300_v1  ;;  %v2576_v12 = vcombine.high %v303_v6, %v307_v7 }
  0xaa   : > { %2039 = vmatprep.mubr.bf16.mxu1 %v2514_v13  ;;  %v2578_v13 = vcombine.high %v304_v8, %v308_v9 }
  0xb0   : > { %1879 = vmatmul.mubr.bf16.gmra.mrb[68].mxu0 %v2511_v18  ;;  %v2575_v18 = vcombine.low %v303_v6, %v307_v7 }
  0xb1   : > { %2040 = vmatmul.mubr.bf16.gmra.mrb[68].mxu1 %v2513_v19  ;;  %1886 = vmatprep.mubr.bf16.mxu0 %v2520_v20  ;;  %v2577_v19 = vcombine.low %v304_v8, %v308_v9  ;;  %v2584_v20 = vcombine.high %v311_v14, %v315_v15 }
  0xb2   : > { %2047 = vmatprep.mubr.bf16.mxu1 %v2522_v21  ;;  %v2586_v21 = vcombine.high %v312_v16, %v316_v17 }
  0xb8   : > { %1887 = vmatmul.mubr.bf16.gmra.mrb[72].mxu0 %v2519_v26  ;;  %v2583_v26 = vcombine.low %v311_v14, %v315_v15  ;;  %v343_v14 = vld [vmem:[%s3550_s12 + $0x390] sm:$0xff] }
  0xb9   : > { %2048 = vmatmul.mubr.bf16.gmra.mrb[72].mxu1 %v2521_v27  ;;  %1894 = vmatprep.mubr.bf16.mxu0 %v2528_v28  ;;  %v2585_v27 = vcombine.low %v312_v16, %v316_v17  ;;  %v2592_v28 = vcombine.high %v319_v22, %v323_v23  ;;  %v347_v15 = vld [vmem:[%s3550_s12 + $0x3b0] sm:$0xff]  ;;  %v2607_v22 = vcombine.low %v335_v54, %v339_v55 }
  0xba   : > { %2055 = vmatprep.mubr.bf16.mxu1 %v2530_v29  ;;  %v2594_v29 = vcombine.high %v320_v24, %v324_v25 }
  0xc0   : > { %1895 = vmatmul.mubr.bf16.gmra.mrb[76].mxu0 %v2527_v34  ;;  %v332_v34 = vld [vmem:[%s3550_s12 + $0x338] sm:$0xff] }
  0xc1   : > { %2056 = vmatmul.mubr.bf16.gmra.mrb[76].mxu1 %v2529_v35  ;;  %1902 = vmatprep.mubr.bf16.mxu0 %v2536_v36  ;;  %v3773_v36 = vld [vmem:[%s3948_s2] ss:$0 sm:$0xff]  ;;  %v2602_v47 = vcombine.high %v328_v33, %v332_v34 }
  0xc2   : > { %2063 = vmatprep.mubr.bf16.mxu1 %v2538_v37 }
  0xc8   : > { %1903 = vmatmul.mubr.bf16.gmra.mrb[80].mxu0 %v2535_v42  ;;  %v2593_v42 = vcombine.low %v320_v24, %v324_v25 }
  0xc9   : > { %2064 = vmatmul.mubr.bf16.gmra.mrb[80].mxu1 %v2537_v43  ;;  %1910 = vmatprep.mubr.bf16.mxu0 %v2544_v44  ;;  %v2600_v43 = vcombine.high %v327_v30, %v331_v31 }
  0xca   : > { %2071 = vmatprep.mubr.bf16.mxu1 %v2546_v45 }
  0xd0   : > { %1911 = vmatmul.mubr.bf16.gmra.mrb[84].mxu0 %v2543_v50 }
  0xd1   : > { %2072 = vmatmul.mubr.bf16.gmra.mrb[84].mxu1 %v2545_v51  ;;  %1918 = vmatprep.mubr.bf16.mxu0 %v2552_v52 }
  0xd2   : > { %2079 = vmatprep.mubr.bf16.mxu1 %v2554_v53 }
  0xd8   : > { %1919 = vmatmul.mubr.bf16.gmra.mrb[88].mxu0 %v2551_v58  ;;  %v336_v58 = vld [vmem:[%s3550_s12 + $0x358] sm:$0xff] }
  0xd9   : > { %2080 = vmatmul.mubr.bf16.gmra.mrb[88].mxu1 %v2553_v59  ;;  %1926 = vmatprep.mubr.bf16.mxu0 %v2560_v60  ;;  %v340_v59 = vld [vmem:[%s3550_s12 + $0x378] sm:$0xff] }
  0xda   : > { %2087 = vmatprep.mubr.bf16.mxu1 %v2562_v61  ;;  %v2610_v7 = vcombine.high %v336_v58, %v340_v59 }
  0xe0   : > { %1927 = vmatmul.mubr.bf16.gmra.mrb[92].mxu0 %v2559_v2  ;;  %v2601_v2 = vcombine.low %v328_v33, %v332_v34 }
  0xe1   : > { %2088 = vmatmul.mubr.bf16.gmra.mrb[92].mxu1 %v2561_v3  ;;  %1934 = vmatprep.mubr.bf16.mxu0 %v2568_v4  ;;  %v2608_v3 = vcombine.high %v335_v54, %v339_v55 }
  0xe2   : > { %2095 = vmatprep.mubr.bf16.mxu1 %v2570_v5 }
  0xe8   : > { %1935 = vmatmul.mubr.bf16.gmra.mrb[96].mxu0 %v2567_v10 }
  0xe9   : > { %2096 = vmatmul.mubr.bf16.gmra.mrb[96].mxu1 %v2569_v11  ;;  %1942 = vmatprep.mubr.bf16.mxu0 %v2576_v12 }
  0xea   : > { %2103 = vmatprep.mubr.bf16.mxu1 %v2578_v13 }
  0xf0   : > { %1943 = vmatmul.mubr.bf16.gmra.mrb[100].mxu0 %v2575_v18  ;;  %v344_v18 = vld [vmem:[%s3550_s12 + $0x398] sm:$0xff] }
  0xf1   : > { %2104 = vmatmul.mubr.bf16.gmra.mrb[100].mxu1 %v2577_v19  ;;  %1950 = vmatprep.mubr.bf16.mxu0 %v2584_v20  ;;  %v348_v19 = vld [vmem:[%s3550_s12 + $0x3b8] sm:$0xff] }
  0xf2   : > { %2111 = vmatprep.mubr.bf16.mxu1 %v2586_v21  ;;  %v2618_v31 = vcombine.high %v344_v18, %v348_v19 }
  0xf8   : > { %1951 = vmatmul.mubr.bf16.gmra.mrb[104].mxu0 %v2583_v26  ;;  %v2609_v26 = vcombine.low %v336_v58, %v340_v59 }
  0xf9   : > { %2112 = vmatmul.mubr.bf16.gmra.mrb[104].mxu1 %v2585_v27  ;;  %1958 = vmatprep.mubr.bf16.mxu0 %v2592_v28  ;;  %v2616_v27 = vcombine.high %v343_v14, %v347_v15 }
  0xfa   : > { %2119 = vmatprep.mubr.bf16.mxu1 %v2594_v29 }
  0xfb   : > { %v2869_v32 = vpop.f32.mrb[0].mxu0 }
  0xfc   : > { %v2981_v35 = vpop.f32.mrb[0].mxu1  ;;  %v2870_v37 = vpop.f32.mrb[1].mxu0 }
  0xfd   : > { %v2871_v39 = vadd.f32 %v2870_v37, %v2869_v32  ;;  %v2982_v40 = vpop.f32.mrb[1].mxu1  ;;  %v2872_v41 = vpop.f32.mrb[2].mxu0 }
  0xfe   : > { %v2983_v44 = vadd.f32 %v2982_v40, %v2981_v35  ;;  %v2984_v45 = vpop.f32.mrb[2].mxu1  ;;  %v2873_v46 = vpop.f32.mrb[3].mxu0  ;;  %v355_v40 = vld [vmem:[%s3550_s12 + $0x3f0] sm:$0xff] }
  0xff   : > { %v1551_v48 = vadd.f32 %v2871_v39, %v3773_v36  ;;  %v2874_v49 = vadd.f32 %v2873_v46, %v2872_v41  ;;  %v2985_v50 = vpop.f32.mrb[3].mxu1  ;;  %v351_v39 = vld [vmem:[%s3550_s12 + $0x3d0] sm:$0xff] }
 0x100   : > { %v2986_v51 = vadd.f32 %v2985_v50, %v2984_v45  ;;  %1959 = vmatmul.mubr.bf16.gmra.mrb[108].mxu0 %v2591_v38 }
 0x101   : > { %v3776_v52 = vadd.f32 %v2983_v44, %v1551_v48  ;;  %v1554_v53 = vadd.f32 %v2874_v49, %v3773_v36  ;;  %2120 = vmatmul.mubr.bf16.gmra.mrb[108].mxu1 %v2593_v42  ;;  %1966 = vmatprep.mubr.bf16.mxu0 %v2600_v43  ;;  %v352_v43 = vld [vmem:[%s3550_s12 + $0x3d8] sm:$0xff] }
 0x102   : > { %2127 = vmatprep.mubr.bf16.mxu1 %v2602_v47  ;;  %v356_v44 = vld [vmem:[%s3550_s12 + $0x3f8] sm:$0xff]  ;;  %v2615_v47 = vcombine.low %v343_v14, %v347_v15  ;;  %s2497_s12 = sshll.u32 %s3955_s25, 2 }
 0x103   : > { %v3781_v56 = vadd.f32 %v2986_v51, %v1554_v53  ;;  %v2875_v57 = vpop.f32.mrb[4].mxu0  ;;  %v2617_v51 = vcombine.low %v344_v18, %v348_v19  ;;  %v2624_v53 = vcombine.high %v351_v39, %v355_v40  ;;  %v2626_v58 = vcombine.high %v352_v43, %v356_v44  ;;  %s3890_s17 = scalar_lea.vmem %s3949_s3, %s2497_s12 }
 0x104   : > { %v2987_v60 = vpop.f32.mrb[4].mxu1  ;;  %v2876_v61 = vpop.f32.mrb[5].mxu0 }
 0x105   : > { %v2877_v63 = vadd.f32 %v2876_v61, %v2875_v57  ;;  %v2988_v0 = vpop.f32.mrb[5].mxu1  ;;  %v2878_v1 = vpop.f32.mrb[6].mxu0 }
 0x106   : > { %v2989_v4 = vadd.f32 %v2988_v0, %v2987_v60  ;;  %v2990_v5 = vpop.f32.mrb[6].mxu1  ;;  %v2879_v6 = vpop.f32.mrb[7].mxu0 }
 0x107   : > { %v1559_v8 = vadd.f32 %v2877_v63, %v3773_v36  ;;  %v2880_v9 = vadd.f32 %v2879_v6, %v2878_v1  ;;  %v2991_v10 = vpop.f32.mrb[7].mxu1 }
 0x108   : > { %v2992_v11 = vadd.f32 %v2991_v10, %v2990_v5  ;;  %1967 = vmatmul.mubr.bf16.gmra.mrb[112].mxu0 %v2599_v62  ;;  %v2623_v5 = vcombine.low %v351_v39, %v355_v40 }
 0x109   : > { %v3786_v12 = vadd.f32 %v2989_v4, %v1559_v8  ;;  %v1562_v13 = vadd.f32 %v2880_v9, %v3773_v36  ;;  %2128 = vmatmul.mubr.bf16.gmra.mrb[112].mxu1 %v2601_v2  ;;  %1974 = vmatprep.mubr.bf16.mxu0 %v2608_v3  ;;  %v2625_v9 = vcombine.low %v352_v43, %v356_v44 }
 0x10a   : > { %2135 = vmatprep.mubr.bf16.mxu1 %v2610_v7 }
 0x10b   : > { %v3791_v16 = vadd.f32 %v2992_v11, %v1562_v13  ;;  %v2881_v17 = vpop.f32.mrb[8].mxu0 }
 0x10c   : > { %v2993_v20 = vpop.f32.mrb[8].mxu1  ;;  %v2882_v21 = vpop.f32.mrb[9].mxu0 }
 0x10d   : > { %v2883_v23 = vadd.f32 %v2882_v21, %v2881_v17  ;;  %v2994_v24 = vpop.f32.mrb[9].mxu1  ;;  %v2884_v25 = vpop.f32.mrb[10].mxu0 }
 0x10e   : > { %v2995_v28 = vadd.f32 %v2994_v24, %v2993_v20  ;;  %v2996_v29 = vpop.f32.mrb[10].mxu1  ;;  %v2885_v30 = vpop.f32.mrb[11].mxu0 }
 0x10f   : > { %v1567_v32 = vadd.f32 %v2883_v23, %v3773_v36  ;;  %v2886_v33 = vadd.f32 %v2885_v30, %v2884_v25  ;;  %v2997_v34 = vpop.f32.mrb[11].mxu1 }
 0x110   : > { %v2998_v35 = vadd.f32 %v2997_v34, %v2996_v29  ;;  %1975 = vmatmul.mubr.bf16.gmra.mrb[116].mxu0 %v2607_v22 }
 0x111   : > { %v3796_v37 = vadd.f32 %v2995_v28, %v1567_v32  ;;  %v1570_v38 = vadd.f32 %v2886_v33, %v3773_v36  ;;  %2136 = vmatmul.mubr.bf16.gmra.mrb[116].mxu1 %v2609_v26  ;;  %1982 = vmatprep.mubr.bf16.mxu0 %v2616_v27 }
 0x112   : > { %2143 = vmatprep.mubr.bf16.mxu1 %v2618_v31 }
 0x113   : > { %v3801_v41 = vadd.f32 %v2998_v35, %v1570_v38  ;;  %v2887_v42 = vpop.f32.mrb[12].mxu0 }
 0x114   : > { %v2999_v45 = vpop.f32.mrb[12].mxu1  ;;  %v2888_v46 = vpop.f32.mrb[13].mxu0 }
 0x115   : > { %v2889_v48 = vadd.f32 %v2888_v46, %v2887_v42  ;;  %v3000_v49 = vpop.f32.mrb[13].mxu1  ;;  %v2890_v50 = vpop.f32.mrb[14].mxu0 }
 0x116   : > { %v3001_v54 = vadd.f32 %v3000_v49, %v2999_v45  ;;  %v3002_v55 = vpop.f32.mrb[14].mxu1  ;;  %v2891_v57 = vpop.f32.mrb[15].mxu0 }
 0x117   : > { %v1575_v59 = vadd.f32 %v2889_v48, %v3773_v36  ;;  %v2892_v60 = vadd.f32 %v2891_v57, %v2890_v50  ;;  %v3003_v61 = vpop.f32.mrb[15].mxu1 }
 0x118   : > { %v3004_v62 = vadd.f32 %v3003_v61, %v3002_v55  ;;  %1983 = vmatmul.mubr.bf16.gmra.mrb[120].mxu0 %v2615_v47 }
 0x119   : > { %v3806_v63 = vadd.f32 %v3001_v54, %v1575_v59  ;;  %v1578_v0 = vadd.f32 %v2892_v60, %v3773_v36  ;;  %2144 = vmatmul.mubr.bf16.gmra.mrb[120].mxu1 %v2617_v51  ;;  %1990 = vmatprep.mubr.bf16.mxu0 %v2624_v53 }
 0x11a   : > { %2151 = vmatprep.mubr.bf16.mxu1 %v2626_v58 }
 0x11b   : > { %v3809_v1 = vadd.f32 %v3004_v62, %v1578_v0  ;;  %v2893_v2 = vpop.f32.mrb[16].mxu0 }
 0x11c   : > { %v3005_v3 = vpop.f32.mrb[16].mxu1  ;;  %v2894_v4 = vpop.f32.mrb[17].mxu0 }
 0x11d   : > { %v2895_v6 = vadd.f32 %v2894_v4, %v2893_v2  ;;  %v3006_v7 = vpop.f32.mrb[17].mxu1  ;;  %v2896_v8 = vpop.f32.mrb[18].mxu0 }
 0x11e   : > { %v3007_v10 = vadd.f32 %v3006_v7, %v3005_v3  ;;  %v3008_v11 = vpop.f32.mrb[18].mxu1  ;;  %v2897_v13 = vpop.f32.mrb[19].mxu0 }
 0x11f   : > { %v1583_v14 = vadd.f32 %v2895_v6, %v3773_v36  ;;  %v2898_v15 = vadd.f32 %v2897_v13, %v2896_v8  ;;  %v3009_v17 = vpop.f32.mrb[19].mxu1 }
 0x120   : > { %v3010_v18 = vadd.f32 %v3009_v17, %v3008_v11  ;;  %1991 = vmatmul.mubr.bf16.gmra.mrb[124].mxu0 %v2623_v5 }
 0x121   : > { %v3812_v19 = vadd.f32 %v3007_v10, %v1583_v14  ;;  %v1586_v20 = vadd.f32 %v2898_v15, %v3773_v36  ;;  %2152 = vmatmul.mubr.bf16.gmra.mrb[124].mxu1 %v2625_v9 }
 0x123   : > { %v3815_v21 = vadd.f32 %v3010_v18, %v1586_v20  ;;  %v2899_v22 = vpop.f32.mrb[20].mxu0 }
 0x124   : > { %v3011_v23 = vpop.f32.mrb[20].mxu1  ;;  %v2900_v24 = vpop.f32.mrb[21].mxu0 }
 0x125   : > { %v2901_v25 = vadd.f32 %v2900_v24, %v2899_v22  ;;  %v3012_v26 = vpop.f32.mrb[21].mxu1  ;;  %v2902_v27 = vpop.f32.mrb[22].mxu0 }
 0x126   : > { %v3013_v28 = vadd.f32 %v3012_v26, %v3011_v23  ;;  %v3014_v29 = vpop.f32.mrb[22].mxu1  ;;  %v2903_v30 = vpop.f32.mrb[23].mxu0 }
 0x127   : > { %v1591_v31 = vadd.f32 %v2901_v25, %v3773_v36  ;;  %v2904_v32 = vadd.f32 %v2903_v30, %v2902_v27  ;;  %v3015_v33 = vpop.f32.mrb[23].mxu1 }
 0x128   : > { %v3016_v34 = vadd.f32 %v3015_v33, %v3014_v29 }
 0x129   : > { %v3818_v35 = vadd.f32 %v3013_v28, %v1591_v31  ;;  %v1594_v38 = vadd.f32 %v2904_v32, %v3773_v36 }
 0x12b   : > { %v3821_v39 = vadd.f32 %v3016_v34, %v1594_v38  ;;  %v2905_v40 = vpop.f32.mrb[24].mxu0 }
 0x12c   : > { %v3017_v42 = vpop.f32.mrb[24].mxu1  ;;  %v2906_v43 = vpop.f32.mrb[25].mxu0 }
 0x12d   : > { %v2907_v44 = vadd.f32 %v2906_v43, %v2905_v40  ;;  %v3018_v45 = vpop.f32.mrb[25].mxu1  ;;  %v2908_v46 = vpop.f32.mrb[26].mxu0 }
 0x12e   : > { %v3019_v47 = vadd.f32 %v3018_v45, %v3017_v42  ;;  %v3020_v48 = vpop.f32.mrb[26].mxu1  ;;  %v2909_v49 = vpop.f32.mrb[27].mxu0 }
 0x12f   : > { %v1599_v50 = vadd.f32 %v2907_v44, %v3773_v36  ;;  %v2910_v51 = vadd.f32 %v2909_v49, %v2908_v46  ;;  %v3021_v53 = vpop.f32.mrb[27].mxu1 }
 0x130   : > { %v3022_v54 = vadd.f32 %v3021_v53, %v3020_v48 }
 0x131   : > { %v3824_v55 = vadd.f32 %v3019_v47, %v1599_v50  ;;  %v1602_v57 = vadd.f32 %v2910_v51, %v3773_v36 }
 0x133   : > { %v3827_v58 = vadd.f32 %v3022_v54, %v1602_v57  ;;  %v2911_v59 = vpop.f32.mrb[28].mxu0 }
 0x134   : > { %v3023_v60 = vpop.f32.mrb[28].mxu1  ;;  %v2912_v61 = vpop.f32.mrb[29].mxu0 }
 0x135   : > { %v2913_v62 = vadd.f32 %v2912_v61, %v2911_v59  ;;  %v3024_v0 = vpop.f32.mrb[29].mxu1  ;;  %v2914_v2 = vpop.f32.mrb[30].mxu0 }
 0x136   : > { %v3025_v3 = vadd.f32 %v3024_v0, %v3023_v60  ;;  %v3026_v4 = vpop.f32.mrb[30].mxu1  ;;  %v2915_v5 = vpop.f32.mrb[31].mxu0 }
 0x137   : > { %v1607_v6 = vadd.f32 %v2913_v62, %v3773_v36  ;;  %v2916_v7 = vadd.f32 %v2915_v5, %v2914_v2  ;;  %v3027_v8 = vpop.f32.mrb[31].mxu1 }
 0x138   : > { %v3028_v9 = vadd.f32 %v3027_v8, %v3026_v4 }
 0x139   : > { %v3830_v10 = vadd.f32 %v3025_v3, %v1607_v6  ;;  %v1610_v11 = vadd.f32 %v2916_v7, %v3773_v36 }
 0x13b   : > { %v3833_v13 = vadd.f32 %v3028_v9, %v1610_v11  ;;  %v2917_v14 = vpop.f32.mrb[32].mxu0 }
 0x13c   : > { %v3029_v15 = vpop.f32.mrb[32].mxu1  ;;  %v2918_v17 = vpop.f32.mrb[33].mxu0 }
 0x13d   : > { %v2919_v18 = vadd.f32 %v2918_v17, %v2917_v14  ;;  %v3030_v20 = vpop.f32.mrb[33].mxu1  ;;  %v2920_v22 = vpop.f32.mrb[34].mxu0 }
 0x13e   : > { %v3031_v23 = vadd.f32 %v3030_v20, %v3029_v15  ;;  %v3032_v24 = vpop.f32.mrb[34].mxu1  ;;  %v2921_v25 = vpop.f32.mrb[35].mxu0 }
 0x13f   : > { %v1615_v26 = vadd.f32 %v2919_v18, %v3773_v36  ;;  %v2922_v27 = vadd.f32 %v2921_v25, %v2920_v22  ;;  %v3033_v28 = vpop.f32.mrb[35].mxu1 }
 0x140   : > { %v3034_v29 = vadd.f32 %v3033_v28, %v3032_v24 }
 0x141   : > { %v3836_v30 = vadd.f32 %v3031_v23, %v1615_v26  ;;  %v1618_v31 = vadd.f32 %v2922_v27, %v3773_v36 }
 0x143   : > { %v3839_v32 = vadd.f32 %v3034_v29, %v1618_v31  ;;  %v2923_v33 = vpop.f32.mrb[36].mxu0 }
 0x144   : > { %v3035_v34 = vpop.f32.mrb[36].mxu1  ;;  %v2924_v38 = vpop.f32.mrb[37].mxu0 }
 0x145   : > { %v2925_v40 = vadd.f32 %v2924_v38, %v2923_v33  ;;  %v3036_v42 = vpop.f32.mrb[37].mxu1  ;;  %v2926_v43 = vpop.f32.mrb[38].mxu0 }
 0x146   : > { %v3037_v44 = vadd.f32 %v3036_v42, %v3035_v34  ;;  %v3038_v45 = vpop.f32.mrb[38].mxu1  ;;  %v2927_v46 = vpop.f32.mrb[39].mxu0 }
 0x147   : > { %v1623_v47 = vadd.f32 %v2925_v40, %v3773_v36  ;;  %v2928_v48 = vadd.f32 %v2927_v46, %v2926_v43  ;;  %v3039_v49 = vpop.f32.mrb[39].mxu1 }
 0x148   : > { %v3040_v50 = vadd.f32 %v3039_v49, %v3038_v45 }
 0x149   : > { %v3842_v51 = vadd.f32 %v3037_v44, %v1623_v47  ;;  %v1626_v53 = vadd.f32 %v2928_v48, %v3773_v36 }
 0x14b   : > { %v3845_v54 = vadd.f32 %v3040_v50, %v1626_v53  ;;  %v2929_v57 = vpop.f32.mrb[40].mxu0 }
 0x14c   : > { %v3041_v59 = vpop.f32.mrb[40].mxu1  ;;  %v2930_v60 = vpop.f32.mrb[41].mxu0 }
 0x14d   : > { %v2931_v61 = vadd.f32 %v2930_v60, %v2929_v57  ;;  %v3042_v62 = vpop.f32.mrb[41].mxu1  ;;  %v2932_v0 = vpop.f32.mrb[42].mxu0 }
 0x14e   : > { %v3043_v2 = vadd.f32 %v3042_v62, %v3041_v59  ;;  %v3044_v3 = vpop.f32.mrb[42].mxu1  ;;  %v2933_v4 = vpop.f32.mrb[43].mxu0 }
 0x14f   : > { %v1631_v5 = vadd.f32 %v2931_v61, %v3773_v36  ;;  %v2934_v6 = vadd.f32 %v2933_v4, %v2932_v0  ;;  %v3045_v7 = vpop.f32.mrb[43].mxu1 }
 0x150   : > { %v3046_v8 = vadd.f32 %v3045_v7, %v3044_v3 }
 0x151   : > { %v3848_v9 = vadd.f32 %v3043_v2, %v1631_v5  ;;  %v1634_v11 = vadd.f32 %v2934_v6, %v3773_v36 }
 0x153   : > { %v3851_v14 = vadd.f32 %v3046_v8, %v1634_v11  ;;  %v2935_v15 = vpop.f32.mrb[44].mxu0 }
 0x154   : > { %v3047_v17 = vpop.f32.mrb[44].mxu1  ;;  %v2936_v18 = vpop.f32.mrb[45].mxu0 }
 0x155   : > { %v2937_v20 = vadd.f32 %v2936_v18, %v2935_v15  ;;  %v3048_v22 = vpop.f32.mrb[45].mxu1  ;;  %v2938_v23 = vpop.f32.mrb[46].mxu0 }
 0x156   : > { %v3049_v24 = vadd.f32 %v3048_v22, %v3047_v17  ;;  %v3050_v25 = vpop.f32.mrb[46].mxu1  ;;  %v2939_v26 = vpop.f32.mrb[47].mxu0 }
 0x157   : > { %v1639_v27 = vadd.f32 %v2937_v20, %v3773_v36  ;;  %v2940_v28 = vadd.f32 %v2939_v26, %v2938_v23  ;;  %v3051_v29 = vpop.f32.mrb[47].mxu1 }
 0x158   : > { %v3052_v31 = vadd.f32 %v3051_v29, %v3050_v25 }
 0x159   : > { %v3854_v33 = vadd.f32 %v3049_v24, %v1639_v27  ;;  %v1642_v34 = vadd.f32 %v2940_v28, %v3773_v36 }
 0x15b   : > { %v3857_v38 = vadd.f32 %v3052_v31, %v1642_v34  ;;  %v2941_v40 = vpop.f32.mrb[48].mxu0 }
 0x15c   : > { %v3053_v42 = vpop.f32.mrb[48].mxu1  ;;  %v2942_v43 = vpop.f32.mrb[49].mxu0 }
 0x15d   : > { %v2943_v44 = vadd.f32 %v2942_v43, %v2941_v40  ;;  %v3054_v45 = vpop.f32.mrb[49].mxu1  ;;  %v2944_v46 = vpop.f32.mrb[50].mxu0 }
 0x15e   : > { %v3055_v47 = vadd.f32 %v3054_v45, %v3053_v42  ;;  %v3056_v48 = vpop.f32.mrb[50].mxu1  ;;  %v2945_v49 = vpop.f32.mrb[51].mxu0 }
 0x15f   : > { %v1647_v50 = vadd.f32 %v2943_v44, %v3773_v36  ;;  %v2946_v53 = vadd.f32 %v2945_v49, %v2944_v46  ;;  %v3057_v57 = vpop.f32.mrb[51].mxu1 }
 0x160   : > { %v3058_v59 = vadd.f32 %v3057_v57, %v3056_v48 }
 0x161   : > { %v3860_v60 = vadd.f32 %v3055_v47, %v1647_v50  ;;  %v1650_v61 = vadd.f32 %v2946_v53, %v3773_v36 }
 0x163   : > { %v3863_v62 = vadd.f32 %v3058_v59, %v1650_v61  ;;  %v2947_v0 = vpop.f32.mrb[52].mxu0 }
 0x164   : > { %v3059_v2 = vpop.f32.mrb[52].mxu1  ;;  %v2948_v3 = vpop.f32.mrb[53].mxu0 }
 0x165   : > { %v2949_v4 = vadd.f32 %v2948_v3, %v2947_v0  ;;  %v3060_v5 = vpop.f32.mrb[53].mxu1  ;;  %v2950_v6 = vpop.f32.mrb[54].mxu0 }
 0x166   : > { %v3061_v7 = vadd.f32 %v3060_v5, %v3059_v2  ;;  %v3062_v8 = vpop.f32.mrb[54].mxu1  ;;  %v2951_v11 = vpop.f32.mrb[55].mxu0 }
 0x167   : > { %v1655_v15 = vadd.f32 %v2949_v4, %v3773_v36  ;;  %v2952_v17 = vadd.f32 %v2951_v11, %v2950_v6  ;;  %v3063_v18 = vpop.f32.mrb[55].mxu1 }
 0x168   : > { %v3064_v20 = vadd.f32 %v3063_v18, %v3062_v8 }
 0x169   : > { %v3866_v22 = vadd.f32 %v3061_v7, %v1655_v15  ;;  %v1658_v23 = vadd.f32 %v2952_v17, %v3773_v36 }
 0x16b   : > { %v3869_v24 = vadd.f32 %v3064_v20, %v1658_v23  ;;  %v2953_v25 = vpop.f32.mrb[56].mxu0 }
 0x16c   : > { %v3065_v26 = vpop.f32.mrb[56].mxu1  ;;  %v2954_v27 = vpop.f32.mrb[57].mxu0 }
 0x16d   : > { %v2955_v28 = vadd.f32 %v2954_v27, %v2953_v25  ;;  %v3066_v29 = vpop.f32.mrb[57].mxu1  ;;  %v2956_v31 = vpop.f32.mrb[58].mxu0 }
 0x16e   : > { %v3067_v34 = vadd.f32 %v3066_v29, %v3065_v26  ;;  %v3068_v40 = vpop.f32.mrb[58].mxu1  ;;  %v2957_v42 = vpop.f32.mrb[59].mxu0 }
 0x16f   : > { %v1663_v43 = vadd.f32 %v2955_v28, %v3773_v36  ;;  %v2958_v44 = vadd.f32 %v2957_v42, %v2956_v31  ;;  %v3069_v45 = vpop.f32.mrb[59].mxu1 }
 0x170   : > { %v3070_v46 = vadd.f32 %v3069_v45, %v3068_v40 }
 0x171   : > { %v3872_v47 = vadd.f32 %v3067_v34, %v1663_v43  ;;  %v1666_v48 = vadd.f32 %v2958_v44, %v3773_v36 }
 0x173   : > { %v3875_v49 = vadd.f32 %v3070_v46, %v1666_v48  ;;  %v2959_v50 = vpop.f32.mrb[60].mxu0 }
 0x174   : > { %v3071_v53 = vpop.f32.mrb[60].mxu1  ;;  %v2960_v57 = vpop.f32.mrb[61].mxu0 }
 0x175   : > { %v2961_v59 = vadd.f32 %v2960_v57, %v2959_v50  ;;  %v3072_v61 = vpop.f32.mrb[61].mxu1  ;;  %v2962_v0 = vpop.f32.mrb[62].mxu0 }
 0x176   : > { %v3073_v2 = vadd.f32 %v3072_v61, %v3071_v53  ;;  %v3074_v3 = vpop.f32.mrb[62].mxu1  ;;  %v2963_v4 = vpop.f32.mrb[63].mxu0 }
 0x177   : > { %v1671_v5 = vadd.f32 %v2961_v59, %v3773_v36  ;;  %v2964_v6 = vadd.f32 %v2963_v4, %v2962_v0  ;;  %v3075_v7 = vpop.f32.mrb[63].mxu1 }
 0x178   : > { %v3076_v8 = vadd.f32 %v3075_v7, %v3074_v3 }
 0x179   : > { %v3878_v11 = vadd.f32 %v3073_v2, %v1671_v5  ;;  %v1674_v15 = vadd.f32 %v2964_v6, %v3773_v36 }
 0x17b   : > { %v3881_v17 = vadd.f32 %v3076_v8, %v1674_v15  ;;  %v3093_v18 = vpop.f32.mrb[64].mxu0 }
 0x17c   : > { %v3205_v20 = vpop.f32.mrb[64].mxu1  ;;  %v3094_v23 = vpop.f32.mrb[65].mxu0 }
 0x17d   : > { %v3095_v25 = vadd.f32 %v3094_v23, %v3093_v18  ;;  %v3206_v26 = vpop.f32.mrb[65].mxu1  ;;  %v3096_v27 = vpop.f32.mrb[66].mxu0 }
 0x17e   : > { %v3207_v28 = vadd.f32 %v3206_v26, %v3205_v20  ;;  %v3208_v29 = vpop.f32.mrb[66].mxu1  ;;  %v3097_v31 = vpop.f32.mrb[67].mxu0 }
 0x17f   : > { %v1873_v34 = vadd.f32 %v3095_v25, %v3776_v52  ;;  %v3098_v40 = vadd.f32 %v3097_v31, %v3096_v27  ;;  %v3209_v42 = vpop.f32.mrb[67].mxu1 }
 0x180   : > { %v3210_v43 = vadd.f32 %v3209_v42, %v3208_v29 }
 0x181   : > { %v2034_v44 = vadd.f32 %v3207_v28, %v1873_v34  ;;  %v1876_v36 = vadd.f32 %v3098_v40, %v3781_v56 }
 0x183   : > { %v2160_v45 = vmul.f32 0.2, %v2034_v44  ;;  %v2037_v46 = vadd.f32 %v3210_v43, %v1876_v36  ;;  %v3099_v48 = vpop.f32.mrb[68].mxu0 }
 0x184   : > { %v3211_v50 = vpop.f32.mrb[68].mxu1  ;;  %v3100_v53 = vpop.f32.mrb[69].mxu0 }
 0x185   : > { %v2161_v57 = vmul.f32 0.2, %v2037_v46  ;;  %v3101_v59 = vadd.f32 %v3100_v53, %v3099_v48  ;;  %v3212_v61 = vpop.f32.mrb[69].mxu1  ;;  %v3102_v0 = vpop.f32.mrb[70].mxu0  ;;  %v2192_v52 = vmax.f32 %v2034_v44, %v2160_v45 }
 0x186   : > { %v3213_v2 = vadd.f32 %v3212_v61, %v3211_v50  ;;  %v3214_v3 = vpop.f32.mrb[70].mxu1  ;;  %v3103_v4 = vpop.f32.mrb[71].mxu0 }
 0x187   : > { %v2193_v5 = vmax.f32 %v2037_v46, %v2161_v57  ;;  %v1881_v6 = vadd.f32 %v3101_v59, %v3786_v12  ;;  %v3104_v7 = vadd.f32 %v3103_v4, %v3102_v0  ;;  %v3215_v8 = vpop.f32.mrb[71].mxu1 }
 0x188   : > { %v3216_v56 = vadd.f32 %v3215_v8, %v3214_v3 }
 0x189   : > { %v2761_v15 = vpack.c.bf16 %v2193_v5, %v2192_v52  ;;  %v2042_v18 = vadd.f32 %v3213_v2, %v1881_v6  ;;  %v1884_v20 = vadd.f32 %v3104_v7, %v3791_v16 }
 0x18b   : > { %2762 = vst [vmem:[%s3890_s17] sm:$0xff] %v2761_v15   ;;  %v2162_v23 = vmul.f32 0.2, %v2042_v18  ;;  %v2045_v25 = vadd.f32 %v3216_v56, %v1884_v20  ;;  %v3105_v26 = vpop.f32.mrb[72].mxu0 }
 0x18c   : > { %v3217_v27 = vpop.f32.mrb[72].mxu1  ;;  %v3106_v28 = vpop.f32.mrb[73].mxu0 }
 0x18d   : > { %v2163_v12 = vmul.f32 0.2, %v2045_v25  ;;  %v3107_v29 = vadd.f32 %v3106_v28, %v3105_v26  ;;  %v3218_v31 = vpop.f32.mrb[73].mxu1  ;;  %v3108_v34 = vpop.f32.mrb[74].mxu0  ;;  %v2194_v44 = vmax.f32 %v2042_v18, %v2162_v23 }
 0x18e   : > { %v3219_v40 = vadd.f32 %v3218_v31, %v3217_v27  ;;  %v3220_v42 = vpop.f32.mrb[74].mxu1  ;;  %v3109_v43 = vpop.f32.mrb[75].mxu0 }
 0x18f   : > { %v2195_v36 = vmax.f32 %v2045_v25, %v2163_v12  ;;  %v1889_v45 = vadd.f32 %v3107_v29, %v3796_v37  ;;  %v3110_v46 = vadd.f32 %v3109_v43, %v3108_v34  ;;  %v3221_v16 = vpop.f32.mrb[75].mxu1 }
 0x190   : > { %v3222_v48 = vadd.f32 %v3221_v16, %v3220_v42 }
 0x191   : > { %v2766_v50 = vpack.c.bf16 %v2195_v36, %v2194_v44  ;;  %v2050_v53 = vadd.f32 %v3219_v40, %v1889_v45  ;;  %v1892_v57 = vadd.f32 %v3110_v46, %v3801_v41 }
 0x193   : > { %2838 = vst [vmem:[%s3890_s17 + $0x8] sm:$0xff] %v2766_v50   ;;  %v2164_v59 = vmul.f32 0.2, %v2050_v53  ;;  %v2053_v61 = vadd.f32 %v3222_v48, %v1892_v57  ;;  %v3111_v0 = vpop.f32.mrb[76].mxu0 }
 0x194   : > { %v3223_v2 = vpop.f32.mrb[76].mxu1  ;;  %v3112_v3 = vpop.f32.mrb[77].mxu0 }
 0x195   : > { %v2165_v4 = vmul.f32 0.2, %v2053_v61  ;;  %v3113_v52 = vadd.f32 %v3112_v3, %v3111_v0  ;;  %v3224_v5 = vpop.f32.mrb[77].mxu1  ;;  %v3114_v6 = vpop.f32.mrb[78].mxu0  ;;  %v2196_v56 = vmax.f32 %v2050_v53, %v2164_v59 }
 0x196   : > { %v3225_v7 = vadd.f32 %v3224_v5, %v3223_v2  ;;  %v3226_v37 = vpop.f32.mrb[78].mxu1  ;;  %v3115_v8 = vpop.f32.mrb[79].mxu0 }
 0x197   : > { %v2197_v15 = vmax.f32 %v2053_v61, %v2165_v4  ;;  %v1897_v18 = vadd.f32 %v3113_v52, %v3806_v63  ;;  %v3116_v20 = vadd.f32 %v3115_v8, %v3114_v6  ;;  %v3227_v41 = vpop.f32.mrb[79].mxu1 }
 0x198   : > { %v3228_v23 = vadd.f32 %v3227_v41, %v3226_v37 }
 0x199   : > { %v2771_v25 = vpack.c.bf16 %v2197_v15, %v2196_v56  ;;  %v2058_v26 = vadd.f32 %v3225_v7, %v1897_v18  ;;  %v1900_v27 = vadd.f32 %v3116_v20, %v3809_v1 }
 0x19b   : > { %2839 = vst [vmem:[%s3890_s17 + $0x10] sm:$0xff] %v2771_v25   ;;  %v2166_v28 = vmul.f32 0.2, %v2058_v26  ;;  %v2061_v12 = vadd.f32 %v3228_v23, %v1900_v27  ;;  %v3117_v29 = vpop.f32.mrb[80].mxu0 }
 0x19c   : > { %v3229_v31 = vpop.f32.mrb[80].mxu1  ;;  %v3118_v34 = vpop.f32.mrb[81].mxu0 }
 0x19d   : > { %v2167_v40 = vmul.f32 0.2, %v2061_v12  ;;  %v3119_v42 = vadd.f32 %v3118_v34, %v3117_v29  ;;  %v3230_v43 = vpop.f32.mrb[81].mxu1  ;;  %v3120_v44 = vpop.f32.mrb[82].mxu0  ;;  %v2198_v46 = vmax.f32 %v2058_v26, %v2166_v28 }
 0x19e   : > { %v3231_v36 = vadd.f32 %v3230_v43, %v3229_v31  ;;  %v3232_v63 = vpop.f32.mrb[82].mxu1  ;;  %v3121_v45 = vpop.f32.mrb[83].mxu0 }
 0x19f   : > { %v2199_v16 = vmax.f32 %v2061_v12, %v2167_v40  ;;  %v1905_v48 = vadd.f32 %v3119_v42, %v3812_v19  ;;  %v3122_v50 = vadd.f32 %v3121_v45, %v3120_v44  ;;  %v3233_v1 = vpop.f32.mrb[83].mxu1 }
 0x1a0   : > { %v3234_v53 = vadd.f32 %v3233_v1, %v3232_v63 }
 0x1a1   : > { %v2776_v57 = vpack.c.bf16 %v2199_v16, %v2198_v46  ;;  %v2066_v59 = vadd.f32 %v3231_v36, %v1905_v48  ;;  %v1908_v61 = vadd.f32 %v3122_v50, %v3815_v21 }
 0x1a3   : > { %2840 = vst [vmem:[%s3890_s17 + $0x18] sm:$0xff] %v2776_v57   ;;  %v2168_v0 = vmul.f32 0.2, %v2066_v59  ;;  %v2069_v2 = vadd.f32 %v3234_v53, %v1908_v61  ;;  %v3123_v3 = vpop.f32.mrb[84].mxu0 }
 0x1a4   : > { %v3235_v4 = vpop.f32.mrb[84].mxu1  ;;  %v3124_v52 = vpop.f32.mrb[85].mxu0 }
 0x1a5   : > { %v2169_v5 = vmul.f32 0.2, %v2069_v2  ;;  %v3125_v6 = vadd.f32 %v3124_v52, %v3123_v3  ;;  %v3236_v7 = vpop.f32.mrb[85].mxu1  ;;  %v3126_v37 = vpop.f32.mrb[86].mxu0  ;;  %v2200_v15 = vmax.f32 %v2066_v59, %v2168_v0 }
 0x1a6   : > { %v3237_v8 = vadd.f32 %v3236_v7, %v3235_v4  ;;  %v3238_v19 = vpop.f32.mrb[86].mxu1  ;;  %v3127_v56 = vpop.f32.mrb[87].mxu0 }
 0x1a7   : > { %v2201_v18 = vmax.f32 %v2069_v2, %v2169_v5  ;;  %v1913_v20 = vadd.f32 %v3125_v6, %v3818_v35  ;;  %v3128_v41 = vadd.f32 %v3127_v56, %v3126_v37  ;;  %v3239_v21 = vpop.f32.mrb[87].mxu1 }
 0x1a8   : > { %v3240_v23 = vadd.f32 %v3239_v21, %v3238_v19 }
 0x1a9   : > { %v2781_v25 = vpack.c.bf16 %v2201_v18, %v2200_v15  ;;  %v2074_v26 = vadd.f32 %v3237_v8, %v1913_v20  ;;  %v1916_v27 = vadd.f32 %v3128_v41, %v3821_v39 }
 0x1ab   : > { %2841 = vst [vmem:[%s3890_s17 + $0x20] sm:$0xff] %v2781_v25   ;;  %v2170_v28 = vmul.f32 0.2, %v2074_v26  ;;  %v2077_v12 = vadd.f32 %v3240_v23, %v1916_v27  ;;  %v3129_v29 = vpop.f32.mrb[88].mxu0 }
 0x1ac   : > { %v3241_v31 = vpop.f32.mrb[88].mxu1  ;;  %v3130_v34 = vpop.f32.mrb[89].mxu0 }
 0x1ad   : > { %v2171_v40 = vmul.f32 0.2, %v2077_v12  ;;  %v3131_v42 = vadd.f32 %v3130_v34, %v3129_v29  ;;  %v3242_v43 = vpop.f32.mrb[89].mxu1  ;;  %v3132_v44 = vpop.f32.mrb[90].mxu0  ;;  %v2202_v45 = vmax.f32 %v2074_v26, %v2170_v28 }
 0x1ae   : > { %v3243_v36 = vadd.f32 %v3242_v43, %v3241_v31  ;;  %v3244_v35 = vpop.f32.mrb[90].mxu1  ;;  %v3133_v63 = vpop.f32.mrb[91].mxu0 }
 0x1af   : > { %v2203_v46 = vmax.f32 %v2077_v12, %v2171_v40  ;;  %v1921_v16 = vadd.f32 %v3131_v42, %v3824_v55  ;;  %v3134_v48 = vadd.f32 %v3133_v63, %v3132_v44  ;;  %v3245_v39 = vpop.f32.mrb[91].mxu1 }
 0x1b0   : > { %v3246_v50 = vadd.f32 %v3245_v39, %v3244_v35 }
 0x1b1   : > { %v2786_v1 = vpack.c.bf16 %v2203_v46, %v2202_v45  ;;  %v2082_v53 = vadd.f32 %v3243_v36, %v1921_v16  ;;  %v1924_v57 = vadd.f32 %v3134_v48, %v3827_v58 }
 0x1b3   : > { %2842 = vst [vmem:[%s3890_s17 + $0x28] sm:$0xff] %v2786_v1   ;;  %v2172_v59 = vmul.f32 0.2, %v2082_v53  ;;  %v2085_v61 = vadd.f32 %v3246_v50, %v1924_v57  ;;  %v3135_v0 = vpop.f32.mrb[92].mxu0 }
 0x1b4   : > { %v3247_v2 = vpop.f32.mrb[92].mxu1  ;;  %v3136_v3 = vpop.f32.mrb[93].mxu0 }
 0x1b5   : > { %v2173_v4 = vmul.f32 0.2, %v2085_v61  ;;  %v3137_v52 = vadd.f32 %v3136_v3, %v3135_v0  ;;  %v3248_v5 = vpop.f32.mrb[93].mxu1  ;;  %v3138_v6 = vpop.f32.mrb[94].mxu0  ;;  %v2204_v8 = vmax.f32 %v2082_v53, %v2172_v59 }
 0x1b6   : > { %v3249_v7 = vadd.f32 %v3248_v5, %v3247_v2  ;;  %v3250_v55 = vpop.f32.mrb[94].mxu1  ;;  %v3139_v37 = vpop.f32.mrb[95].mxu0 }
 0x1b7   : > { %v2205_v19 = vmax.f32 %v2085_v61, %v2173_v4  ;;  %v1929_v56 = vadd.f32 %v3137_v52, %v3830_v10  ;;  %v3140_v15 = vadd.f32 %v3139_v37, %v3138_v6  ;;  %v3251_v58 = vpop.f32.mrb[95].mxu1 }
 0x1b8   : > { %v3252_v18 = vadd.f32 %v3251_v58, %v3250_v55 }
 0x1b9   : > { %v2791_v20 = vpack.c.bf16 %v2205_v19, %v2204_v8  ;;  %v2090_v41 = vadd.f32 %v3249_v7, %v1929_v56  ;;  %v1932_v21 = vadd.f32 %v3140_v15, %v3833_v13 }
 0x1bb   : > { %2843 = vst [vmem:[%s3890_s17 + $0x30] sm:$0xff] %v2791_v20   ;;  %v2174_v23 = vmul.f32 0.2, %v2090_v41  ;;  %v2093_v25 = vadd.f32 %v3252_v18, %v1932_v21  ;;  %v3141_v26 = vpop.f32.mrb[96].mxu0 }
 0x1bc   : > { %v3253_v27 = vpop.f32.mrb[96].mxu1  ;;  %v3142_v28 = vpop.f32.mrb[97].mxu0 }
 0x1bd   : > { %v2175_v12 = vmul.f32 0.2, %v2093_v25  ;;  %v3143_v29 = vadd.f32 %v3142_v28, %v3141_v26  ;;  %v3254_v31 = vpop.f32.mrb[97].mxu1  ;;  %v3144_v34 = vpop.f32.mrb[98].mxu0  ;;  %v2206_v43 = vmax.f32 %v2090_v41, %v2174_v23 }
 0x1be   : > { %v3255_v40 = vadd.f32 %v3254_v31, %v3253_v27  ;;  %v3256_v10 = vpop.f32.mrb[98].mxu1  ;;  %v3145_v42 = vpop.f32.mrb[99].mxu0 }
 0x1bf   : > { %v2207_v44 = vmax.f32 %v2093_v25, %v2175_v12  ;;  %v1937_v36 = vadd.f32 %v3143_v29, %v3836_v30  ;;  %v3146_v35 = vadd.f32 %v3145_v42, %v3144_v34  ;;  %v3257_v13 = vpop.f32.mrb[99].mxu1 }
 0x1c0   : > { %v3258_v63 = vadd.f32 %v3257_v13, %v3256_v10 }
 0x1c1   : > { %v2796_v45 = vpack.c.bf16 %v2207_v44, %v2206_v43  ;;  %v2098_v46 = vadd.f32 %v3255_v40, %v1937_v36  ;;  %v1940_v16 = vadd.f32 %v3146_v35, %v3839_v32 }
 0x1c3   : > { %2844 = vst [vmem:[%s3890_s17 + $0x38] sm:$0xff] %v2796_v45   ;;  %v2176_v48 = vmul.f32 0.2, %v2098_v46  ;;  %v2101_v39 = vadd.f32 %v3258_v63, %v1940_v16  ;;  %v3147_v50 = vpop.f32.mrb[100].mxu0 }
 0x1c4   : > { %v3259_v1 = vpop.f32.mrb[100].mxu1  ;;  %v3148_v53 = vpop.f32.mrb[101].mxu0 }
 0x1c5   : > { %v2177_v57 = vmul.f32 0.2, %v2101_v39  ;;  %v3149_v59 = vadd.f32 %v3148_v53, %v3147_v50  ;;  %v3260_v61 = vpop.f32.mrb[101].mxu1  ;;  %v3150_v0 = vpop.f32.mrb[102].mxu0  ;;  %v2208_v4 = vmax.f32 %v2098_v46, %v2176_v48 }
 0x1c6   : > { %v3261_v2 = vadd.f32 %v3260_v61, %v3259_v1  ;;  %v3262_v30 = vpop.f32.mrb[102].mxu1  ;;  %v3151_v3 = vpop.f32.mrb[103].mxu0 }
 0x1c7   : > { %v2209_v52 = vmax.f32 %v2101_v39, %v2177_v57  ;;  %v1945_v5 = vadd.f32 %v3149_v59, %v3842_v51  ;;  %v3152_v6 = vadd.f32 %v3151_v3, %v3150_v0  ;;  %v3263_v32 = vpop.f32.mrb[103].mxu1 }
 0x1c8   : > { %v3264_v7 = vadd.f32 %v3263_v32, %v3262_v30 }
 0x1c9   : > { %v2801_v55 = vpack.c.bf16 %v2209_v52, %v2208_v4  ;;  %v2106_v37 = vadd.f32 %v3261_v2, %v1945_v5  ;;  %v1948_v8 = vadd.f32 %v3152_v6, %v3845_v54 }
 0x1cb   : > { %2845 = vst [vmem:[%s3890_s17 + $0x40] sm:$0xff] %v2801_v55   ;;  %v2178_v19 = vmul.f32 0.2, %v2106_v37  ;;  %v2109_v56 = vadd.f32 %v3264_v7, %v1948_v8  ;;  %v3153_v15 = vpop.f32.mrb[104].mxu0 }
 0x1cc   : > { %v3265_v58 = vpop.f32.mrb[104].mxu1  ;;  %v3154_v18 = vpop.f32.mrb[105].mxu0 }
 0x1cd   : > { %v2179_v20 = vmul.f32 0.2, %v2109_v56  ;;  %v3155_v41 = vadd.f32 %v3154_v18, %v3153_v15  ;;  %v3266_v21 = vpop.f32.mrb[105].mxu1  ;;  %v3156_v23 = vpop.f32.mrb[106].mxu0  ;;  %v2210_v27 = vmax.f32 %v2106_v37, %v2178_v19 }
 0x1ce   : > { %v3267_v25 = vadd.f32 %v3266_v21, %v3265_v58  ;;  %v3268_v51 = vpop.f32.mrb[106].mxu1  ;;  %v3157_v26 = vpop.f32.mrb[107].mxu0 }
 0x1cf   : > { %v2211_v28 = vmax.f32 %v2109_v56, %v2179_v20  ;;  %v1953_v12 = vadd.f32 %v3155_v41, %v3848_v9  ;;  %v3158_v29 = vadd.f32 %v3157_v26, %v3156_v23  ;;  %v3269_v54 = vpop.f32.mrb[107].mxu1 }
 0x1d0   : > { %v3270_v31 = vadd.f32 %v3269_v54, %v3268_v51 }
 0x1d1   : > { %v2806_v34 = vpack.c.bf16 %v2211_v28, %v2210_v27  ;;  %v2114_v40 = vadd.f32 %v3267_v25, %v1953_v12  ;;  %v1956_v10 = vadd.f32 %v3158_v29, %v3851_v14 }
 0x1d3   : > { %2846 = vst [vmem:[%s3890_s17 + $0x48] sm:$0xff] %v2806_v34   ;;  %v2180_v42 = vmul.f32 0.2, %v2114_v40  ;;  %v2117_v43 = vadd.f32 %v3270_v31, %v1956_v10  ;;  %v3159_v44 = vpop.f32.mrb[108].mxu0 }
 0x1d4   : > { %v3271_v36 = vpop.f32.mrb[108].mxu1  ;;  %v3160_v35 = vpop.f32.mrb[109].mxu0 }
 0x1d5   : > { %v2181_v13 = vmul.f32 0.2, %v2117_v43  ;;  %v3161_v63 = vadd.f32 %v3160_v35, %v3159_v44  ;;  %v3272_v45 = vpop.f32.mrb[109].mxu1  ;;  %v3162_v46 = vpop.f32.mrb[110].mxu0  ;;  %v2212_v39 = vmax.f32 %v2114_v40, %v2180_v42 }
 0x1d6   : > { %v3273_v16 = vadd.f32 %v3272_v45, %v3271_v36  ;;  %v3274_v9 = vpop.f32.mrb[110].mxu1  ;;  %v3163_v48 = vpop.f32.mrb[111].mxu0 }
 0x1d7   : > { %v2213_v50 = vmax.f32 %v2117_v43, %v2181_v13  ;;  %v1961_v1 = vadd.f32 %v3161_v63, %v3854_v33  ;;  %v3164_v53 = vadd.f32 %v3163_v48, %v3162_v46  ;;  %v3275_v14 = vpop.f32.mrb[111].mxu1 }
 0x1d8   : > { %v3276_v57 = vadd.f32 %v3275_v14, %v3274_v9 }
 0x1d9   : > { %v2811_v59 = vpack.c.bf16 %v2213_v50, %v2212_v39  ;;  %v2122_v61 = vadd.f32 %v3273_v16, %v1961_v1  ;;  %v1964_v0 = vadd.f32 %v3164_v53, %v3857_v38 }
 0x1db   : > { %2847 = vst [vmem:[%s3890_s17 + $0x50] sm:$0xff] %v2811_v59   ;;  %v2182_v2 = vmul.f32 0.2, %v2122_v61  ;;  %v2125_v30 = vadd.f32 %v3276_v57, %v1964_v0  ;;  %v3165_v3 = vpop.f32.mrb[112].mxu0 }
 0x1dc   : > { %v3277_v4 = vpop.f32.mrb[112].mxu1  ;;  %v3166_v52 = vpop.f32.mrb[113].mxu0 }
 0x1dd   : > { %v2183_v5 = vmul.f32 0.2, %v2125_v30  ;;  %v3167_v6 = vadd.f32 %v3166_v52, %v3165_v3  ;;  %v3278_v32 = vpop.f32.mrb[113].mxu1  ;;  %v3168_v7 = vpop.f32.mrb[114].mxu0  ;;  %v2214_v8 = vmax.f32 %v2122_v61, %v2182_v2 }
 0x1de   : > { %v3279_v55 = vadd.f32 %v3278_v32, %v3277_v4  ;;  %v3280_v33 = vpop.f32.mrb[114].mxu1  ;;  %v3169_v37 = vpop.f32.mrb[115].mxu0 }
 0x1df   : > { %v2215_v19 = vmax.f32 %v2125_v30, %v2183_v5  ;;  %v1969_v56 = vadd.f32 %v3167_v6, %v3860_v60  ;;  %v3170_v15 = vadd.f32 %v3169_v37, %v3168_v7  ;;  %v3281_v38 = vpop.f32.mrb[115].mxu1 }
 0x1e0   : > { %v3282_v58 = vadd.f32 %v3281_v38, %v3280_v33 }
 0x1e1   : > { %v2816_v18 = vpack.c.bf16 %v2215_v19, %v2214_v8  ;;  %v2130_v20 = vadd.f32 %v3279_v55, %v1969_v56  ;;  %v1972_v41 = vadd.f32 %v3170_v15, %v3863_v62 }
 0x1e3   : > { %2848 = vst [vmem:[%s3890_s17 + $0x58] sm:$0xff] %v2816_v18   ;;  %v2184_v21 = vmul.f32 0.2, %v2130_v20  ;;  %v2133_v23 = vadd.f32 %v3282_v58, %v1972_v41  ;;  %v3171_v25 = vpop.f32.mrb[116].mxu0 }
 0x1e4   : > { %v3283_v51 = vpop.f32.mrb[116].mxu1  ;;  %v3172_v26 = vpop.f32.mrb[117].mxu0 }
 0x1e5   : > { %v2185_v27 = vmul.f32 0.2, %v2133_v23  ;;  %v3173_v28 = vadd.f32 %v3172_v26, %v3171_v25  ;;  %v3284_v12 = vpop.f32.mrb[117].mxu1  ;;  %v3174_v29 = vpop.f32.mrb[118].mxu0  ;;  %v2216_v34 = vmax.f32 %v2130_v20, %v2184_v21 }
 0x1e6   : > { %v3285_v54 = vadd.f32 %v3284_v12, %v3283_v51  ;;  %v3286_v60 = vpop.f32.mrb[118].mxu1  ;;  %v3175_v31 = vpop.f32.mrb[119].mxu0 }
 0x1e7   : > { %v2217_v40 = vmax.f32 %v2133_v23, %v2185_v27  ;;  %v1977_v10 = vadd.f32 %v3173_v28, %v3866_v22  ;;  %v3176_v42 = vadd.f32 %v3175_v31, %v3174_v29  ;;  %v3287_v62 = vpop.f32.mrb[119].mxu1 }
 0x1e8   : > { %v3288_v43 = vadd.f32 %v3287_v62, %v3286_v60 }
 0x1e9   : > { %v2821_v44 = vpack.c.bf16 %v2217_v40, %v2216_v34  ;;  %v2138_v36 = vadd.f32 %v3285_v54, %v1977_v10  ;;  %v1980_v35 = vadd.f32 %v3176_v42, %v3869_v24 }
 0x1eb   : > { %2849 = vst [vmem:[%s3890_s17 + $0x60] sm:$0xff] %v2821_v44   ;;  %v2186_v13 = vmul.f32 0.2, %v2138_v36  ;;  %v2141_v63 = vadd.f32 %v3288_v43, %v1980_v35  ;;  %v3177_v45 = vpop.f32.mrb[120].mxu0 }
 0x1ec   : > { %v3289_v46 = vpop.f32.mrb[120].mxu1  ;;  %v3178_v16 = vpop.f32.mrb[121].mxu0 }
 0x1ed   : > { %v2187_v9 = vmul.f32 0.2, %v2141_v63  ;;  %v3179_v48 = vadd.f32 %v3178_v16, %v3177_v45  ;;  %v3290_v39 = vpop.f32.mrb[121].mxu1  ;;  %v3180_v50 = vpop.f32.mrb[122].mxu0  ;;  %v2218_v14 = vmax.f32 %v2138_v36, %v2186_v13 }
 0x1ee   : > { %v3291_v1 = vadd.f32 %v3290_v39, %v3289_v46  ;;  %v3292_v22 = vpop.f32.mrb[122].mxu1  ;;  %v3181_v53 = vpop.f32.mrb[123].mxu0 }
 0x1ef   : > { %v2219_v57 = vmax.f32 %v2141_v63, %v2187_v9  ;;  %v1985_v59 = vadd.f32 %v3179_v48, %v3872_v47  ;;  %v3182_v61 = vadd.f32 %v3181_v53, %v3180_v50  ;;  %v3293_v24 = vpop.f32.mrb[123].mxu1 }
 0x1f0   : > { %v3294_v0 = vadd.f32 %v3293_v24, %v3292_v22 }
 0x1f1   : > { %v2826_v2 = vpack.c.bf16 %v2219_v57, %v2218_v14  ;;  %v2146_v30 = vadd.f32 %v3291_v1, %v1985_v59  ;;  %v1988_v3 = vadd.f32 %v3182_v61, %v3875_v49 }
 0x1f3   : > { %2850 = vst [vmem:[%s3890_s17 + $0x68] sm:$0xff] %v2826_v2   ;;  %v2188_v4 = vmul.f32 0.2, %v2146_v30  ;;  %v2149_v52 = vadd.f32 %v3294_v0, %v1988_v3  ;;  %v3183_v5 = vpop.f32.mrb[124].mxu0 }
 0x1f4   : > { %v3295_v6 = vpop.f32.mrb[124].mxu1  ;;  %v3184_v32 = vpop.f32.mrb[125].mxu0 }
 0x1f5   : > { %v2189_v7 = vmul.f32 0.2, %v2149_v52  ;;  %v3185_v55 = vadd.f32 %v3184_v32, %v3183_v5  ;;  %v3296_v33 = vpop.f32.mrb[125].mxu1  ;;  %v3186_v37 = vpop.f32.mrb[126].mxu0  ;;  %v2220_v56 = vmax.f32 %v2146_v30, %v2188_v4 }
 0x1f6   : > { %v3297_v8 = vadd.f32 %v3296_v33, %v3295_v6  ;;  %v3298_v47 = vpop.f32.mrb[126].mxu1  ;;  %v3187_v19 = vpop.f32.mrb[127].mxu0 }
 0x1f7   : > { %v2221_v15 = vmax.f32 %v2149_v52, %v2189_v7  ;;  %v1993_v38 = vadd.f32 %v3185_v55, %v3878_v11  ;;  %v3188_v49 = vadd.f32 %v3187_v19, %v3186_v37  ;;  %v3299_v58 = vpop.f32.mrb[127].mxu1 }
 0x1f8   : > { %v3300_v18 = vadd.f32 %v3299_v58, %v3298_v47 }
 0x1f9   : > { %v2831_v20 = vpack.c.bf16 %v2221_v15, %v2220_v56  ;;  %v2154_v41 = vadd.f32 %v3297_v8, %v1993_v38  ;;  %v1996_v21 = vadd.f32 %v3188_v49, %v3881_v17 }
 0x1fb   : > { %2851 = vst [vmem:[%s3890_s17 + $0x70] sm:$0xff] %v2831_v20   ;;  %v2190_v23 = vmul.f32 0.2, %v2154_v41  ;;  %v2157_v25 = vadd.f32 %v3300_v18, %v1996_v21 }
 0x1fd   : > { %v2191_v51 = vmul.f32 0.2, %v2157_v25  ;;  %v2222_v26 = vmax.f32 %v2154_v41, %v2190_v23 }
 0x1ff   : > { %v2223_v27 = vmax.f32 %v2157_v25, %v2191_v51 }
 0x201   : > { %v2836_v28 = vpack.c.bf16 %v2223_v27, %v2222_v26 }
 0x203   : > { %2852 = vst [vmem:[%s3890_s17 + $0x78] sm:$0xff] %v2836_v28  }
 0x204 PF: > { %s13_s14 = sadd.s32 1, %s3411_s14   ;;  %s3950_s12 = smov %s3407_s13 }
 0x205   : > { %p10_p5 = scmp.ge.s32.totalorder %s13_s14, 4   ;;  %s3951_s13 = smov %s3953_s15 }
 0x207   :  { %12 = sbr.rel (!%p10_p5) target bundleno = 2 (0x2), region = 68 }

// kernel: discriminator_forward.7
= control target key start
LH: loop header
LB: loop body
LE: loop exit
PB: predicated region body
PF: predicated region fallthrough
CT: control target
= control target key end

     0   :  { %s5260_s12 = smov 0   ;;  %s5262_s13 = smov 0   ;;  %s6575_s0 = inlined_call_operand.vmem [shape: bf16[128,2048], index: 0, kind: input, shape index: {}]   ;;  %s6576_s1 = inlined_call_operand.vmem [shape: bf16[2048,256], index: 1, kind: input, shape index: {}]   ;;  %s6577_s2 = inlined_call_operand.vmem [shape: f32[1,256], index: 2, kind: input, shape index: {}]   ;;  %s6578_s3 = inlined_call_operand.vmem [shape: bf16[128,256], index: 3, kind: output, shape index: {}]  }
   0x1   :  { %s5264_s14 = smov 0   ;;  %s5266_s15 = smov 0  }
   0x2   :  { %s5268_s16 = smov 0  }
   0x3 LB: > { %s22_s17 = sadd.s32 1, %s5234_s15  ;;  %s4170_s18 = sadd.s32 4294967295, %s5238_s16   ;;  %s5238_s16 = sphi %s5268_s16, %s13_s16   ;;  %s5234_s15 = sphi %s5266_s15, %s6583_s15   ;;  %s5230_s14 = sphi %s5264_s14, %s6582_s14   ;;  %s5226_s13 = sphi %s5262_s13, %s6581_s13   ;;  %s5222_s12 = sphi %s5260_s12, %s6580_s12  }
   0x4   : > { %p23_p0 = scmp.ge.s32.totalorder %s22_s17, 2  ;;  %p65_p1 = scmp.ne.s32.totalorder %s5226_s13, %s5222_s12 }
   0x5   : > { %p66_p2 = scmp.eq.s32.totalorder %s5238_s16, 0  ;;  %p123_p4 = scmp.eq.s32.totalorder %s4170_s18, 1 }
   0x6   : > { %s6585_s17 = smov (%p23_p0, %s22_s17), 0  ;;  %s58_s20 = sadd.s32 1, %s5226_s13 }
   0x7   : > { %p67_p3 = por %p66_p2, %p65_p1  ;;  %s55_s19 = ssub.s32 %s5234_s15, %s6585_s17 }
   0x8   : > { %p56_p5 = scmp.eq.s32.totalorder %s55_s19, 0  ;;  %p5295_p6 = por %p123_p4, %p65_p1 }
   0x9   : > { %p4174_p7 = scmp.ge.s32.totalorder %s5238_s16, 2 }
   0xa   : > { %s5300_s22 = scalar_select %p56_p5, %s5226_s13, %s58_s20  }
   0xb   : > { %155 = sbr.rel (%p4174_p7) target bundleno = 192 (0xc0), region = 20 }
  0x12   : > { %158 = sbr.rel (!%p67_p3) target bundleno = 192 (0xc0), region = 24  ;;  %s160_s23 = sand.u32 (%p67_p3), 1, %s5226_s13  }
  0x13   : > { %s4176_s24 = sshll.u32 (%p67_p3), %s5234_s15, 2  ;;  %s4175_s25 = sshll.u32 (%p67_p3), %s160_s23, 10 }
  0x14   : > { %s5308_s28 = scalar_lea.vmem (%p67_p3), %s6576_s1, %s4176_s24  ;;  %s5312_s29 = scalar_lea.vmem (%p67_p3), [#allocation2], %s4175_s25 }
  0x15   : > { %v180_v0 = vld [vmem:[%s5308_s28] sm:$0xf] (%p67_p3)  ;;  %v182_v1 = vld [vmem:[%s5308_s28 + $0x8] sm:$0xf] (%p67_p3)  ;;  %v184_v2 = vld [vmem:[%s5308_s28 + $0x10] sm:$0xf] (%p67_p3) }
  0x16   : > { %181 = vst [vmem:[%s5312_s29] sm:$0xf] (%p67_p3), %v180_v0  ;;  %183 = vst [vmem:[%s5312_s29 + $0x4] sm:$0xf] (%p67_p3), %v182_v1  ;;  %v186_v3 = vld [vmem:[%s5308_s28 + $0x18] sm:$0xf] (%p67_p3) }
  0x17   : > { %v188_v4 = vld [vmem:[%s5308_s28 + $0x20] sm:$0xf] (%p67_p3)  ;;  %185 = vst [vmem:[%s5312_s29 + $0x8] sm:$0xf] (%p67_p3), %v184_v2  ;;  %187 = vst [vmem:[%s5312_s29 + $0xc] sm:$0xf] (%p67_p3), %v186_v3 }
  0x18   : > { %189 = vst [vmem:[%s5312_s29 + $0x10] sm:$0xf] (%p67_p3), %v188_v4  ;;  %v190_v5 = vld [vmem:[%s5308_s28 + $0x28] sm:$0xf] (%p67_p3)  ;;  %v192_v6 = vld [vmem:[%s5308_s28 + $0x30] sm:$0xf] (%p67_p3) }
  0x19   : > { %v194_v7 = vld [vmem:[%s5308_s28 + $0x38] sm:$0xf]  ;;  %191 = vst [vmem:[%s5312_s29 + $0x14] sm:$0xf] %v190_v5  ;;  %193 = vst [vmem:[%s5312_s29 + $0x18] sm:$0xf] %v192_v6 }
  0x1a   : > { %195 = vst [vmem:[%s5312_s29 + $0x1c] sm:$0xf] %v194_v7  ;;  %v196_v8 = vld [vmem:[%s5308_s28 + $0x40] sm:$0xf]  ;;  %v198_v9 = vld [vmem:[%s5308_s28 + $0x48] sm:$0xf] }
  0x1b   : > { %v200_v10 = vld [vmem:[%s5308_s28 + $0x50] sm:$0xf]  ;;  %197 = vst [vmem:[%s5312_s29 + $0x20] sm:$0xf] %v196_v8  ;;  %199 = vst [vmem:[%s5312_s29 + $0x24] sm:$0xf] %v198_v9 }
  0x1c   : > { %201 = vst [vmem:[%s5312_s29 + $0x28] sm:$0xf] %v200_v10  ;;  %v202_v11 = vld [vmem:[%s5308_s28 + $0x58] sm:$0xf]  ;;  %v204_v12 = vld [vmem:[%s5308_s28 + $0x60] sm:$0xf] }
  0x1d   : > { %v206_v13 = vld [vmem:[%s5308_s28 + $0x68] sm:$0xf]  ;;  %203 = vst [vmem:[%s5312_s29 + $0x2c] sm:$0xf] %v202_v11  ;;  %205 = vst [vmem:[%s5312_s29 + $0x30] sm:$0xf] %v204_v12 }
  0x1e   : > { %207 = vst [vmem:[%s5312_s29 + $0x34] sm:$0xf] %v206_v13  ;;  %v208_v14 = vld [vmem:[%s5308_s28 + $0x70] sm:$0xf]  ;;  %v210_v15 = vld [vmem:[%s5308_s28 + $0x78] sm:$0xf] }
  0x1f   : > { %v212_v16 = vld [vmem:[%s5308_s28 + $0x80] sm:$0xf]  ;;  %209 = vst [vmem:[%s5312_s29 + $0x38] sm:$0xf] %v208_v14  ;;  %211 = vst [vmem:[%s5312_s29 + $0x3c] sm:$0xf] %v210_v15 }
  0x20   : > { %213 = vst [vmem:[%s5312_s29 + $0x40] sm:$0xf] %v212_v16  ;;  %v214_v17 = vld [vmem:[%s5308_s28 + $0x88] sm:$0xf]  ;;  %v216_v18 = vld [vmem:[%s5308_s28 + $0x90] sm:$0xf] }
  0x21   : > { %v218_v19 = vld [vmem:[%s5308_s28 + $0x98] sm:$0xf]  ;;  %215 = vst [vmem:[%s5312_s29 + $0x44] sm:$0xf] %v214_v17  ;;  %217 = vst [vmem:[%s5312_s29 + $0x48] sm:$0xf] %v216_v18 }
  0x22   : > { %219 = vst [vmem:[%s5312_s29 + $0x4c] sm:$0xf] %v218_v19  ;;  %v220_v20 = vld [vmem:[%s5308_s28 + $0xa0] sm:$0xf]  ;;  %v222_v21 = vld [vmem:[%s5308_s28 + $0xa8] sm:$0xf] }
  0x23   : > { %v224_v22 = vld [vmem:[%s5308_s28 + $0xb0] sm:$0xf]  ;;  %221 = vst [vmem:[%s5312_s29 + $0x50] sm:$0xf] %v220_v20  ;;  %223 = vst [vmem:[%s5312_s29 + $0x54] sm:$0xf] %v222_v21 }
  0x24   : > { %225 = vst [vmem:[%s5312_s29 + $0x58] sm:$0xf] %v224_v22  ;;  %v226_v23 = vld [vmem:[%s5308_s28 + $0xb8] sm:$0xf]  ;;  %v228_v24 = vld [vmem:[%s5308_s28 + $0xc0] sm:$0xf] }
  0x25   : > { %v230_v25 = vld [vmem:[%s5308_s28 + $0xc8] sm:$0xf]  ;;  %227 = vst [vmem:[%s5312_s29 + $0x5c] sm:$0xf] %v226_v23  ;;  %229 = vst [vmem:[%s5312_s29 + $0x60] sm:$0xf] %v228_v24 }
  0x26   : > { %231 = vst [vmem:[%s5312_s29 + $0x64] sm:$0xf] %v230_v25  ;;  %v232_v26 = vld [vmem:[%s5308_s28 + $0xd0] sm:$0xf]  ;;  %v234_v27 = vld [vmem:[%s5308_s28 + $0xd8] sm:$0xf] }
  0x27   : > { %v236_v28 = vld [vmem:[%s5308_s28 + $0xe0] sm:$0xf]  ;;  %233 = vst [vmem:[%s5312_s29 + $0x68] sm:$0xf] %v232_v26  ;;  %235 = vst [vmem:[%s5312_s29 + $0x6c] sm:$0xf] %v234_v27 }
  0x28   : > { %237 = vst [vmem:[%s5312_s29 + $0x70] sm:$0xf] %v236_v28  ;;  %v238_v29 = vld [vmem:[%s5308_s28 + $0xe8] sm:$0xf]  ;;  %v240_v30 = vld [vmem:[%s5308_s28 + $0xf0] sm:$0xf] }
  0x29   : > { %v242_v31 = vld [vmem:[%s5308_s28 + $0xf8] sm:$0xf]  ;;  %239 = vst [vmem:[%s5312_s29 + $0x74] sm:$0xf] %v238_v29  ;;  %241 = vst [vmem:[%s5312_s29 + $0x78] sm:$0xf] %v240_v30 }
  0x2a   : > { %243 = vst [vmem:[%s5312_s29 + $0x7c] sm:$0xf] %v242_v31  ;;  %v244_v32 = vld [vmem:[%s5308_s28 + $0x100] sm:$0xf]  ;;  %v246_v33 = vld [vmem:[%s5308_s28 + $0x108] sm:$0xf] }
  0x2b   : > { %v248_v34 = vld [vmem:[%s5308_s28 + $0x110] sm:$0xf]  ;;  %245 = vst [vmem:[%s5312_s29 + $0x80] sm:$0xf] %v244_v32  ;;  %247 = vst [vmem:[%s5312_s29 + $0x84] sm:$0xf] %v246_v33 }
  0x2c   : > { %249 = vst [vmem:[%s5312_s29 + $0x88] sm:$0xf] %v248_v34  ;;  %v250_v35 = vld [vmem:[%s5308_s28 + $0x118] sm:$0xf]  ;;  %v252_v36 = vld [vmem:[%s5308_s28 + $0x120] sm:$0xf] }
  0x2d   : > { %v254_v37 = vld [vmem:[%s5308_s28 + $0x128] sm:$0xf]  ;;  %251 = vst [vmem:[%s5312_s29 + $0x8c] sm:$0xf] %v250_v35  ;;  %253 = vst [vmem:[%s5312_s29 + $0x90] sm:$0xf] %v252_v36 }
  0x2e   : > { %255 = vst [vmem:[%s5312_s29 + $0x94] sm:$0xf] %v254_v37  ;;  %v256_v38 = vld [vmem:[%s5308_s28 + $0x130] sm:$0xf]  ;;  %v258_v39 = vld [vmem:[%s5308_s28 + $0x138] sm:$0xf] }
  0x2f   : > { %v260_v40 = vld [vmem:[%s5308_s28 + $0x140] sm:$0xf]  ;;  %257 = vst [vmem:[%s5312_s29 + $0x98] sm:$0xf] %v256_v38  ;;  %259 = vst [vmem:[%s5312_s29 + $0x9c] sm:$0xf] %v258_v39 }
  0x30   : > { %261 = vst [vmem:[%s5312_s29 + $0xa0] sm:$0xf] %v260_v40  ;;  %v262_v41 = vld [vmem:[%s5308_s28 + $0x148] sm:$0xf]  ;;  %v264_v42 = vld [vmem:[%s5308_s28 + $0x150] sm:$0xf] }
  0x31   : > { %v266_v43 = vld [vmem:[%s5308_s28 + $0x158] sm:$0xf]  ;;  %263 = vst [vmem:[%s5312_s29 + $0xa4] sm:$0xf] %v262_v41  ;;  %265 = vst [vmem:[%s5312_s29 + $0xa8] sm:$0xf] %v264_v42 }
  0x32   : > { %267 = vst [vmem:[%s5312_s29 + $0xac] sm:$0xf] %v266_v43  ;;  %v268_v44 = vld [vmem:[%s5308_s28 + $0x160] sm:$0xf]  ;;  %v270_v45 = vld [vmem:[%s5308_s28 + $0x168] sm:$0xf] }
  0x33   : > { %v272_v46 = vld [vmem:[%s5308_s28 + $0x170] sm:$0xf]  ;;  %269 = vst [vmem:[%s5312_s29 + $0xb0] sm:$0xf] %v268_v44  ;;  %271 = vst [vmem:[%s5312_s29 + $0xb4] sm:$0xf] %v270_v45 }
  0x34   : > { %273 = vst [vmem:[%s5312_s29 + $0xb8] sm:$0xf] %v272_v46  ;;  %v274_v47 = vld [vmem:[%s5308_s28 + $0x178] sm:$0xf]  ;;  %v276_v48 = vld [vmem:[%s5308_s28 + $0x180] sm:$0xf] }
  0x35   : > { %v278_v49 = vld [vmem:[%s5308_s28 + $0x188] sm:$0xf]  ;;  %275 = vst [vmem:[%s5312_s29 + $0xbc] sm:$0xf] %v274_v47  ;;  %277 = vst [vmem:[%s5312_s29 + $0xc0] sm:$0xf] %v276_v48 }
  0x36   : > { %279 = vst [vmem:[%s5312_s29 + $0xc4] sm:$0xf] %v278_v49  ;;  %v280_v50 = vld [vmem:[%s5308_s28 + $0x190] sm:$0xf]  ;;  %v282_v51 = vld [vmem:[%s5308_s28 + $0x198] sm:$0xf] }
  0x37   : > { %v284_v52 = vld [vmem:[%s5308_s28 + $0x1a0] sm:$0xf]  ;;  %281 = vst [vmem:[%s5312_s29 + $0xc8] sm:$0xf] %v280_v50  ;;  %283 = vst [vmem:[%s5312_s29 + $0xcc] sm:$0xf] %v282_v51 }
  0x38   : > { %285 = vst [vmem:[%s5312_s29 + $0xd0] sm:$0xf] %v284_v52  ;;  %v286_v53 = vld [vmem:[%s5308_s28 + $0x1a8] sm:$0xf]  ;;  %v288_v54 = vld [vmem:[%s5308_s28 + $0x1b0] sm:$0xf] }
  0x39   : > { %v290_v55 = vld [vmem:[%s5308_s28 + $0x1b8] sm:$0xf]  ;;  %287 = vst [vmem:[%s5312_s29 + $0xd4] sm:$0xf] %v286_v53  ;;  %289 = vst [vmem:[%s5312_s29 + $0xd8] sm:$0xf] %v288_v54 }
  0x3a   : > { %291 = vst [vmem:[%s5312_s29 + $0xdc] sm:$0xf] %v290_v55  ;;  %v292_v56 = vld [vmem:[%s5308_s28 + $0x1c0] sm:$0xf]  ;;  %v294_v57 = vld [vmem:[%s5308_s28 + $0x1c8] sm:$0xf] }
  0x3b   : > { %v296_v58 = vld [vmem:[%s5308_s28 + $0x1d0] sm:$0xf]  ;;  %293 = vst [vmem:[%s5312_s29 + $0xe0] sm:$0xf] %v292_v56  ;;  %295 = vst [vmem:[%s5312_s29 + $0xe4] sm:$0xf] %v294_v57 }
  0x3c   : > { %297 = vst [vmem:[%s5312_s29 + $0xe8] sm:$0xf] %v296_v58  ;;  %v298_v59 = vld [vmem:[%s5308_s28 + $0x1d8] sm:$0xf]  ;;  %v300_v60 = vld [vmem:[%s5308_s28 + $0x1e0] sm:$0xf] }
  0x3d   : > { %v302_v61 = vld [vmem:[%s5308_s28 + $0x1e8] sm:$0xf]  ;;  %299 = vst [vmem:[%s5312_s29 + $0xec] sm:$0xf] %v298_v59  ;;  %301 = vst [vmem:[%s5312_s29 + $0xf0] sm:$0xf] %v300_v60 }
  0x3e   : > { %303 = vst [vmem:[%s5312_s29 + $0xf4] sm:$0xf] %v302_v61  ;;  %v304_v62 = vld [vmem:[%s5308_s28 + $0x1f0] sm:$0xf]  ;;  %v306_v63 = vld [vmem:[%s5308_s28 + $0x1f8] sm:$0xf] }
  0x3f   : > { %v308_v0 = vld [vmem:[%s5308_s28 + $0x200] sm:$0xf]  ;;  %305 = vst [vmem:[%s5312_s29 + $0xf8] sm:$0xf] %v304_v62  ;;  %307 = vst [vmem:[%s5312_s29 + $0xfc] sm:$0xf] %v306_v63 }
  0x40   : > { %309 = vst [vmem:[%s5312_s29 + $0x100] sm:$0xf] %v308_v0  ;;  %v310_v1 = vld [vmem:[%s5308_s28 + $0x208] sm:$0xf]  ;;  %v312_v2 = vld [vmem:[%s5308_s28 + $0x210] sm:$0xf] }
  0x41   : > { %v314_v3 = vld [vmem:[%s5308_s28 + $0x218] sm:$0xf]  ;;  %311 = vst [vmem:[%s5312_s29 + $0x104] sm:$0xf] %v310_v1  ;;  %313 = vst [vmem:[%s5312_s29 + $0x108] sm:$0xf] %v312_v2 }
  0x42   : > { %315 = vst [vmem:[%s5312_s29 + $0x10c] sm:$0xf] %v314_v3  ;;  %v316_v4 = vld [vmem:[%s5308_s28 + $0x220] sm:$0xf]  ;;  %v318_v5 = vld [vmem:[%s5308_s28 + $0x228] sm:$0xf] }
  0x43   : > { %v320_v6 = vld [vmem:[%s5308_s28 + $0x230] sm:$0xf]  ;;  %317 = vst [vmem:[%s5312_s29 + $0x110] sm:$0xf] %v316_v4  ;;  %319 = vst [vmem:[%s5312_s29 + $0x114] sm:$0xf] %v318_v5 }
  0x44   : > { %321 = vst [vmem:[%s5312_s29 + $0x118] sm:$0xf] %v320_v6  ;;  %v322_v7 = vld [vmem:[%s5308_s28 + $0x238] sm:$0xf]  ;;  %v324_v8 = vld [vmem:[%s5308_s28 + $0x240] sm:$0xf] }
  0x45   : > { %v326_v9 = vld [vmem:[%s5308_s28 + $0x248] sm:$0xf]  ;;  %323 = vst [vmem:[%s5312_s29 + $0x11c] sm:$0xf] %v322_v7  ;;  %325 = vst [vmem:[%s5312_s29 + $0x120] sm:$0xf] %v324_v8 }
  0x46   : > { %327 = vst [vmem:[%s5312_s29 + $0x124] sm:$0xf] %v326_v9  ;;  %v328_v10 = vld [vmem:[%s5308_s28 + $0x250] sm:$0xf]  ;;  %v330_v11 = vld [vmem:[%s5308_s28 + $0x258] sm:$0xf] }
  0x47   : > { %v332_v12 = vld [vmem:[%s5308_s28 + $0x260] sm:$0xf]  ;;  %329 = vst [vmem:[%s5312_s29 + $0x128] sm:$0xf] %v328_v10  ;;  %331 = vst [vmem:[%s5312_s29 + $0x12c] sm:$0xf] %v330_v11 }
  0x48   : > { %333 = vst [vmem:[%s5312_s29 + $0x130] sm:$0xf] %v332_v12  ;;  %v334_v13 = vld [vmem:[%s5308_s28 + $0x268] sm:$0xf]  ;;  %v336_v14 = vld [vmem:[%s5308_s28 + $0x270] sm:$0xf] }
  0x49   : > { %v338_v15 = vld [vmem:[%s5308_s28 + $0x278] sm:$0xf]  ;;  %335 = vst [vmem:[%s5312_s29 + $0x134] sm:$0xf] %v334_v13  ;;  %337 = vst [vmem:[%s5312_s29 + $0x138] sm:$0xf] %v336_v14 }
  0x4a   : > { %339 = vst [vmem:[%s5312_s29 + $0x13c] sm:$0xf] %v338_v15  ;;  %v340_v16 = vld [vmem:[%s5308_s28 + $0x280] sm:$0xf]  ;;  %v342_v17 = vld [vmem:[%s5308_s28 + $0x288] sm:$0xf] }
  0x4b   : > { %v344_v18 = vld [vmem:[%s5308_s28 + $0x290] sm:$0xf]  ;;  %341 = vst [vmem:[%s5312_s29 + $0x140] sm:$0xf] %v340_v16  ;;  %343 = vst [vmem:[%s5312_s29 + $0x144] sm:$0xf] %v342_v17 }
  0x4c   : > { %345 = vst [vmem:[%s5312_s29 + $0x148] sm:$0xf] %v344_v18  ;;  %v346_v19 = vld [vmem:[%s5308_s28 + $0x298] sm:$0xf]  ;;  %v348_v20 = vld [vmem:[%s5308_s28 + $0x2a0] sm:$0xf] }
  0x4d   : > { %v350_v21 = vld [vmem:[%s5308_s28 + $0x2a8] sm:$0xf]  ;;  %347 = vst [vmem:[%s5312_s29 + $0x14c] sm:$0xf] %v346_v19  ;;  %349 = vst [vmem:[%s5312_s29 + $0x150] sm:$0xf] %v348_v20 }
  0x4e   : > { %351 = vst [vmem:[%s5312_s29 + $0x154] sm:$0xf] %v350_v21  ;;  %v352_v22 = vld [vmem:[%s5308_s28 + $0x2b0] sm:$0xf]  ;;  %v354_v23 = vld [vmem:[%s5308_s28 + $0x2b8] sm:$0xf] }
  0x4f   : > { %v356_v24 = vld [vmem:[%s5308_s28 + $0x2c0] sm:$0xf]  ;;  %353 = vst [vmem:[%s5312_s29 + $0x158] sm:$0xf] %v352_v22  ;;  %355 = vst [vmem:[%s5312_s29 + $0x15c] sm:$0xf] %v354_v23 }
  0x50   : > { %357 = vst [vmem:[%s5312_s29 + $0x160] sm:$0xf] %v356_v24  ;;  %v358_v25 = vld [vmem:[%s5308_s28 + $0x2c8] sm:$0xf]  ;;  %v360_v26 = vld [vmem:[%s5308_s28 + $0x2d0] sm:$0xf] }
  0x51   : > { %v362_v27 = vld [vmem:[%s5308_s28 + $0x2d8] sm:$0xf]  ;;  %359 = vst [vmem:[%s5312_s29 + $0x164] sm:$0xf] %v358_v25  ;;  %361 = vst [vmem:[%s5312_s29 + $0x168] sm:$0xf] %v360_v26 }
  0x52   : > { %363 = vst [vmem:[%s5312_s29 + $0x16c] sm:$0xf] %v362_v27  ;;  %v364_v28 = vld [vmem:[%s5308_s28 + $0x2e0] sm:$0xf]  ;;  %v366_v29 = vld [vmem:[%s5308_s28 + $0x2e8] sm:$0xf] }
  0x53   : > { %v368_v30 = vld [vmem:[%s5308_s28 + $0x2f0] sm:$0xf]  ;;  %365 = vst [vmem:[%s5312_s29 + $0x170] sm:$0xf] %v364_v28  ;;  %367 = vst [vmem:[%s5312_s29 + $0x174] sm:$0xf] %v366_v29 }
  0x54   : > { %369 = vst [vmem:[%s5312_s29 + $0x178] sm:$0xf] %v368_v30  ;;  %v370_v31 = vld [vmem:[%s5308_s28 + $0x2f8] sm:$0xf]  ;;  %v372_v32 = vld [vmem:[%s5308_s28 + $0x300] sm:$0xf] }
  0x55   : > { %v374_v33 = vld [vmem:[%s5308_s28 + $0x308] sm:$0xf]  ;;  %371 = vst [vmem:[%s5312_s29 + $0x17c] sm:$0xf] %v370_v31  ;;  %373 = vst [vmem:[%s5312_s29 + $0x180] sm:$0xf] %v372_v32 }
  0x56   : > { %375 = vst [vmem:[%s5312_s29 + $0x184] sm:$0xf] %v374_v33  ;;  %v376_v34 = vld [vmem:[%s5308_s28 + $0x310] sm:$0xf]  ;;  %v378_v35 = vld [vmem:[%s5308_s28 + $0x318] sm:$0xf] }
  0x57   : > { %v380_v36 = vld [vmem:[%s5308_s28 + $0x320] sm:$0xf]  ;;  %377 = vst [vmem:[%s5312_s29 + $0x188] sm:$0xf] %v376_v34  ;;  %379 = vst [vmem:[%s5312_s29 + $0x18c] sm:$0xf] %v378_v35 }
  0x58   : > { %381 = vst [vmem:[%s5312_s29 + $0x190] sm:$0xf] %v380_v36  ;;  %v382_v37 = vld [vmem:[%s5308_s28 + $0x328] sm:$0xf]  ;;  %v384_v38 = vld [vmem:[%s5308_s28 + $0x330] sm:$0xf] }
  0x59   : > { %v386_v39 = vld [vmem:[%s5308_s28 + $0x338] sm:$0xf]  ;;  %383 = vst [vmem:[%s5312_s29 + $0x194] sm:$0xf] %v382_v37  ;;  %385 = vst [vmem:[%s5312_s29 + $0x198] sm:$0xf] %v384_v38 }
  0x5a   : > { %387 = vst [vmem:[%s5312_s29 + $0x19c] sm:$0xf] %v386_v39  ;;  %v388_v40 = vld [vmem:[%s5308_s28 + $0x340] sm:$0xf]  ;;  %v390_v41 = vld [vmem:[%s5308_s28 + $0x348] sm:$0xf] }
  0x5b   : > { %v392_v42 = vld [vmem:[%s5308_s28 + $0x350] sm:$0xf]  ;;  %389 = vst [vmem:[%s5312_s29 + $0x1a0] sm:$0xf] %v388_v40  ;;  %391 = vst [vmem:[%s5312_s29 + $0x1a4] sm:$0xf] %v390_v41 }
  0x5c   : > { %393 = vst [vmem:[%s5312_s29 + $0x1a8] sm:$0xf] %v392_v42  ;;  %v394_v43 = vld [vmem:[%s5308_s28 + $0x358] sm:$0xf]  ;;  %v396_v44 = vld [vmem:[%s5308_s28 + $0x360] sm:$0xf] }
  0x5d   : > { %v398_v45 = vld [vmem:[%s5308_s28 + $0x368] sm:$0xf]  ;;  %395 = vst [vmem:[%s5312_s29 + $0x1ac] sm:$0xf] %v394_v43  ;;  %397 = vst [vmem:[%s5312_s29 + $0x1b0] sm:$0xf] %v396_v44 }
  0x5e   : > { %399 = vst [vmem:[%s5312_s29 + $0x1b4] sm:$0xf] %v398_v45  ;;  %v400_v46 = vld [vmem:[%s5308_s28 + $0x370] sm:$0xf]  ;;  %v402_v47 = vld [vmem:[%s5308_s28 + $0x378] sm:$0xf] }
  0x5f   : > { %v404_v48 = vld [vmem:[%s5308_s28 + $0x380] sm:$0xf]  ;;  %401 = vst [vmem:[%s5312_s29 + $0x1b8] sm:$0xf] %v400_v46  ;;  %403 = vst [vmem:[%s5312_s29 + $0x1bc] sm:$0xf] %v402_v47 }
  0x60   : > { %405 = vst [vmem:[%s5312_s29 + $0x1c0] sm:$0xf] %v404_v48  ;;  %v406_v49 = vld [vmem:[%s5308_s28 + $0x388] sm:$0xf]  ;;  %v408_v50 = vld [vmem:[%s5308_s28 + $0x390] sm:$0xf] }
  0x61   : > { %v410_v51 = vld [vmem:[%s5308_s28 + $0x398] sm:$0xf]  ;;  %407 = vst [vmem:[%s5312_s29 + $0x1c4] sm:$0xf] %v406_v49  ;;  %409 = vst [vmem:[%s5312_s29 + $0x1c8] sm:$0xf] %v408_v50 }
  0x62   : > { %411 = vst [vmem:[%s5312_s29 + $0x1cc] sm:$0xf] %v410_v51  ;;  %v412_v52 = vld [vmem:[%s5308_s28 + $0x3a0] sm:$0xf]  ;;  %v414_v53 = vld [vmem:[%s5308_s28 + $0x3a8] sm:$0xf] }
  0x63   : > { %v416_v54 = vld [vmem:[%s5308_s28 + $0x3b0] sm:$0xf]  ;;  %413 = vst [vmem:[%s5312_s29 + $0x1d0] sm:$0xf] %v412_v52  ;;  %415 = vst [vmem:[%s5312_s29 + $0x1d4] sm:$0xf] %v414_v53 }
  0x64   : > { %417 = vst [vmem:[%s5312_s29 + $0x1d8] sm:$0xf] %v416_v54  ;;  %v418_v55 = vld [vmem:[%s5308_s28 + $0x3b8] sm:$0xf]  ;;  %v420_v56 = vld [vmem:[%s5308_s28 + $0x3c0] sm:$0xf] }
  0x65   : > { %v422_v57 = vld [vmem:[%s5308_s28 + $0x3c8] sm:$0xf]  ;;  %419 = vst [vmem:[%s5312_s29 + $0x1dc] sm:$0xf] %v418_v55  ;;  %421 = vst [vmem:[%s5312_s29 + $0x1e0] sm:$0xf] %v420_v56 }
  0x66   : > { %423 = vst [vmem:[%s5312_s29 + $0x1e4] sm:$0xf] %v422_v57  ;;  %v424_v58 = vld [vmem:[%s5308_s28 + $0x3d0] sm:$0xf]  ;;  %v426_v59 = vld [vmem:[%s5308_s28 + $0x3d8] sm:$0xf] }
  0x67   : > { %v428_v60 = vld [vmem:[%s5308_s28 + $0x3e0] sm:$0xf]  ;;  %425 = vst [vmem:[%s5312_s29 + $0x1e8] sm:$0xf] %v424_v58  ;;  %427 = vst [vmem:[%s5312_s29 + $0x1ec] sm:$0xf] %v426_v59 }
  0x68   : > { %429 = vst [vmem:[%s5312_s29 + $0x1f0] sm:$0xf] %v428_v60  ;;  %v430_v61 = vld [vmem:[%s5308_s28 + $0x3e8] sm:$0xf]  ;;  %v432_v62 = vld [vmem:[%s5308_s28 + $0x3f0] sm:$0xf] }
  0x69   : > { %v434_v63 = vld [vmem:[%s5308_s28 + $0x3f8] sm:$0xf]  ;;  %431 = vst [vmem:[%s5312_s29 + $0x1f4] sm:$0xf] %v430_v61  ;;  %433 = vst [vmem:[%s5312_s29 + $0x1f8] sm:$0xf] %v432_v62 }
  0x6a   : > { %435 = vst [vmem:[%s5312_s29 + $0x1fc] sm:$0xf] %v434_v63  ;;  %v436_v0 = vld [vmem:[%s5308_s28 + $0x400] sm:$0xf]  ;;  %v438_v1 = vld [vmem:[%s5308_s28 + $0x408] sm:$0xf] }
  0x6b   : > { %v440_v2 = vld [vmem:[%s5308_s28 + $0x410] sm:$0xf]  ;;  %437 = vst [vmem:[%s5312_s29 + $0x200] sm:$0xf] %v436_v0  ;;  %439 = vst [vmem:[%s5312_s29 + $0x204] sm:$0xf] %v438_v1 }
  0x6c   : > { %441 = vst [vmem:[%s5312_s29 + $0x208] sm:$0xf] %v440_v2  ;;  %v442_v3 = vld [vmem:[%s5308_s28 + $0x418] sm:$0xf]  ;;  %v444_v4 = vld [vmem:[%s5308_s28 + $0x420] sm:$0xf] }
  0x6d   : > { %v446_v5 = vld [vmem:[%s5308_s28 + $0x428] sm:$0xf]  ;;  %443 = vst [vmem:[%s5312_s29 + $0x20c] sm:$0xf] %v442_v3  ;;  %445 = vst [vmem:[%s5312_s29 + $0x210] sm:$0xf] %v444_v4 }
  0x6e   : > { %447 = vst [vmem:[%s5312_s29 + $0x214] sm:$0xf] %v446_v5  ;;  %v448_v6 = vld [vmem:[%s5308_s28 + $0x430] sm:$0xf]  ;;  %v450_v7 = vld [vmem:[%s5308_s28 + $0x438] sm:$0xf] }
  0x6f   : > { %v452_v8 = vld [vmem:[%s5308_s28 + $0x440] sm:$0xf]  ;;  %449 = vst [vmem:[%s5312_s29 + $0x218] sm:$0xf] %v448_v6  ;;  %451 = vst [vmem:[%s5312_s29 + $0x21c] sm:$0xf] %v450_v7 }
  0x70   : > { %453 = vst [vmem:[%s5312_s29 + $0x220] sm:$0xf] %v452_v8  ;;  %v454_v9 = vld [vmem:[%s5308_s28 + $0x448] sm:$0xf]  ;;  %v456_v10 = vld [vmem:[%s5308_s28 + $0x450] sm:$0xf] }
  0x71   : > { %v458_v11 = vld [vmem:[%s5308_s28 + $0x458] sm:$0xf]  ;;  %455 = vst [vmem:[%s5312_s29 + $0x224] sm:$0xf] %v454_v9  ;;  %457 = vst [vmem:[%s5312_s29 + $0x228] sm:$0xf] %v456_v10 }
  0x72   : > { %459 = vst [vmem:[%s5312_s29 + $0x22c] sm:$0xf] %v458_v11  ;;  %v460_v12 = vld [vmem:[%s5308_s28 + $0x460] sm:$0xf]  ;;  %v462_v13 = vld [vmem:[%s5308_s28 + $0x468] sm:$0xf] }
  0x73   : > { %v464_v14 = vld [vmem:[%s5308_s28 + $0x470] sm:$0xf]  ;;  %461 = vst [vmem:[%s5312_s29 + $0x230] sm:$0xf] %v460_v12  ;;  %463 = vst [vmem:[%s5312_s29 + $0x234] sm:$0xf] %v462_v13 }
  0x74   : > { %465 = vst [vmem:[%s5312_s29 + $0x238] sm:$0xf] %v464_v14  ;;  %v466_v15 = vld [vmem:[%s5308_s28 + $0x478] sm:$0xf]  ;;  %v468_v16 = vld [vmem:[%s5308_s28 + $0x480] sm:$0xf] }
  0x75   : > { %v470_v17 = vld [vmem:[%s5308_s28 + $0x488] sm:$0xf]  ;;  %467 = vst [vmem:[%s5312_s29 + $0x23c] sm:$0xf] %v466_v15  ;;  %469 = vst [vmem:[%s5312_s29 + $0x240] sm:$0xf] %v468_v16 }
  0x76   : > { %471 = vst [vmem:[%s5312_s29 + $0x244] sm:$0xf] %v470_v17  ;;  %v472_v18 = vld [vmem:[%s5308_s28 + $0x490] sm:$0xf]  ;;  %v474_v19 = vld [vmem:[%s5308_s28 + $0x498] sm:$0xf] }
  0x77   : > { %v476_v20 = vld [vmem:[%s5308_s28 + $0x4a0] sm:$0xf]  ;;  %473 = vst [vmem:[%s5312_s29 + $0x248] sm:$0xf] %v472_v18  ;;  %475 = vst [vmem:[%s5312_s29 + $0x24c] sm:$0xf] %v474_v19 }
  0x78   : > { %477 = vst [vmem:[%s5312_s29 + $0x250] sm:$0xf] %v476_v20  ;;  %v478_v21 = vld [vmem:[%s5308_s28 + $0x4a8] sm:$0xf]  ;;  %v480_v22 = vld [vmem:[%s5308_s28 + $0x4b0] sm:$0xf] }
  0x79   : > { %v482_v23 = vld [vmem:[%s5308_s28 + $0x4b8] sm:$0xf]  ;;  %479 = vst [vmem:[%s5312_s29 + $0x254] sm:$0xf] %v478_v21  ;;  %481 = vst [vmem:[%s5312_s29 + $0x258] sm:$0xf] %v480_v22 }
  0x7a   : > { %483 = vst [vmem:[%s5312_s29 + $0x25c] sm:$0xf] %v482_v23  ;;  %v484_v24 = vld [vmem:[%s5308_s28 + $0x4c0] sm:$0xf]  ;;  %v486_v25 = vld [vmem:[%s5308_s28 + $0x4c8] sm:$0xf] }
  0x7b   : > { %v488_v26 = vld [vmem:[%s5308_s28 + $0x4d0] sm:$0xf]  ;;  %485 = vst [vmem:[%s5312_s29 + $0x260] sm:$0xf] %v484_v24  ;;  %487 = vst [vmem:[%s5312_s29 + $0x264] sm:$0xf] %v486_v25 }
  0x7c   : > { %489 = vst [vmem:[%s5312_s29 + $0x268] sm:$0xf] %v488_v26  ;;  %v490_v27 = vld [vmem:[%s5308_s28 + $0x4d8] sm:$0xf]  ;;  %v492_v28 = vld [vmem:[%s5308_s28 + $0x4e0] sm:$0xf] }
  0x7d   : > { %v494_v29 = vld [vmem:[%s5308_s28 + $0x4e8] sm:$0xf]  ;;  %491 = vst [vmem:[%s5312_s29 + $0x26c] sm:$0xf] %v490_v27  ;;  %493 = vst [vmem:[%s5312_s29 + $0x270] sm:$0xf] %v492_v28 }
  0x7e   : > { %495 = vst [vmem:[%s5312_s29 + $0x274] sm:$0xf] %v494_v29  ;;  %v496_v30 = vld [vmem:[%s5308_s28 + $0x4f0] sm:$0xf]  ;;  %v498_v31 = vld [vmem:[%s5308_s28 + $0x4f8] sm:$0xf] }
  0x7f   : > { %v500_v32 = vld [vmem:[%s5308_s28 + $0x500] sm:$0xf]  ;;  %497 = vst [vmem:[%s5312_s29 + $0x278] sm:$0xf] %v496_v30  ;;  %499 = vst [vmem:[%s5312_s29 + $0x27c] sm:$0xf] %v498_v31 }
  0x80   : > { %501 = vst [vmem:[%s5312_s29 + $0x280] sm:$0xf] %v500_v32  ;;  %v502_v33 = vld [vmem:[%s5308_s28 + $0x508] sm:$0xf]  ;;  %v504_v34 = vld [vmem:[%s5308_s28 + $0x510] sm:$0xf] }
  0x81   : > { %v506_v35 = vld [vmem:[%s5308_s28 + $0x518] sm:$0xf]  ;;  %503 = vst [vmem:[%s5312_s29 + $0x284] sm:$0xf] %v502_v33  ;;  %505 = vst [vmem:[%s5312_s29 + $0x288] sm:$0xf] %v504_v34 }
  0x82   : > { %507 = vst [vmem:[%s5312_s29 + $0x28c] sm:$0xf] %v506_v35  ;;  %v508_v36 = vld [vmem:[%s5308_s28 + $0x520] sm:$0xf]  ;;  %v510_v37 = vld [vmem:[%s5308_s28 + $0x528] sm:$0xf] }
  0x83   : > { %v512_v38 = vld [vmem:[%s5308_s28 + $0x530] sm:$0xf]  ;;  %509 = vst [vmem:[%s5312_s29 + $0x290] sm:$0xf] %v508_v36  ;;  %511 = vst [vmem:[%s5312_s29 + $0x294] sm:$0xf] %v510_v37 }
  0x84   : > { %513 = vst [vmem:[%s5312_s29 + $0x298] sm:$0xf] %v512_v38  ;;  %v514_v39 = vld [vmem:[%s5308_s28 + $0x538] sm:$0xf]  ;;  %v516_v40 = vld [vmem:[%s5308_s28 + $0x540] sm:$0xf] }
  0x85   : > { %v518_v41 = vld [vmem:[%s5308_s28 + $0x548] sm:$0xf]  ;;  %515 = vst [vmem:[%s5312_s29 + $0x29c] sm:$0xf] %v514_v39  ;;  %517 = vst [vmem:[%s5312_s29 + $0x2a0] sm:$0xf] %v516_v40 }
  0x86   : > { %519 = vst [vmem:[%s5312_s29 + $0x2a4] sm:$0xf] %v518_v41  ;;  %v520_v42 = vld [vmem:[%s5308_s28 + $0x550] sm:$0xf]  ;;  %v522_v43 = vld [vmem:[%s5308_s28 + $0x558] sm:$0xf] }
  0x87   : > { %v524_v44 = vld [vmem:[%s5308_s28 + $0x560] sm:$0xf]  ;;  %521 = vst [vmem:[%s5312_s29 + $0x2a8] sm:$0xf] %v520_v42  ;;  %523 = vst [vmem:[%s5312_s29 + $0x2ac] sm:$0xf] %v522_v43 }
  0x88   : > { %525 = vst [vmem:[%s5312_s29 + $0x2b0] sm:$0xf] %v524_v44  ;;  %v526_v45 = vld [vmem:[%s5308_s28 + $0x568] sm:$0xf]  ;;  %v528_v46 = vld [vmem:[%s5308_s28 + $0x570] sm:$0xf] }
  0x89   : > { %v530_v47 = vld [vmem:[%s5308_s28 + $0x578] sm:$0xf]  ;;  %527 = vst [vmem:[%s5312_s29 + $0x2b4] sm:$0xf] %v526_v45  ;;  %529 = vst [vmem:[%s5312_s29 + $0x2b8] sm:$0xf] %v528_v46 }
  0x8a   : > { %531 = vst [vmem:[%s5312_s29 + $0x2bc] sm:$0xf] %v530_v47  ;;  %v532_v48 = vld [vmem:[%s5308_s28 + $0x580] sm:$0xf]  ;;  %v534_v49 = vld [vmem:[%s5308_s28 + $0x588] sm:$0xf] }
  0x8b   : > { %v536_v50 = vld [vmem:[%s5308_s28 + $0x590] sm:$0xf]  ;;  %533 = vst [vmem:[%s5312_s29 + $0x2c0] sm:$0xf] %v532_v48  ;;  %535 = vst [vmem:[%s5312_s29 + $0x2c4] sm:$0xf] %v534_v49 }
  0x8c   : > { %537 = vst [vmem:[%s5312_s29 + $0x2c8] sm:$0xf] %v536_v50  ;;  %v538_v51 = vld [vmem:[%s5308_s28 + $0x598] sm:$0xf]  ;;  %v540_v52 = vld [vmem:[%s5308_s28 + $0x5a0] sm:$0xf] }
  0x8d   : > { %v542_v53 = vld [vmem:[%s5308_s28 + $0x5a8] sm:$0xf]  ;;  %539 = vst [vmem:[%s5312_s29 + $0x2cc] sm:$0xf] %v538_v51  ;;  %541 = vst [vmem:[%s5312_s29 + $0x2d0] sm:$0xf] %v540_v52 }
  0x8e   : > { %543 = vst [vmem:[%s5312_s29 + $0x2d4] sm:$0xf] %v542_v53  ;;  %v544_v54 = vld [vmem:[%s5308_s28 + $0x5b0] sm:$0xf]  ;;  %v546_v55 = vld [vmem:[%s5308_s28 + $0x5b8] sm:$0xf] }
  0x8f   : > { %v548_v56 = vld [vmem:[%s5308_s28 + $0x5c0] sm:$0xf]  ;;  %545 = vst [vmem:[%s5312_s29 + $0x2d8] sm:$0xf] %v544_v54  ;;  %547 = vst [vmem:[%s5312_s29 + $0x2dc] sm:$0xf] %v546_v55 }
  0x90   : > { %549 = vst [vmem:[%s5312_s29 + $0x2e0] sm:$0xf] %v548_v56  ;;  %v550_v57 = vld [vmem:[%s5308_s28 + $0x5c8] sm:$0xf]  ;;  %v552_v58 = vld [vmem:[%s5308_s28 + $0x5d0] sm:$0xf] }
  0x91   : > { %v554_v59 = vld [vmem:[%s5308_s28 + $0x5d8] sm:$0xf]  ;;  %551 = vst [vmem:[%s5312_s29 + $0x2e4] sm:$0xf] %v550_v57  ;;  %553 = vst [vmem:[%s5312_s29 + $0x2e8] sm:$0xf] %v552_v58 }
  0x92   : > { %555 = vst [vmem:[%s5312_s29 + $0x2ec] sm:$0xf] %v554_v59  ;;  %v556_v60 = vld [vmem:[%s5308_s28 + $0x5e0] sm:$0xf]  ;;  %v558_v61 = vld [vmem:[%s5308_s28 + $0x5e8] sm:$0xf] }
  0x93   : > { %v560_v62 = vld [vmem:[%s5308_s28 + $0x5f0] sm:$0xf]  ;;  %557 = vst [vmem:[%s5312_s29 + $0x2f0] sm:$0xf] %v556_v60  ;;  %559 = vst [vmem:[%s5312_s29 + $0x2f4] sm:$0xf] %v558_v61 }
  0x94   : > { %561 = vst [vmem:[%s5312_s29 + $0x2f8] sm:$0xf] %v560_v62  ;;  %v562_v63 = vld [vmem:[%s5308_s28 + $0x5f8] sm:$0xf]  ;;  %v564_v0 = vld [vmem:[%s5308_s28 + $0x600] sm:$0xf] }
  0x95   : > { %v566_v1 = vld [vmem:[%s5308_s28 + $0x608] sm:$0xf]  ;;  %563 = vst [vmem:[%s5312_s29 + $0x2fc] sm:$0xf] %v562_v63  ;;  %565 = vst [vmem:[%s5312_s29 + $0x300] sm:$0xf] %v564_v0 }
  0x96   : > { %567 = vst [vmem:[%s5312_s29 + $0x304] sm:$0xf] %v566_v1  ;;  %v568_v2 = vld [vmem:[%s5308_s28 + $0x610] sm:$0xf]  ;;  %v570_v3 = vld [vmem:[%s5308_s28 + $0x618] sm:$0xf] }
  0x97   : > { %v572_v4 = vld [vmem:[%s5308_s28 + $0x620] sm:$0xf]  ;;  %569 = vst [vmem:[%s5312_s29 + $0x308] sm:$0xf] %v568_v2  ;;  %571 = vst [vmem:[%s5312_s29 + $0x30c] sm:$0xf] %v570_v3 }
  0x98   : > { %573 = vst [vmem:[%s5312_s29 + $0x310] sm:$0xf] %v572_v4  ;;  %v574_v5 = vld [vmem:[%s5308_s28 + $0x628] sm:$0xf]  ;;  %v576_v6 = vld [vmem:[%s5308_s28 + $0x630] sm:$0xf] }
  0x99   : > { %v578_v7 = vld [vmem:[%s5308_s28 + $0x638] sm:$0xf]  ;;  %575 = vst [vmem:[%s5312_s29 + $0x314] sm:$0xf] %v574_v5  ;;  %577 = vst [vmem:[%s5312_s29 + $0x318] sm:$0xf] %v576_v6 }
  0x9a   : > { %579 = vst [vmem:[%s5312_s29 + $0x31c] sm:$0xf] %v578_v7  ;;  %v580_v8 = vld [vmem:[%s5308_s28 + $0x640] sm:$0xf]  ;;  %v582_v9 = vld [vmem:[%s5308_s28 + $0x648] sm:$0xf] }
  0x9b   : > { %v584_v10 = vld [vmem:[%s5308_s28 + $0x650] sm:$0xf]  ;;  %581 = vst [vmem:[%s5312_s29 + $0x320] sm:$0xf] %v580_v8  ;;  %583 = vst [vmem:[%s5312_s29 + $0x324] sm:$0xf] %v582_v9 }
  0x9c   : > { %585 = vst [vmem:[%s5312_s29 + $0x328] sm:$0xf] %v584_v10  ;;  %v586_v11 = vld [vmem:[%s5308_s28 + $0x658] sm:$0xf]  ;;  %v588_v12 = vld [vmem:[%s5308_s28 + $0x660] sm:$0xf] }
  0x9d   : > { %v590_v13 = vld [vmem:[%s5308_s28 + $0x668] sm:$0xf]  ;;  %587 = vst [vmem:[%s5312_s29 + $0x32c] sm:$0xf] %v586_v11  ;;  %589 = vst [vmem:[%s5312_s29 + $0x330] sm:$0xf] %v588_v12 }
  0x9e   : > { %591 = vst [vmem:[%s5312_s29 + $0x334] sm:$0xf] %v590_v13  ;;  %v592_v14 = vld [vmem:[%s5308_s28 + $0x670] sm:$0xf]  ;;  %v594_v15 = vld [vmem:[%s5308_s28 + $0x678] sm:$0xf] }
  0x9f   : > { %v596_v16 = vld [vmem:[%s5308_s28 + $0x680] sm:$0xf]  ;;  %593 = vst [vmem:[%s5312_s29 + $0x338] sm:$0xf] %v592_v14  ;;  %595 = vst [vmem:[%s5312_s29 + $0x33c] sm:$0xf] %v594_v15 }
  0xa0   : > { %597 = vst [vmem:[%s5312_s29 + $0x340] sm:$0xf] %v596_v16  ;;  %v598_v17 = vld [vmem:[%s5308_s28 + $0x688] sm:$0xf]  ;;  %v600_v18 = vld [vmem:[%s5308_s28 + $0x690] sm:$0xf] }
  0xa1   : > { %v602_v19 = vld [vmem:[%s5308_s28 + $0x698] sm:$0xf]  ;;  %599 = vst [vmem:[%s5312_s29 + $0x344] sm:$0xf] %v598_v17  ;;  %601 = vst [vmem:[%s5312_s29 + $0x348] sm:$0xf] %v600_v18 }
  0xa2   : > { %603 = vst [vmem:[%s5312_s29 + $0x34c] sm:$0xf] %v602_v19  ;;  %v604_v20 = vld [vmem:[%s5308_s28 + $0x6a0] sm:$0xf]  ;;  %v606_v21 = vld [vmem:[%s5308_s28 + $0x6a8] sm:$0xf] }
  0xa3   : > { %v608_v22 = vld [vmem:[%s5308_s28 + $0x6b0] sm:$0xf]  ;;  %605 = vst [vmem:[%s5312_s29 + $0x350] sm:$0xf] %v604_v20  ;;  %607 = vst [vmem:[%s5312_s29 + $0x354] sm:$0xf] %v606_v21 }
  0xa4   : > { %609 = vst [vmem:[%s5312_s29 + $0x358] sm:$0xf] %v608_v22  ;;  %v610_v23 = vld [vmem:[%s5308_s28 + $0x6b8] sm:$0xf]  ;;  %v612_v24 = vld [vmem:[%s5308_s28 + $0x6c0] sm:$0xf] }
  0xa5   : > { %v614_v25 = vld [vmem:[%s5308_s28 + $0x6c8] sm:$0xf]  ;;  %611 = vst [vmem:[%s5312_s29 + $0x35c] sm:$0xf] %v610_v23  ;;  %613 = vst [vmem:[%s5312_s29 + $0x360] sm:$0xf] %v612_v24 }
  0xa6   : > { %615 = vst [vmem:[%s5312_s29 + $0x364] sm:$0xf] %v614_v25  ;;  %v616_v26 = vld [vmem:[%s5308_s28 + $0x6d0] sm:$0xf]  ;;  %v618_v27 = vld [vmem:[%s5308_s28 + $0x6d8] sm:$0xf] }
  0xa7   : > { %v620_v28 = vld [vmem:[%s5308_s28 + $0x6e0] sm:$0xf]  ;;  %617 = vst [vmem:[%s5312_s29 + $0x368] sm:$0xf] %v616_v26  ;;  %619 = vst [vmem:[%s5312_s29 + $0x36c] sm:$0xf] %v618_v27 }
  0xa8   : > { %621 = vst [vmem:[%s5312_s29 + $0x370] sm:$0xf] %v620_v28  ;;  %v622_v29 = vld [vmem:[%s5308_s28 + $0x6e8] sm:$0xf]  ;;  %v624_v30 = vld [vmem:[%s5308_s28 + $0x6f0] sm:$0xf] }
  0xa9   : > { %v626_v31 = vld [vmem:[%s5308_s28 + $0x6f8] sm:$0xf]  ;;  %623 = vst [vmem:[%s5312_s29 + $0x374] sm:$0xf] %v622_v29  ;;  %625 = vst [vmem:[%s5312_s29 + $0x378] sm:$0xf] %v624_v30 }
  0xaa   : > { %627 = vst [vmem:[%s5312_s29 + $0x37c] sm:$0xf] %v626_v31  ;;  %v628_v32 = vld [vmem:[%s5308_s28 + $0x700] sm:$0xf]  ;;  %v630_v33 = vld [vmem:[%s5308_s28 + $0x708] sm:$0xf] }
  0xab   : > { %v632_v34 = vld [vmem:[%s5308_s28 + $0x710] sm:$0xf]  ;;  %629 = vst [vmem:[%s5312_s29 + $0x380] sm:$0xf] %v628_v32  ;;  %631 = vst [vmem:[%s5312_s29 + $0x384] sm:$0xf] %v630_v33 }
  0xac   : > { %633 = vst [vmem:[%s5312_s29 + $0x388] sm:$0xf] %v632_v34  ;;  %v634_v35 = vld [vmem:[%s5308_s28 + $0x718] sm:$0xf]  ;;  %v636_v36 = vld [vmem:[%s5308_s28 + $0x720] sm:$0xf] }
  0xad   : > { %v638_v37 = vld [vmem:[%s5308_s28 + $0x728] sm:$0xf]  ;;  %635 = vst [vmem:[%s5312_s29 + $0x38c] sm:$0xf] %v634_v35  ;;  %637 = vst [vmem:[%s5312_s29 + $0x390] sm:$0xf] %v636_v36 }
  0xae   : > { %639 = vst [vmem:[%s5312_s29 + $0x394] sm:$0xf] %v638_v37  ;;  %v640_v38 = vld [vmem:[%s5308_s28 + $0x730] sm:$0xf]  ;;  %v642_v39 = vld [vmem:[%s5308_s28 + $0x738] sm:$0xf] }
  0xaf   : > { %v644_v40 = vld [vmem:[%s5308_s28 + $0x740] sm:$0xf]  ;;  %641 = vst [vmem:[%s5312_s29 + $0x398] sm:$0xf] %v640_v38  ;;  %643 = vst [vmem:[%s5312_s29 + $0x39c] sm:$0xf] %v642_v39 }
  0xb0   : > { %645 = vst [vmem:[%s5312_s29 + $0x3a0] sm:$0xf] %v644_v40  ;;  %v646_v41 = vld [vmem:[%s5308_s28 + $0x748] sm:$0xf]  ;;  %v648_v42 = vld [vmem:[%s5308_s28 + $0x750] sm:$0xf] }
  0xb1   : > { %v650_v43 = vld [vmem:[%s5308_s28 + $0x758] sm:$0xf]  ;;  %647 = vst [vmem:[%s5312_s29 + $0x3a4] sm:$0xf] %v646_v41  ;;  %649 = vst [vmem:[%s5312_s29 + $0x3a8] sm:$0xf] %v648_v42 }
  0xb2   : > { %651 = vst [vmem:[%s5312_s29 + $0x3ac] sm:$0xf] %v650_v43  ;;  %v652_v44 = vld [vmem:[%s5308_s28 + $0x760] sm:$0xf]  ;;  %v654_v45 = vld [vmem:[%s5308_s28 + $0x768] sm:$0xf] }
  0xb3   : > { %v656_v46 = vld [vmem:[%s5308_s28 + $0x770] sm:$0xf]  ;;  %653 = vst [vmem:[%s5312_s29 + $0x3b0] sm:$0xf] %v652_v44  ;;  %655 = vst [vmem:[%s5312_s29 + $0x3b4] sm:$0xf] %v654_v45 }
  0xb4   : > { %657 = vst [vmem:[%s5312_s29 + $0x3b8] sm:$0xf] %v656_v46  ;;  %v658_v47 = vld [vmem:[%s5308_s28 + $0x778] sm:$0xf]  ;;  %v660_v48 = vld [vmem:[%s5308_s28 + $0x780] sm:$0xf] }
  0xb5   : > { %v662_v49 = vld [vmem:[%s5308_s28 + $0x788] sm:$0xf]  ;;  %659 = vst [vmem:[%s5312_s29 + $0x3bc] sm:$0xf] %v658_v47  ;;  %661 = vst [vmem:[%s5312_s29 + $0x3c0] sm:$0xf] %v660_v48 }
  0xb6   : > { %663 = vst [vmem:[%s5312_s29 + $0x3c4] sm:$0xf] %v662_v49  ;;  %v664_v50 = vld [vmem:[%s5308_s28 + $0x790] sm:$0xf]  ;;  %v666_v51 = vld [vmem:[%s5308_s28 + $0x798] sm:$0xf] }
  0xb7   : > { %v668_v52 = vld [vmem:[%s5308_s28 + $0x7a0] sm:$0xf]  ;;  %665 = vst [vmem:[%s5312_s29 + $0x3c8] sm:$0xf] %v664_v50  ;;  %667 = vst [vmem:[%s5312_s29 + $0x3cc] sm:$0xf] %v666_v51 }
  0xb8   : > { %669 = vst [vmem:[%s5312_s29 + $0x3d0] sm:$0xf] %v668_v52  ;;  %v670_v53 = vld [vmem:[%s5308_s28 + $0x7a8] sm:$0xf]  ;;  %v672_v54 = vld [vmem:[%s5308_s28 + $0x7b0] sm:$0xf] }
  0xb9   : > { %v674_v55 = vld [vmem:[%s5308_s28 + $0x7b8] sm:$0xf]  ;;  %671 = vst [vmem:[%s5312_s29 + $0x3d4] sm:$0xf] %v670_v53  ;;  %673 = vst [vmem:[%s5312_s29 + $0x3d8] sm:$0xf] %v672_v54 }
  0xba   : > { %675 = vst [vmem:[%s5312_s29 + $0x3dc] sm:$0xf] %v674_v55  ;;  %v676_v56 = vld [vmem:[%s5308_s28 + $0x7c0] sm:$0xf]  ;;  %v678_v57 = vld [vmem:[%s5308_s28 + $0x7c8] sm:$0xf] }
  0xbb   : > { %v680_v58 = vld [vmem:[%s5308_s28 + $0x7d0] sm:$0xf]  ;;  %677 = vst [vmem:[%s5312_s29 + $0x3e0] sm:$0xf] %v676_v56  ;;  %679 = vst [vmem:[%s5312_s29 + $0x3e4] sm:$0xf] %v678_v57 }
  0xbc   : > { %681 = vst [vmem:[%s5312_s29 + $0x3e8] sm:$0xf] %v680_v58  ;;  %v682_v59 = vld [vmem:[%s5308_s28 + $0x7d8] sm:$0xf]  ;;  %v684_v60 = vld [vmem:[%s5308_s28 + $0x7e0] sm:$0xf] }
  0xbd   : > { %v686_v61 = vld [vmem:[%s5308_s28 + $0x7e8] sm:$0xf]  ;;  %683 = vst [vmem:[%s5312_s29 + $0x3ec] sm:$0xf] %v682_v59  ;;  %685 = vst [vmem:[%s5312_s29 + $0x3f0] sm:$0xf] %v684_v60 }
  0xbe   : > { %687 = vst [vmem:[%s5312_s29 + $0x3f4] sm:$0xf] %v686_v61  ;;  %v688_v62 = vld [vmem:[%s5308_s28 + $0x7f0] sm:$0xf]  ;;  %v690_v63 = vld [vmem:[%s5308_s28 + $0x7f8] sm:$0xf] }
  0xbf   : > { %689 = vst [vmem:[%s5312_s29 + $0x3f8] sm:$0xf] %v688_v62  ;;  %691 = vst [vmem:[%s5312_s29 + $0x3fc] sm:$0xf] %v690_v63 }
  0xc0 PF: > { %p4177_p8 = scmp.ge.s32.totalorder %s5238_s16, 1  ;;  %p1231_p9 = scmp.lt.s32.totalorder %s5238_s16, 3 }
  0xc2   : > { %p1232_p10 = pnand %p4177_p8, %p1231_p9 }
  0xc3   : > { %s1238_s30 = sand.u32 (!%p1232_p10), 1, %s5222_s12   ;;  %v5830_v0 = vld [vmem:[%s6575_s0] sm:$0xff] (!%p1232_p10)  ;;  %v5840_v2 = vld [vmem:[%s6575_s0 + $0x8] sm:$0xff] (!%p1232_p10)  ;;  %p1276_p11 = scmp.lt.s32.totalorder (!%p1232_p10), %s5230_s14, 1 }
  0xc4   : > { %1235 = sbr.rel (%p1232_p10) target bundleno = 716 (0x2cc), region = 69  ;;  %v5835_v1 = vld [vmem:[%s6575_s0 + $0x40] sm:$0xff] (!%p1232_p10)  ;;  %s4178_s10 = sshll.u32 (!%p1232_p10), %s1238_s30, 10  ;;  %v5849_v4 = vld [vmem:[%s6575_s0 + $0x48] sm:$0xff] (!%p1232_p10) }
  0xc5   : > { %v4182_v3 = vcombine.high (!%p1232_p10), %v5830_v0, %v5835_v1  ;;  %v4184_v5 = vcombine.high (!%p1232_p10), %v5840_v2, %v5849_v4  ;;  %s5853_s19 = scalar_lea.vmem (!%p1232_p10), [#allocation2], %s4178_s10  ;;  %v1297_v35 = vld [vmem:[%s6575_s0 + $0x80] sm:$0xff] (!%p1232_p10)  ;;  %v1298_v38 = vld [vmem:[%s6575_s0 + $0x88] sm:$0xff] (!%p1232_p10)  ;;  %v4181_v42 = vcombine.low (!%p1232_p10), %v5830_v0, %v5835_v1  ;;  %v4183_v43 = vcombine.low (!%p1232_p10), %v5840_v2, %v5849_v4 }
  0xc6   : > { %v5072_v6 = vld [vmem:[%s5853_s19 + $0x40] sm:$0xff] (!%p1232_p10)   ;;  %v5076_v10 = vld [vmem:[%s5853_s19 + $0x48] sm:$0xff] (!%p1232_p10)   ;;  %v5080_v14 = vld [vmem:[%s5853_s19 + $0x50] sm:$0xff] (!%p1232_p10)  }
  0xc7   : > { %3112 = vmatprep.mubr.bf16.mxu0 (!%p1232_p10), %v4182_v3  ;;  %v5073_v7 = vld [vmem:[%s5853_s19 + $0xc0] sm:$0xff] (!%p1232_p10)   ;;  %3209 = vmatprep.mubr.bf16.mxu1 (!%p1232_p10), %v4184_v5  ;;  %v5077_v11 = vld [vmem:[%s5853_s19 + $0xc8] sm:$0xff] (!%p1232_p10)   ;;  %v5081_v15 = vld [vmem:[%s5853_s19 + $0xd0] sm:$0xff] (!%p1232_p10)  }
  0xc8   : > { %4520 = vmatprep.subr.bf16.mxu0 (!%p1232_p10), %v5072_v6  ;;  %v5074_v8 = vld [vmem:[%s5853_s19] sm:$0xff] (!%p1232_p10)   ;;  %4584 = vmatprep.subr.bf16.mxu1 (!%p1232_p10), %v5073_v7  ;;  %v5078_v12 = vld [vmem:[%s5853_s19 + $0x8] sm:$0xff] (!%p1232_p10)   ;;  %v5082_v16 = vld [vmem:[%s5853_s19 + $0x10] sm:$0xff] (!%p1232_p10)  }
  0xc9   : > { %v5075_v9 = vld [vmem:[%s5853_s19 + $0x80] sm:$0xff] (!%p1232_p10)   ;;  %4521 = vmatpush3.bf16.msra.mxu0 (!%p1232_p10), %v5074_v8  ;;  %v5079_v13 = vld [vmem:[%s5853_s19 + $0x88] sm:$0xff] (!%p1232_p10)   ;;  %v5083_v17 = vld [vmem:[%s5853_s19 + $0x90] sm:$0xff] (!%p1232_p10)  }
  0xca   : > { %4585 = vmatpush3.bf16.msra.mxu1 (!%p1232_p10), %v5075_v9  ;;  %4522 = vmatprep.subr.bf16.mxu0 (!%p1232_p10), %v5076_v10  ;;  %v5084_v18 = vld [vmem:[%s5853_s19 + $0x58] sm:$0xff] (!%p1232_p10)   ;;  %v5088_v22 = vld [vmem:[%s5853_s19 + $0x60] sm:$0xff] (!%p1232_p10)   ;;  %v5092_v26 = vld [vmem:[%s5853_s19 + $0x68] sm:$0xff] (!%p1232_p10)  }
  0xcb   : > { %4586 = vmatprep.subr.bf16.mxu1 %v5077_v11  ;;  %v5085_v19 = vld [vmem:[%s5853_s19 + $0xd8] sm:$0xff]   ;;  %v5089_v23 = vld [vmem:[%s5853_s19 + $0xe0] sm:$0xff]   ;;  %v5093_v27 = vld [vmem:[%s5853_s19 + $0xe8] sm:$0xff]   ;;  %s1277_s5 = scalar_select %p1276_p11, %s5230_s14, 1 }
  0xcc   : > { %v5086_v20 = vld [vmem:[%s5853_s19 + $0x18] sm:$0xff]   ;;  %v5090_v24 = vld [vmem:[%s5853_s19 + $0x20] sm:$0xff]   ;;  %v5094_v28 = vld [vmem:[%s5853_s19 + $0x28] sm:$0xff]  }
  0xcd   : > { %4523 = vmatpush3.bf16.msra.mxu0 %v5078_v12  ;;  %v5087_v21 = vld [vmem:[%s5853_s19 + $0x98] sm:$0xff]   ;;  %v5091_v25 = vld [vmem:[%s5853_s19 + $0xa0] sm:$0xff]   ;;  %v5095_v29 = vld [vmem:[%s5853_s19 + $0xa8] sm:$0xff]   ;;  %s1278_s8 = scalar_lea.vmem %s6577_s2, %s1277_s5  ;;  %s4179_s5 = sshll.u32 %s1238_s30, 6 }
  0xce   : > { %4587 = vmatpush3.bf16.msra.mxu1 %v5079_v13  ;;  %4524 = vmatprep.subr.bf16.mxu0 %v5080_v14  ;;  %v5096_v30 = vld [vmem:[%s5853_s19 + $0x70] sm:$0xff]   ;;  %v5100_v34 = vld [vmem:[%s5853_s19 + $0x78] sm:$0xff]   ;;  %v1305_v36 = vld [vmem:[%s6575_s0 + $0xc0] sm:$0xff]  ;;  %s6516_s12 = scalar_lea.vmem [#allocation3], %s4179_s5  ;;  %s4454_s30 = sshll.u32 (%p5295_p6), %s5230_s14, 2 }
  0xcf   : > { %4588 = vmatprep.subr.bf16.mxu1 %v5081_v15  ;;  %v5097_v31 = vld [vmem:[%s5853_s19 + $0xf0] sm:$0xff]   ;;  %v5101_v37 = vld [vmem:[%s5853_s19 + $0xf8] sm:$0xff]   ;;  %v1306_v39 = vld [vmem:[%s6575_s0 + $0xc8] sm:$0xff]  ;;  %v4198_v46 = vcombine.high %v1297_v35, %v1305_v36  ;;  %v4197_v54 = vcombine.low %v1297_v35, %v1305_v36 }
  0xd0   : > { %v5098_v32 = vld [vmem:[%s5853_s19 + $0x30] sm:$0xff]   ;;  %v5102_v40 = vld [vmem:[%s5853_s19 + $0x38] sm:$0xff]   ;;  %v5104_v44 = vld [vmem:[%s5853_s19 + $0x140] sm:$0xff]   ;;  %v4200_v48 = vcombine.high %v1298_v38, %v1306_v39  ;;  %v4199_v56 = vcombine.low %v1298_v38, %v1306_v39 }
  0xd1   : > { %4525 = vmatpush3.bf16.msra.mxu0 %v5082_v16  ;;  %v5099_v33 = vld [vmem:[%s5853_s19 + $0xb0] sm:$0xff]   ;;  %v5103_v41 = vld [vmem:[%s5853_s19 + $0xb8] sm:$0xff]   ;;  %v5105_v45 = vld [vmem:[%s5853_s19 + $0x100] sm:$0xff]  }
  0xd2   : > { %4589 = vmatpush3.bf16.msra.mxu1 %v5083_v17  ;;  %4526 = vmatprep.subr.bf16.mxu0 %v5084_v18  ;;  %v5106_v47 = vld [vmem:[%s5853_s19 + $0x1c0] sm:$0xff]   ;;  %v5108_v50 = vld [vmem:[%s5853_s19 + $0x148] sm:$0xff]   ;;  %v5112_v62 = vld [vmem:[%s5853_s19 + $0x150] sm:$0xff]  }
  0xd3   : > { %4590 = vmatprep.subr.bf16.mxu1 %v5085_v19  ;;  %v5107_v49 = vld [vmem:[%s5853_s19 + $0x180] sm:$0xff]   ;;  %v5109_v52 = vld [vmem:[%s5853_s19 + $0x108] sm:$0xff]   ;;  %v5113_v63 = vld [vmem:[%s5853_s19 + $0x110] sm:$0xff]  }
  0xd4   : > { %v1313_v51 = vld [vmem:[%s6575_s0 + $0x100] sm:$0xff]  ;;  %v5110_v53 = vld [vmem:[%s5853_s19 + $0x1c8] sm:$0xff]   ;;  %v5114_v0 = vld [vmem:[%s5853_s19 + $0x1d0] sm:$0xff]  }
  0xd5   : > { %4527 = vmatpush3.bf16.msra.mxu0 %v5086_v20  ;;  %v5111_v55 = vld [vmem:[%s5853_s19 + $0x188] sm:$0xff]   ;;  %v1321_v57 = vld [vmem:[%s6575_s0 + $0x140] sm:$0xff]  ;;  %v5115_v1 = vld [vmem:[%s5853_s19 + $0x190] sm:$0xff]  }
  0xd6   : > { %4591 = vmatpush3.bf16.msra.mxu1 %v5087_v21  ;;  %4528 = vmatprep.subr.bf16.mxu0 %v5088_v22  ;;  %v1314_v58 = vld [vmem:[%s6575_s0 + $0x108] sm:$0xff]  ;;  %v4214_v60 = vcombine.high %v1313_v51, %v1321_v57  ;;  %v1329_v2 = vld [vmem:[%s6575_s0 + $0x180] sm:$0xff]  ;;  %v4213_v6 = vcombine.low %v1313_v51, %v1321_v57  ;;  %v5116_v7 = vld [vmem:[%s5853_s19 + $0x158] sm:$0xff]  }
  0xd7   : > { %4592 = vmatprep.subr.bf16.mxu1 %v5089_v23  ;;  %v1322_v59 = vld [vmem:[%s6575_s0 + $0x148] sm:$0xff]  ;;  %v1337_v3 = vld [vmem:[%s6575_s0 + $0x1c0] sm:$0xff]  ;;  %v5117_v10 = vld [vmem:[%s5853_s19 + $0x118] sm:$0xff]  }
  0xd8   : > { %v4216_v61 = vcombine.high %v1314_v58, %v1322_v59  ;;  %v1330_v4 = vld [vmem:[%s6575_s0 + $0x188] sm:$0xff]  ;;  %v4215_v8 = vcombine.low %v1314_v58, %v1322_v59  ;;  %v4230_v9 = vcombine.high %v1329_v2, %v1337_v3  ;;  %v5118_v12 = vld [vmem:[%s5853_s19 + $0x1d8] sm:$0xff]   ;;  %v1345_v14 = vld [vmem:[%s6575_s0 + $0x200] sm:$0xff]  ;;  %v4229_v21 = vcombine.low %v1329_v2, %v1337_v3 }
  0xd9   : > { %4529 = vmatpush3.bf16.msra.mxu0 %v5090_v24  ;;  %v1338_v5 = vld [vmem:[%s6575_s0 + $0x1c8] sm:$0xff]  ;;  %v5119_v13 = vld [vmem:[%s5853_s19 + $0x198] sm:$0xff]   ;;  %v1353_v15 = vld [vmem:[%s6575_s0 + $0x240] sm:$0xff] }
  0xda   : > { %4593 = vmatpush3.bf16.msra.mxu1 %v5091_v25  ;;  %4530 = vmatprep.subr.bf16.mxu0 %v5092_v26  ;;  %v4232_v11 = vcombine.high %v1330_v4, %v1338_v5  ;;  %v1346_v16 = vld [vmem:[%s6575_s0 + $0x208] sm:$0xff]  ;;  %v5120_v18 = vld [vmem:[%s5853_s19 + $0x160] sm:$0xff]   ;;  %v4231_v23 = vcombine.low %v1330_v4, %v1338_v5  ;;  %v4246_v24 = vcombine.high %v1345_v14, %v1353_v15  ;;  %v5128_v35 = vld [vmem:[%s5853_s19 + $0x170] sm:$0xff]  }
  0xdb   : > { %4594 = vmatprep.subr.bf16.mxu1 %v5093_v27  ;;  %v1354_v17 = vld [vmem:[%s6575_s0 + $0x248] sm:$0xff]  ;;  %v5121_v19 = vld [vmem:[%s5853_s19 + $0x120] sm:$0xff]   ;;  %v5129_v38 = vld [vmem:[%s5853_s19 + $0x130] sm:$0xff]  }
  0xdc   : > { %v5122_v20 = vld [vmem:[%s5853_s19 + $0x1e0] sm:$0xff]   ;;  %v4248_v25 = vcombine.high %v1346_v16, %v1354_v17  ;;  %v5124_v26 = vld [vmem:[%s5853_s19 + $0x168] sm:$0xff]   ;;  %v4247_v36 = vcombine.low %v1346_v16, %v1354_v17  ;;  %v1284_v2 = vld [vmem:[%s6575_s0 + $0x18] sm:$0xff] }
  0xdd   : > { %4531 = vmatpush3.bf16.msra.mxu0 %v5094_v28  ;;  %v5123_v22 = vld [vmem:[%s5853_s19 + $0x1a0] sm:$0xff]   ;;  %v5125_v27 = vld [vmem:[%s5853_s19 + $0x128] sm:$0xff]   ;;  %v1292_v3 = vld [vmem:[%s6575_s0 + $0x58] sm:$0xff] }
  0xde   : > { %4595 = vmatpush3.bf16.msra.mxu1 %v5095_v29  ;;  %4532 = vmatprep.subr.bf16.mxu0 %v5096_v30  ;;  %v5126_v28 = vld [vmem:[%s5853_s19 + $0x1e8] sm:$0xff]   ;;  %v1361_v30 = vld [vmem:[%s6575_s0 + $0x280] sm:$0xff] }
  0xdf   : > { %4596 = vmatprep.subr.bf16.mxu1 %v5097_v31  ;;  %v5127_v29 = vld [vmem:[%s5853_s19 + $0x1a8] sm:$0xff]   ;;  %v1369_v31 = vld [vmem:[%s6575_s0 + $0x2c0] sm:$0xff] }
  0xe0   : > { %v1401_v57 = vld [vmem:[%s6575_s0 + $0x3c0] sm:$0xff]  ;;  %v1394_v58 = vld [vmem:[%s6575_s0 + $0x388] sm:$0xff] }
  0xe1   : > { %4533 = vmatpush3.bf16.msra.mxu0 %v5098_v32  ;;  %v1362_v32 = vld [vmem:[%s6575_s0 + $0x288] sm:$0xff] }
  0xe2   : > { %4597 = vmatpush3.bf16.msra.mxu1 %v5099_v33  ;;  %4534 = vmatprep.subr.bf16.mxu0 %v5100_v34  ;;  %v1370_v33 = vld [vmem:[%s6575_s0 + $0x2c8] sm:$0xff]  ;;  %v4245_v34 = vcombine.low %v1345_v14, %v1353_v15  ;;  %v5137_v14 = vld [vmem:[%s5853_s19 + $0x200] sm:$0xff]  }
  0xe3   : > { %4598 = vmatprep.subr.bf16.mxu1 %v5101_v37  ;;  %v4262_v37 = vcombine.high %v1361_v30, %v1369_v31  ;;  %v4264_v39 = vcombine.high %v1362_v32, %v1370_v33  ;;  %v4263_v51 = vcombine.low %v1362_v32, %v1370_v33  ;;  %v1402_v59 = vld [vmem:[%s6575_s0 + $0x3c8] sm:$0xff]  ;;  %v5139_v15 = vld [vmem:[%s5853_s19 + $0x280] sm:$0xff]   ;;  %v5147_v33 = vld [vmem:[%s5853_s19 + $0x290] sm:$0xff]  }
  0xe4   : > { %v4295_v5 = vcombine.low %v1394_v58, %v1402_v59 }
  0xe5   : > { %4535 = vmatpush3.bf16.msra.mxu0 %v5102_v40  ;;  %v5130_v40 = vld [vmem:[%s5853_s19 + $0x1f0] sm:$0xff]  }
  0xe6   : > { %4599 = vmatpush3.bf16.msra.mxu1 %v5103_v41  ;;  %4648 = vmatprep.subr.bf16.mxu0 %v5104_v44  ;;  %v5131_v41 = vld [vmem:[%s5853_s19 + $0x1b0] sm:$0xff]   ;;  %v1378_v44 = vld [vmem:[%s6575_s0 + $0x308] sm:$0xff] }
  0xe7   : > { %4712 = vmatprep.subr.bf16.mxu1 %v5106_v47  ;;  %v5133_v47 = vld [vmem:[%s5853_s19 + $0x138] sm:$0xff]  }
  0xe8   : > { %3113 = vmatmul.mubr.bf16.vlgmr.msra.gmra.mrb[0].mxu0 %v4181_v42  ;;  %v1377_v42 = vld [vmem:[%s6575_s0 + $0x300] sm:$0xff] }
  0xe9   : > { %3210 = vmatmul.mubr.bf16.vlgmr.msra.gmra.mrb[0].mxu1 %v4183_v43  ;;  %4649 = vmatpush3.bf16.msra.mxu0 %v5105_v45  ;;  %v1385_v43 = vld [vmem:[%s6575_s0 + $0x340] sm:$0xff]  ;;  %v1386_v45 = vld [vmem:[%s6575_s0 + $0x348] sm:$0xff] }
  0xea   : > { %3120 = vmatprep.mubr.bf16.mxu0 %v4198_v46  ;;  %4713 = vmatpush3.bf16.msra.mxu1 %v5107_v49  ;;  %v5132_v46 = vld [vmem:[%s5853_s19 + $0x178] sm:$0xff]   ;;  %v4261_v49 = vcombine.low %v1361_v30, %v1369_v31  ;;  %v5145_v31 = vld [vmem:[%s5853_s19 + $0x210] sm:$0xff]  }
  0xeb   : > { %3217 = vmatprep.mubr.bf16.mxu1 %v4200_v48  ;;  %4650 = vmatprep.subr.bf16.mxu0 %v5108_v50  ;;  %v5134_v48 = vld [vmem:[%s5853_s19 + $0x1f8] sm:$0xff]  }
  0xec   : > { %4714 = vmatprep.subr.bf16.mxu1 %v5110_v53  ;;  %v5135_v50 = vld [vmem:[%s5853_s19 + $0x1b8] sm:$0xff]   ;;  %v4280_v53 = vcombine.high %v1378_v44, %v1386_v45 }
  0xed   : > { %4651 = vmatpush3.bf16.msra.mxu0 %v5109_v52  ;;  %v4278_v52 = vcombine.high %v1377_v42, %v1385_v43 }
  0xee   : > { %4715 = vmatpush3.bf16.msra.mxu1 %v5111_v55  ;;  %4652 = vmatprep.subr.bf16.mxu0 %v5112_v62  ;;  %v5138_v55 = vld [vmem:[%s5853_s19 + $0x2c0] sm:$0xff]  }
  0xef   : > { %4716 = vmatprep.subr.bf16.mxu1 %v5114_v0  ;;  %v1283_v0 = vld [vmem:[%s6575_s0 + $0x10] sm:$0xff] }
  0xf0   : > { %3121 = vmatmul.mubr.bf16.gmra.mrb[4].mxu0 %v4197_v54  ;;  %v5136_v54 = vld [vmem:[%s5853_s19 + $0x240] sm:$0xff]  }
  0xf1   : > { %3218 = vmatmul.mubr.bf16.gmra.mrb[4].mxu1 %v4199_v56  ;;  %3128 = vmatprep.mubr.bf16.mxu0 %v4214_v60  ;;  %v1393_v56 = vld [vmem:[%s6575_s0 + $0x380] sm:$0xff]  ;;  %v4277_v60 = vcombine.low %v1377_v42, %v1385_v43 }
  0xf2   : > { %3225 = vmatprep.mubr.bf16.mxu1 %v4216_v61  ;;  %4653 = vmatpush3.bf16.msra.mxu0 %v5113_v63  ;;  %v4279_v61 = vcombine.low %v1378_v44, %v1386_v45  ;;  %v4294_v62 = vcombine.high %v1393_v56, %v1401_v57  ;;  %v4296_v63 = vcombine.high %v1394_v58, %v1402_v59  ;;  %v5152_v42 = vld [vmem:[%s5853_s19 + $0x260] sm:$0xff]   ;;  %v5160_v58 = vld [vmem:[%s5853_s19 + $0x270] sm:$0xff]  }
  0xf3   : > { %4717 = vmatpush3.bf16.msra.mxu1 %v5115_v1  ;;  %4654 = vmatprep.subr.bf16.mxu0 %v5116_v7  ;;  %v1291_v1 = vld [vmem:[%s6575_s0 + $0x50] sm:$0xff]  ;;  %v4293_v4 = vcombine.low %v1393_v56, %v1401_v57  ;;  %v4188_v7 = vcombine.high %v1284_v2, %v1292_v3  ;;  %v5154_v44 = vld [vmem:[%s5853_s19 + $0x2e0] sm:$0xff]   ;;  %v5157_v56 = vld [vmem:[%s5853_s19 + $0x228] sm:$0xff]  }
  0xf4   : > { %4718 = vmatprep.subr.bf16.mxu1 %v5118_v12  ;;  %v1308_v12 = vld [vmem:[%s6575_s0 + $0xd8] sm:$0xff]  ;;  %v5159_v57 = vld [vmem:[%s5853_s19 + $0x2a8] sm:$0xff]  }
  0xf6   : > { %4655 = vmatpush3.bf16.msra.mxu0 %v5117_v10  ;;  %v1300_v10 = vld [vmem:[%s6575_s0 + $0x98] sm:$0xff] }
  0xf7   : > { %4719 = vmatpush3.bf16.msra.mxu1 %v5119_v13  ;;  %4656 = vmatprep.subr.bf16.mxu0 %v5120_v18  ;;  %v4187_v13 = vcombine.low %v1284_v2, %v1292_v3  ;;  %v4204_v17 = vcombine.high %v1300_v10, %v1308_v12  ;;  %v5140_v18 = vld [vmem:[%s5853_s19 + $0x248] sm:$0xff]   ;;  %v5164_v2 = vld [vmem:[%s5853_s19 + $0x278] sm:$0xff]   ;;  %v1363_v3 = vld [vmem:[%s6575_s0 + $0x290] sm:$0xff] }
  0xf8   : > { %3129 = vmatmul.mubr.bf16.gmra.mrb[8].mxu0 %v4213_v6  ;;  %4720 = vmatprep.subr.bf16.mxu1 %v5122_v20  ;;  %v4186_v6 = vcombine.high %v1283_v0, %v1291_v1  ;;  %v5142_v20 = vld [vmem:[%s5853_s19 + $0x2c8] sm:$0xff]  }
  0xf9   : > { %3226 = vmatmul.mubr.bf16.gmra.mrb[8].mxu1 %v4215_v8  ;;  %3136 = vmatprep.mubr.bf16.mxu0 %v4230_v9  ;;  %v1299_v8 = vld [vmem:[%s6575_s0 + $0x90] sm:$0xff] }
  0xfa   : > { %3233 = vmatprep.mubr.bf16.mxu1 %v4232_v11  ;;  %4657 = vmatpush3.bf16.msra.mxu0 %v5121_v19  ;;  %v1307_v9 = vld [vmem:[%s6575_s0 + $0xd0] sm:$0xff]  ;;  %v4185_v11 = vcombine.low %v1283_v0, %v1291_v1  ;;  %v5141_v19 = vld [vmem:[%s5853_s19 + $0x208] sm:$0xff]  }
  0xfb   : > { %4721 = vmatpush3.bf16.msra.mxu1 %v5123_v22  ;;  %4658 = vmatprep.subr.bf16.mxu0 %v5124_v26  ;;  %v4202_v16 = vcombine.high %v1299_v8, %v1307_v9  ;;  %v1315_v22 = vld [vmem:[%s6575_s0 + $0x110] sm:$0xff] }
  0xfc   : > { %4722 = vmatprep.subr.bf16.mxu1 %v5126_v28  ;;  %v5144_v26 = vld [vmem:[%s5853_s19 + $0x250] sm:$0xff]   ;;  %v4201_v28 = vcombine.low %v1299_v8, %v1307_v9  ;;  %v5165_v8 = vld [vmem:[%s5853_s19 + $0x238] sm:$0xff]  }
  0xfd   : > { %v5163_v1 = vld [vmem:[%s5853_s19 + $0x2b0] sm:$0xff]   ;;  %v5167_v9 = vld [vmem:[%s5853_s19 + $0x2b8] sm:$0xff]  }
  0xfe   : > { %4659 = vmatpush3.bf16.msra.mxu0 %v5125_v27  ;;  %v5146_v27 = vld [vmem:[%s5853_s19 + $0x2d0] sm:$0xff]  }
  0xff   : > { %4723 = vmatpush3.bf16.msra.mxu1 %v5127_v29  ;;  %4660 = vmatprep.subr.bf16.mxu0 %v5128_v35  ;;  %v4203_v29 = vcombine.low %v1300_v10, %v1308_v12  ;;  %v1331_v35 = vld [vmem:[%s6575_s0 + $0x190] sm:$0xff]  ;;  %v5168_v10 = vld [vmem:[%s5853_s19 + $0x340] sm:$0xff]  }
 0x100   : > { %3137 = vmatmul.mubr.bf16.gmra.mrb[12].mxu0 %v4229_v21  ;;  %4724 = vmatprep.subr.bf16.mxu1 %v5130_v40  ;;  %v5143_v21 = vld [vmem:[%s5853_s19 + $0x288] sm:$0xff]   ;;  %v5149_v40 = vld [vmem:[%s5853_s19 + $0x218] sm:$0xff]   ;;  %v5170_v12 = vld [vmem:[%s5853_s19 + $0x3c0] sm:$0xff]  }
 0x101   : > { %3234 = vmatmul.mubr.bf16.gmra.mrb[12].mxu1 %v4231_v23  ;;  %3144 = vmatprep.mubr.bf16.mxu0 %v4246_v24  ;;  %v1323_v23 = vld [vmem:[%s6575_s0 + $0x150] sm:$0xff]  ;;  %v1316_v24 = vld [vmem:[%s6575_s0 + $0x118] sm:$0xff] }
 0x102   : > { %3241 = vmatprep.mubr.bf16.mxu1 %v4248_v25  ;;  %4661 = vmatpush3.bf16.msra.mxu0 %v5129_v38  ;;  %v1324_v25 = vld [vmem:[%s6575_s0 + $0x158] sm:$0xff]  ;;  %v4218_v30 = vcombine.high %v1315_v22, %v1323_v23  ;;  %v4217_v43 = vcombine.low %v1315_v22, %v1323_v23 }
 0x103   : > { %4725 = vmatpush3.bf16.msra.mxu1 %v5131_v41  ;;  %4662 = vmatprep.subr.bf16.mxu0 %v5132_v46  ;;  %v4220_v32 = vcombine.high %v1316_v24, %v1324_v25  ;;  %v1332_v38 = vld [vmem:[%s6575_s0 + $0x198] sm:$0xff]  ;;  %v4219_v45 = vcombine.low %v1316_v24, %v1324_v25  ;;  %v1395_v24 = vld [vmem:[%s6575_s0 + $0x390] sm:$0xff] }
 0x104   : > { %4726 = vmatprep.subr.bf16.mxu1 %v5134_v48  ;;  %v5151_v41 = vld [vmem:[%s5853_s19 + $0x298] sm:$0xff]   ;;  %v5153_v48 = vld [vmem:[%s5853_s19 + $0x220] sm:$0xff]   ;;  %v1403_v25 = vld [vmem:[%s6575_s0 + $0x3d0] sm:$0xff] }
 0x106   : > { %4663 = vmatpush3.bf16.msra.mxu0 %v5133_v47 }
 0x107   : > { %4727 = vmatpush3.bf16.msra.mxu1 %v5135_v50  ;;  %4776 = vmatprep.subr.bf16.mxu0 %v5136_v54  ;;  %v5156_v50 = vld [vmem:[%s5853_s19 + $0x268] sm:$0xff]   ;;  %v1348_v54 = vld [vmem:[%s6575_s0 + $0x218] sm:$0xff] }
 0x108   : > { %3145 = vmatmul.mubr.bf16.gmra.mrb[16].mxu0 %v4245_v34  ;;  %4840 = vmatprep.subr.bf16.mxu1 %v5138_v55  ;;  %v5148_v34 = vld [vmem:[%s5853_s19 + $0x258] sm:$0xff]  }
 0x109   : > { %3242 = vmatmul.mubr.bf16.gmra.mrb[16].mxu1 %v4247_v36  ;;  %3152 = vmatprep.mubr.bf16.mxu0 %v4262_v37  ;;  %v1339_v36 = vld [vmem:[%s6575_s0 + $0x1d0] sm:$0xff]  ;;  %v5150_v37 = vld [vmem:[%s5853_s19 + $0x2d8] sm:$0xff]  }
 0x10a   : > { %3249 = vmatprep.mubr.bf16.mxu1 %v4264_v39  ;;  %v1340_v39 = vld [vmem:[%s6575_s0 + $0x1d8] sm:$0xff]  ;;  %v4234_v46 = vcombine.high %v1331_v35, %v1339_v36  ;;  %v4233_v59 = vcombine.low %v1331_v35, %v1339_v36  ;;  %v1294_v35 = vld [vmem:[%s6575_s0 + $0x68] sm:$0xff]  ;;  %v4297_v36 = vcombine.low %v1395_v24, %v1403_v25 }
 0x10b   : > { %v4236_v47 = vcombine.high %v1332_v38, %v1340_v39  ;;  %v1356_v55 = vld [vmem:[%s6575_s0 + $0x258] sm:$0xff] }
 0x10c   : > { %v4252_v0 = vcombine.high %v1348_v54, %v1356_v55 }
 0x110   : > { %3153 = vmatmul.mubr.bf16.gmra.mrb[20].mxu0 %v4261_v49  ;;  %v5155_v49 = vld [vmem:[%s5853_s19 + $0x2a0] sm:$0xff]  }
 0x111   : > { %3250 = vmatmul.mubr.bf16.gmra.mrb[20].mxu1 %v4263_v51  ;;  %3160 = vmatprep.mubr.bf16.mxu0 %v4278_v52  ;;  %v1347_v51 = vld [vmem:[%s6575_s0 + $0x210] sm:$0xff] }
 0x112   : > { %3257 = vmatprep.mubr.bf16.mxu1 %v4280_v53  ;;  %v1355_v52 = vld [vmem:[%s6575_s0 + $0x250] sm:$0xff]  ;;  %v5158_v53 = vld [vmem:[%s5853_s19 + $0x2e8] sm:$0xff]  }
 0x118   : > { %3161 = vmatmul.mubr.bf16.gmra.mrb[24].mxu0 %v4277_v60  ;;  %v5162_v60 = vld [vmem:[%s5853_s19 + $0x2f0] sm:$0xff]  }
 0x119   : > { %3258 = vmatmul.mubr.bf16.gmra.mrb[24].mxu1 %v4279_v61  ;;  %3168 = vmatprep.mubr.bf16.mxu0 %v4294_v62  ;;  %v4235_v61 = vcombine.low %v1332_v38, %v1340_v39  ;;  %v4250_v62 = vcombine.high %v1347_v51, %v1355_v52 }
 0x11a   : > { %3265 = vmatprep.mubr.bf16.mxu1 %v4296_v63  ;;  %v5161_v63 = vld [vmem:[%s5853_s19 + $0x230] sm:$0xff]  }
 0x120   : > { %3169 = vmatmul.mubr.bf16.gmra.mrb[28].mxu0 %v4293_v4  ;;  %v1371_v4 = vld [vmem:[%s6575_s0 + $0x2d0] sm:$0xff] }
 0x121   : > { %3266 = vmatmul.mubr.bf16.gmra.mrb[28].mxu1 %v4295_v5  ;;  %3306 = vmatprep.mubr.bf16.mxu0 %v4186_v6  ;;  %v5166_v5 = vld [vmem:[%s5853_s19 + $0x2f8] sm:$0xff]  }
 0x122   : > { %3403 = vmatprep.mubr.bf16.mxu1 %v4188_v7  ;;  %v1364_v6 = vld [vmem:[%s6575_s0 + $0x298] sm:$0xff] }
 0x123   : > { %v1372_v7 = vld [vmem:[%s6575_s0 + $0x2d8] sm:$0xff] }
 0x128   : > { %3307 = vmatmul.mubr.bf16.vlgmr.msra.gmra.mrb[32].mxu0 %v4185_v11  ;;  %v4249_v11 = vcombine.low %v1347_v51, %v1355_v52  ;;  %v5174_v51 = vld [vmem:[%s5853_s19 + $0x3c8] sm:$0xff]  }
 0x129   : > { %3404 = vmatmul.mubr.bf16.vlgmr.msra.gmra.mrb[32].mxu1 %v4187_v13  ;;  %4777 = vmatpush3.bf16.msra.mxu0 %v5137_v14  ;;  %v4251_v13 = vcombine.low %v1348_v54, %v1356_v55  ;;  %v4266_v14 = vcombine.high %v1363_v3, %v1371_v4  ;;  %v5173_v52 = vld [vmem:[%s5853_s19 + $0x308] sm:$0xff]   ;;  %v1317_v54 = vld [vmem:[%s6575_s0 + $0x120] sm:$0xff] }
 0x12a   : > { %4841 = vmatpush3.bf16.msra.mxu1 %v5139_v15  ;;  %3314 = vmatprep.mubr.bf16.mxu0 %v4202_v16  ;;  %v4268_v15 = vcombine.high %v1364_v6, %v1372_v7  ;;  %v1379_v16 = vld [vmem:[%s6575_s0 + $0x310] sm:$0xff]  ;;  %v1325_v55 = vld [vmem:[%s6575_s0 + $0x160] sm:$0xff] }
 0x12b   : > { %3411 = vmatprep.mubr.bf16.mxu1 %v4204_v17  ;;  %4778 = vmatprep.subr.bf16.mxu0 %v5140_v18  ;;  %v1387_v17 = vld [vmem:[%s6575_s0 + $0x350] sm:$0xff]  ;;  %v1380_v18 = vld [vmem:[%s6575_s0 + $0x318] sm:$0xff] }
 0x12c   : > { %4842 = vmatprep.subr.bf16.mxu1 %v5142_v20  ;;  %v4265_v20 = vcombine.low %v1363_v3, %v1371_v4  ;;  %v4282_v22 = vcombine.high %v1379_v16, %v1387_v17  ;;  %v5182_v3 = vld [vmem:[%s5853_s19 + $0x3d8] sm:$0xff]   ;;  %v1333_v4 = vld [vmem:[%s6575_s0 + $0x1a0] sm:$0xff] }
 0x12d   : > { %4779 = vmatpush3.bf16.msra.mxu0 %v5141_v19  ;;  %v1388_v19 = vld [vmem:[%s6575_s0 + $0x358] sm:$0xff] }
 0x12e   : > { %4843 = vmatpush3.bf16.msra.mxu1 %v5143_v21  ;;  %4780 = vmatprep.subr.bf16.mxu0 %v5144_v26  ;;  %v4267_v21 = vcombine.low %v1364_v6, %v1372_v7  ;;  %v4284_v23 = vcombine.high %v1380_v18, %v1388_v19  ;;  %v1396_v26 = vld [vmem:[%s6575_s0 + $0x398] sm:$0xff]  ;;  %v1334_v6 = vld [vmem:[%s6575_s0 + $0x1a8] sm:$0xff] }
 0x12f   : > { %4844 = vmatprep.subr.bf16.mxu1 %v5146_v27  ;;  %v1404_v27 = vld [vmem:[%s6575_s0 + $0x3d8] sm:$0xff] }
 0x130   : > { %3315 = vmatmul.mubr.bf16.gmra.mrb[36].mxu0 %v4201_v28  ;;  %v4281_v28 = vcombine.low %v1379_v16, %v1387_v17  ;;  %v5181_v7 = vld [vmem:[%s5853_s19 + $0x318] sm:$0xff]   ;;  %v5185_v16 = vld [vmem:[%s5853_s19 + $0x320] sm:$0xff]  }
 0x131   : > { %3412 = vmatmul.mubr.bf16.gmra.mrb[36].mxu1 %v4203_v29  ;;  %3322 = vmatprep.mubr.bf16.mxu0 %v4218_v30  ;;  %v4283_v29 = vcombine.low %v1380_v18, %v1388_v19  ;;  %v4298_v30 = vcombine.high %v1395_v24, %v1403_v25  ;;  %v5187_v17 = vld [vmem:[%s5853_s19 + $0x3a0] sm:$0xff]   ;;  %v5188_v18 = vld [vmem:[%s5853_s19 + $0x368] sm:$0xff]  }
 0x132   : > { %3419 = vmatprep.mubr.bf16.mxu1 %v4220_v32  ;;  %4781 = vmatpush3.bf16.msra.mxu0 %v5145_v31  ;;  %v4300_v31 = vcombine.high %v1396_v26, %v1404_v27  ;;  %v1285_v32 = vld [vmem:[%s6575_s0 + $0x20] sm:$0xff]  ;;  %v5190_v19 = vld [vmem:[%s5853_s19 + $0x3e8] sm:$0xff]  }
 0x133   : > { %4845 = vmatpush3.bf16.msra.mxu1 %v5147_v33  ;;  %4782 = vmatprep.subr.bf16.mxu0 %v5148_v34  ;;  %v1293_v33 = vld [vmem:[%s6575_s0 + $0x60] sm:$0xff]  ;;  %v1286_v34 = vld [vmem:[%s6575_s0 + $0x28] sm:$0xff] }
 0x134   : > { %4846 = vmatprep.subr.bf16.mxu1 %v5150_v37  ;;  %v4299_v37 = vcombine.low %v1396_v26, %v1404_v27  ;;  %v4190_v38 = vcombine.high %v1285_v32, %v1293_v33  ;;  %v4192_v39 = vcombine.high %v1286_v34, %v1294_v35  ;;  %v1358_v24 = vld [vmem:[%s6575_s0 + $0x268] sm:$0xff]  ;;  %v5192_v26 = vld [vmem:[%s5853_s19 + $0x370] sm:$0xff]  }
 0x135   : > { %v5191_v25 = vld [vmem:[%s5853_s19 + $0x3a8] sm:$0xff]  }
 0x136   : > { %4783 = vmatpush3.bf16.msra.mxu0 %v5149_v40  ;;  %v1301_v40 = vld [vmem:[%s6575_s0 + $0xa0] sm:$0xff] }
 0x137   : > { %4847 = vmatpush3.bf16.msra.mxu1 %v5151_v41  ;;  %4784 = vmatprep.subr.bf16.mxu0 %v5152_v42  ;;  %v1309_v41 = vld [vmem:[%s6575_s0 + $0xe0] sm:$0xff]  ;;  %v4189_v42 = vcombine.low %v1285_v32, %v1293_v33  ;;  %v5193_v32 = vld [vmem:[%s5853_s19 + $0x330] sm:$0xff]  }
 0x138   : > { %3323 = vmatmul.mubr.bf16.gmra.mrb[40].mxu0 %v4217_v43  ;;  %4848 = vmatprep.subr.bf16.mxu1 %v5154_v44  ;;  %v1302_v43 = vld [vmem:[%s6575_s0 + $0xa8] sm:$0xff]  ;;  %v5195_v33 = vld [vmem:[%s5853_s19 + $0x3b0] sm:$0xff]  }
 0x139   : > { %3420 = vmatmul.mubr.bf16.gmra.mrb[40].mxu1 %v4219_v45  ;;  %3330 = vmatprep.mubr.bf16.mxu0 %v4234_v46  ;;  %v1310_v44 = vld [vmem:[%s6575_s0 + $0xe8] sm:$0xff]  ;;  %v4191_v45 = vcombine.low %v1286_v34, %v1294_v35  ;;  %v5169_v46 = vld [vmem:[%s5853_s19 + $0x300] sm:$0xff]   ;;  %v5196_v34 = vld [vmem:[%s5853_s19 + $0x378] sm:$0xff]  }
 0x13a   : > { %3427 = vmatprep.mubr.bf16.mxu1 %v4236_v47  ;;  %4785 = vmatpush3.bf16.msra.mxu0 %v5153_v48  ;;  %v5171_v47 = vld [vmem:[%s5853_s19 + $0x380] sm:$0xff]   ;;  %v4206_v48 = vcombine.high %v1301_v40, %v1309_v41  ;;  %v5198_v35 = vld [vmem:[%s5853_s19 + $0x3f8] sm:$0xff]  }
 0x13b   : > { %4849 = vmatpush3.bf16.msra.mxu1 %v5155_v49  ;;  %4786 = vmatprep.subr.bf16.mxu0 %v5156_v50  ;;  %v4208_v49 = vcombine.high %v1302_v43, %v1310_v44  ;;  %v5172_v50 = vld [vmem:[%s5853_s19 + $0x348] sm:$0xff]  }
 0x13c   : > { %4850 = vmatprep.subr.bf16.mxu1 %v5158_v53  ;;  %v5175_v53 = vld [vmem:[%s5853_s19 + $0x388] sm:$0xff]  }
 0x13e   : > { %4787 = vmatpush3.bf16.msra.mxu0 %v5157_v56  ;;  %v5176_v56 = vld [vmem:[%s5853_s19 + $0x350] sm:$0xff]  }
 0x13f   : > { %4851 = vmatpush3.bf16.msra.mxu1 %v5159_v57  ;;  %4788 = vmatprep.subr.bf16.mxu0 %v5160_v58  ;;  %v1318_v57 = vld [vmem:[%s6575_s0 + $0x128] sm:$0xff] }
 0x140   : > { %3331 = vmatmul.mubr.bf16.gmra.mrb[44].mxu0 %v4233_v59  ;;  %4852 = vmatprep.subr.bf16.mxu1 %v5162_v60  ;;  %v1326_v58 = vld [vmem:[%s6575_s0 + $0x168] sm:$0xff]  ;;  %v5178_v59 = vld [vmem:[%s5853_s19 + $0x3d0] sm:$0xff]   ;;  %v4205_v60 = vcombine.low %v1301_v40, %v1309_v41  ;;  %v5199_v41 = vld [vmem:[%s5853_s19 + $0x3b8] sm:$0xff]  }
 0x141   : > { %3428 = vmatmul.mubr.bf16.gmra.mrb[44].mxu1 %v4235_v61  ;;  %3338 = vmatprep.mubr.bf16.mxu0 %v4250_v62  ;;  %v4207_v61 = vcombine.low %v1302_v43, %v1310_v44  ;;  %v4222_v62 = vcombine.high %v1317_v54, %v1325_v55  ;;  %v1374_v40 = vld [vmem:[%s6575_s0 + $0x2e8] sm:$0xff] }
 0x142   : > { %3435 = vmatprep.mubr.bf16.mxu1 %v4252_v0  ;;  %4789 = vmatpush3.bf16.msra.mxu0 %v5161_v63  ;;  %v4224_v63 = vcombine.high %v1318_v57, %v1326_v58  ;;  %v5177_v0 = vld [vmem:[%s5853_s19 + $0x310] sm:$0xff]  }
 0x143   : > { %4853 = vmatpush3.bf16.msra.mxu1 %v5163_v1  ;;  %4790 = vmatprep.subr.bf16.mxu0 %v5164_v2  ;;  %v5179_v1 = vld [vmem:[%s5853_s19 + $0x390] sm:$0xff]   ;;  %v5180_v2 = vld [vmem:[%s5853_s19 + $0x358] sm:$0xff]  }
 0x144   : > { %4854 = vmatprep.subr.bf16.mxu1 %v5166_v5  ;;  %v1341_v5 = vld [vmem:[%s6575_s0 + $0x1e0] sm:$0xff] }
 0x145   : > { %v4237_v27 = vcombine.low %v1333_v4, %v1341_v5 }
 0x146   : > { %4791 = vmatpush3.bf16.msra.mxu0 %v5165_v8  ;;  %v1342_v8 = vld [vmem:[%s6575_s0 + $0x1e8] sm:$0xff] }
 0x147   : > { %4855 = vmatpush3.bf16.msra.mxu1 %v5167_v9  ;;  %4904 = vmatprep.subr.bf16.mxu0 %v5168_v10  ;;  %v5183_v9 = vld [vmem:[%s5853_s19 + $0x398] sm:$0xff]   ;;  %v5184_v10 = vld [vmem:[%s5853_s19 + $0x360] sm:$0xff]  }
 0x148   : > { %3339 = vmatmul.mubr.bf16.gmra.mrb[48].mxu0 %v4249_v11  ;;  %4968 = vmatprep.subr.bf16.mxu1 %v5170_v12  ;;  %v4221_v11 = vcombine.low %v1317_v54, %v1325_v55  ;;  %v5186_v12 = vld [vmem:[%s5853_s19 + $0x3e0] sm:$0xff]  }
 0x149   : > { %3436 = vmatmul.mubr.bf16.gmra.mrb[48].mxu1 %v4251_v13  ;;  %3346 = vmatprep.mubr.bf16.mxu0 %v4266_v14  ;;  %v4223_v13 = vcombine.low %v1318_v57, %v1326_v58  ;;  %v4238_v14 = vcombine.high %v1333_v4, %v1341_v5  ;;  %v1397_v54 = vld [vmem:[%s6575_s0 + $0x3a0] sm:$0xff]  ;;  %v1406_v57 = vld [vmem:[%s6575_s0 + $0x3e8] sm:$0xff] }
 0x14a   : > { %3443 = vmatprep.mubr.bf16.mxu1 %v4268_v15  ;;  %v4240_v15 = vcombine.high %v1334_v6, %v1342_v8  ;;  %v1405_v55 = vld [vmem:[%s6575_s0 + $0x3e0] sm:$0xff] }
 0x150   : > { %3347 = vmatmul.mubr.bf16.gmra.mrb[52].mxu0 %v4265_v20  ;;  %v1349_v20 = vld [vmem:[%s6575_s0 + $0x220] sm:$0xff] }
 0x151   : > { %3444 = vmatmul.mubr.bf16.gmra.mrb[52].mxu1 %v4267_v21  ;;  %3354 = vmatprep.mubr.bf16.mxu0 %v4282_v22  ;;  %v1357_v21 = vld [vmem:[%s6575_s0 + $0x260] sm:$0xff]  ;;  %v1350_v22 = vld [vmem:[%s6575_s0 + $0x228] sm:$0xff] }
 0x152   : > { %3451 = vmatprep.mubr.bf16.mxu1 %v4284_v23  ;;  %v5189_v23 = vld [vmem:[%s5853_s19 + $0x328] sm:$0xff]   ;;  %v4255_v43 = vcombine.low %v1350_v22, %v1358_v24 }
 0x158   : > { %3355 = vmatmul.mubr.bf16.gmra.mrb[56].mxu0 %v4281_v28  ;;  %v5194_v28 = vld [vmem:[%s5853_s19 + $0x3f0] sm:$0xff]  }
 0x159   : > { %3452 = vmatmul.mubr.bf16.gmra.mrb[56].mxu1 %v4283_v29  ;;  %3362 = vmatprep.mubr.bf16.mxu0 %v4298_v30  ;;  %v4239_v29 = vcombine.low %v1334_v6, %v1342_v8  ;;  %v4254_v30 = vcombine.high %v1349_v20, %v1357_v21  ;;  %v1303_v6 = vld [vmem:[%s6575_s0 + $0xb0] sm:$0xff]  ;;  %v1304_v8 = vld [vmem:[%s6575_s0 + $0xb8] sm:$0xff] }
 0x15a   : > { %3459 = vmatprep.mubr.bf16.mxu1 %v4300_v31  ;;  %v4256_v31 = vcombine.high %v1350_v22, %v1358_v24  ;;  %v1335_v22 = vld [vmem:[%s6575_s0 + $0x1b0] sm:$0xff]  ;;  %v1336_v24 = vld [vmem:[%s6575_s0 + $0x1b8] sm:$0xff] }
 0x160   : > { %3363 = vmatmul.mubr.bf16.gmra.mrb[60].mxu0 %v4297_v36  ;;  %v1365_v36 = vld [vmem:[%s6575_s0 + $0x2a0] sm:$0xff] }
 0x161   : > { %3460 = vmatmul.mubr.bf16.gmra.mrb[60].mxu1 %v4299_v37  ;;  %3500 = vmatprep.mubr.bf16.mxu0 %v4190_v38  ;;  %v1373_v37 = vld [vmem:[%s6575_s0 + $0x2e0] sm:$0xff]  ;;  %v5197_v38 = vld [vmem:[%s5853_s19 + $0x338] sm:$0xff]  }
 0x162   : > { %3597 = vmatprep.mubr.bf16.mxu1 %v4192_v39  ;;  %v1366_v39 = vld [vmem:[%s6575_s0 + $0x2a8] sm:$0xff]  ;;  %v4270_v44 = vcombine.high %v1365_v36, %v1373_v37 }
 0x168   : > { %3501 = vmatmul.mubr.bf16.vlgmr.msra.gmra.mrb[64].mxu0 %v4189_v42  ;;  %v4253_v42 = vcombine.low %v1349_v20, %v1357_v21 }
 0x169   : > { %3598 = vmatmul.mubr.bf16.vlgmr.msra.gmra.mrb[64].mxu1 %v4191_v45  ;;  %4905 = vmatpush3.bf16.msra.mxu0 %v5169_v46  ;;  %v4272_v45 = vcombine.high %v1366_v39, %v1374_v40  ;;  %v1381_v46 = vld [vmem:[%s6575_s0 + $0x320] sm:$0xff] }
 0x16a   : > { %4969 = vmatpush3.bf16.msra.mxu1 %v5171_v47  ;;  %3508 = vmatprep.mubr.bf16.mxu0 %v4206_v48  ;;  %v1389_v47 = vld [vmem:[%s6575_s0 + $0x360] sm:$0xff]  ;;  %v1382_v48 = vld [vmem:[%s6575_s0 + $0x328] sm:$0xff] }
 0x16b   : > { %3605 = vmatprep.mubr.bf16.mxu1 %v4208_v49  ;;  %4906 = vmatprep.subr.bf16.mxu0 %v5172_v50  ;;  %v1390_v49 = vld [vmem:[%s6575_s0 + $0x368] sm:$0xff]  ;;  %v4269_v50 = vcombine.low %v1365_v36, %v1373_v37  ;;  %v4285_v58 = vcombine.low %v1381_v46, %v1389_v47  ;;  %v6328_v36 = vld [vmem:[%s1278_s8] ss:$0 sm:$0xff]  ;;  %s3979_s8 = scalar_lea.vmem (%p5295_p6), %s6578_s3, %s4454_s30 }
 0x16c   : > { %4970 = vmatprep.subr.bf16.mxu1 %v5174_v51  ;;  %v4271_v51 = vcombine.low %v1366_v39, %v1374_v40 }
 0x16d   : > { %4907 = vmatpush3.bf16.msra.mxu0 %v5173_v52  ;;  %v4286_v52 = vcombine.high %v1381_v46, %v1389_v47 }
 0x16e   : > { %4971 = vmatpush3.bf16.msra.mxu1 %v5175_v53  ;;  %4908 = vmatprep.subr.bf16.mxu0 %v5176_v56  ;;  %v4288_v53 = vcombine.high %v1382_v48, %v1390_v49  ;;  %v1398_v56 = vld [vmem:[%s6575_s0 + $0x3a8] sm:$0xff] }
 0x16f   : > { %4972 = vmatprep.subr.bf16.mxu1 %v5178_v59  ;;  %v4287_v59 = vcombine.low %v1382_v48, %v1390_v49 }
 0x170   : > { %3509 = vmatmul.mubr.bf16.gmra.mrb[68].mxu0 %v4205_v60  ;;  %v4302_v60 = vcombine.high %v1397_v54, %v1405_v55 }
 0x171   : > { %3606 = vmatmul.mubr.bf16.gmra.mrb[68].mxu1 %v4207_v61  ;;  %3516 = vmatprep.mubr.bf16.mxu0 %v4222_v62  ;;  %v4304_v61 = vcombine.high %v1398_v56, %v1406_v57  ;;  %v1287_v62 = vld [vmem:[%s6575_s0 + $0x30] sm:$0xff] }
 0x172   : > { %3613 = vmatprep.mubr.bf16.mxu1 %v4224_v63  ;;  %4909 = vmatpush3.bf16.msra.mxu0 %v5177_v0  ;;  %v1295_v63 = vld [vmem:[%s6575_s0 + $0x70] sm:$0xff]  ;;  %v1288_v0 = vld [vmem:[%s6575_s0 + $0x38] sm:$0xff] }
 0x173   : > { %4973 = vmatpush3.bf16.msra.mxu1 %v5179_v1  ;;  %4910 = vmatprep.subr.bf16.mxu0 %v5180_v2  ;;  %v1296_v1 = vld [vmem:[%s6575_s0 + $0x78] sm:$0xff]  ;;  %v4301_v2 = vcombine.low %v1397_v54, %v1405_v55  ;;  %v4194_v4 = vcombine.high %v1287_v62, %v1295_v63  ;;  %v1367_v54 = vld [vmem:[%s6575_s0 + $0x2b0] sm:$0xff] }
 0x174   : > { %4974 = vmatprep.subr.bf16.mxu1 %v5182_v3  ;;  %v4303_v3 = vcombine.low %v1398_v56, %v1406_v57  ;;  %v4196_v5 = vcombine.high %v1288_v0, %v1296_v1  ;;  %v1375_v55 = vld [vmem:[%s6575_s0 + $0x2f0] sm:$0xff] }
 0x176   : > { %4911 = vmatpush3.bf16.msra.mxu0 %v5181_v7  ;;  %v1311_v7 = vld [vmem:[%s6575_s0 + $0xf0] sm:$0xff] }
 0x177   : > { %4975 = vmatpush3.bf16.msra.mxu1 %v5183_v9  ;;  %4912 = vmatprep.subr.bf16.mxu0 %v5184_v10  ;;  %v1312_v9 = vld [vmem:[%s6575_s0 + $0xf8] sm:$0xff]  ;;  %v4193_v10 = vcombine.low %v1287_v62, %v1295_v63 }
 0x178   : > { %3517 = vmatmul.mubr.bf16.gmra.mrb[72].mxu0 %v4221_v11  ;;  %4976 = vmatprep.subr.bf16.mxu1 %v5186_v12  ;;  %v4195_v11 = vcombine.low %v1288_v0, %v1296_v1  ;;  %v4210_v12 = vcombine.high %v1303_v6, %v1311_v7 }
 0x179   : > { %3614 = vmatmul.mubr.bf16.gmra.mrb[72].mxu1 %v4223_v13  ;;  %3524 = vmatprep.mubr.bf16.mxu0 %v4238_v14  ;;  %v4212_v13 = vcombine.high %v1304_v8, %v1312_v9  ;;  %v1319_v14 = vld [vmem:[%s6575_s0 + $0x130] sm:$0xff] }
 0x17a   : > { %3621 = vmatprep.mubr.bf16.mxu1 %v4240_v15  ;;  %4913 = vmatpush3.bf16.msra.mxu0 %v5185_v16  ;;  %v1327_v15 = vld [vmem:[%s6575_s0 + $0x170] sm:$0xff]  ;;  %v1320_v16 = vld [vmem:[%s6575_s0 + $0x138] sm:$0xff] }
 0x17b   : > { %4977 = vmatpush3.bf16.msra.mxu1 %v5187_v17  ;;  %4914 = vmatprep.subr.bf16.mxu0 %v5188_v18  ;;  %v1328_v17 = vld [vmem:[%s6575_s0 + $0x178] sm:$0xff]  ;;  %v4209_v18 = vcombine.low %v1303_v6, %v1311_v7  ;;  %v4226_v20 = vcombine.high %v1319_v14, %v1327_v15 }
 0x17c   : > { %4978 = vmatprep.subr.bf16.mxu1 %v5190_v19  ;;  %v4211_v19 = vcombine.low %v1304_v8, %v1312_v9  ;;  %v4228_v21 = vcombine.high %v1320_v16, %v1328_v17 }
 0x17e   : > { %4915 = vmatpush3.bf16.msra.mxu0 %v5189_v23  ;;  %v1343_v23 = vld [vmem:[%s6575_s0 + $0x1f0] sm:$0xff] }
 0x17f   : > { %4979 = vmatpush3.bf16.msra.mxu1 %v5191_v25  ;;  %4916 = vmatprep.subr.bf16.mxu0 %v5192_v26  ;;  %v1344_v25 = vld [vmem:[%s6575_s0 + $0x1f8] sm:$0xff]  ;;  %v4225_v26 = vcombine.low %v1319_v14, %v1327_v15  ;;  %v1383_v14 = vld [vmem:[%s6575_s0 + $0x330] sm:$0xff] }
 0x180   : > { %3525 = vmatmul.mubr.bf16.gmra.mrb[76].mxu0 %v4237_v27  ;;  %4980 = vmatprep.subr.bf16.mxu1 %v5194_v28  ;;  %v4227_v27 = vcombine.low %v1320_v16, %v1328_v17  ;;  %v4242_v28 = vcombine.high %v1335_v22, %v1343_v23  ;;  %v1391_v15 = vld [vmem:[%s6575_s0 + $0x370] sm:$0xff] }
 0x181   : > { %3622 = vmatmul.mubr.bf16.gmra.mrb[76].mxu1 %v4239_v29  ;;  %3532 = vmatprep.mubr.bf16.mxu0 %v4254_v30  ;;  %v4244_v29 = vcombine.high %v1336_v24, %v1344_v25  ;;  %v1351_v30 = vld [vmem:[%s6575_s0 + $0x230] sm:$0xff] }
 0x182   : > { %3629 = vmatprep.mubr.bf16.mxu1 %v4256_v31  ;;  %4917 = vmatpush3.bf16.msra.mxu0 %v5193_v32  ;;  %v1359_v31 = vld [vmem:[%s6575_s0 + $0x270] sm:$0xff] }
 0x183   : > { %4981 = vmatpush3.bf16.msra.mxu1 %v5195_v33  ;;  %4918 = vmatprep.subr.bf16.mxu0 %v5196_v34  ;;  %v1352_v33 = vld [vmem:[%s6575_s0 + $0x238] sm:$0xff]  ;;  %v4257_v62 = vcombine.low %v1351_v30, %v1359_v31 }
 0x184   : > { %4982 = vmatprep.subr.bf16.mxu1 %v5198_v35  ;;  %v1360_v34 = vld [vmem:[%s6575_s0 + $0x278] sm:$0xff] }
 0x185   : > { %v4260_v47 = vcombine.high %v1352_v33, %v1360_v34 }
 0x186   : > { %4919 = vmatpush3.bf16.msra.mxu0 %v5197_v38  ;;  %v4241_v38 = vcombine.low %v1335_v22, %v1343_v23  ;;  %v4273_v22 = vcombine.low %v1367_v54, %v1375_v55 }
 0x187   : > { %4983 = vmatpush3.bf16.msra.mxu1 %v5199_v41 }
 0x188   : > { %3533 = vmatmul.mubr.bf16.gmra.mrb[80].mxu0 %v4253_v42  ;;  %v4243_v42 = vcombine.low %v1336_v24, %v1344_v25 }
 0x189   : > { %3630 = vmatmul.mubr.bf16.gmra.mrb[80].mxu1 %v4255_v43  ;;  %3540 = vmatprep.mubr.bf16.mxu0 %v4270_v44  ;;  %v4258_v43 = vcombine.high %v1351_v30, %v1359_v31 }
 0x18a   : > { %3637 = vmatprep.mubr.bf16.mxu1 %v4272_v45 }
 0x190   : > { %3541 = vmatmul.mubr.bf16.gmra.mrb[84].mxu0 %v4269_v50 }
 0x191   : > { %3638 = vmatmul.mubr.bf16.gmra.mrb[84].mxu1 %v4271_v51  ;;  %3548 = vmatprep.mubr.bf16.mxu0 %v4286_v52 }
 0x192   : > { %3645 = vmatprep.mubr.bf16.mxu1 %v4288_v53 }
 0x198   : > { %3549 = vmatmul.mubr.bf16.gmra.mrb[88].mxu0 %v4285_v58  ;;  %v1368_v58 = vld [vmem:[%s6575_s0 + $0x2b8] sm:$0xff] }
 0x199   : > { %3646 = vmatmul.mubr.bf16.gmra.mrb[88].mxu1 %v4287_v59  ;;  %3556 = vmatprep.mubr.bf16.mxu0 %v4302_v60  ;;  %v1376_v59 = vld [vmem:[%s6575_s0 + $0x2f8] sm:$0xff] }
 0x19a   : > { %3653 = vmatprep.mubr.bf16.mxu1 %v4304_v61  ;;  %v4276_v7 = vcombine.high %v1368_v58, %v1376_v59 }
 0x1a0   : > { %3557 = vmatmul.mubr.bf16.gmra.mrb[92].mxu0 %v4301_v2  ;;  %v4259_v2 = vcombine.low %v1352_v33, %v1360_v34 }
 0x1a1   : > { %3654 = vmatmul.mubr.bf16.gmra.mrb[92].mxu1 %v4303_v3  ;;  %3694 = vmatprep.mubr.bf16.mxu0 %v4194_v4  ;;  %v4274_v3 = vcombine.high %v1367_v54, %v1375_v55 }
 0x1a2   : > { %3791 = vmatprep.mubr.bf16.mxu1 %v4196_v5 }
 0x1a8   : > { %3695 = vmatmul.mubr.bf16.vlgmr.msra.gmra.mrb[96].mxu0 %v4193_v10 }
 0x1a9   : > { %3792 = vmatmul.mubr.bf16.vlgmr.msra.gmra.mrb[96].mxu1 %v4195_v11  ;;  %3702 = vmatprep.mubr.bf16.mxu0 %v4210_v12 }
 0x1aa   : > { %3799 = vmatprep.mubr.bf16.mxu1 %v4212_v13 }
 0x1b0   : > { %3703 = vmatmul.mubr.bf16.gmra.mrb[100].mxu0 %v4209_v18  ;;  %v1384_v18 = vld [vmem:[%s6575_s0 + $0x338] sm:$0xff] }
 0x1b1   : > { %3800 = vmatmul.mubr.bf16.gmra.mrb[100].mxu1 %v4211_v19  ;;  %3710 = vmatprep.mubr.bf16.mxu0 %v4226_v20  ;;  %v1392_v19 = vld [vmem:[%s6575_s0 + $0x378] sm:$0xff] }
 0x1b2   : > { %3807 = vmatprep.mubr.bf16.mxu1 %v4228_v21  ;;  %v4292_v31 = vcombine.high %v1384_v18, %v1392_v19 }
 0x1b8   : > { %3711 = vmatmul.mubr.bf16.gmra.mrb[104].mxu0 %v4225_v26  ;;  %v4275_v26 = vcombine.low %v1368_v58, %v1376_v59 }
 0x1b9   : > { %3808 = vmatmul.mubr.bf16.gmra.mrb[104].mxu1 %v4227_v27  ;;  %3718 = vmatprep.mubr.bf16.mxu0 %v4242_v28  ;;  %v4290_v27 = vcombine.high %v1383_v14, %v1391_v15 }
 0x1ba   : > { %3815 = vmatprep.mubr.bf16.mxu1 %v4244_v29 }
 0x1bb   : > { %v4536_v32 = vpop.f32.mrb[0].mxu0 }
 0x1bc   : > { %v4600_v35 = vpop.f32.mrb[0].mxu1  ;;  %v4537_v37 = vpop.f32.mrb[1].mxu0 }
 0x1bd   : > { %v4538_v39 = vadd.f32 %v4537_v37, %v4536_v32  ;;  %v4601_v40 = vpop.f32.mrb[1].mxu1  ;;  %v4539_v41 = vpop.f32.mrb[2].mxu0 }
 0x1be   : > { %v4602_v44 = vadd.f32 %v4601_v40, %v4600_v35  ;;  %v4603_v45 = vpop.f32.mrb[2].mxu1  ;;  %v4540_v46 = vpop.f32.mrb[3].mxu0  ;;  %v1407_v40 = vld [vmem:[%s6575_s0 + $0x3f0] sm:$0xff] }
 0x1bf   : > { %v3115_v48 = vadd.f32 %v4538_v39, %v6328_v36  ;;  %v4541_v49 = vadd.f32 %v4540_v46, %v4539_v41  ;;  %v4604_v50 = vpop.f32.mrb[3].mxu1  ;;  %v1399_v39 = vld [vmem:[%s6575_s0 + $0x3b0] sm:$0xff] }
 0x1c0   : > { %v4605_v51 = vadd.f32 %v4604_v50, %v4603_v45  ;;  %3719 = vmatmul.mubr.bf16.gmra.mrb[108].mxu0 %v4241_v38 }
 0x1c1   : > { %v6331_v52 = vadd.f32 %v4602_v44, %v3115_v48  ;;  %v3118_v53 = vadd.f32 %v4541_v49, %v6328_v36  ;;  %3816 = vmatmul.mubr.bf16.gmra.mrb[108].mxu1 %v4243_v42  ;;  %3726 = vmatprep.mubr.bf16.mxu0 %v4258_v43  ;;  %v1400_v43 = vld [vmem:[%s6575_s0 + $0x3b8] sm:$0xff] }
 0x1c2   : > { %3823 = vmatprep.mubr.bf16.mxu1 %v4260_v47  ;;  %v1408_v44 = vld [vmem:[%s6575_s0 + $0x3f8] sm:$0xff]  ;;  %v4289_v47 = vcombine.low %v1383_v14, %v1391_v15 }
 0x1c3   : > { %v6340_v56 = vadd.f32 %v4605_v51, %v3118_v53  ;;  %v4542_v57 = vpop.f32.mrb[4].mxu0  ;;  %v4291_v51 = vcombine.low %v1384_v18, %v1392_v19  ;;  %v4306_v53 = vcombine.high %v1399_v39, %v1407_v40  ;;  %v4308_v58 = vcombine.high %v1400_v43, %v1408_v44 }
 0x1c4   : > { %v4606_v60 = vpop.f32.mrb[4].mxu1  ;;  %v4543_v61 = vpop.f32.mrb[5].mxu0 }
 0x1c5   : > { %v4544_v63 = vadd.f32 %v4543_v61, %v4542_v57  ;;  %v4607_v0 = vpop.f32.mrb[5].mxu1  ;;  %v4545_v1 = vpop.f32.mrb[6].mxu0 }
 0x1c6   : > { %v4608_v4 = vadd.f32 %v4607_v0, %v4606_v60  ;;  %v4609_v5 = vpop.f32.mrb[6].mxu1  ;;  %v4546_v6 = vpop.f32.mrb[7].mxu0 }
 0x1c7   : > { %v3123_v8 = vadd.f32 %v4544_v63, %v6328_v36  ;;  %v4547_v9 = vadd.f32 %v4546_v6, %v4545_v1  ;;  %v4610_v10 = vpop.f32.mrb[7].mxu1 }
 0x1c8   : > { %v4611_v11 = vadd.f32 %v4610_v10, %v4609_v5  ;;  %3727 = vmatmul.mubr.bf16.gmra.mrb[112].mxu0 %v4257_v62  ;;  %v4305_v5 = vcombine.low %v1399_v39, %v1407_v40 }
 0x1c9   : > { %v6349_v12 = vadd.f32 %v4608_v4, %v3123_v8  ;;  %v3126_v13 = vadd.f32 %v4547_v9, %v6328_v36  ;;  %3824 = vmatmul.mubr.bf16.gmra.mrb[112].mxu1 %v4259_v2  ;;  %3734 = vmatprep.mubr.bf16.mxu0 %v4274_v3  ;;  %v4307_v9 = vcombine.low %v1400_v43, %v1408_v44 }
 0x1ca   : > { %3831 = vmatprep.mubr.bf16.mxu1 %v4276_v7 }
 0x1cb   : > { %v6358_v16 = vadd.f32 %v4611_v11, %v3126_v13  ;;  %v4548_v17 = vpop.f32.mrb[8].mxu0 }
 0x1cc   : > { %v4612_v20 = vpop.f32.mrb[8].mxu1  ;;  %v4549_v21 = vpop.f32.mrb[9].mxu0 }
 0x1cd   : > { %v4550_v23 = vadd.f32 %v4549_v21, %v4548_v17  ;;  %v4613_v24 = vpop.f32.mrb[9].mxu1  ;;  %v4551_v25 = vpop.f32.mrb[10].mxu0 }
 0x1ce   : > { %v4614_v28 = vadd.f32 %v4613_v24, %v4612_v20  ;;  %v4615_v29 = vpop.f32.mrb[10].mxu1  ;;  %v4552_v30 = vpop.f32.mrb[11].mxu0 }
 0x1cf   : > { %v3131_v32 = vadd.f32 %v4550_v23, %v6328_v36  ;;  %v4553_v33 = vadd.f32 %v4552_v30, %v4551_v25  ;;  %v4616_v34 = vpop.f32.mrb[11].mxu1 }
 0x1d0   : > { %v4617_v35 = vadd.f32 %v4616_v34, %v4615_v29  ;;  %3735 = vmatmul.mubr.bf16.gmra.mrb[116].mxu0 %v4273_v22 }
 0x1d1   : > { %v6367_v37 = vadd.f32 %v4614_v28, %v3131_v32  ;;  %v3134_v38 = vadd.f32 %v4553_v33, %v6328_v36  ;;  %3832 = vmatmul.mubr.bf16.gmra.mrb[116].mxu1 %v4275_v26  ;;  %3742 = vmatprep.mubr.bf16.mxu0 %v4290_v27 }
 0x1d2   : > { %3839 = vmatprep.mubr.bf16.mxu1 %v4292_v31 }
 0x1d3   : > { %v6376_v41 = vadd.f32 %v4617_v35, %v3134_v38  ;;  %v4554_v42 = vpop.f32.mrb[12].mxu0 }
 0x1d4   : > { %v4618_v45 = vpop.f32.mrb[12].mxu1  ;;  %v4555_v46 = vpop.f32.mrb[13].mxu0 }
 0x1d5   : > { %v4556_v48 = vadd.f32 %v4555_v46, %v4554_v42  ;;  %v4619_v49 = vpop.f32.mrb[13].mxu1  ;;  %v4557_v50 = vpop.f32.mrb[14].mxu0 }
 0x1d6   : > { %v4620_v54 = vadd.f32 %v4619_v49, %v4618_v45  ;;  %v4621_v55 = vpop.f32.mrb[14].mxu1  ;;  %v4558_v57 = vpop.f32.mrb[15].mxu0 }
 0x1d7   : > { %v3139_v59 = vadd.f32 %v4556_v48, %v6328_v36  ;;  %v4559_v60 = vadd.f32 %v4558_v57, %v4557_v50  ;;  %v4622_v61 = vpop.f32.mrb[15].mxu1 }
 0x1d8   : > { %v4623_v62 = vadd.f32 %v4622_v61, %v4621_v55  ;;  %3743 = vmatmul.mubr.bf16.gmra.mrb[120].mxu0 %v4289_v47 }
 0x1d9   : > { %v6385_v63 = vadd.f32 %v4620_v54, %v3139_v59  ;;  %v3142_v0 = vadd.f32 %v4559_v60, %v6328_v36  ;;  %3840 = vmatmul.mubr.bf16.gmra.mrb[120].mxu1 %v4291_v51  ;;  %3750 = vmatprep.mubr.bf16.mxu0 %v4306_v53 }
 0x1da   : > { %3847 = vmatprep.mubr.bf16.mxu1 %v4308_v58 }
 0x1db   : > { %v6388_v1 = vadd.f32 %v4623_v62, %v3142_v0  ;;  %v4560_v2 = vpop.f32.mrb[16].mxu0 }
 0x1dc   : > { %v4624_v3 = vpop.f32.mrb[16].mxu1  ;;  %v4561_v4 = vpop.f32.mrb[17].mxu0 }
 0x1dd   : > { %v4562_v6 = vadd.f32 %v4561_v4, %v4560_v2  ;;  %v4625_v7 = vpop.f32.mrb[17].mxu1  ;;  %v4563_v8 = vpop.f32.mrb[18].mxu0 }
 0x1de   : > { %v4626_v10 = vadd.f32 %v4625_v7, %v4624_v3  ;;  %v4627_v11 = vpop.f32.mrb[18].mxu1  ;;  %v4564_v13 = vpop.f32.mrb[19].mxu0 }
 0x1df   : > { %v3147_v14 = vadd.f32 %v4562_v6, %v6328_v36  ;;  %v4565_v15 = vadd.f32 %v4564_v13, %v4563_v8  ;;  %v4628_v17 = vpop.f32.mrb[19].mxu1 }
 0x1e0   : > { %v4629_v18 = vadd.f32 %v4628_v17, %v4627_v11  ;;  %3751 = vmatmul.mubr.bf16.gmra.mrb[124].mxu0 %v4305_v5 }
 0x1e1   : > { %v6391_v19 = vadd.f32 %v4626_v10, %v3147_v14  ;;  %v3150_v20 = vadd.f32 %v4565_v15, %v6328_v36  ;;  %3848 = vmatmul.mubr.bf16.gmra.mrb[124].mxu1 %v4307_v9 }
 0x1e3   : > { %v6394_v21 = vadd.f32 %v4629_v18, %v3150_v20  ;;  %v4566_v22 = vpop.f32.mrb[20].mxu0 }
 0x1e4   : > { %v4630_v23 = vpop.f32.mrb[20].mxu1  ;;  %v4567_v24 = vpop.f32.mrb[21].mxu0 }
 0x1e5   : > { %v4568_v25 = vadd.f32 %v4567_v24, %v4566_v22  ;;  %v4631_v26 = vpop.f32.mrb[21].mxu1  ;;  %v4569_v27 = vpop.f32.mrb[22].mxu0 }
 0x1e6   : > { %v4632_v28 = vadd.f32 %v4631_v26, %v4630_v23  ;;  %v4633_v29 = vpop.f32.mrb[22].mxu1  ;;  %v4570_v30 = vpop.f32.mrb[23].mxu0 }
 0x1e7   : > { %v3155_v31 = vadd.f32 %v4568_v25, %v6328_v36  ;;  %v4571_v32 = vadd.f32 %v4570_v30, %v4569_v27  ;;  %v4634_v33 = vpop.f32.mrb[23].mxu1 }
 0x1e8   : > { %v4635_v34 = vadd.f32 %v4634_v33, %v4633_v29 }
 0x1e9   : > { %v6397_v35 = vadd.f32 %v4632_v28, %v3155_v31  ;;  %v3158_v38 = vadd.f32 %v4571_v32, %v6328_v36 }
 0x1eb   : > { %v6400_v39 = vadd.f32 %v4635_v34, %v3158_v38  ;;  %v4572_v40 = vpop.f32.mrb[24].mxu0 }
 0x1ec   : > { %v4636_v42 = vpop.f32.mrb[24].mxu1  ;;  %v4573_v43 = vpop.f32.mrb[25].mxu0 }
 0x1ed   : > { %v4574_v44 = vadd.f32 %v4573_v43, %v4572_v40  ;;  %v4637_v45 = vpop.f32.mrb[25].mxu1  ;;  %v4575_v46 = vpop.f32.mrb[26].mxu0 }
 0x1ee   : > { %v4638_v47 = vadd.f32 %v4637_v45, %v4636_v42  ;;  %v4639_v48 = vpop.f32.mrb[26].mxu1  ;;  %v4576_v49 = vpop.f32.mrb[27].mxu0 }
 0x1ef   : > { %v3163_v50 = vadd.f32 %v4574_v44, %v6328_v36  ;;  %v4577_v51 = vadd.f32 %v4576_v49, %v4575_v46  ;;  %v4640_v53 = vpop.f32.mrb[27].mxu1 }
 0x1f0   : > { %v4641_v54 = vadd.f32 %v4640_v53, %v4639_v48 }
 0x1f1   : > { %v6403_v55 = vadd.f32 %v4638_v47, %v3163_v50  ;;  %v3166_v57 = vadd.f32 %v4577_v51, %v6328_v36 }
 0x1f3   : > { %v6406_v58 = vadd.f32 %v4641_v54, %v3166_v57  ;;  %v4578_v59 = vpop.f32.mrb[28].mxu0 }
 0x1f4   : > { %v4642_v60 = vpop.f32.mrb[28].mxu1  ;;  %v4579_v61 = vpop.f32.mrb[29].mxu0 }
 0x1f5   : > { %v4580_v62 = vadd.f32 %v4579_v61, %v4578_v59  ;;  %v4643_v0 = vpop.f32.mrb[29].mxu1  ;;  %v4581_v2 = vpop.f32.mrb[30].mxu0 }
 0x1f6   : > { %v4644_v3 = vadd.f32 %v4643_v0, %v4642_v60  ;;  %v4645_v4 = vpop.f32.mrb[30].mxu1  ;;  %v4582_v5 = vpop.f32.mrb[31].mxu0 }
 0x1f7   : > { %v3171_v6 = vadd.f32 %v4580_v62, %v6328_v36  ;;  %v4583_v7 = vadd.f32 %v4582_v5, %v4581_v2  ;;  %v4646_v8 = vpop.f32.mrb[31].mxu1 }
 0x1f8   : > { %v4647_v9 = vadd.f32 %v4646_v8, %v4645_v4 }
 0x1f9   : > { %v6409_v10 = vadd.f32 %v4644_v3, %v3171_v6  ;;  %v3174_v11 = vadd.f32 %v4583_v7, %v6328_v36 }
 0x1fb   : > { %v6412_v13 = vadd.f32 %v4647_v9, %v3174_v11  ;;  %v4664_v14 = vpop.f32.mrb[32].mxu0 }
 0x1fc   : > { %v4728_v15 = vpop.f32.mrb[32].mxu1  ;;  %v4665_v17 = vpop.f32.mrb[33].mxu0 }
 0x1fd   : > { %v4666_v18 = vadd.f32 %v4665_v17, %v4664_v14  ;;  %v4729_v20 = vpop.f32.mrb[33].mxu1  ;;  %v4667_v22 = vpop.f32.mrb[34].mxu0 }
 0x1fe   : > { %v4730_v23 = vadd.f32 %v4729_v20, %v4728_v15  ;;  %v4731_v24 = vpop.f32.mrb[34].mxu1  ;;  %v4668_v25 = vpop.f32.mrb[35].mxu0 }
 0x1ff   : > { %v3309_v26 = vadd.f32 %v4666_v18, %v6331_v52  ;;  %v4669_v27 = vadd.f32 %v4668_v25, %v4667_v22  ;;  %v4732_v28 = vpop.f32.mrb[35].mxu1 }
 0x200   : > { %v4733_v29 = vadd.f32 %v4732_v28, %v4731_v24 }
 0x201   : > { %v6415_v30 = vadd.f32 %v4730_v23, %v3309_v26  ;;  %v3312_v36 = vadd.f32 %v4669_v27, %v6340_v56 }
 0x203   : > { %v6418_v31 = vadd.f32 %v4733_v29, %v3312_v36  ;;  %v4670_v32 = vpop.f32.mrb[36].mxu0 }
 0x204   : > { %v4734_v33 = vpop.f32.mrb[36].mxu1  ;;  %v4671_v34 = vpop.f32.mrb[37].mxu0 }
 0x205   : > { %v4672_v38 = vadd.f32 %v4671_v34, %v4670_v32  ;;  %v4735_v40 = vpop.f32.mrb[37].mxu1  ;;  %v4673_v42 = vpop.f32.mrb[38].mxu0 }
 0x206   : > { %v4736_v43 = vadd.f32 %v4735_v40, %v4734_v33  ;;  %v4737_v44 = vpop.f32.mrb[38].mxu1  ;;  %v4674_v45 = vpop.f32.mrb[39].mxu0 }
 0x207   : > { %v3317_v52 = vadd.f32 %v4672_v38, %v6349_v12  ;;  %v4675_v46 = vadd.f32 %v4674_v45, %v4673_v42  ;;  %v4738_v47 = vpop.f32.mrb[39].mxu1 }
 0x208   : > { %v4739_v48 = vadd.f32 %v4738_v47, %v4737_v44 }
 0x209   : > { %v6421_v49 = vadd.f32 %v4736_v43, %v3317_v52  ;;  %v3320_v56 = vadd.f32 %v4675_v46, %v6358_v16 }
 0x20b   : > { %v6424_v50 = vadd.f32 %v4739_v48, %v3320_v56  ;;  %v4676_v51 = vpop.f32.mrb[40].mxu0 }
 0x20c   : > { %v4740_v53 = vpop.f32.mrb[40].mxu1  ;;  %v4677_v54 = vpop.f32.mrb[41].mxu0 }
 0x20d   : > { %v4678_v57 = vadd.f32 %v4677_v54, %v4676_v51  ;;  %v4741_v59 = vpop.f32.mrb[41].mxu1  ;;  %v4679_v60 = vpop.f32.mrb[42].mxu0 }
 0x20e   : > { %v4742_v61 = vadd.f32 %v4741_v59, %v4740_v53  ;;  %v4743_v62 = vpop.f32.mrb[42].mxu1  ;;  %v4680_v0 = vpop.f32.mrb[43].mxu0 }
 0x20f   : > { %v3325_v12 = vadd.f32 %v4678_v57, %v6367_v37  ;;  %v4681_v2 = vadd.f32 %v4680_v0, %v4679_v60  ;;  %v4744_v3 = vpop.f32.mrb[43].mxu1 }
 0x210   : > { %v4745_v4 = vadd.f32 %v4744_v3, %v4743_v62 }
 0x211   : > { %v6427_v5 = vadd.f32 %v4742_v61, %v3325_v12  ;;  %v3328_v16 = vadd.f32 %v4681_v2, %v6376_v41 }
 0x213   : > { %v6430_v6 = vadd.f32 %v4745_v4, %v3328_v16  ;;  %v4682_v7 = vpop.f32.mrb[44].mxu0 }
 0x214   : > { %v4746_v8 = vpop.f32.mrb[44].mxu1  ;;  %v4683_v9 = vpop.f32.mrb[45].mxu0 }
 0x215   : > { %v4684_v11 = vadd.f32 %v4683_v9, %v4682_v7  ;;  %v4747_v14 = vpop.f32.mrb[45].mxu1  ;;  %v4685_v15 = vpop.f32.mrb[46].mxu0 }
 0x216   : > { %v4748_v17 = vadd.f32 %v4747_v14, %v4746_v8  ;;  %v4749_v18 = vpop.f32.mrb[46].mxu1  ;;  %v4686_v20 = vpop.f32.mrb[47].mxu0 }
 0x217   : > { %v3333_v37 = vadd.f32 %v4684_v11, %v6385_v63  ;;  %v4687_v22 = vadd.f32 %v4686_v20, %v4685_v15  ;;  %v4750_v23 = vpop.f32.mrb[47].mxu1 }
 0x218   : > { %v4751_v24 = vadd.f32 %v4750_v23, %v4749_v18 }
 0x219   : > { %v6433_v25 = vadd.f32 %v4748_v17, %v3333_v37  ;;  %v3336_v41 = vadd.f32 %v4687_v22, %v6388_v1 }
 0x21b   : > { %v6436_v26 = vadd.f32 %v4751_v24, %v3336_v41  ;;  %v4688_v27 = vpop.f32.mrb[48].mxu0 }
 0x21c   : > { %v4752_v28 = vpop.f32.mrb[48].mxu1  ;;  %v4689_v29 = vpop.f32.mrb[49].mxu0 }
 0x21d   : > { %v4690_v36 = vadd.f32 %v4689_v29, %v4688_v27  ;;  %v4753_v32 = vpop.f32.mrb[49].mxu1  ;;  %v4691_v33 = vpop.f32.mrb[50].mxu0 }
 0x21e   : > { %v4754_v34 = vadd.f32 %v4753_v32, %v4752_v28  ;;  %v4755_v38 = vpop.f32.mrb[50].mxu1  ;;  %v4692_v40 = vpop.f32.mrb[51].mxu0 }
 0x21f   : > { %v3341_v63 = vadd.f32 %v4690_v36, %v6391_v19  ;;  %v4693_v42 = vadd.f32 %v4692_v40, %v4691_v33  ;;  %v4756_v43 = vpop.f32.mrb[51].mxu1 }
 0x220   : > { %v4757_v44 = vadd.f32 %v4756_v43, %v4755_v38 }
 0x221   : > { %v6439_v45 = vadd.f32 %v4754_v34, %v3341_v63  ;;  %v3344_v1 = vadd.f32 %v4693_v42, %v6394_v21 }
 0x223   : > { %v6442_v52 = vadd.f32 %v4757_v44, %v3344_v1  ;;  %v4694_v46 = vpop.f32.mrb[52].mxu0 }
 0x224   : > { %v4758_v47 = vpop.f32.mrb[52].mxu1  ;;  %v4695_v48 = vpop.f32.mrb[53].mxu0 }
 0x225   : > { %v4696_v56 = vadd.f32 %v4695_v48, %v4694_v46  ;;  %v4759_v51 = vpop.f32.mrb[53].mxu1  ;;  %v4697_v53 = vpop.f32.mrb[54].mxu0 }
 0x226   : > { %v4760_v54 = vadd.f32 %v4759_v51, %v4758_v47  ;;  %v4761_v57 = vpop.f32.mrb[54].mxu1  ;;  %v4698_v59 = vpop.f32.mrb[55].mxu0 }
 0x227   : > { %v3349_v19 = vadd.f32 %v4696_v56, %v6397_v35  ;;  %v4699_v60 = vadd.f32 %v4698_v59, %v4697_v53  ;;  %v4762_v61 = vpop.f32.mrb[55].mxu1 }
 0x228   : > { %v4763_v62 = vadd.f32 %v4762_v61, %v4761_v57 }
 0x229   : > { %v6445_v0 = vadd.f32 %v4760_v54, %v3349_v19  ;;  %v3352_v21 = vadd.f32 %v4699_v60, %v6400_v39 }
 0x22b   : > { %v6448_v12 = vadd.f32 %v4763_v62, %v3352_v21  ;;  %v4700_v2 = vpop.f32.mrb[56].mxu0 }
 0x22c   : > { %v4764_v3 = vpop.f32.mrb[56].mxu1  ;;  %v4701_v4 = vpop.f32.mrb[57].mxu0 }
 0x22d   : > { %v4702_v16 = vadd.f32 %v4701_v4, %v4700_v2  ;;  %v4765_v7 = vpop.f32.mrb[57].mxu1  ;;  %v4703_v8 = vpop.f32.mrb[58].mxu0 }
 0x22e   : > { %v4766_v9 = vadd.f32 %v4765_v7, %v4764_v3  ;;  %v4767_v11 = vpop.f32.mrb[58].mxu1  ;;  %v4704_v14 = vpop.f32.mrb[59].mxu0 }
 0x22f   : > { %v3357_v35 = vadd.f32 %v4702_v16, %v6403_v55  ;;  %v4705_v15 = vadd.f32 %v4704_v14, %v4703_v8  ;;  %v4768_v17 = vpop.f32.mrb[59].mxu1 }
 0x230   : > { %v4769_v18 = vadd.f32 %v4768_v17, %v4767_v11 }
 0x231   : > { %v6451_v20 = vadd.f32 %v4766_v9, %v3357_v35  ;;  %v3360_v39 = vadd.f32 %v4705_v15, %v6406_v58 }
 0x233   : > { %v6454_v37 = vadd.f32 %v4769_v18, %v3360_v39  ;;  %v4706_v22 = vpop.f32.mrb[60].mxu0 }
 0x234   : > { %v4770_v23 = vpop.f32.mrb[60].mxu1  ;;  %v4707_v24 = vpop.f32.mrb[61].mxu0 }
 0x235   : > { %v4708_v41 = vadd.f32 %v4707_v24, %v4706_v22  ;;  %v4771_v27 = vpop.f32.mrb[61].mxu1  ;;  %v4709_v28 = vpop.f32.mrb[62].mxu0 }
 0x236   : > { %v4772_v29 = vadd.f32 %v4771_v27, %v4770_v23  ;;  %v4773_v36 = vpop.f32.mrb[62].mxu1  ;;  %v4710_v32 = vpop.f32.mrb[63].mxu0 }
 0x237   : > { %v3365_v55 = vadd.f32 %v4708_v41, %v6409_v10  ;;  %v4711_v33 = vadd.f32 %v4710_v32, %v4709_v28  ;;  %v4774_v34 = vpop.f32.mrb[63].mxu1 }
 0x238   : > { %v4775_v38 = vadd.f32 %v4774_v34, %v4773_v36 }
 0x239   : > { %v6457_v40 = vadd.f32 %v4772_v29, %v3365_v55  ;;  %v3368_v58 = vadd.f32 %v4711_v33, %v6412_v13 }
 0x23b   : > { %v6460_v63 = vadd.f32 %v4775_v38, %v3368_v58  ;;  %v4792_v42 = vpop.f32.mrb[64].mxu0 }
 0x23c   : > { %v4856_v43 = vpop.f32.mrb[64].mxu1  ;;  %v4793_v44 = vpop.f32.mrb[65].mxu0 }
 0x23d   : > { %v4794_v1 = vadd.f32 %v4793_v44, %v4792_v42  ;;  %v4857_v46 = vpop.f32.mrb[65].mxu1  ;;  %v4795_v47 = vpop.f32.mrb[66].mxu0 }
 0x23e   : > { %v4858_v48 = vadd.f32 %v4857_v46, %v4856_v43  ;;  %v4859_v56 = vpop.f32.mrb[66].mxu1  ;;  %v4796_v51 = vpop.f32.mrb[67].mxu0 }
 0x23f   : > { %v3503_v10 = vadd.f32 %v4794_v1, %v6415_v30  ;;  %v4797_v53 = vadd.f32 %v4796_v51, %v4795_v47  ;;  %v4860_v54 = vpop.f32.mrb[67].mxu1 }
 0x240   : > { %v4861_v57 = vadd.f32 %v4860_v54, %v4859_v56 }
 0x241   : > { %v6463_v59 = vadd.f32 %v4858_v48, %v3503_v10  ;;  %v3506_v13 = vadd.f32 %v4797_v53, %v6418_v31 }
 0x243   : > { %v6466_v19 = vadd.f32 %v4861_v57, %v3506_v13  ;;  %v4798_v60 = vpop.f32.mrb[68].mxu0 }
 0x244   : > { %v4862_v61 = vpop.f32.mrb[68].mxu1  ;;  %v4799_v62 = vpop.f32.mrb[69].mxu0 }
 0x245   : > { %v4800_v21 = vadd.f32 %v4799_v62, %v4798_v60  ;;  %v4863_v2 = vpop.f32.mrb[69].mxu1  ;;  %v4801_v3 = vpop.f32.mrb[70].mxu0 }
 0x246   : > { %v4864_v4 = vadd.f32 %v4863_v2, %v4862_v61  ;;  %v4865_v16 = vpop.f32.mrb[70].mxu1  ;;  %v4802_v7 = vpop.f32.mrb[71].mxu0 }
 0x247   : > { %v3511_v30 = vadd.f32 %v4800_v21, %v6421_v49  ;;  %v4803_v8 = vadd.f32 %v4802_v7, %v4801_v3  ;;  %v4866_v9 = vpop.f32.mrb[71].mxu1 }
 0x248   : > { %v4867_v11 = vadd.f32 %v4866_v9, %v4865_v16 }
 0x249   : > { %v6469_v14 = vadd.f32 %v4864_v4, %v3511_v30  ;;  %v3514_v31 = vadd.f32 %v4803_v8, %v6424_v50 }
 0x24b   : > { %v6472_v35 = vadd.f32 %v4867_v11, %v3514_v31  ;;  %v4804_v15 = vpop.f32.mrb[72].mxu0 }
 0x24c   : > { %v4868_v17 = vpop.f32.mrb[72].mxu1  ;;  %v4805_v18 = vpop.f32.mrb[73].mxu0 }
 0x24d   : > { %v4806_v39 = vadd.f32 %v4805_v18, %v4804_v15  ;;  %v4869_v22 = vpop.f32.mrb[73].mxu1  ;;  %v4807_v23 = vpop.f32.mrb[74].mxu0 }
 0x24e   : > { %v4870_v24 = vadd.f32 %v4869_v22, %v4868_v17  ;;  %v4871_v41 = vpop.f32.mrb[74].mxu1  ;;  %v4808_v27 = vpop.f32.mrb[75].mxu0 }
 0x24f   : > { %v3519_v49 = vadd.f32 %v4806_v39, %v6427_v5  ;;  %v4809_v28 = vadd.f32 %v4808_v27, %v4807_v23  ;;  %v4872_v29 = vpop.f32.mrb[75].mxu1 }
 0x250   : > { %v4873_v36 = vadd.f32 %v4872_v29, %v4871_v41 }
 0x251   : > { %v6475_v32 = vadd.f32 %v4870_v24, %v3519_v49  ;;  %v3522_v50 = vadd.f32 %v4809_v28, %v6430_v6 }
 0x253   : > { %v6478_v55 = vadd.f32 %v4873_v36, %v3522_v50  ;;  %v4810_v33 = vpop.f32.mrb[76].mxu0 }
 0x254   : > { %v4874_v34 = vpop.f32.mrb[76].mxu1  ;;  %v4811_v38 = vpop.f32.mrb[77].mxu0 }
 0x255   : > { %v4812_v58 = vadd.f32 %v4811_v38, %v4810_v33  ;;  %v4875_v42 = vpop.f32.mrb[77].mxu1  ;;  %v4813_v43 = vpop.f32.mrb[78].mxu0 }
 0x256   : > { %v4876_v44 = vadd.f32 %v4875_v42, %v4874_v34  ;;  %v4877_v1 = vpop.f32.mrb[78].mxu1  ;;  %v4814_v46 = vpop.f32.mrb[79].mxu0 }
 0x257   : > { %v3527_v5 = vadd.f32 %v4812_v58, %v6433_v25  ;;  %v4815_v47 = vadd.f32 %v4814_v46, %v4813_v43  ;;  %v4878_v48 = vpop.f32.mrb[79].mxu1 }
 0x258   : > { %v4879_v56 = vadd.f32 %v4878_v48, %v4877_v1 }
 0x259   : > { %v6481_v51 = vadd.f32 %v4876_v44, %v3527_v5  ;;  %v3530_v6 = vadd.f32 %v4815_v47, %v6436_v26 }
 0x25b   : > { %v6484_v10 = vadd.f32 %v4879_v56, %v3530_v6  ;;  %v4816_v53 = vpop.f32.mrb[80].mxu0 }
 0x25c   : > { %v4880_v54 = vpop.f32.mrb[80].mxu1  ;;  %v4817_v57 = vpop.f32.mrb[81].mxu0 }
 0x25d   : > { %v4818_v13 = vadd.f32 %v4817_v57, %v4816_v53  ;;  %v4881_v60 = vpop.f32.mrb[81].mxu1  ;;  %v4819_v61 = vpop.f32.mrb[82].mxu0 }
 0x25e   : > { %v4882_v62 = vadd.f32 %v4881_v60, %v4880_v54  ;;  %v4883_v21 = vpop.f32.mrb[82].mxu1  ;;  %v4820_v2 = vpop.f32.mrb[83].mxu0 }
 0x25f   : > { %v3535_v25 = vadd.f32 %v4818_v13, %v6439_v45  ;;  %v4821_v3 = vadd.f32 %v4820_v2, %v4819_v61  ;;  %v4884_v4 = vpop.f32.mrb[83].mxu1 }
 0x260   : > { %v4885_v16 = vadd.f32 %v4884_v4, %v4883_v21 }
 0x261   : > { %v6487_v7 = vadd.f32 %v4882_v62, %v3535_v25  ;;  %v3538_v26 = vadd.f32 %v4821_v3, %v6442_v52 }
 0x263   : > { %v6490_v30 = vadd.f32 %v4885_v16, %v3538_v26  ;;  %v4822_v8 = vpop.f32.mrb[84].mxu0 }
 0x264   : > { %v4886_v9 = vpop.f32.mrb[84].mxu1  ;;  %v4823_v11 = vpop.f32.mrb[85].mxu0 }
 0x265   : > { %v4824_v31 = vadd.f32 %v4823_v11, %v4822_v8  ;;  %v4887_v15 = vpop.f32.mrb[85].mxu1  ;;  %v4825_v17 = vpop.f32.mrb[86].mxu0 }
 0x266   : > { %v4888_v18 = vadd.f32 %v4887_v15, %v4886_v9  ;;  %v4889_v39 = vpop.f32.mrb[86].mxu1  ;;  %v4826_v22 = vpop.f32.mrb[87].mxu0 }
 0x267   : > { %v3543_v45 = vadd.f32 %v4824_v31, %v6445_v0  ;;  %v4827_v23 = vadd.f32 %v4826_v22, %v4825_v17  ;;  %v4890_v24 = vpop.f32.mrb[87].mxu1 }
 0x268   : > { %v4891_v41 = vadd.f32 %v4890_v24, %v4889_v39 }
 0x269   : > { %v6493_v27 = vadd.f32 %v4888_v18, %v3543_v45  ;;  %v3546_v52 = vadd.f32 %v4827_v23, %v6448_v12 }
 0x26b   : > { %v6496_v49 = vadd.f32 %v4891_v41, %v3546_v52  ;;  %v4828_v28 = vpop.f32.mrb[88].mxu0 }
 0x26c   : > { %v4892_v29 = vpop.f32.mrb[88].mxu1  ;;  %v4829_v36 = vpop.f32.mrb[89].mxu0 }
 0x26d   : > { %v4830_v50 = vadd.f32 %v4829_v36, %v4828_v28  ;;  %v4893_v33 = vpop.f32.mrb[89].mxu1  ;;  %v4831_v34 = vpop.f32.mrb[90].mxu0 }
 0x26e   : > { %v4894_v38 = vadd.f32 %v4893_v33, %v4892_v29  ;;  %v4895_v58 = vpop.f32.mrb[90].mxu1  ;;  %v4832_v42 = vpop.f32.mrb[91].mxu0 }
 0x26f   : > { %v3551_v0 = vadd.f32 %v4830_v50, %v6451_v20  ;;  %v4833_v43 = vadd.f32 %v4832_v42, %v4831_v34  ;;  %v4896_v44 = vpop.f32.mrb[91].mxu1 }
 0x270   : > { %v4897_v1 = vadd.f32 %v4896_v44, %v4895_v58 }
 0x271   : > { %v6499_v46 = vadd.f32 %v4894_v38, %v3551_v0  ;;  %v3554_v12 = vadd.f32 %v4833_v43, %v6454_v37 }
 0x273   : > { %v6502_v5 = vadd.f32 %v4897_v1, %v3554_v12  ;;  %v4834_v47 = vpop.f32.mrb[92].mxu0 }
 0x274   : > { %v4898_v48 = vpop.f32.mrb[92].mxu1  ;;  %v4835_v56 = vpop.f32.mrb[93].mxu0 }
 0x275   : > { %v4836_v6 = vadd.f32 %v4835_v56, %v4834_v47  ;;  %v4899_v53 = vpop.f32.mrb[93].mxu1  ;;  %v4837_v54 = vpop.f32.mrb[94].mxu0 }
 0x276   : > { %v4900_v57 = vadd.f32 %v4899_v53, %v4898_v48  ;;  %v4901_v13 = vpop.f32.mrb[94].mxu1  ;;  %v4838_v60 = vpop.f32.mrb[95].mxu0 }
 0x277   : > { %v3559_v20 = vadd.f32 %v4836_v6, %v6457_v40  ;;  %v4839_v61 = vadd.f32 %v4838_v60, %v4837_v54  ;;  %v4902_v62 = vpop.f32.mrb[95].mxu1 }
 0x278   : > { %v4903_v21 = vadd.f32 %v4902_v62, %v4901_v13 }
 0x279   : > { %v6505_v2 = vadd.f32 %v4900_v57, %v3559_v20  ;;  %v3562_v37 = vadd.f32 %v4839_v61, %v6460_v63 }
 0x27b   : > { %v6508_v25 = vadd.f32 %v4903_v21, %v3562_v37  ;;  %v4920_v3 = vpop.f32.mrb[96].mxu0 }
 0x27c   : > { %v4984_v4 = vpop.f32.mrb[96].mxu1  ;;  %v4921_v16 = vpop.f32.mrb[97].mxu0 }
 0x27d   : > { %v4922_v26 = vadd.f32 %v4921_v16, %v4920_v3  ;;  %v4985_v8 = vpop.f32.mrb[97].mxu1  ;;  %v4923_v9 = vpop.f32.mrb[98].mxu0 }
 0x27e   : > { %v4986_v11 = vadd.f32 %v4985_v8, %v4984_v4  ;;  %v4987_v31 = vpop.f32.mrb[98].mxu1  ;;  %v4924_v15 = vpop.f32.mrb[99].mxu0 }
 0x27f   : > { %v3697_v40 = vadd.f32 %v4922_v26, %v6463_v59  ;;  %v4925_v17 = vadd.f32 %v4924_v15, %v4923_v9  ;;  %v4988_v18 = vpop.f32.mrb[99].mxu1 }
 0x280   : > { %v4989_v39 = vadd.f32 %v4988_v18, %v4987_v31 }
 0x281   : > { %v3794_v22 = vadd.f32 %v4986_v11, %v3697_v40  ;;  %v3700_v63 = vadd.f32 %v4925_v17, %v6466_v19 }
 0x283   : > { %v3856_v45 = vmul.f32 0.2, %v3794_v22  ;;  %v3797_v23 = vadd.f32 %v4989_v39, %v3700_v63  ;;  %v4926_v24 = vpop.f32.mrb[100].mxu0 }
 0x284   : > { %v4990_v41 = vpop.f32.mrb[100].mxu1  ;;  %v4927_v52 = vpop.f32.mrb[101].mxu0 }
 0x285   : > { %v3857_v28 = vmul.f32 0.2, %v3797_v23  ;;  %v4928_v29 = vadd.f32 %v4927_v52, %v4926_v24  ;;  %v4991_v36 = vpop.f32.mrb[101].mxu1  ;;  %v4929_v50 = vpop.f32.mrb[102].mxu0  ;;  %v3872_v38 = vmax.f32 %v3794_v22, %v3856_v45 }
 0x286   : > { %v4992_v33 = vadd.f32 %v4991_v36, %v4990_v41  ;;  %v4993_v34 = vpop.f32.mrb[102].mxu1  ;;  %v4930_v59 = vpop.f32.mrb[103].mxu0 }
 0x287   : > { %v3873_v58 = vmax.f32 %v3797_v23, %v3857_v28  ;;  %v3705_v42 = vadd.f32 %v4928_v29, %v6469_v14  ;;  %v4931_v0 = vadd.f32 %v4930_v59, %v4929_v50  ;;  %v4994_v19 = vpop.f32.mrb[103].mxu1 }
 0x288   : > { %v4995_v43 = vadd.f32 %v4994_v19, %v4993_v34 }
 0x289   : > { %v4476_v44 = vpack.c.bf16 %v3873_v58, %v3872_v38  ;;  %v3802_v1 = vadd.f32 %v4992_v33, %v3705_v42  ;;  %v3708_v12 = vadd.f32 %v4931_v0, %v6472_v35 }
 0x28b   : > { %4477 = vst [vmem:[%s6516_s12] sm:$0xff] %v4476_v44   ;;  %v3858_v47 = vmul.f32 0.2, %v3802_v1  ;;  %v3805_v48 = vadd.f32 %v4995_v43, %v3708_v12  ;;  %v4932_v56 = vpop.f32.mrb[104].mxu0 }
 0x28c   : > { %v4996_v6 = vpop.f32.mrb[104].mxu1  ;;  %v4933_v53 = vpop.f32.mrb[105].mxu0 }
 0x28d   : > { %v3859_v54 = vmul.f32 0.2, %v3805_v48  ;;  %v4934_v57 = vadd.f32 %v4933_v53, %v4932_v56  ;;  %v4997_v14 = vpop.f32.mrb[105].mxu1  ;;  %v4935_v13 = vpop.f32.mrb[106].mxu0  ;;  %v3874_v62 = vmax.f32 %v3802_v1, %v3858_v47 }
 0x28e   : > { %v4998_v60 = vadd.f32 %v4997_v14, %v4996_v6  ;;  %v4999_v20 = vpop.f32.mrb[106].mxu1  ;;  %v4936_v61 = vpop.f32.mrb[107].mxu0 }
 0x28f   : > { %v3875_v21 = vmax.f32 %v3805_v48, %v3859_v54  ;;  %v3713_v35 = vadd.f32 %v4934_v57, %v6475_v32  ;;  %v4937_v37 = vadd.f32 %v4936_v61, %v4935_v13  ;;  %v5000_v3 = vpop.f32.mrb[107].mxu1 }
 0x290   : > { %v5001_v4 = vadd.f32 %v5000_v3, %v4999_v20 }
 0x291   : > { %v4481_v16 = vpack.c.bf16 %v3875_v21, %v3874_v62  ;;  %v3810_v26 = vadd.f32 %v4998_v60, %v3713_v35  ;;  %v3716_v8 = vadd.f32 %v4937_v37, %v6478_v55 }
 0x293   : > { %4513 = vst [vmem:[%s6516_s12 + $0x8] sm:$0xff] %v4481_v16   ;;  %v3860_v9 = vmul.f32 0.2, %v3810_v26  ;;  %v3813_v11 = vadd.f32 %v5001_v4, %v3716_v8  ;;  %v4938_v31 = vpop.f32.mrb[108].mxu0 }
 0x294   : > { %v5002_v15 = vpop.f32.mrb[108].mxu1  ;;  %v4939_v40 = vpop.f32.mrb[109].mxu0 }
 0x295   : > { %v3861_v17 = vmul.f32 0.2, %v3813_v11  ;;  %v4940_v18 = vadd.f32 %v4939_v40, %v4938_v31  ;;  %v5003_v39 = vpop.f32.mrb[109].mxu1  ;;  %v4941_v22 = vpop.f32.mrb[110].mxu0  ;;  %v3876_v23 = vmax.f32 %v3810_v26, %v3860_v9 }
 0x296   : > { %v5004_v63 = vadd.f32 %v5003_v39, %v5002_v15  ;;  %v5005_v32 = vpop.f32.mrb[110].mxu1  ;;  %v4942_v45 = vpop.f32.mrb[111].mxu0 }
 0x297   : > { %v3877_v24 = vmax.f32 %v3813_v11, %v3861_v17  ;;  %v3721_v41 = vadd.f32 %v4940_v18, %v6481_v51  ;;  %v4943_v52 = vadd.f32 %v4942_v45, %v4941_v22  ;;  %v5006_v55 = vpop.f32.mrb[111].mxu1 }
 0x298   : > { %v5007_v28 = vadd.f32 %v5006_v55, %v5005_v32 }
 0x299   : > { %v4486_v29 = vpack.c.bf16 %v3877_v24, %v3876_v23  ;;  %v3818_v36 = vadd.f32 %v5004_v63, %v3721_v41  ;;  %v3724_v50 = vadd.f32 %v4943_v52, %v6484_v10 }
 0x29b   : > { %4514 = vst [vmem:[%s6516_s12 + $0x10] sm:$0xff] %v4486_v29   ;;  %v3862_v33 = vmul.f32 0.2, %v3818_v36  ;;  %v3821_v34 = vadd.f32 %v5007_v28, %v3724_v50  ;;  %v4944_v59 = vpop.f32.mrb[112].mxu0 }
 0x29c   : > { %v5008_v38 = vpop.f32.mrb[112].mxu1  ;;  %v4945_v58 = vpop.f32.mrb[113].mxu0 }
 0x29d   : > { %v3863_v42 = vmul.f32 0.2, %v3821_v34  ;;  %v4946_v0 = vadd.f32 %v4945_v58, %v4944_v59  ;;  %v5009_v19 = vpop.f32.mrb[113].mxu1  ;;  %v4947_v43 = vpop.f32.mrb[114].mxu0  ;;  %v3878_v12 = vmax.f32 %v3818_v36, %v3862_v33 }
 0x29e   : > { %v5010_v44 = vadd.f32 %v5009_v19, %v5008_v38  ;;  %v5011_v51 = vpop.f32.mrb[114].mxu1  ;;  %v4948_v1 = vpop.f32.mrb[115].mxu0 }
 0x29f   : > { %v3879_v47 = vmax.f32 %v3821_v34, %v3863_v42  ;;  %v3729_v48 = vadd.f32 %v4946_v0, %v6487_v7  ;;  %v4949_v56 = vadd.f32 %v4948_v1, %v4947_v43  ;;  %v5012_v10 = vpop.f32.mrb[115].mxu1 }
 0x2a0   : > { %v5013_v6 = vadd.f32 %v5012_v10, %v5011_v51 }
 0x2a1   : > { %v4491_v53 = vpack.c.bf16 %v3879_v47, %v3878_v12  ;;  %v3826_v54 = vadd.f32 %v5010_v44, %v3729_v48  ;;  %v3732_v57 = vadd.f32 %v4949_v56, %v6490_v30 }
 0x2a3   : > { %4515 = vst [vmem:[%s6516_s12 + $0x18] sm:$0xff] %v4491_v53   ;;  %v3864_v14 = vmul.f32 0.2, %v3826_v54  ;;  %v3829_v13 = vadd.f32 %v5013_v6, %v3732_v57  ;;  %v4950_v60 = vpop.f32.mrb[116].mxu0 }
 0x2a4   : > { %v5014_v20 = vpop.f32.mrb[116].mxu1  ;;  %v4951_v61 = vpop.f32.mrb[117].mxu0 }
 0x2a5   : > { %v3865_v62 = vmul.f32 0.2, %v3829_v13  ;;  %v4952_v21 = vadd.f32 %v4951_v61, %v4950_v60  ;;  %v5015_v35 = vpop.f32.mrb[117].mxu1  ;;  %v4953_v37 = vpop.f32.mrb[118].mxu0  ;;  %v3880_v16 = vmax.f32 %v3826_v54, %v3864_v14 }
 0x2a6   : > { %v5016_v3 = vadd.f32 %v5015_v35, %v5014_v20  ;;  %v5017_v7 = vpop.f32.mrb[118].mxu1  ;;  %v4954_v4 = vpop.f32.mrb[119].mxu0  ;;  %v3999_v35 = vld [vmem:[%s6516_s12 + $0x8] sm:$0xf] (%p5295_p6) }
 0x2a7   : > { %v3881_v26 = vmax.f32 %v3829_v13, %v3865_v62  ;;  %v3737_v8 = vadd.f32 %v4952_v21, %v6493_v27  ;;  %v4955_v9 = vadd.f32 %v4954_v4, %v4953_v37  ;;  %v5018_v30 = vpop.f32.mrb[119].mxu1  ;;  %v4001_v37 = vld [vmem:[%s6516_s12 + $0xc] sm:$0xf] (%p5295_p6)  ;;  %4000 = vst [vmem:[%s3979_s8 + $0x10] sm:$0xf] (%p5295_p6), %v3999_v35 }
 0x2a8   : > { %v5019_v11 = vadd.f32 %v5018_v30, %v5017_v7  ;;  %4002 = vst [vmem:[%s3979_s8 + $0x18] sm:$0xf] (%p5295_p6), %v4001_v37  ;;  %v4005_v7 = vld [vmem:[%s6516_s12 + $0x14] sm:$0xf] (%p5295_p6) }
 0x2a9   : > { %v4496_v31 = vpack.c.bf16 %v3881_v26, %v3880_v16  ;;  %v3834_v15 = vadd.f32 %v5016_v3, %v3737_v8  ;;  %v3740_v40 = vadd.f32 %v4955_v9, %v6496_v49  ;;  %v4003_v3 = vld [vmem:[%s6516_s12 + $0x10] sm:$0xf] (%p5295_p6)  ;;  %4006 = vst [vmem:[%s3979_s8 + $0x28] sm:$0xf] (%p5295_p6), %v4005_v7 }
 0x2aa   : > { %4004 = vst [vmem:[%s3979_s8 + $0x20] sm:$0xf] (%p5295_p6), %v4003_v3  ;;  %v4007_v4 = vld [vmem:[%s6516_s12 + $0x18] sm:$0xf] (%p5295_p6)  ;;  %v4009_v16 = vld [vmem:[%s6516_s12 + $0x1c] sm:$0xf] (%p5295_p6) }
 0x2ab   : > { %4516 = vst [vmem:[%s6516_s12 + $0x20] sm:$0xff] %v4496_v31   ;;  %v3866_v17 = vmul.f32 0.2, %v3834_v15  ;;  %v3837_v18 = vadd.f32 %v5019_v11, %v3740_v40  ;;  %v4956_v39 = vpop.f32.mrb[120].mxu0  ;;  %4008 = vst [vmem:[%s3979_s8 + $0x30] sm:$0xf] (%p5295_p6), %v4007_v4 }
 0x2ac   : > { %v5020_v22 = vpop.f32.mrb[120].mxu1  ;;  %v4957_v63 = vpop.f32.mrb[121].mxu0  ;;  %4010 = vst [vmem:[%s3979_s8 + $0x38] sm:$0xf] (%p5295_p6), %v4009_v16 }
 0x2ad   : > { %v3867_v32 = vmul.f32 0.2, %v3837_v18  ;;  %v4958_v45 = vadd.f32 %v4957_v63, %v4956_v39  ;;  %v5021_v23 = vpop.f32.mrb[121].mxu1  ;;  %v4959_v24 = vpop.f32.mrb[122].mxu0  ;;  %v3882_v55 = vmax.f32 %v3834_v15, %v3866_v17 }
 0x2ae   : > { %v5022_v41 = vadd.f32 %v5021_v23, %v5020_v22  ;;  %v5023_v27 = vpop.f32.mrb[122].mxu1  ;;  %v4960_v52 = vpop.f32.mrb[123].mxu0 }
 0x2af   : > { %v3883_v28 = vmax.f32 %v3837_v18, %v3867_v32  ;;  %v3745_v29 = vadd.f32 %v4958_v45, %v6499_v46  ;;  %v4961_v36 = vadd.f32 %v4960_v52, %v4959_v24  ;;  %v5024_v49 = vpop.f32.mrb[123].mxu1 }
 0x2b0   : > { %v5025_v50 = vadd.f32 %v5024_v49, %v5023_v27 }
 0x2b1   : > { %v4501_v33 = vpack.c.bf16 %v3883_v28, %v3882_v55  ;;  %v3842_v34 = vadd.f32 %v5022_v41, %v3745_v29  ;;  %v3748_v59 = vadd.f32 %v4961_v36, %v6502_v5 }
 0x2b2   : > { %v4011_v26 = vld [vmem:[%s6516_s12 + $0x20] sm:$0xf] (%p5295_p6)  ;;  %v4013_v8 = vld [vmem:[%s6516_s12 + $0x24] sm:$0xf] (%p5295_p6) }
 0x2b3   : > { %4517 = vst [vmem:[%s6516_s12 + $0x28] sm:$0xff] %v4501_v33   ;;  %v3868_v38 = vmul.f32 0.2, %v3842_v34  ;;  %v3845_v58 = vadd.f32 %v5025_v50, %v3748_v59  ;;  %v4962_v42 = vpop.f32.mrb[124].mxu0  ;;  %4012 = vst [vmem:[%s3979_s8 + $0x40] sm:$0xf] (%p5295_p6), %v4011_v26 }
 0x2b4   : > { %v5026_v0 = vpop.f32.mrb[124].mxu1  ;;  %v4963_v19 = vpop.f32.mrb[125].mxu0  ;;  %4014 = vst [vmem:[%s3979_s8 + $0x48] sm:$0xf] (%p5295_p6), %v4013_v8 }
 0x2b5   : > { %v3869_v43 = vmul.f32 0.2, %v3845_v58  ;;  %v4964_v44 = vadd.f32 %v4963_v19, %v4962_v42  ;;  %v5027_v51 = vpop.f32.mrb[125].mxu1  ;;  %v4965_v1 = vpop.f32.mrb[126].mxu0  ;;  %v3884_v48 = vmax.f32 %v3842_v34, %v3868_v38 }
 0x2b6   : > { %v5028_v12 = vadd.f32 %v5027_v51, %v5026_v0  ;;  %v5029_v46 = vpop.f32.mrb[126].mxu1  ;;  %v4966_v47 = vpop.f32.mrb[127].mxu0 }
 0x2b7   : > { %v3885_v56 = vmax.f32 %v3845_v58, %v3869_v43  ;;  %v3753_v10 = vadd.f32 %v4964_v44, %v6505_v2  ;;  %v4967_v5 = vadd.f32 %v4966_v47, %v4965_v1  ;;  %v5030_v6 = vpop.f32.mrb[127].mxu1  ;;  %v3995_v2 = vld [vmem:[%s6516_s12] sm:$0xf] (%p5295_p6) }
 0x2b8   : > { %v5031_v53 = vadd.f32 %v5030_v6, %v5029_v46  ;;  %3996 = vst [vmem:[%s3979_s8] sm:$0xf] (%p5295_p6), %v3995_v2 }
 0x2b9   : > { %v4506_v54 = vpack.c.bf16 %v3885_v56, %v3884_v48  ;;  %v3850_v57 = vadd.f32 %v5028_v12, %v3753_v10  ;;  %v3756_v14 = vadd.f32 %v4967_v5, %v6508_v25  ;;  %v3997_v25 = vld [vmem:[%s6516_s12 + $0x4] sm:$0xf] (%p5295_p6) }
 0x2ba   : > { %3998 = vst [vmem:[%s3979_s8 + $0x8] sm:$0xf] (%p5295_p6), %v3997_v25  ;;  %v4015_v9 = vld [vmem:[%s6516_s12 + $0x28] sm:$0xf] (%p5295_p6)  ;;  %v4017_v30 = vld [vmem:[%s6516_s12 + $0x2c] sm:$0xf] (%p5295_p6) }
 0x2bb   : > { %4518 = vst [vmem:[%s6516_s12 + $0x30] sm:$0xff] %v4506_v54   ;;  %v3870_v13 = vmul.f32 0.2, %v3850_v57  ;;  %v3853_v60 = vadd.f32 %v5031_v53, %v3756_v14  ;;  %4016 = vst [vmem:[%s3979_s8 + $0x50] sm:$0xf] (%p5295_p6), %v4015_v9 }
 0x2bc   : > { %4018 = vst [vmem:[%s3979_s8 + $0x58] sm:$0xf] (%p5295_p6), %v4017_v30 }
 0x2bd   : > { %v3871_v20 = vmul.f32 0.2, %v3853_v60  ;;  %v3886_v61 = vmax.f32 %v3850_v57, %v3870_v13  ;;  %3974 = sbr.rel (!%p5295_p6) target bundleno = 716 (0x2cc), region = 77 }
 0x2bf   : > { %v3887_v62 = vmax.f32 %v3853_v60, %v3871_v20 }
 0x2c1   : > { %v4511_v21 = vpack.c.bf16 %v3887_v62, %v3886_v61 }
 0x2c2   : > { %v4019_v11 = vld [vmem:[%s6516_s12 + $0x30] sm:$0xf] (%p5295_p6)  ;;  %v4021_v31 = vld [vmem:[%s6516_s12 + $0x34] sm:$0xf] (%p5295_p6) }
 0x2c3   : > { %4519 = vst [vmem:[%s6516_s12 + $0x38] sm:$0xff] %v4511_v21   ;;  %4020 = vst [vmem:[%s3979_s8 + $0x60] sm:$0xf] (%p5295_p6), %v4019_v11 }
 0x2c4   : > { %4022 = vst [vmem:[%s3979_s8 + $0x68] sm:$0xf] %v4021_v31 }
 0x2ca   : > { %v4023_v15 = vld [vmem:[%s6516_s12 + $0x38] sm:$0xf]  ;;  %v4025_v40 = vld [vmem:[%s6516_s12 + $0x3c] sm:$0xf] }
 0x2cb   : > { %4024 = vst [vmem:[%s3979_s8 + $0x70] sm:$0xf] %v4023_v15  ;;  %4026 = vst [vmem:[%s3979_s8 + $0x78] sm:$0xf] %v4025_v40 }
 0x2cc PF: > { %s13_s16 = sadd.s32 1, %s5238_s16   ;;  %s6580_s12 = smov %s5226_s13 }
 0x2cd   : > { %p10_p12 = scmp.ge.s32.totalorder %s13_s16, 4   ;;  %s6581_s13 = smov %s5300_s22 }
 0x2ce   : > { %s6582_s14 = smov %s5234_s15  ;;  %s6583_s15 = smov %s6585_s17 }
 0x2cf   :  { %12 = sbr.rel (!%p10_p12) target bundleno = 3 (0x3), region = 155 }

// kernel: discriminator_forward.9
= control target key start
LH: loop header
LB: loop body
LE: loop exit
PB: predicated region body
PF: predicated region fallthrough
CT: control target
= control target key end

     0   :  { %v75_v0 = vlaneseq  ;;  %v1508_v10 = vmov 1983009808   ;;  %vm1371_vm0 = vcmask 1041408   ;;  %vm1501_vm1 = vcmask 1024   ;;  %s2489_s1 = inlined_call_operand.vmem [shape: bf16[1,8192], index: 1, kind: input, shape index: {}]   ;;  %s2490_s0 = inlined_call_operand.vmem [shape: bf16[2,8192], index: 0, kind: input, shape index: {}]   ;;  %s2491_s2 = inlined_call_operand.vmem [shape: f32[2,1], index: 2, kind: output, shape index: {}]  }
   0x1   :  { %v39_v1 = vld [vmem:[%s2489_s1 + $0x20] sm:$0xff]  ;;  %v40_v2 = vld [vmem:[%s2489_s1 + $0x28] sm:$0xff]  ;;  %v41_v4 = vld [vmem:[%s2489_s1 + $0x30] sm:$0xff]  ;;  %v1546_v11 = vunpack.c.l.s4 %v1508_v10 }
   0x2   :  { %v1530_v3 = vshrl.u32 %v75_v0, 7  ;;  %v42_v5 = vld [vmem:[%s2489_s1 + $0x38] sm:$0xff]  ;;  %v1538_v6 = vunpack.c.l.bf16 %v39_v1  ;;  %v1540_v7 = vunpack.c.h.bf16 %v39_v1  ;;  %v1542_v8 = vunpack.c.l.bf16 %v40_v2  ;;  %v1627_v48 = vld [vmem:[%s2490_s0] sm:$0xff]  ;;  %v1632_v49 = vld [vmem:[%s2490_s0 + $0x8] sm:$0xff] }
   0x3   :  { %v1544_v9 = vunpack.c.h.bf16 %v40_v2  ;;  %v1560_v16 = vunpack.c.l.bf16 %v41_v4  ;;  %v1562_v17 = vunpack.c.h.bf16 %v41_v4  ;;  %v1564_v18 = vunpack.c.l.bf16 %v42_v5  ;;  %2512 = vst [vmem:[#allocation4_spill] sm:$0xff] %v1627_v48  ;;  %2513 = vst [vmem:[#allocation5_spill] sm:$0xff] %v1632_v49  ;;  %v1645_v54 = vld [vmem:[%s2490_s0 + $0x20] sm:$0xff]  ;;  %v1653_v56 = vld [vmem:[%s2490_s0 + $0x28] sm:$0xff] }
   0x4   :  { %v1549_v12 = vsub.s32 0, %v1530_v3  ;;  %v1552_v13 = vsub.s32 2, %v1530_v3  ;;  %v1555_v14 = vsub.s32 4, %v1530_v3  ;;  %v1558_v15 = vsub.s32 6, %v1530_v3  ;;  %v35_v55 = vld [vmem:[%s2489_s1] sm:$0xff]  ;;  %v1658_v57 = vld [vmem:[%s2490_s0 + $0x30] sm:$0xff] }
   0x5   :  { %v1566_v19 = vunpack.c.h.bf16 %v42_v5  ;;  %2514 = vst [vmem:[#allocation6_spill] sm:$0xff] %v1658_v57  ;;  %v1663_v58 = vld [vmem:[%s2490_s0 + $0x38] sm:$0xff]  ;;  %v36_v0 = vld [vmem:[%s2489_s1 + $0x8] sm:$0xff]  ;;  %v37_v1 = vld [vmem:[%s2489_s1 + $0x10] sm:$0xff]  ;;  %v1676_v2 = vunpack.c.l.bf16 %v35_v55  ;;  %v719_v4 = vunpack.c.0.s8 %v1546_v11  ;;  %v1691_v11 = vunpack.c.h.bf16 %v35_v55 }
   0x6   :  { %2510 = vst [vmem:[#allocation2_spill] sm:$0xff] %v1552_v13  ;;  %2511 = vst [vmem:[#allocation3_spill] sm:$0xff] %v1555_v14  ;;  %v206_v20 = vrot.slane %v1538_v6, %v1549_v12  ;;  %v210_v21 = vrot.slane %v1538_v6, %v1552_v13  ;;  %v214_v22 = vrot.slane %v1538_v6, %v1555_v14  ;;  %v1686_v60 = vld [vmem:[%s2489_s1 + $0x18] sm:$0xff]  ;;  %v1693_v5 = vunpack.c.l.bf16 %v36_v0 }
   0x7   :  { %v218_v23 = vrot.slane %v1538_v6, %v1558_v15  ;;  %v222_v24 = vrot.slane %v1540_v7, %v1549_v12  ;;  %v226_v25 = vrot.slane %v1540_v7, %v1552_v13  ;;  %v230_v26 = vrot.slane %v1540_v7, %v1555_v14  ;;  %2515 = vst [vmem:[#allocation7_spill] sm:$0xff] %v1663_v58 }
   0x8   :  { %v234_v27 = vrot.slane %v1540_v7, %v1558_v15  ;;  %v238_v28 = vrot.slane %v1542_v8, %v1549_v12  ;;  %v242_v29 = vrot.slane %v1542_v8, %v1552_v13  ;;  %v246_v30 = vrot.slane %v1542_v8, %v1555_v14  ;;  %2516 = vst [vmem:[#allocation8_spill] sm:$0xff] %v1686_v60 }
   0x9   :  { %v250_v31 = vrot.slane %v1542_v8, %v1558_v15  ;;  %v254_v32 = vrot.slane %v1544_v9, %v1549_v12  ;;  %v258_v33 = vrot.slane %v1544_v9, %v1552_v13  ;;  %v262_v34 = vrot.slane %v1544_v9, %v1555_v14 }
   0xa   :  { %v266_v35 = vrot.slane %v1544_v9, %v1558_v15  ;;  %v270_v36 = vrot.slane %v1560_v16, %v1549_v12  ;;  %v274_v37 = vrot.slane %v1560_v16, %v1552_v13  ;;  %v278_v38 = vrot.slane %v1560_v16, %v1555_v14 }
   0xb   :  { %v282_v39 = vrot.slane %v1560_v16, %v1558_v15  ;;  %v286_v40 = vrot.slane %v1562_v17, %v1549_v12  ;;  %v290_v41 = vrot.slane %v1562_v17, %v1552_v13  ;;  %v294_v42 = vrot.slane %v1562_v17, %v1555_v14 }
   0xc   :  { %v298_v43 = vrot.slane %v1562_v17, %v1558_v15  ;;  %v302_v44 = vrot.slane %v1564_v18, %v1549_v12  ;;  %v306_v45 = vrot.slane %v1564_v18, %v1552_v13  ;;  %v310_v46 = vrot.slane %v1564_v18, %v1555_v14 }
   0xd   :  { %v314_v47 = vrot.slane %v1564_v18, %v1558_v15  ;;  %v318_v50 = vrot.slane %v1566_v19, %v1549_v12  ;;  %v322_v51 = vrot.slane %v1566_v19, %v1552_v13  ;;  %v1695_v10 = vunpack.c.h.bf16 %v36_v0 }
   0xe   :  { %v1697_v62 = vunpack.c.l.bf16 %v37_v1  ;;  %v1699_v61 = vunpack.c.h.bf16 %v37_v1  ;;  %v1702_v52 = vunpack.c.l.bf16 %v1686_v60  ;;  %v78_v59 = vrot.slane %v1676_v2, %v1549_v12 }
   0xf   :  { %v82_v63 = vrot.slane %v1676_v2, %v1552_v13  ;;  %v1709_v55 = vsub.s32 %v719_v4, %v1530_v3  ;;  %v1715_v0 = vrot.slane %v206_v20, %v1549_v12  ;;  %v1721_v1 = vrot.slane %v210_v21, %v1549_v12 }
  0x10   :  { %2517 = vst [vmem:[#allocation9_spill] sm:$0xff] %v1699_v61  ;;  %2518 = vst [vmem:[#allocation10_spill] sm:$0xff] %v1702_v52  ;;  %v1727_v53 = vrot.slane %v214_v22, %v1549_v12  ;;  %v1733_v3 = vrot.slane %v218_v23, %v1549_v12  ;;  %v1739_v20 = vrot.slane %v222_v24, %v1549_v12 }
  0x11   :  { %2519 = vst [vmem:[#allocation11_spill] sm:$0xff] %v1709_v55  ;;  %v1745_v21 = vrot.slane %v226_v25, %v1549_v12  ;;  %v1751_v22 = vrot.slane %v230_v26, %v1549_v12  ;;  %v1757_v6 = vrot.slane %v234_v27, %v1549_v12  ;;  %v1763_v23 = vrot.slane %v238_v28, %v1549_v12 }
  0x12   :  { %v1769_v24 = vrot.slane %v242_v29, %v1549_v12  ;;  %v1775_v25 = vrot.slane %v246_v30, %v1549_v12  ;;  %v1781_v7 = vrot.slane %v250_v31, %v1549_v12  ;;  %v1787_v26 = vrot.slane %v254_v32, %v1549_v12 }
  0x13   :  { %v1793_v27 = vrot.slane %v258_v33, %v1549_v12  ;;  %v1799_v28 = vrot.slane %v262_v34, %v1549_v12  ;;  %v1805_v8 = vrot.slane %v266_v35, %v1549_v12  ;;  %v1811_v29 = vrot.slane %v270_v36, %v1549_v12 }
  0x14   :  { %v1817_v30 = vrot.slane %v274_v37, %v1549_v12  ;;  %v1823_v31 = vrot.slane %v278_v38, %v1549_v12  ;;  %v1829_v9 = vrot.slane %v282_v39, %v1549_v12  ;;  %v1835_v32 = vrot.slane %v286_v40, %v1549_v12 }
  0x15   :  { %v1841_v33 = vrot.slane %v290_v41, %v1549_v12  ;;  %v1847_v34 = vrot.slane %v294_v42, %v1549_v12  ;;  %v1853_v16 = vrot.slane %v298_v43, %v1549_v12  ;;  %v1859_v35 = vrot.slane %v302_v44, %v1549_v12 }
  0x16   :  { %v1865_v36 = vrot.slane %v306_v45, %v1549_v12  ;;  %v1871_v37 = vrot.slane %v310_v46, %v1549_v12  ;;  %v1877_v17 = vrot.slane %v314_v47, %v1549_v12  ;;  %v1883_v38 = vrot.slane %v318_v50, %v1549_v12 }
  0x17   :  { %v1889_v39 = vrot.slane %v322_v51, %v1549_v12  ;;  %v2520_v40 = vrot.slane %v1566_v19, %v1555_v14  ;;  %v2521_v18 = vrot.slane %v1566_v19, %v1558_v15  ;;  %v86_v43 = vrot.slane %v1676_v2, %v1555_v14 }
  0x18   :  { %v90_v44 = vrot.slane %v1676_v2, %v1558_v15  ;;  %v94_v45 = vrot.slane %v1691_v11, %v1549_v12  ;;  %v98_v46 = vrot.slane %v1691_v11, %v1552_v13  ;;  %v102_v47 = vrot.slane %v1691_v11, %v1555_v14 }
  0x19   :  { %v1895_v41 = vrot.slane %v2520_v40, %v1549_v12  ;;  %v1901_v42 = vrot.slane %v2521_v18, %v1549_v12  ;;  %v106_v19 = vrot.slane %v1691_v11, %v1558_v15  ;;  %v110_v50 = vrot.slane %v1693_v5, %v1549_v12 }
  0x1a   :  { %v114_v51 = vrot.slane %v1693_v5, %v1552_v13  ;;  %v118_v2 = vrot.slane %v1693_v5, %v1555_v14  ;;  %v122_v4 = vrot.slane %v1693_v5, %v1558_v15  ;;  %v126_v40 = vrot.slane %v1695_v10, %v1549_v12 }
  0x1b   :  { %v130_v18 = vrot.slane %v1695_v10, %v1552_v13  ;;  %v134_v11 = vrot.slane %v1695_v10, %v1555_v14  ;;  %v138_v49 = vrot.slane %v1695_v10, %v1558_v15  ;;  %v142_v48 = vrot.slane %v1697_v62, %v1549_v12 }
  0x1c   :  { %v146_v60 = vrot.slane %v1697_v62, %v1552_v13  ;;  %v150_v5 = vrot.slane %v1697_v62, %v1555_v14  ;;  %v154_v52 = vrot.slane %v1697_v62, %v1558_v15  ;;  %v1940_v61 = vrot.slane %v78_v59, %v1549_v12 }
  0x1d   :  { %v1943_v58 = vrot.slane %v82_v63, %v1549_v12  ;;  %v1946_v10 = vrot.slane %v86_v43, %v1549_v12  ;;  %v1949_v57 = vrot.slane %v90_v44, %v1549_v12  ;;  %v1952_v13 = vrot.slane %v94_v45, %v1549_v12 }
  0x1e   :  { %v1955_v14 = vrot.slane %v98_v46, %v1549_v12  ;;  %v1958_v62 = vrot.slane %v102_v47, %v1549_v12  ;;  %v1961_v59 = vrot.slane %v106_v19, %v1549_v12  ;;  %v1964_v63 = vrot.slane %v110_v50, %v1549_v12 }
  0x1f   :  { %v1967_v43 = vrot.slane %v114_v51, %v1549_v12  ;;  %v1970_v44 = vrot.slane %v118_v2, %v1549_v12  ;;  %v1973_v45 = vrot.slane %v122_v4, %v1549_v12  ;;  %v1976_v46 = vrot.slane %v126_v40, %v1549_v12 }
  0x20   :  { %v1979_v47 = vrot.slane %v130_v18, %v1549_v12  ;;  %v1982_v19 = vrot.slane %v134_v11, %v1549_v12  ;;  %v1985_v50 = vrot.slane %v138_v49, %v1549_v12  ;;  %v1988_v51 = vrot.slane %v142_v48, %v1549_v12 }
  0x21   :  { %v851_v2 = vcombine.low %v1715_v0, %v1721_v1  ;;  %v1993_v4 = vrot.slane %v146_v60, %v1549_v12  ;;  %v1996_v40 = vrot.slane %v150_v5, %v1549_v12  ;;  %v1999_v18 = vrot.slane %v154_v52, %v1549_v12 }
  0x22   :  { %v852_v11 = vcombine.low %v1727_v53, %v1733_v3  ;;  %v715_v49 = vcombine.low %v1940_v61, %v1943_v58  ;;  %v868_v0 = vcombine.low %v1739_v20, %v1745_v21  ;;  %v869_v60 = vcombine.low %v1751_v22, %v1757_v6 }
  0x23   :  { %v859_v48 = vrot.slane %v851_v2, %v1709_v55  ;;  %v716_v1 = vcombine.low %v1946_v10, %v1949_v57  ;;  %v885_v5 = vcombine.low %v1763_v23, %v1769_v24  ;;  %v886_v53 = vcombine.low %v1775_v25, %v1781_v7 }
  0x24   :  { %v866_v52 = vrot.slane %v852_v11, %v1709_v55  ;;  %v876_v58 = vrot.slane %v868_v0, %v1709_v55  ;;  %v883_v61 = vrot.slane %v869_v60, %v1709_v55  ;;  %v902_v3 = vcombine.low %v1787_v26, %v1793_v27 }
  0x25   :  { %v903_v20 = vcombine.low %v1799_v28, %v1805_v8  ;;  %v893_v57 = vrot.slane %v885_v5, %v1709_v55  ;;  %v900_v22 = vrot.slane %v886_v53, %v1709_v55  ;;  %v919_v6 = vcombine.low %v1811_v29, %v1817_v30  ;;  %v2529_v5 = vld [vmem:[#allocation7_spill] sm:$0xff] }
  0x26   :  { %v867_v21 = vcombine.low %v859_v48, %v866_v52  ;;  %v884_v23 = vcombine.low %v876_v58, %v883_v61  ;;  %v910_v24 = vrot.slane %v902_v3, %v1709_v55  ;;  %v920_v7 = vcombine.low %v1823_v31, %v1829_v9 }
  0x27   :  { %v917_v25 = vrot.slane %v903_v20, %v1709_v55  ;;  %v901_v26 = vcombine.low %v893_v57, %v900_v22  ;;  %v927_v27 = vrot.slane %v919_v6, %v1709_v55  ;;  %v936_v28 = vcombine.low %v1835_v32, %v1841_v33  ;;  %v2533_v20 = vld [vmem:[#allocation2_spill] sm:$0xff]  ;;  %v2534_v6 = vld [vmem:[#allocation3_spill] sm:$0xff] }
  0x28   :  { %v937_v8 = vcombine.low %v1847_v34, %v1853_v16  ;;  %v934_v29 = vrot.slane %v920_v7, %v1709_v55  ;;  %v953_v30 = vcombine.low %v1859_v35, %v1865_v36  ;;  %v954_v2 = vcombine.low %v1871_v37, %v1877_v17 }
  0x29   :  { %v918_v10 = vcombine.low %v910_v24, %v917_v25  ;;  %v944_v31 = vrot.slane %v936_v28, %v1709_v55  ;;  %v970_v11 = vcombine.low %v1883_v38, %v1889_v39  ;;  %v971_v32 = vcombine.low %v1895_v41, %v1901_v42 }
  0x2a   :  { %v951_v9 = vrot.slane %v937_v8, %v1709_v55  ;;  %v732_v33 = vcombine.low %v1952_v13, %v1955_v14  ;;  %v935_v34 = vcombine.low %v927_v27, %v934_v29  ;;  %v961_v16 = vrot.slane %v953_v30, %v1709_v55  ;;  %v2114_v29 = vld [vmem:[%s2490_s0 + $0x10] sm:$0xff] }
  0x2b   :  { %v968_v35 = vrot.slane %v954_v2, %v1709_v55  ;;  %v733_v36 = vcombine.low %v1958_v62, %v1961_v59  ;;  %v978_v17 = vrot.slane %v970_v11, %v1709_v55  ;;  %v985_v48 = vrot.slane %v971_v32, %v1709_v55 }
  0x2c   :  { %v952_v37 = vcombine.low %v944_v31, %v951_v9  ;;  %v749_v38 = vcombine.low %v1964_v63, %v1967_v43  ;;  %v750_v39 = vcombine.low %v1970_v44, %v1973_v45  ;;  %v766_v13 = vcombine.low %v1976_v46, %v1979_v47 }
  0x2d   :  { %v969_v14 = vcombine.low %v961_v16, %v968_v35  ;;  %v723_v41 = vrot.slane %v715_v49, %v1709_v55  ;;  %v730_v42 = vrot.slane %v716_v1, %v1709_v55  ;;  %v767_v62 = vcombine.low %v1982_v19, %v1985_v50  ;;  %v2526_v49 = vld [vmem:[#allocation6_spill] sm:$0xff]  ;;  %v2536_v35 = vld [vmem:[#allocation8_spill] sm:$0xff] }
  0x2e   :  { %v986_v59 = vcombine.low %v978_v17, %v985_v48  ;;  %v2522_v0 = vunpack.c.l.bf16 %v1645_v54  ;;  %v2523_v63 = vunpack.c.h.bf16 %v1645_v54  ;;  %v2524_v44 = vunpack.c.l.bf16 %v1653_v56 }
  0x2f   :  { %v2525_v46 = vunpack.c.h.bf16 %v1653_v56  ;;  %v2527_v52 = vunpack.c.l.bf16 %v2526_v49  ;;  %v2528_v19 = vunpack.c.h.bf16 %v2526_v49  ;;  %v2530_v53 = vunpack.c.l.bf16 %v2529_v5  ;;  %v2532_v56 = vld [vmem:[#allocation9_spill] sm:$0xff] }
  0x30   :  { %v1011_v60 = vmul.f32 %v867_v21, %v2522_v0  ;;  %v1012_v43 = vmul.f32 %v884_v23, %v2523_v63  ;;  %v1013_v45 = vmul.f32 %v901_v26, %v2524_v44  ;;  %v2531_v54 = vunpack.c.h.bf16 %v2529_v5  ;;  %v2535_v26 = vld [vmem:[#allocation10_spill] sm:$0xff] }
  0x31   :  { %v2073_v47 = vmul.f32 %v918_v10, %v2525_v46  ;;  %v2077_v1 = vmul.f32 %v935_v34, %v2527_v52  ;;  %v2081_v50 = vmul.f32 %v952_v37, %v2528_v19  ;;  %v2085_v58 = vmul.f32 %v969_v14, %v2530_v53  ;;  %v2541_v19 = vld [vmem:[#allocation5_spill] sm:$0xff] }
  0x32   :  { %v2089_v61 = vmul.f32 %v986_v59, %v2531_v54  ;;  %v158_v3 = vrot.slane %v2532_v56, %v1549_v12  ;;  %v162_v21 = vrot.slane %v2532_v56, %v2533_v20  ;;  %v740_v57 = vrot.slane %v732_v33, %v1709_v55 }
  0x33   :  { %v747_v22 = vrot.slane %v733_v36, %v1709_v55  ;;  %v166_v23 = vrot.slane %v2532_v56, %v2534_v6  ;;  %v170_v24 = vrot.slane %v2532_v56, %v1558_v15  ;;  %v783_v25 = vcombine.low %v1988_v51, %v1993_v4 }
  0x34   :  { %v784_v7 = vcombine.low %v1996_v40, %v1999_v18  ;;  %v174_v27 = vrot.slane %v2535_v26, %v1549_v12  ;;  %v178_v28 = vrot.slane %v2535_v26, %v2533_v20  ;;  %v757_v8 = vrot.slane %v749_v38, %v1709_v55 }
  0x35   :  { %v764_v10 = vrot.slane %v750_v39, %v1709_v55  ;;  %v182_v51 = vrot.slane %v2535_v26, %v2534_v6  ;;  %v731_v4 = vcombine.low %v723_v41, %v730_v42  ;;  %v774_v40 = vrot.slane %v766_v13, %v1709_v55  ;;  %v2537_v13 = vld [vmem:[#allocation4_spill] sm:$0xff] }
  0x36   :  { %v781_v18 = vrot.slane %v767_v62, %v1709_v55  ;;  %v186_v30 = vrot.slane %v2535_v26, %v1558_v15  ;;  %v478_v2 = vrot.slane %v158_v3, %v1549_v12  ;;  %v482_v31 = vrot.slane %v162_v21, %v1549_v12 }
  0x37   :  { %v748_v9 = vcombine.low %v740_v57, %v747_v22  ;;  %v486_v11 = vrot.slane %v166_v23, %v1549_v12  ;;  %v490_v32 = vrot.slane %v170_v24, %v1549_v12  ;;  %v791_v33 = vrot.slane %v783_v25, %v1709_v55 }
  0x38   :  { %v798_v34 = vrot.slane %v784_v7, %v1709_v55  ;;  %v23_v16 = vunpack.c.l.bf16 %v2114_v29  ;;  %v2130_v36 = vunpack.c.h.bf16 %v2536_v35  ;;  %v2133_v37 = vrot.slane %v174_v27, %v1549_v12 }
  0x39   :  { %v765_v17 = vcombine.low %v757_v8, %v764_v10  ;;  %v2136_v48 = vrot.slane %v178_v28, %v1549_v12  ;;  %v2139_v38 = vrot.slane %v182_v51, %v1549_v12  ;;  %v782_v39 = vcombine.low %v774_v40, %v781_v18 }
  0x3a   :  { %v2538_v14 = vunpack.c.l.bf16 %v2537_v13  ;;  %v2144_v42 = vrot.slane %v186_v30, %v1549_v12  ;;  %v800_v62 = vcombine.low %v478_v2, %v482_v31  ;;  %v2539_v59 = vunpack.c.h.bf16 %v2537_v13 }
  0x3b   :  { %v1171_v63 = vcombine.high %v1011_v60, %v1011_v60  ;;  %v799_v44 = vcombine.low %v791_v33, %v798_v34  ;;  %v801_v46 = vcombine.low %v486_v11, %v490_v32  ;;  %v2149_v52 = vrot.slane %v1011_v60, %v1709_v55 }
  0x3c   :  { %v1003_v41 = vmul.f32 %v731_v4, %v2538_v14  ;;  %v1004_v0 = vmul.f32 %v748_v9, %v2539_v59  ;;  %v2542_v5 = vunpack.c.l.bf16 %v2541_v19  ;;  %v1188_v56 = vcombine.high %v1012_v43, %v1012_v43 }
  0x3d   :  { %2540 = vst [vmem:[#allocation6_spill] sm:$0xff] %v2149_v52  ;;  %v2154_v54 = vrot.slane %v1171_v63, %v1709_v55  ;;  %v2157_v3 = vrot.slane %v1012_v43, %v1709_v55  ;;  %v2543_v21 = vunpack.c.h.bf16 %v2541_v19  ;;  %v1205_v23 = vcombine.high %v1013_v45, %v1013_v45 }
  0x3e   :  { %v1035_v49 = vcombine.high %v1003_v41, %v1003_v41  ;;  %v1005_v53 = vmul.f32 %v765_v17, %v2542_v5  ;;  %v1042_v22 = vrot.slane %v1003_v41, %v1709_v55  ;;  %v2163_v24 = vrot.slane %v1013_v45, %v1709_v55 }
  0x3f   :  { %v1006_v57 = vmul.f32 %v782_v39, %v2543_v21  ;;  %v1052_v60 = vcombine.high %v1004_v0, %v1004_v0  ;;  %v1059_v25 = vrot.slane %v1004_v0, %v1709_v55  ;;  %v2167_v7 = vrot.slane %v1188_v56, %v1709_v55 }
  0x40   :  { %v1222_v26 = vcombine.high %v2073_v47, %v2073_v47  ;;  %v1049_v43 = vrot.slane %v1035_v49, %v1709_v55  ;;  %v2173_v27 = vrot.slane %v1205_v23, %v1709_v55  ;;  %v2177_v28 = vrot.slane %v2073_v47, %v1709_v55 }
  0x41   :  { %v1239_v45 = vcombine.high %v2077_v1, %v2077_v1  ;;  %v1069_v8 = vcombine.high %v1005_v53, %v1005_v53  ;;  %v2186_v51 = vrot.slane %v2077_v1, %v1709_v55  ;;  %v1256_v4 = vcombine.high %v2081_v50, %v2081_v50 }
  0x42   :  { %v2182_v10 = vrot.slane %v1222_v26, %v1709_v55  ;;  %v1050_v40 = vcombine.high %v1042_v22, %v1042_v22  ;;  %v1076_v18 = vrot.slane %v1005_v53, %v1709_v55  ;;  %v2196_v30 = vrot.slane %v2081_v50, %v1709_v55 }
  0x43   :  { %v2192_v47 = vrot.slane %v1239_v45, %v1709_v55  ;;  %v1086_v2 = vcombine.high %v1006_v57, %v1006_v57  ;;  %v2199_v31 = vrot.slane %v1006_v57, %v1709_v55  ;;  %v2202_v1 = vrot.slane %v1256_v4, %v1709_v55 }
  0x44   :  { %v1273_v9 = vcombine.high %v2085_v58, %v2085_v58  ;;  %v1051_v11 = vcombine.high %v1049_v43, %v1049_v43  ;;  %v1066_v32 = vrot.slane %v1052_v60, %v1709_v55  ;;  %v2209_v33 = vrot.slane %v2085_v58, %v1709_v55 }
  0x45   :  { %v1290_v50 = vcombine.high %v2089_v61, %v2089_v61  ;;  %v1083_v34 = vrot.slane %v1069_v8, %v1709_v55  ;;  %v2219_v17 = vrot.slane %v2089_v61, %v1709_v55  ;;  %v1372_v39 = vsel %vm1371_vm0, %v1042_v22, 0.0 }
  0x46   :  { %v2215_v35 = vrot.slane %v1273_v9, %v1709_v55  ;;  %v2223_v13 = vrot.slane %v800_v62, %v1709_v55  ;;  %v1373_v14 = vsel %vm1371_vm0, %v1050_v40, 0.0  ;;  %v1375_v41 = vsel %vm1371_vm0, %v1049_v43, 0.0 }
  0x47   :  { %v2226_v58 = vrot.slane %v1290_v50, %v1709_v55  ;;  %v2231_v59 = vrot.slane %v801_v46, %v1709_v55  ;;  %v2233_v0 = vmul.f32 %v799_v44, %v23_v16  ;;  %v1067_v63 = vcombine.high %v1059_v25, %v1059_v25 }
  0x48   :  { %v1374_v61 = vadd.f32 %v1373_v14, %v1372_v39  ;;  %v1084_v49 = vcombine.high %v1076_v18, %v1076_v18  ;;  %v2236_v19 = vrot.slane %v1086_v2, %v1709_v55  ;;  %v1377_v5 = vsel %vm1371_vm0, %v1051_v11, 0.0 }
  0x49   :  { %v1068_v53 = vcombine.high %v1066_v32, %v1066_v32  ;;  %v1085_v56 = vcombine.high %v1083_v34, %v1083_v34  ;;  %v1186_v21 = vcombine.high %v2149_v52, %v2149_v52  ;;  %v1187_v16 = vcombine.high %v2154_v54, %v2154_v54 }
  0x4a   :  { %v1376_v46 = vadd.f32 %v1375_v41, %v1374_v61  ;;  %v1203_v44 = vcombine.high %v2157_v3, %v2157_v3  ;;  %v1220_v57 = vcombine.high %v2163_v24, %v2163_v24  ;;  %v1379_v22 = vsel %vm1371_vm0, %v1059_v25, 0.0 }
  0x4b   :  { %v1204_v23 = vcombine.high %v2167_v7, %v2167_v7  ;;  %v1221_v60 = vcombine.high %v2173_v27, %v2173_v27  ;;  %v1237_v26 = vcombine.high %v2177_v28, %v2177_v28  ;;  %v1238_v45 = vcombine.high %v2182_v10, %v2182_v10 }
  0x4c   :  { %v1378_v43 = vadd.f32 %v1377_v5, %v1376_v46  ;;  %v1254_v8 = vcombine.high %v2186_v51, %v2186_v51  ;;  %v1255_v4 = vcombine.high %v2192_v47, %v2192_v47  ;;  %v1381_v25 = vsel %vm1371_vm0, %v1067_v63, 0.0 }
  0x4d   :  { %v1271_v40 = vcombine.high %v2196_v30, %v2196_v30  ;;  %v1272_v2 = vcombine.high %v2202_v1, %v2202_v1  ;;  %v1288_v9 = vcombine.high %v2209_v33, %v2209_v33  ;;  %v1289_v50 = vcombine.high %v2215_v35, %v2215_v35 }
  0x4e   :  { %v1380_v11 = vadd.f32 %v1379_v22, %v1378_v43  ;;  %v1305_v39 = vcombine.high %v2219_v17, %v2219_v17  ;;  %v1306_v14 = vcombine.high %v2226_v58, %v2226_v58  ;;  %v1383_v41 = vsel %vm1371_vm0, %v1066_v32, 0.0 }
  0x4f   :  { %v1385_v61 = vsel %vm1371_vm0, %v1068_v53, 0.0  ;;  %v1387_v5 = vsel %vm1371_vm0, %v1076_v18, 0.0  ;;  %v1389_v46 = vsel %vm1371_vm0, %v1084_v49, 0.0  ;;  %v1391_v22 = vsel %vm1371_vm0, %v1083_v34, 0.0 }
  0x50   :  { %v1382_v63 = vadd.f32 %v1381_v25, %v1380_v11  ;;  %v1393_v43 = vsel %vm1371_vm0, %v1085_v56, 0.0  ;;  %v2282_v62 = vsel %vm1371_vm0, %v1186_v21, 0.0  ;;  %v2286_v52 = vsel %vm1371_vm0, %v2154_v54, 0.0 }
  0x51   :  { %v2289_v32 = vsel %vm1371_vm0, %v1187_v16, 0.0  ;;  %v2293_v18 = vsel %vm1371_vm0, %v2157_v3, 0.0  ;;  %v2296_v49 = vsel %vm1371_vm0, %v1203_v44, 0.0  ;;  %v2300_v34 = vsel %vm1371_vm0, %v2167_v7, 0.0 }
  0x52   :  { %v1384_v55 = vadd.f32 %v1383_v41, %v1382_v63  ;;  %v2303_v53 = vsel %vm1371_vm0, %v1204_v23, 0.0  ;;  %v2307_v54 = vsel %vm1371_vm0, %v2163_v24, 0.0  ;;  %v2310_v56 = vsel %vm1371_vm0, %v1220_v57, 0.0 }
  0x53   :  { %v2314_v3 = vsel %vm1371_vm0, %v2173_v27, 0.0  ;;  %v2317_v16 = vsel %vm1371_vm0, %v1221_v60, 0.0  ;;  %v2321_v7 = vsel %vm1371_vm0, %v2177_v28, 0.0  ;;  %v2324_v44 = vsel %vm1371_vm0, %v1237_v26, 0.0 }
  0x54   :  { %v1386_v21 = vadd.f32 %v1385_v61, %v1384_v55  ;;  %v2328_v24 = vsel %vm1371_vm0, %v2182_v10, 0.0  ;;  %v2331_v55 = vsel %vm1371_vm0, %v1238_v45, 0.0  ;;  %v2335_v27 = vsel %vm1371_vm0, %v2186_v51, 0.0 }
  0x55   :  { %v2338_v23 = vsel %vm1371_vm0, %v1254_v8, 0.0  ;;  %v2342_v28 = vsel %vm1371_vm0, %v2192_v47, 0.0  ;;  %v2345_v60 = vsel %vm1371_vm0, %v1255_v4, 0.0  ;;  %v2349_v10 = vsel %vm1371_vm0, %v2196_v30, 0.0 }
  0x56   :  { %v1388_v57 = vadd.f32 %v1387_v5, %v1386_v21  ;;  %v2352_v26 = vsel %vm1371_vm0, %v1271_v40, 0.0  ;;  %v2356_v51 = vsel %vm1371_vm0, %v2202_v1, 0.0  ;;  %v2359_v45 = vsel %vm1371_vm0, %v1272_v2, 0.0  ;;  %v14_v5 = vld [vmem:[%s2490_s0 + $0x18] sm:$0xff] }
  0x57   :  { %v2363_v47 = vsel %vm1371_vm0, %v2209_v33, 0.0  ;;  %v2366_v4 = vsel %vm1371_vm0, %v1288_v9, 0.0  ;;  %v2370_v30 = vsel %vm1371_vm0, %v2215_v35, 0.0  ;;  %v2373_v25 = vsel %vm1371_vm0, %v1289_v50, 0.0 }
  0x58   :  { %v1390_v8 = vadd.f32 %v1389_v46, %v1388_v57  ;;  %v2377_v1 = vsel %vm1371_vm0, %v2219_v17, 0.0  ;;  %v2380_v40 = vsel %vm1371_vm0, %v1305_v39, 0.0  ;;  %v2384_v33 = vsel %vm1371_vm0, %v2226_v58, 0.0 }
  0x59   :  { %v24_v2 = vunpack.c.h.bf16 %v2114_v29  ;;  %v190_v35 = vrot.slane %v2130_v36, %v1549_v12  ;;  %v2390_v11 = vsel %vm1371_vm0, %v1306_v14, 0.0  ;;  %v194_v17 = vrot.slane %v2130_v36, %v2533_v20 }
  0x5a   :  { %v1392_v9 = vadd.f32 %v1391_v22, %v1390_v8  ;;  %v198_v50 = vrot.slane %v2130_v36, %v2534_v6  ;;  %v202_v39 = vrot.slane %v2130_v36, %v1558_v15  ;;  %v1395_v58 = vsel %vm1371_vm0, %v2199_v31, 0.0  ;;  %v2544_v15 = vld [vmem:[#allocation11_spill] sm:$0xff] }
  0x5b   :  { %v816_v29 = vcombine.low %v2223_v13, %v2231_v59  ;;  %v817_v41 = vcombine.low %v2133_v37, %v2136_v48  ;;  %v818_v14 = vcombine.low %v2139_v38, %v2144_v42  ;;  %v1102_v20 = vcombine.high %v2236_v19, %v2236_v19 }
  0x5c   :  { %v1394_v63 = vadd.f32 %v1393_v43, %v1392_v9  ;;  %v1103_v6 = vcombine.high %v2233_v0, %v2233_v0  ;;  %v1110_v36 = vrot.slane %v2233_v0, %v2544_v15  ;;  %v2545_v61 = vcombine.high %v2199_v31, %v2199_v31 }
  0x5d   :  { %v510_v37 = vrot.slane %v190_v35, %v1549_v12  ;;  %v514_v48 = vrot.slane %v194_v17, %v1549_v12  ;;  %v518_v38 = vrot.slane %v198_v50, %v1549_v12  ;;  %v1399_v42 = vsel %vm1371_vm0, %v2236_v19, 0.0 }
  0x5e   :  { %v1397_v13 = vsel %vm1371_vm0, %v2545_v61, 0.0  ;;  %v1396_v59 = vadd.f32 %v1395_v58, %v1394_v63  ;;  %v522_v0 = vrot.slane %v202_v39, %v1549_v12  ;;  %v825_v31 = vrot.slane %v817_v41, %v2544_v15 }
  0x5f   :  { %v832_v46 = vrot.slane %v818_v14, %v2544_v15  ;;  %v1008_v43 = vmul.f32 %v816_v29, %v24_v2  ;;  %v1117_v21 = vrot.slane %v1103_v6, %v2544_v15  ;;  %v1118_v57 = vcombine.high %v1110_v36, %v1110_v36 }
  0x60   :  { %v1398_v22 = vadd.f32 %v1397_v13, %v1396_v59  ;;  %v1401_v8 = vsel %vm1371_vm0, %v1102_v20, 0.0  ;;  %v25_v9 = vunpack.c.l.bf16 %v14_v5  ;;  %v1403_v19 = vsel %vm1371_vm0, %v1110_v36, 0.0 }
  0x61   :  { %v833_v17 = vcombine.low %v825_v31, %v832_v46  ;;  %v834_v50 = vcombine.low %v510_v37, %v514_v48  ;;  %v835_v58 = vcombine.low %v518_v38, %v522_v0  ;;  %v1119_v12 = vcombine.high %v1117_v21, %v1117_v21 }
  0x62   :  { %v1400_v35 = vadd.f32 %v1399_v42, %v1398_v22  ;;  %v1120_v39 = vcombine.high %v1008_v43, %v1008_v43  ;;  %v1127_v41 = vrot.slane %v1008_v43, %v2544_v15  ;;  %v1405_v14 = vsel %vm1371_vm0, %v1118_v57, 0.0 }
  0x63   :  { %v1407_v29 = vsel %vm1371_vm0, %v1117_v21, 0.0  ;;  %v842_v6 = vrot.slane %v834_v50, %v2544_v15  ;;  %v849_v20 = vrot.slane %v835_v58, %v2544_v15  ;;  %v1009_v13 = vmul.f32 %v833_v17, %v25_v9 }
  0x64   :  { %v1402_v63 = vadd.f32 %v1401_v8, %v1400_v35  ;;  %v1134_v36 = vrot.slane %v1120_v39, %v2544_v15  ;;  %v1135_v59 = vcombine.high %v1127_v41, %v1127_v41  ;;  %v1409_v37 = vsel %vm1371_vm0, %v1119_v12, 0.0 }
  0x65   :  { %v1411_v38 = vsel %vm1371_vm0, %v1127_v41, 0.0  ;;  %v26_v42 = vunpack.c.h.bf16 %v14_v5  ;;  %v850_v0 = vcombine.low %v842_v6, %v849_v20  ;;  %v1137_v22 = vcombine.high %v1009_v13, %v1009_v13 }
  0x66   :  { %v1404_v2 = vadd.f32 %v1403_v19, %v1402_v63  ;;  %v1136_v46 = vcombine.high %v1134_v36, %v1134_v36  ;;  %v1144_v43 = vrot.slane %v1009_v13, %v2544_v15  ;;  %v1413_v21 = vsel %vm1371_vm0, %v1135_v59, 0.0 }
  0x67   :  { %v1415_v8 = vsel %vm1371_vm0, %v1134_v36, 0.0  ;;  %v1010_v9 = vmul.f32 %v850_v0, %v26_v42  ;;  %v1151_v19 = vrot.slane %v1137_v22, %v2544_v15 }
  0x68   :  { %v1406_v61 = vadd.f32 %v1405_v14, %v1404_v2  ;;  %v1152_v17 = vcombine.high %v1144_v43, %v1144_v43  ;;  %v1417_v50 = vsel %vm1371_vm0, %v1136_v46, 0.0  ;;  %v1419_v5 = vsel %vm1371_vm0, %v1144_v43, 0.0  ;;  %v2546_v43 = vld [vmem:[#allocation6_spill] sm:$0xff] }
  0x69   :  { %v1153_v12 = vcombine.high %v1151_v19, %v1151_v19  ;;  %v1154_v39 = vcombine.high %v1010_v9, %v1010_v9  ;;  %v1161_v41 = vrot.slane %v1010_v9, %v2544_v15 }
  0x6a   :  { %v1408_v48 = vadd.f32 %v1407_v29, %v1406_v61  ;;  %v1421_v14 = vsel %vm1371_vm0, %v1152_v17, 0.0  ;;  %v1423_v29 = vsel %vm1371_vm0, %v1151_v19, 0.0 }
  0x6b   :  { %v1168_v20 = vrot.slane %v1154_v39, %v2544_v15  ;;  %v1169_v61 = vcombine.high %v1161_v41, %v1161_v41  ;;  %v1425_v13 = vsel %vm1371_vm0, %v1153_v12, 0.0  ;;  %v1427_v59 = vsel %vm1371_vm0, %v1161_v41, 0.0 }
  0x6c   :  { %v1410_v31 = vadd.f32 %v1409_v37, %v1408_v48  ;;  %v1435_v15 = vsel %vm1371_vm0, %v2546_v43, 0.0 }
  0x6d   :  { %v1170_v48 = vcombine.high %v1168_v20, %v1168_v20  ;;  %v1431_v0 = vsel %vm1371_vm0, %v1168_v20, 0.0 }
  0x6e   :  { %v1412_v57 = vadd.f32 %v1411_v38, %v1410_v31  ;;  %v1429_v38 = vsel %vm1371_vm0, %v1169_v61, 0.0 }
  0x6f   :  { %v1433_v46 = vsel %vm1371_vm0, %v1170_v48, 0.0 }
  0x70   :  { %v1414_v35 = vadd.f32 %v1413_v21, %v1412_v57 }
  0x72   :  { %v1416_v58 = vadd.f32 %v1415_v8, %v1414_v35 }
  0x74   :  { %v1418_v63 = vadd.f32 %v1417_v50, %v1416_v58 }
  0x76   :  { %v1420_v2 = vadd.f32 %v1419_v5, %v1418_v63 }
  0x78   :  { %v1422_v6 = vadd.f32 %v1421_v14, %v1420_v2 }
  0x7a   :  { %v1424_v36 = vadd.f32 %v1423_v29, %v1422_v6 }
  0x7c   :  { %v1426_v37 = vadd.f32 %v1425_v13, %v1424_v36 }
  0x7e   :  { %v1428_v42 = vadd.f32 %v1427_v59, %v1426_v37 }
  0x80   :  { %v1430_v31 = vadd.f32 %v1429_v38, %v1428_v42 }
  0x82   :  { %v1432_v22 = vadd.f32 %v1431_v0, %v1430_v31 }
  0x84   :  { %v1434_v21 = vadd.f32 %v1433_v46, %v1432_v22 }
  0x86   :  { %v1436_v57 = vadd.f32 %v1435_v15, %v1434_v21 }
  0x88   :  { %v1438_v8 = vadd.f32 %v2282_v62, %v1436_v57 }
  0x8a   :  { %v1440_v35 = vadd.f32 %v2286_v52, %v1438_v8 }
  0x8c   :  { %v1442_v9 = vadd.f32 %v2289_v32, %v1440_v35 }
  0x8e   :  { %v1444_v19 = vadd.f32 %v2293_v18, %v1442_v9 }
  0x90   :  { %v1446_v17 = vadd.f32 %v2296_v49, %v1444_v19 }
  0x92   :  { %v1448_v50 = vadd.f32 %v2300_v34, %v1446_v17 }
  0x94   :  { %v1450_v58 = vadd.f32 %v2303_v53, %v1448_v50 }
  0x96   :  { %v1452_v5 = vadd.f32 %v2307_v54, %v1450_v58 }
  0x98   :  { %v1454_v63 = vadd.f32 %v2310_v56, %v1452_v5 }
  0x9a   :  { %v1456_v12 = vadd.f32 %v2314_v3, %v1454_v63 }
  0x9c   :  { %v1458_v62 = vadd.f32 %v2317_v16, %v1456_v12 }
  0x9e   :  { %v1460_v52 = vadd.f32 %v2321_v7, %v1458_v62 }
  0xa0   :  { %v1462_v32 = vadd.f32 %v2324_v44, %v1460_v52 }
  0xa2   :  { %v1464_v18 = vadd.f32 %v2328_v24, %v1462_v32 }
  0xa4   :  { %v1466_v49 = vadd.f32 %v2331_v55, %v1464_v18 }
  0xa6   :  { %v1468_v34 = vadd.f32 %v2335_v27, %v1466_v49 }
  0xa8   :  { %v1470_v53 = vadd.f32 %v2338_v23, %v1468_v34 }
  0xaa   :  { %v1472_v54 = vadd.f32 %v2342_v28, %v1470_v53 }
  0xac   :  { %v1474_v56 = vadd.f32 %v2345_v60, %v1472_v54 }
  0xae   :  { %v1476_v3 = vadd.f32 %v2349_v10, %v1474_v56 }
  0xb0   :  { %v1478_v16 = vadd.f32 %v2352_v26, %v1476_v3 }
  0xb2   :  { %v1480_v7 = vadd.f32 %v2356_v51, %v1478_v16 }
  0xb4   :  { %v1482_v44 = vadd.f32 %v2359_v45, %v1480_v7 }
  0xb6   :  { %v1484_v24 = vadd.f32 %v2363_v47, %v1482_v44 }
  0xb8   :  { %v1486_v55 = vadd.f32 %v2366_v4, %v1484_v24 }
  0xba   :  { %v1488_v27 = vadd.f32 %v2370_v30, %v1486_v55 }
  0xbc   :  { %v1490_v23 = vadd.f32 %v2373_v25, %v1488_v27 }
  0xbe   :  { %v1492_v28 = vadd.f32 %v2377_v1, %v1490_v23 }
  0xc0   :  { %v1494_v60 = vadd.f32 %v2380_v40, %v1492_v28 }
  0xc2   :  { %v1496_v10 = vadd.f32 %v2384_v33, %v1494_v60 }
  0xc4   :  { %v1498_v26 = vadd.f32 %v2390_v11, %v1496_v10 }
  0xc6   :  { %1499 = vadd.xlane.f32.xlu0 %v1498_v26 }
 0x153   :  { %v1500_v51 = vpop.xlane.xlu0 %1499 }
 0x154   :  { %1502 = vst.msk [vmem:[%s2491_s2] sm:$0x3] %vm1501_vm1, %v1500_v51 }

// kernel: discriminator_forward.8
= control target key start
LH: loop header
LB: loop body
LE: loop exit
PB: predicated region body
PF: predicated region fallthrough
CT: control target
= control target key end

     0   :  { %s10509_s12 = smov 0   ;;  %s10511_s13 = smov 0   ;;  %s12457_s0 = inlined_call_operand.vmem [shape: bf16[32,4096], index: 0, kind: input, shape index: {}]   ;;  %s12458_s1 = inlined_call_operand.vmem [shape: bf16[4096,512], index: 1, kind: input, shape index: {}]   ;;  %s12459_s2 = inlined_call_operand.vmem [shape: f32[1,512], index: 2, kind: input, shape index: {}]   ;;  %s12460_s3 = inlined_call_operand.vmem [shape: bf16[32,512], index: 3, kind: output, shape index: {}]  }
   0x1   :  { %s10513_s14 = smov 0   ;;  %s10515_s15 = smov 0  }
   0x2   :  { %s10517_s16 = smov 0  }
   0x3 LB: > { %s22_s17 = sadd.s32 1, %s10483_s15  ;;  %s8910_s18 = sadd.s32 4294967295, %s10487_s16   ;;  %s10487_s16 = sphi %s10517_s16, %s13_s16   ;;  %s10483_s15 = sphi %s10515_s15, %s12465_s15   ;;  %s10479_s14 = sphi %s10513_s14, %s12464_s14   ;;  %s10475_s13 = sphi %s10511_s13, %s12463_s13   ;;  %s10471_s12 = sphi %s10509_s12, %s12462_s12  }
   0x4   : > { %p23_p0 = scmp.ge.s32.totalorder %s22_s17, 2  ;;  %p65_p1 = scmp.ne.s32.totalorder %s10475_s13, %s10471_s12 }
   0x5   : > { %p66_p2 = scmp.eq.s32.totalorder %s10487_s16, 0  ;;  %p123_p4 = scmp.eq.s32.totalorder %s8910_s18, 1 }
   0x6   : > { %s12467_s17 = smov (%p23_p0, %s22_s17), 0  ;;  %s58_s20 = sadd.s32 1, %s10475_s13 }
   0x7   : > { %p67_p3 = por %p66_p2, %p65_p1  ;;  %s55_s19 = ssub.s32 %s10483_s15, %s12467_s17 }
   0x8   : > { %p56_p5 = scmp.eq.s32.totalorder %s55_s19, 0  ;;  %p10544_p6 = por %p123_p4, %p65_p1 }
   0x9   : > { %p8914_p7 = scmp.ge.s32.totalorder %s10487_s16, 2 }
   0xa   : > { %s10549_s22 = scalar_select %p56_p5, %s10475_s13, %s58_s20  }
   0xb   : > { %155 = sbr.rel (%p8914_p7) target bundleno = 278 (0x116), region = 20 }
  0x12   : > { %158 = sbr.rel (!%p67_p3) target bundleno = 278 (0x116), region = 24  ;;  %s160_s23 = sand.u32 (%p67_p3), 1, %s10475_s13  }
  0x13   : > { %s9507_s24 = sshll.u32 (%p67_p3), %s10483_s15, 3  ;;  %s8915_s25 = sshll.u32 (%p67_p3), %s160_s23, 12 }
  0x14   : > { %s10557_s28 = scalar_lea.vmem (%p67_p3), %s12458_s1, %s9507_s24  ;;  %s10562_s29 = scalar_lea.vmem (%p67_p3), [#allocation2], %s8915_s25 }
  0x15   : > { %v1218_v0 = vld [vmem:[%s10557_s28] sm:$0xff] (%p67_p3)  ;;  %v1220_v1 = vld [vmem:[%s10557_s28 + $0x10] sm:$0xff] (%p67_p3) }
  0x16   : > { %v1222_v2 = vld [vmem:[%s10557_s28 + $0x20] sm:$0xff] (%p67_p3)  ;;  %1219 = vst [vmem:[%s10562_s29] sm:$0xff] (%p67_p3), %v1218_v0  ;;  %1221 = vst [vmem:[%s10562_s29 + $0x8] sm:$0xff] (%p67_p3), %v1220_v1  ;;  %v1224_v3 = vld [vmem:[%s10557_s28 + $0x30] sm:$0xff] (%p67_p3) }
  0x17   : > { %1223 = vst [vmem:[%s10562_s29 + $0x10] sm:$0xff] (%p67_p3), %v1222_v2  ;;  %v1226_v4 = vld [vmem:[%s10557_s28 + $0x40] sm:$0xff] (%p67_p3)  ;;  %v1228_v5 = vld [vmem:[%s10557_s28 + $0x50] sm:$0xff] (%p67_p3)  ;;  %1225 = vst [vmem:[%s10562_s29 + $0x18] sm:$0xff] (%p67_p3), %v1224_v3 }
  0x18   : > { %1227 = vst [vmem:[%s10562_s29 + $0x20] sm:$0xff] (%p67_p3), %v1226_v4  ;;  %1229 = vst [vmem:[%s10562_s29 + $0x28] sm:$0xff] (%p67_p3), %v1228_v5  ;;  %v1230_v6 = vld [vmem:[%s10557_s28 + $0x60] sm:$0xff] (%p67_p3)  ;;  %v1232_v7 = vld [vmem:[%s10557_s28 + $0x70] sm:$0xff] (%p67_p3) }
  0x19   : > { %v1234_v8 = vld [vmem:[%s10557_s28 + $0x80] sm:$0xff]  ;;  %1231 = vst [vmem:[%s10562_s29 + $0x30] sm:$0xff] %v1230_v6  ;;  %1233 = vst [vmem:[%s10562_s29 + $0x38] sm:$0xff] %v1232_v7  ;;  %v1236_v9 = vld [vmem:[%s10557_s28 + $0x90] sm:$0xff] }
  0x1a   : > { %1235 = vst [vmem:[%s10562_s29 + $0x40] sm:$0xff] %v1234_v8  ;;  %v1238_v10 = vld [vmem:[%s10557_s28 + $0xa0] sm:$0xff]  ;;  %v1240_v11 = vld [vmem:[%s10557_s28 + $0xb0] sm:$0xff]  ;;  %1237 = vst [vmem:[%s10562_s29 + $0x48] sm:$0xff] %v1236_v9 }
  0x1b   : > { %1239 = vst [vmem:[%s10562_s29 + $0x50] sm:$0xff] %v1238_v10  ;;  %1241 = vst [vmem:[%s10562_s29 + $0x58] sm:$0xff] %v1240_v11  ;;  %v1242_v12 = vld [vmem:[%s10557_s28 + $0xc0] sm:$0xff]  ;;  %v1244_v13 = vld [vmem:[%s10557_s28 + $0xd0] sm:$0xff] }
  0x1c   : > { %v1246_v14 = vld [vmem:[%s10557_s28 + $0xe0] sm:$0xff]  ;;  %1243 = vst [vmem:[%s10562_s29 + $0x60] sm:$0xff] %v1242_v12  ;;  %1245 = vst [vmem:[%s10562_s29 + $0x68] sm:$0xff] %v1244_v13  ;;  %v1248_v15 = vld [vmem:[%s10557_s28 + $0xf0] sm:$0xff] }
  0x1d   : > { %1247 = vst [vmem:[%s10562_s29 + $0x70] sm:$0xff] %v1246_v14  ;;  %v1250_v16 = vld [vmem:[%s10557_s28 + $0x100] sm:$0xff]  ;;  %v1252_v17 = vld [vmem:[%s10557_s28 + $0x110] sm:$0xff]  ;;  %1249 = vst [vmem:[%s10562_s29 + $0x78] sm:$0xff] %v1248_v15 }
  0x1e   : > { %1251 = vst [vmem:[%s10562_s29 + $0x80] sm:$0xff] %v1250_v16  ;;  %1253 = vst [vmem:[%s10562_s29 + $0x88] sm:$0xff] %v1252_v17  ;;  %v1254_v18 = vld [vmem:[%s10557_s28 + $0x120] sm:$0xff]  ;;  %v1256_v19 = vld [vmem:[%s10557_s28 + $0x130] sm:$0xff] }
  0x1f   : > { %v1258_v20 = vld [vmem:[%s10557_s28 + $0x140] sm:$0xff]  ;;  %1255 = vst [vmem:[%s10562_s29 + $0x90] sm:$0xff] %v1254_v18  ;;  %1257 = vst [vmem:[%s10562_s29 + $0x98] sm:$0xff] %v1256_v19  ;;  %v1260_v21 = vld [vmem:[%s10557_s28 + $0x150] sm:$0xff] }
  0x20   : > { %1259 = vst [vmem:[%s10562_s29 + $0xa0] sm:$0xff] %v1258_v20  ;;  %v1262_v22 = vld [vmem:[%s10557_s28 + $0x160] sm:$0xff]  ;;  %v1264_v23 = vld [vmem:[%s10557_s28 + $0x170] sm:$0xff]  ;;  %1261 = vst [vmem:[%s10562_s29 + $0xa8] sm:$0xff] %v1260_v21 }
  0x21   : > { %1263 = vst [vmem:[%s10562_s29 + $0xb0] sm:$0xff] %v1262_v22  ;;  %1265 = vst [vmem:[%s10562_s29 + $0xb8] sm:$0xff] %v1264_v23  ;;  %v1266_v24 = vld [vmem:[%s10557_s28 + $0x180] sm:$0xff]  ;;  %v1268_v25 = vld [vmem:[%s10557_s28 + $0x190] sm:$0xff] }
  0x22   : > { %v1270_v26 = vld [vmem:[%s10557_s28 + $0x1a0] sm:$0xff]  ;;  %1267 = vst [vmem:[%s10562_s29 + $0xc0] sm:$0xff] %v1266_v24  ;;  %1269 = vst [vmem:[%s10562_s29 + $0xc8] sm:$0xff] %v1268_v25  ;;  %v1272_v27 = vld [vmem:[%s10557_s28 + $0x1b0] sm:$0xff] }
  0x23   : > { %1271 = vst [vmem:[%s10562_s29 + $0xd0] sm:$0xff] %v1270_v26  ;;  %v1274_v28 = vld [vmem:[%s10557_s28 + $0x1c0] sm:$0xff]  ;;  %v1276_v29 = vld [vmem:[%s10557_s28 + $0x1d0] sm:$0xff]  ;;  %1273 = vst [vmem:[%s10562_s29 + $0xd8] sm:$0xff] %v1272_v27 }
  0x24   : > { %1275 = vst [vmem:[%s10562_s29 + $0xe0] sm:$0xff] %v1274_v28  ;;  %1277 = vst [vmem:[%s10562_s29 + $0xe8] sm:$0xff] %v1276_v29  ;;  %v1278_v30 = vld [vmem:[%s10557_s28 + $0x1e0] sm:$0xff]  ;;  %v1280_v31 = vld [vmem:[%s10557_s28 + $0x1f0] sm:$0xff] }
  0x25   : > { %v1282_v32 = vld [vmem:[%s10557_s28 + $0x200] sm:$0xff]  ;;  %1279 = vst [vmem:[%s10562_s29 + $0xf0] sm:$0xff] %v1278_v30  ;;  %1281 = vst [vmem:[%s10562_s29 + $0xf8] sm:$0xff] %v1280_v31  ;;  %v1284_v33 = vld [vmem:[%s10557_s28 + $0x210] sm:$0xff] }
  0x26   : > { %1283 = vst [vmem:[%s10562_s29 + $0x100] sm:$0xff] %v1282_v32  ;;  %v1286_v34 = vld [vmem:[%s10557_s28 + $0x220] sm:$0xff]  ;;  %v1288_v35 = vld [vmem:[%s10557_s28 + $0x230] sm:$0xff]  ;;  %1285 = vst [vmem:[%s10562_s29 + $0x108] sm:$0xff] %v1284_v33 }
  0x27   : > { %1287 = vst [vmem:[%s10562_s29 + $0x110] sm:$0xff] %v1286_v34  ;;  %1289 = vst [vmem:[%s10562_s29 + $0x118] sm:$0xff] %v1288_v35  ;;  %v1290_v36 = vld [vmem:[%s10557_s28 + $0x240] sm:$0xff]  ;;  %v1292_v37 = vld [vmem:[%s10557_s28 + $0x250] sm:$0xff] }
  0x28   : > { %v1294_v38 = vld [vmem:[%s10557_s28 + $0x260] sm:$0xff]  ;;  %1291 = vst [vmem:[%s10562_s29 + $0x120] sm:$0xff] %v1290_v36  ;;  %1293 = vst [vmem:[%s10562_s29 + $0x128] sm:$0xff] %v1292_v37  ;;  %v1296_v39 = vld [vmem:[%s10557_s28 + $0x270] sm:$0xff] }
  0x29   : > { %1295 = vst [vmem:[%s10562_s29 + $0x130] sm:$0xff] %v1294_v38  ;;  %v1298_v40 = vld [vmem:[%s10557_s28 + $0x280] sm:$0xff]  ;;  %v1300_v41 = vld [vmem:[%s10557_s28 + $0x290] sm:$0xff]  ;;  %1297 = vst [vmem:[%s10562_s29 + $0x138] sm:$0xff] %v1296_v39 }
  0x2a   : > { %1299 = vst [vmem:[%s10562_s29 + $0x140] sm:$0xff] %v1298_v40  ;;  %1301 = vst [vmem:[%s10562_s29 + $0x148] sm:$0xff] %v1300_v41  ;;  %v1302_v42 = vld [vmem:[%s10557_s28 + $0x2a0] sm:$0xff]  ;;  %v1304_v43 = vld [vmem:[%s10557_s28 + $0x2b0] sm:$0xff] }
  0x2b   : > { %v1306_v44 = vld [vmem:[%s10557_s28 + $0x2c0] sm:$0xff]  ;;  %1303 = vst [vmem:[%s10562_s29 + $0x150] sm:$0xff] %v1302_v42  ;;  %1305 = vst [vmem:[%s10562_s29 + $0x158] sm:$0xff] %v1304_v43  ;;  %v1308_v45 = vld [vmem:[%s10557_s28 + $0x2d0] sm:$0xff] }
  0x2c   : > { %1307 = vst [vmem:[%s10562_s29 + $0x160] sm:$0xff] %v1306_v44  ;;  %v1310_v46 = vld [vmem:[%s10557_s28 + $0x2e0] sm:$0xff]  ;;  %v1312_v47 = vld [vmem:[%s10557_s28 + $0x2f0] sm:$0xff]  ;;  %1309 = vst [vmem:[%s10562_s29 + $0x168] sm:$0xff] %v1308_v45 }
  0x2d   : > { %1311 = vst [vmem:[%s10562_s29 + $0x170] sm:$0xff] %v1310_v46  ;;  %1313 = vst [vmem:[%s10562_s29 + $0x178] sm:$0xff] %v1312_v47  ;;  %v1314_v48 = vld [vmem:[%s10557_s28 + $0x300] sm:$0xff]  ;;  %v1316_v49 = vld [vmem:[%s10557_s28 + $0x310] sm:$0xff] }
  0x2e   : > { %v1318_v50 = vld [vmem:[%s10557_s28 + $0x320] sm:$0xff]  ;;  %1315 = vst [vmem:[%s10562_s29 + $0x180] sm:$0xff] %v1314_v48  ;;  %1317 = vst [vmem:[%s10562_s29 + $0x188] sm:$0xff] %v1316_v49  ;;  %v1320_v51 = vld [vmem:[%s10557_s28 + $0x330] sm:$0xff] }
  0x2f   : > { %1319 = vst [vmem:[%s10562_s29 + $0x190] sm:$0xff] %v1318_v50  ;;  %v1322_v52 = vld [vmem:[%s10557_s28 + $0x340] sm:$0xff]  ;;  %v1324_v53 = vld [vmem:[%s10557_s28 + $0x350] sm:$0xff]  ;;  %1321 = vst [vmem:[%s10562_s29 + $0x198] sm:$0xff] %v1320_v51 }
  0x30   : > { %1323 = vst [vmem:[%s10562_s29 + $0x1a0] sm:$0xff] %v1322_v52  ;;  %1325 = vst [vmem:[%s10562_s29 + $0x1a8] sm:$0xff] %v1324_v53  ;;  %v1326_v54 = vld [vmem:[%s10557_s28 + $0x360] sm:$0xff]  ;;  %v1328_v55 = vld [vmem:[%s10557_s28 + $0x370] sm:$0xff] }
  0x31   : > { %v1330_v56 = vld [vmem:[%s10557_s28 + $0x380] sm:$0xff]  ;;  %1327 = vst [vmem:[%s10562_s29 + $0x1b0] sm:$0xff] %v1326_v54  ;;  %1329 = vst [vmem:[%s10562_s29 + $0x1b8] sm:$0xff] %v1328_v55  ;;  %v1332_v57 = vld [vmem:[%s10557_s28 + $0x390] sm:$0xff] }
  0x32   : > { %1331 = vst [vmem:[%s10562_s29 + $0x1c0] sm:$0xff] %v1330_v56  ;;  %v1334_v58 = vld [vmem:[%s10557_s28 + $0x3a0] sm:$0xff]  ;;  %v1336_v59 = vld [vmem:[%s10557_s28 + $0x3b0] sm:$0xff]  ;;  %1333 = vst [vmem:[%s10562_s29 + $0x1c8] sm:$0xff] %v1332_v57 }
  0x33   : > { %1335 = vst [vmem:[%s10562_s29 + $0x1d0] sm:$0xff] %v1334_v58  ;;  %1337 = vst [vmem:[%s10562_s29 + $0x1d8] sm:$0xff] %v1336_v59  ;;  %v1338_v60 = vld [vmem:[%s10557_s28 + $0x3c0] sm:$0xff]  ;;  %v1340_v61 = vld [vmem:[%s10557_s28 + $0x3d0] sm:$0xff] }
  0x34   : > { %v1342_v62 = vld [vmem:[%s10557_s28 + $0x3e0] sm:$0xff]  ;;  %1339 = vst [vmem:[%s10562_s29 + $0x1e0] sm:$0xff] %v1338_v60  ;;  %1341 = vst [vmem:[%s10562_s29 + $0x1e8] sm:$0xff] %v1340_v61  ;;  %v1344_v63 = vld [vmem:[%s10557_s28 + $0x3f0] sm:$0xff] }
  0x35   : > { %1343 = vst [vmem:[%s10562_s29 + $0x1f0] sm:$0xff] %v1342_v62  ;;  %v1346_v0 = vld [vmem:[%s10557_s28 + $0x400] sm:$0xff]  ;;  %v1348_v1 = vld [vmem:[%s10557_s28 + $0x410] sm:$0xff]  ;;  %1345 = vst [vmem:[%s10562_s29 + $0x1f8] sm:$0xff] %v1344_v63 }
  0x36   : > { %1347 = vst [vmem:[%s10562_s29 + $0x200] sm:$0xff] %v1346_v0  ;;  %1349 = vst [vmem:[%s10562_s29 + $0x208] sm:$0xff] %v1348_v1  ;;  %v1350_v2 = vld [vmem:[%s10557_s28 + $0x420] sm:$0xff]  ;;  %v1352_v3 = vld [vmem:[%s10557_s28 + $0x430] sm:$0xff] }
  0x37   : > { %v1354_v4 = vld [vmem:[%s10557_s28 + $0x440] sm:$0xff]  ;;  %1351 = vst [vmem:[%s10562_s29 + $0x210] sm:$0xff] %v1350_v2  ;;  %1353 = vst [vmem:[%s10562_s29 + $0x218] sm:$0xff] %v1352_v3  ;;  %v1356_v5 = vld [vmem:[%s10557_s28 + $0x450] sm:$0xff] }
  0x38   : > { %1355 = vst [vmem:[%s10562_s29 + $0x220] sm:$0xff] %v1354_v4  ;;  %v1358_v6 = vld [vmem:[%s10557_s28 + $0x460] sm:$0xff]  ;;  %v1360_v7 = vld [vmem:[%s10557_s28 + $0x470] sm:$0xff]  ;;  %1357 = vst [vmem:[%s10562_s29 + $0x228] sm:$0xff] %v1356_v5 }
  0x39   : > { %1359 = vst [vmem:[%s10562_s29 + $0x230] sm:$0xff] %v1358_v6  ;;  %1361 = vst [vmem:[%s10562_s29 + $0x238] sm:$0xff] %v1360_v7  ;;  %v1362_v8 = vld [vmem:[%s10557_s28 + $0x480] sm:$0xff]  ;;  %v1364_v9 = vld [vmem:[%s10557_s28 + $0x490] sm:$0xff] }
  0x3a   : > { %v1366_v10 = vld [vmem:[%s10557_s28 + $0x4a0] sm:$0xff]  ;;  %1363 = vst [vmem:[%s10562_s29 + $0x240] sm:$0xff] %v1362_v8  ;;  %1365 = vst [vmem:[%s10562_s29 + $0x248] sm:$0xff] %v1364_v9  ;;  %v1368_v11 = vld [vmem:[%s10557_s28 + $0x4b0] sm:$0xff] }
  0x3b   : > { %1367 = vst [vmem:[%s10562_s29 + $0x250] sm:$0xff] %v1366_v10  ;;  %v1370_v12 = vld [vmem:[%s10557_s28 + $0x4c0] sm:$0xff]  ;;  %v1372_v13 = vld [vmem:[%s10557_s28 + $0x4d0] sm:$0xff]  ;;  %1369 = vst [vmem:[%s10562_s29 + $0x258] sm:$0xff] %v1368_v11 }
  0x3c   : > { %1371 = vst [vmem:[%s10562_s29 + $0x260] sm:$0xff] %v1370_v12  ;;  %1373 = vst [vmem:[%s10562_s29 + $0x268] sm:$0xff] %v1372_v13  ;;  %v1374_v14 = vld [vmem:[%s10557_s28 + $0x4e0] sm:$0xff]  ;;  %v1376_v15 = vld [vmem:[%s10557_s28 + $0x4f0] sm:$0xff] }
  0x3d   : > { %v1378_v16 = vld [vmem:[%s10557_s28 + $0x500] sm:$0xff]  ;;  %1375 = vst [vmem:[%s10562_s29 + $0x270] sm:$0xff] %v1374_v14  ;;  %1377 = vst [vmem:[%s10562_s29 + $0x278] sm:$0xff] %v1376_v15  ;;  %v1380_v17 = vld [vmem:[%s10557_s28 + $0x510] sm:$0xff] }
  0x3e   : > { %1379 = vst [vmem:[%s10562_s29 + $0x280] sm:$0xff] %v1378_v16  ;;  %v1382_v18 = vld [vmem:[%s10557_s28 + $0x520] sm:$0xff]  ;;  %v1384_v19 = vld [vmem:[%s10557_s28 + $0x530] sm:$0xff]  ;;  %1381 = vst [vmem:[%s10562_s29 + $0x288] sm:$0xff] %v1380_v17 }
  0x3f   : > { %1383 = vst [vmem:[%s10562_s29 + $0x290] sm:$0xff] %v1382_v18  ;;  %1385 = vst [vmem:[%s10562_s29 + $0x298] sm:$0xff] %v1384_v19  ;;  %v1386_v20 = vld [vmem:[%s10557_s28 + $0x540] sm:$0xff]  ;;  %v1388_v21 = vld [vmem:[%s10557_s28 + $0x550] sm:$0xff] }
  0x40   : > { %v1390_v22 = vld [vmem:[%s10557_s28 + $0x560] sm:$0xff]  ;;  %1387 = vst [vmem:[%s10562_s29 + $0x2a0] sm:$0xff] %v1386_v20  ;;  %1389 = vst [vmem:[%s10562_s29 + $0x2a8] sm:$0xff] %v1388_v21  ;;  %v1392_v23 = vld [vmem:[%s10557_s28 + $0x570] sm:$0xff] }
  0x41   : > { %1391 = vst [vmem:[%s10562_s29 + $0x2b0] sm:$0xff] %v1390_v22  ;;  %v1394_v24 = vld [vmem:[%s10557_s28 + $0x580] sm:$0xff]  ;;  %v1396_v25 = vld [vmem:[%s10557_s28 + $0x590] sm:$0xff]  ;;  %1393 = vst [vmem:[%s10562_s29 + $0x2b8] sm:$0xff] %v1392_v23 }
  0x42   : > { %1395 = vst [vmem:[%s10562_s29 + $0x2c0] sm:$0xff] %v1394_v24  ;;  %1397 = vst [vmem:[%s10562_s29 + $0x2c8] sm:$0xff] %v1396_v25  ;;  %v1398_v26 = vld [vmem:[%s10557_s28 + $0x5a0] sm:$0xff]  ;;  %v1400_v27 = vld [vmem:[%s10557_s28 + $0x5b0] sm:$0xff] }
  0x43   : > { %v1402_v28 = vld [vmem:[%s10557_s28 + $0x5c0] sm:$0xff]  ;;  %1399 = vst [vmem:[%s10562_s29 + $0x2d0] sm:$0xff] %v1398_v26  ;;  %1401 = vst [vmem:[%s10562_s29 + $0x2d8] sm:$0xff] %v1400_v27  ;;  %v1404_v29 = vld [vmem:[%s10557_s28 + $0x5d0] sm:$0xff] }
  0x44   : > { %1403 = vst [vmem:[%s10562_s29 + $0x2e0] sm:$0xff] %v1402_v28  ;;  %v1406_v30 = vld [vmem:[%s10557_s28 + $0x5e0] sm:$0xff]  ;;  %v1408_v31 = vld [vmem:[%s10557_s28 + $0x5f0] sm:$0xff]  ;;  %1405 = vst [vmem:[%s10562_s29 + $0x2e8] sm:$0xff] %v1404_v29 }
  0x45   : > { %1407 = vst [vmem:[%s10562_s29 + $0x2f0] sm:$0xff] %v1406_v30  ;;  %1409 = vst [vmem:[%s10562_s29 + $0x2f8] sm:$0xff] %v1408_v31  ;;  %v1410_v32 = vld [vmem:[%s10557_s28 + $0x600] sm:$0xff]  ;;  %v1412_v33 = vld [vmem:[%s10557_s28 + $0x610] sm:$0xff] }
  0x46   : > { %v1414_v34 = vld [vmem:[%s10557_s28 + $0x620] sm:$0xff]  ;;  %1411 = vst [vmem:[%s10562_s29 + $0x300] sm:$0xff] %v1410_v32  ;;  %1413 = vst [vmem:[%s10562_s29 + $0x308] sm:$0xff] %v1412_v33  ;;  %v1416_v35 = vld [vmem:[%s10557_s28 + $0x630] sm:$0xff] }
  0x47   : > { %1415 = vst [vmem:[%s10562_s29 + $0x310] sm:$0xff] %v1414_v34  ;;  %v1418_v36 = vld [vmem:[%s10557_s28 + $0x640] sm:$0xff]  ;;  %v1420_v37 = vld [vmem:[%s10557_s28 + $0x650] sm:$0xff]  ;;  %1417 = vst [vmem:[%s10562_s29 + $0x318] sm:$0xff] %v1416_v35 }
  0x48   : > { %1419 = vst [vmem:[%s10562_s29 + $0x320] sm:$0xff] %v1418_v36  ;;  %1421 = vst [vmem:[%s10562_s29 + $0x328] sm:$0xff] %v1420_v37  ;;  %v1422_v38 = vld [vmem:[%s10557_s28 + $0x660] sm:$0xff]  ;;  %v1424_v39 = vld [vmem:[%s10557_s28 + $0x670] sm:$0xff] }
  0x49   : > { %v1426_v40 = vld [vmem:[%s10557_s28 + $0x680] sm:$0xff]  ;;  %1423 = vst [vmem:[%s10562_s29 + $0x330] sm:$0xff] %v1422_v38  ;;  %1425 = vst [vmem:[%s10562_s29 + $0x338] sm:$0xff] %v1424_v39  ;;  %v1428_v41 = vld [vmem:[%s10557_s28 + $0x690] sm:$0xff] }
  0x4a   : > { %1427 = vst [vmem:[%s10562_s29 + $0x340] sm:$0xff] %v1426_v40  ;;  %v1430_v42 = vld [vmem:[%s10557_s28 + $0x6a0] sm:$0xff]  ;;  %v1432_v43 = vld [vmem:[%s10557_s28 + $0x6b0] sm:$0xff]  ;;  %1429 = vst [vmem:[%s10562_s29 + $0x348] sm:$0xff] %v1428_v41 }
  0x4b   : > { %1431 = vst [vmem:[%s10562_s29 + $0x350] sm:$0xff] %v1430_v42  ;;  %1433 = vst [vmem:[%s10562_s29 + $0x358] sm:$0xff] %v1432_v43  ;;  %v1434_v44 = vld [vmem:[%s10557_s28 + $0x6c0] sm:$0xff]  ;;  %v1436_v45 = vld [vmem:[%s10557_s28 + $0x6d0] sm:$0xff] }
  0x4c   : > { %v1438_v46 = vld [vmem:[%s10557_s28 + $0x6e0] sm:$0xff]  ;;  %1435 = vst [vmem:[%s10562_s29 + $0x360] sm:$0xff] %v1434_v44  ;;  %1437 = vst [vmem:[%s10562_s29 + $0x368] sm:$0xff] %v1436_v45  ;;  %v1440_v47 = vld [vmem:[%s10557_s28 + $0x6f0] sm:$0xff] }
  0x4d   : > { %1439 = vst [vmem:[%s10562_s29 + $0x370] sm:$0xff] %v1438_v46  ;;  %v1442_v48 = vld [vmem:[%s10557_s28 + $0x700] sm:$0xff]  ;;  %v1444_v49 = vld [vmem:[%s10557_s28 + $0x710] sm:$0xff]  ;;  %1441 = vst [vmem:[%s10562_s29 + $0x378] sm:$0xff] %v1440_v47 }
  0x4e   : > { %1443 = vst [vmem:[%s10562_s29 + $0x380] sm:$0xff] %v1442_v48  ;;  %1445 = vst [vmem:[%s10562_s29 + $0x388] sm:$0xff] %v1444_v49  ;;  %v1446_v50 = vld [vmem:[%s10557_s28 + $0x720] sm:$0xff]  ;;  %v1448_v51 = vld [vmem:[%s10557_s28 + $0x730] sm:$0xff] }
  0x4f   : > { %v1450_v52 = vld [vmem:[%s10557_s28 + $0x740] sm:$0xff]  ;;  %1447 = vst [vmem:[%s10562_s29 + $0x390] sm:$0xff] %v1446_v50  ;;  %1449 = vst [vmem:[%s10562_s29 + $0x398] sm:$0xff] %v1448_v51  ;;  %v1452_v53 = vld [vmem:[%s10557_s28 + $0x750] sm:$0xff] }
  0x50   : > { %1451 = vst [vmem:[%s10562_s29 + $0x3a0] sm:$0xff] %v1450_v52  ;;  %v1454_v54 = vld [vmem:[%s10557_s28 + $0x760] sm:$0xff]  ;;  %v1456_v55 = vld [vmem:[%s10557_s28 + $0x770] sm:$0xff]  ;;  %1453 = vst [vmem:[%s10562_s29 + $0x3a8] sm:$0xff] %v1452_v53 }
  0x51   : > { %1455 = vst [vmem:[%s10562_s29 + $0x3b0] sm:$0xff] %v1454_v54  ;;  %1457 = vst [vmem:[%s10562_s29 + $0x3b8] sm:$0xff] %v1456_v55  ;;  %v1458_v56 = vld [vmem:[%s10557_s28 + $0x780] sm:$0xff]  ;;  %v1460_v57 = vld [vmem:[%s10557_s28 + $0x790] sm:$0xff] }
  0x52   : > { %v1462_v58 = vld [vmem:[%s10557_s28 + $0x7a0] sm:$0xff]  ;;  %1459 = vst [vmem:[%s10562_s29 + $0x3c0] sm:$0xff] %v1458_v56  ;;  %1461 = vst [vmem:[%s10562_s29 + $0x3c8] sm:$0xff] %v1460_v57  ;;  %v1464_v59 = vld [vmem:[%s10557_s28 + $0x7b0] sm:$0xff] }
  0x53   : > { %1463 = vst [vmem:[%s10562_s29 + $0x3d0] sm:$0xff] %v1462_v58  ;;  %v1466_v60 = vld [vmem:[%s10557_s28 + $0x7c0] sm:$0xff]  ;;  %v1468_v61 = vld [vmem:[%s10557_s28 + $0x7d0] sm:$0xff]  ;;  %1465 = vst [vmem:[%s10562_s29 + $0x3d8] sm:$0xff] %v1464_v59 }
  0x54   : > { %1467 = vst [vmem:[%s10562_s29 + $0x3e0] sm:$0xff] %v1466_v60  ;;  %1469 = vst [vmem:[%s10562_s29 + $0x3e8] sm:$0xff] %v1468_v61  ;;  %v1470_v62 = vld [vmem:[%s10557_s28 + $0x7e0] sm:$0xff]  ;;  %v1472_v63 = vld [vmem:[%s10557_s28 + $0x7f0] sm:$0xff] }
  0x55   : > { %v1474_v0 = vld [vmem:[%s10557_s28 + $0x800] sm:$0xff]  ;;  %1471 = vst [vmem:[%s10562_s29 + $0x3f0] sm:$0xff] %v1470_v62  ;;  %1473 = vst [vmem:[%s10562_s29 + $0x3f8] sm:$0xff] %v1472_v63  ;;  %v1476_v1 = vld [vmem:[%s10557_s28 + $0x810] sm:$0xff] }
  0x56   : > { %1475 = vst [vmem:[%s10562_s29 + $0x400] sm:$0xff] %v1474_v0  ;;  %v1478_v2 = vld [vmem:[%s10557_s28 + $0x820] sm:$0xff]  ;;  %v1480_v3 = vld [vmem:[%s10557_s28 + $0x830] sm:$0xff]  ;;  %1477 = vst [vmem:[%s10562_s29 + $0x408] sm:$0xff] %v1476_v1 }
  0x57   : > { %1479 = vst [vmem:[%s10562_s29 + $0x410] sm:$0xff] %v1478_v2  ;;  %1481 = vst [vmem:[%s10562_s29 + $0x418] sm:$0xff] %v1480_v3  ;;  %v1482_v4 = vld [vmem:[%s10557_s28 + $0x840] sm:$0xff]  ;;  %v1484_v5 = vld [vmem:[%s10557_s28 + $0x850] sm:$0xff] }
  0x58   : > { %v1486_v6 = vld [vmem:[%s10557_s28 + $0x860] sm:$0xff]  ;;  %1483 = vst [vmem:[%s10562_s29 + $0x420] sm:$0xff] %v1482_v4  ;;  %1485 = vst [vmem:[%s10562_s29 + $0x428] sm:$0xff] %v1484_v5  ;;  %v1488_v7 = vld [vmem:[%s10557_s28 + $0x870] sm:$0xff] }
  0x59   : > { %1487 = vst [vmem:[%s10562_s29 + $0x430] sm:$0xff] %v1486_v6  ;;  %v1490_v8 = vld [vmem:[%s10557_s28 + $0x880] sm:$0xff]  ;;  %v1492_v9 = vld [vmem:[%s10557_s28 + $0x890] sm:$0xff]  ;;  %1489 = vst [vmem:[%s10562_s29 + $0x438] sm:$0xff] %v1488_v7 }
  0x5a   : > { %1491 = vst [vmem:[%s10562_s29 + $0x440] sm:$0xff] %v1490_v8  ;;  %1493 = vst [vmem:[%s10562_s29 + $0x448] sm:$0xff] %v1492_v9  ;;  %v1494_v10 = vld [vmem:[%s10557_s28 + $0x8a0] sm:$0xff]  ;;  %v1496_v11 = vld [vmem:[%s10557_s28 + $0x8b0] sm:$0xff] }
  0x5b   : > { %v1498_v12 = vld [vmem:[%s10557_s28 + $0x8c0] sm:$0xff]  ;;  %1495 = vst [vmem:[%s10562_s29 + $0x450] sm:$0xff] %v1494_v10  ;;  %1497 = vst [vmem:[%s10562_s29 + $0x458] sm:$0xff] %v1496_v11  ;;  %v1500_v13 = vld [vmem:[%s10557_s28 + $0x8d0] sm:$0xff] }
  0x5c   : > { %1499 = vst [vmem:[%s10562_s29 + $0x460] sm:$0xff] %v1498_v12  ;;  %v1502_v14 = vld [vmem:[%s10557_s28 + $0x8e0] sm:$0xff]  ;;  %v1504_v15 = vld [vmem:[%s10557_s28 + $0x8f0] sm:$0xff]  ;;  %1501 = vst [vmem:[%s10562_s29 + $0x468] sm:$0xff] %v1500_v13 }
  0x5d   : > { %1503 = vst [vmem:[%s10562_s29 + $0x470] sm:$0xff] %v1502_v14  ;;  %1505 = vst [vmem:[%s10562_s29 + $0x478] sm:$0xff] %v1504_v15  ;;  %v1506_v16 = vld [vmem:[%s10557_s28 + $0x900] sm:$0xff]  ;;  %v1508_v17 = vld [vmem:[%s10557_s28 + $0x910] sm:$0xff] }
  0x5e   : > { %v1510_v18 = vld [vmem:[%s10557_s28 + $0x920] sm:$0xff]  ;;  %1507 = vst [vmem:[%s10562_s29 + $0x480] sm:$0xff] %v1506_v16  ;;  %1509 = vst [vmem:[%s10562_s29 + $0x488] sm:$0xff] %v1508_v17  ;;  %v1512_v19 = vld [vmem:[%s10557_s28 + $0x930] sm:$0xff] }
  0x5f   : > { %1511 = vst [vmem:[%s10562_s29 + $0x490] sm:$0xff] %v1510_v18  ;;  %v1514_v20 = vld [vmem:[%s10557_s28 + $0x940] sm:$0xff]  ;;  %v1516_v21 = vld [vmem:[%s10557_s28 + $0x950] sm:$0xff]  ;;  %1513 = vst [vmem:[%s10562_s29 + $0x498] sm:$0xff] %v1512_v19 }
  0x60   : > { %1515 = vst [vmem:[%s10562_s29 + $0x4a0] sm:$0xff] %v1514_v20  ;;  %1517 = vst [vmem:[%s10562_s29 + $0x4a8] sm:$0xff] %v1516_v21  ;;  %v1518_v22 = vld [vmem:[%s10557_s28 + $0x960] sm:$0xff]  ;;  %v1520_v23 = vld [vmem:[%s10557_s28 + $0x970] sm:$0xff] }
  0x61   : > { %v1522_v24 = vld [vmem:[%s10557_s28 + $0x980] sm:$0xff]  ;;  %1519 = vst [vmem:[%s10562_s29 + $0x4b0] sm:$0xff] %v1518_v22  ;;  %1521 = vst [vmem:[%s10562_s29 + $0x4b8] sm:$0xff] %v1520_v23  ;;  %v1524_v25 = vld [vmem:[%s10557_s28 + $0x990] sm:$0xff] }
  0x62   : > { %1523 = vst [vmem:[%s10562_s29 + $0x4c0] sm:$0xff] %v1522_v24  ;;  %v1526_v26 = vld [vmem:[%s10557_s28 + $0x9a0] sm:$0xff]  ;;  %v1528_v27 = vld [vmem:[%s10557_s28 + $0x9b0] sm:$0xff]  ;;  %1525 = vst [vmem:[%s10562_s29 + $0x4c8] sm:$0xff] %v1524_v25 }
  0x63   : > { %1527 = vst [vmem:[%s10562_s29 + $0x4d0] sm:$0xff] %v1526_v26  ;;  %1529 = vst [vmem:[%s10562_s29 + $0x4d8] sm:$0xff] %v1528_v27  ;;  %v1530_v28 = vld [vmem:[%s10557_s28 + $0x9c0] sm:$0xff]  ;;  %v1532_v29 = vld [vmem:[%s10557_s28 + $0x9d0] sm:$0xff] }
  0x64   : > { %v1534_v30 = vld [vmem:[%s10557_s28 + $0x9e0] sm:$0xff]  ;;  %1531 = vst [vmem:[%s10562_s29 + $0x4e0] sm:$0xff] %v1530_v28  ;;  %1533 = vst [vmem:[%s10562_s29 + $0x4e8] sm:$0xff] %v1532_v29  ;;  %v1536_v31 = vld [vmem:[%s10557_s28 + $0x9f0] sm:$0xff] }
  0x65   : > { %1535 = vst [vmem:[%s10562_s29 + $0x4f0] sm:$0xff] %v1534_v30  ;;  %v1538_v32 = vld [vmem:[%s10557_s28 + $0xa00] sm:$0xff]  ;;  %v1540_v33 = vld [vmem:[%s10557_s28 + $0xa10] sm:$0xff]  ;;  %1537 = vst [vmem:[%s10562_s29 + $0x4f8] sm:$0xff] %v1536_v31 }
  0x66   : > { %1539 = vst [vmem:[%s10562_s29 + $0x500] sm:$0xff] %v1538_v32  ;;  %1541 = vst [vmem:[%s10562_s29 + $0x508] sm:$0xff] %v1540_v33  ;;  %v1542_v34 = vld [vmem:[%s10557_s28 + $0xa20] sm:$0xff]  ;;  %v1544_v35 = vld [vmem:[%s10557_s28 + $0xa30] sm:$0xff] }
  0x67   : > { %v1546_v36 = vld [vmem:[%s10557_s28 + $0xa40] sm:$0xff]  ;;  %1543 = vst [vmem:[%s10562_s29 + $0x510] sm:$0xff] %v1542_v34  ;;  %1545 = vst [vmem:[%s10562_s29 + $0x518] sm:$0xff] %v1544_v35  ;;  %v1548_v37 = vld [vmem:[%s10557_s28 + $0xa50] sm:$0xff] }
  0x68   : > { %1547 = vst [vmem:[%s10562_s29 + $0x520] sm:$0xff] %v1546_v36  ;;  %v1550_v38 = vld [vmem:[%s10557_s28 + $0xa60] sm:$0xff]  ;;  %v1552_v39 = vld [vmem:[%s10557_s28 + $0xa70] sm:$0xff]  ;;  %1549 = vst [vmem:[%s10562_s29 + $0x528] sm:$0xff] %v1548_v37 }
  0x69   : > { %1551 = vst [vmem:[%s10562_s29 + $0x530] sm:$0xff] %v1550_v38  ;;  %1553 = vst [vmem:[%s10562_s29 + $0x538] sm:$0xff] %v1552_v39  ;;  %v1554_v40 = vld [vmem:[%s10557_s28 + $0xa80] sm:$0xff]  ;;  %v1556_v41 = vld [vmem:[%s10557_s28 + $0xa90] sm:$0xff] }
  0x6a   : > { %v1558_v42 = vld [vmem:[%s10557_s28 + $0xaa0] sm:$0xff]  ;;  %1555 = vst [vmem:[%s10562_s29 + $0x540] sm:$0xff] %v1554_v40  ;;  %1557 = vst [vmem:[%s10562_s29 + $0x548] sm:$0xff] %v1556_v41  ;;  %v1560_v43 = vld [vmem:[%s10557_s28 + $0xab0] sm:$0xff] }
  0x6b   : > { %1559 = vst [vmem:[%s10562_s29 + $0x550] sm:$0xff] %v1558_v42  ;;  %v1562_v44 = vld [vmem:[%s10557_s28 + $0xac0] sm:$0xff]  ;;  %v1564_v45 = vld [vmem:[%s10557_s28 + $0xad0] sm:$0xff]  ;;  %1561 = vst [vmem:[%s10562_s29 + $0x558] sm:$0xff] %v1560_v43 }
  0x6c   : > { %1563 = vst [vmem:[%s10562_s29 + $0x560] sm:$0xff] %v1562_v44  ;;  %1565 = vst [vmem:[%s10562_s29 + $0x568] sm:$0xff] %v1564_v45  ;;  %v1566_v46 = vld [vmem:[%s10557_s28 + $0xae0] sm:$0xff]  ;;  %v1568_v47 = vld [vmem:[%s10557_s28 + $0xaf0] sm:$0xff] }
  0x6d   : > { %v1570_v48 = vld [vmem:[%s10557_s28 + $0xb00] sm:$0xff]  ;;  %1567 = vst [vmem:[%s10562_s29 + $0x570] sm:$0xff] %v1566_v46  ;;  %1569 = vst [vmem:[%s10562_s29 + $0x578] sm:$0xff] %v1568_v47  ;;  %v1572_v49 = vld [vmem:[%s10557_s28 + $0xb10] sm:$0xff] }
  0x6e   : > { %1571 = vst [vmem:[%s10562_s29 + $0x580] sm:$0xff] %v1570_v48  ;;  %v1574_v50 = vld [vmem:[%s10557_s28 + $0xb20] sm:$0xff]  ;;  %v1576_v51 = vld [vmem:[%s10557_s28 + $0xb30] sm:$0xff]  ;;  %1573 = vst [vmem:[%s10562_s29 + $0x588] sm:$0xff] %v1572_v49 }
  0x6f   : > { %1575 = vst [vmem:[%s10562_s29 + $0x590] sm:$0xff] %v1574_v50  ;;  %1577 = vst [vmem:[%s10562_s29 + $0x598] sm:$0xff] %v1576_v51  ;;  %v1578_v52 = vld [vmem:[%s10557_s28 + $0xb40] sm:$0xff]  ;;  %v1580_v53 = vld [vmem:[%s10557_s28 + $0xb50] sm:$0xff] }
  0x70   : > { %v1582_v54 = vld [vmem:[%s10557_s28 + $0xb60] sm:$0xff]  ;;  %1579 = vst [vmem:[%s10562_s29 + $0x5a0] sm:$0xff] %v1578_v52  ;;  %1581 = vst [vmem:[%s10562_s29 + $0x5a8] sm:$0xff] %v1580_v53  ;;  %v1584_v55 = vld [vmem:[%s10557_s28 + $0xb70] sm:$0xff] }
  0x71   : > { %1583 = vst [vmem:[%s10562_s29 + $0x5b0] sm:$0xff] %v1582_v54  ;;  %v1586_v56 = vld [vmem:[%s10557_s28 + $0xb80] sm:$0xff]  ;;  %v1588_v57 = vld [vmem:[%s10557_s28 + $0xb90] sm:$0xff]  ;;  %1585 = vst [vmem:[%s10562_s29 + $0x5b8] sm:$0xff] %v1584_v55 }
  0x72   : > { %1587 = vst [vmem:[%s10562_s29 + $0x5c0] sm:$0xff] %v1586_v56  ;;  %1589 = vst [vmem:[%s10562_s29 + $0x5c8] sm:$0xff] %v1588_v57  ;;  %v1590_v58 = vld [vmem:[%s10557_s28 + $0xba0] sm:$0xff]  ;;  %v1592_v59 = vld [vmem:[%s10557_s28 + $0xbb0] sm:$0xff] }
  0x73   : > { %v1594_v60 = vld [vmem:[%s10557_s28 + $0xbc0] sm:$0xff]  ;;  %1591 = vst [vmem:[%s10562_s29 + $0x5d0] sm:$0xff] %v1590_v58  ;;  %1593 = vst [vmem:[%s10562_s29 + $0x5d8] sm:$0xff] %v1592_v59  ;;  %v1596_v61 = vld [vmem:[%s10557_s28 + $0xbd0] sm:$0xff] }
  0x74   : > { %1595 = vst [vmem:[%s10562_s29 + $0x5e0] sm:$0xff] %v1594_v60  ;;  %v1598_v62 = vld [vmem:[%s10557_s28 + $0xbe0] sm:$0xff]  ;;  %v1600_v63 = vld [vmem:[%s10557_s28 + $0xbf0] sm:$0xff]  ;;  %1597 = vst [vmem:[%s10562_s29 + $0x5e8] sm:$0xff] %v1596_v61 }
  0x75   : > { %1599 = vst [vmem:[%s10562_s29 + $0x5f0] sm:$0xff] %v1598_v62  ;;  %1601 = vst [vmem:[%s10562_s29 + $0x5f8] sm:$0xff] %v1600_v63  ;;  %v1602_v0 = vld [vmem:[%s10557_s28 + $0xc00] sm:$0xff]  ;;  %v1604_v1 = vld [vmem:[%s10557_s28 + $0xc10] sm:$0xff] }
  0x76   : > { %v1606_v2 = vld [vmem:[%s10557_s28 + $0xc20] sm:$0xff]  ;;  %1603 = vst [vmem:[%s10562_s29 + $0x600] sm:$0xff] %v1602_v0  ;;  %1605 = vst [vmem:[%s10562_s29 + $0x608] sm:$0xff] %v1604_v1  ;;  %v1608_v3 = vld [vmem:[%s10557_s28 + $0xc30] sm:$0xff] }
  0x77   : > { %1607 = vst [vmem:[%s10562_s29 + $0x610] sm:$0xff] %v1606_v2  ;;  %v1610_v4 = vld [vmem:[%s10557_s28 + $0xc40] sm:$0xff]  ;;  %v1612_v5 = vld [vmem:[%s10557_s28 + $0xc50] sm:$0xff]  ;;  %1609 = vst [vmem:[%s10562_s29 + $0x618] sm:$0xff] %v1608_v3 }
  0x78   : > { %1611 = vst [vmem:[%s10562_s29 + $0x620] sm:$0xff] %v1610_v4  ;;  %1613 = vst [vmem:[%s10562_s29 + $0x628] sm:$0xff] %v1612_v5  ;;  %v1614_v6 = vld [vmem:[%s10557_s28 + $0xc60] sm:$0xff]  ;;  %v1616_v7 = vld [vmem:[%s10557_s28 + $0xc70] sm:$0xff] }
  0x79   : > { %v1618_v8 = vld [vmem:[%s10557_s28 + $0xc80] sm:$0xff]  ;;  %1615 = vst [vmem:[%s10562_s29 + $0x630] sm:$0xff] %v1614_v6  ;;  %1617 = vst [vmem:[%s10562_s29 + $0x638] sm:$0xff] %v1616_v7  ;;  %v1620_v9 = vld [vmem:[%s10557_s28 + $0xc90] sm:$0xff] }
  0x7a   : > { %1619 = vst [vmem:[%s10562_s29 + $0x640] sm:$0xff] %v1618_v8  ;;  %v1622_v10 = vld [vmem:[%s10557_s28 + $0xca0] sm:$0xff]  ;;  %v1624_v11 = vld [vmem:[%s10557_s28 + $0xcb0] sm:$0xff]  ;;  %1621 = vst [vmem:[%s10562_s29 + $0x648] sm:$0xff] %v1620_v9 }
  0x7b   : > { %1623 = vst [vmem:[%s10562_s29 + $0x650] sm:$0xff] %v1622_v10  ;;  %1625 = vst [vmem:[%s10562_s29 + $0x658] sm:$0xff] %v1624_v11  ;;  %v1626_v12 = vld [vmem:[%s10557_s28 + $0xcc0] sm:$0xff]  ;;  %v1628_v13 = vld [vmem:[%s10557_s28 + $0xcd0] sm:$0xff] }
  0x7c   : > { %v1630_v14 = vld [vmem:[%s10557_s28 + $0xce0] sm:$0xff]  ;;  %1627 = vst [vmem:[%s10562_s29 + $0x660] sm:$0xff] %v1626_v12  ;;  %1629 = vst [vmem:[%s10562_s29 + $0x668] sm:$0xff] %v1628_v13  ;;  %v1632_v15 = vld [vmem:[%s10557_s28 + $0xcf0] sm:$0xff] }
  0x7d   : > { %1631 = vst [vmem:[%s10562_s29 + $0x670] sm:$0xff] %v1630_v14  ;;  %v1634_v16 = vld [vmem:[%s10557_s28 + $0xd00] sm:$0xff]  ;;  %v1636_v17 = vld [vmem:[%s10557_s28 + $0xd10] sm:$0xff]  ;;  %1633 = vst [vmem:[%s10562_s29 + $0x678] sm:$0xff] %v1632_v15 }
  0x7e   : > { %1635 = vst [vmem:[%s10562_s29 + $0x680] sm:$0xff] %v1634_v16  ;;  %1637 = vst [vmem:[%s10562_s29 + $0x688] sm:$0xff] %v1636_v17  ;;  %v1638_v18 = vld [vmem:[%s10557_s28 + $0xd20] sm:$0xff]  ;;  %v1640_v19 = vld [vmem:[%s10557_s28 + $0xd30] sm:$0xff] }
  0x7f   : > { %v1642_v20 = vld [vmem:[%s10557_s28 + $0xd40] sm:$0xff]  ;;  %1639 = vst [vmem:[%s10562_s29 + $0x690] sm:$0xff] %v1638_v18  ;;  %1641 = vst [vmem:[%s10562_s29 + $0x698] sm:$0xff] %v1640_v19  ;;  %v1644_v21 = vld [vmem:[%s10557_s28 + $0xd50] sm:$0xff] }
  0x80   : > { %1643 = vst [vmem:[%s10562_s29 + $0x6a0] sm:$0xff] %v1642_v20  ;;  %v1646_v22 = vld [vmem:[%s10557_s28 + $0xd60] sm:$0xff]  ;;  %v1648_v23 = vld [vmem:[%s10557_s28 + $0xd70] sm:$0xff]  ;;  %1645 = vst [vmem:[%s10562_s29 + $0x6a8] sm:$0xff] %v1644_v21 }
  0x81   : > { %1647 = vst [vmem:[%s10562_s29 + $0x6b0] sm:$0xff] %v1646_v22  ;;  %1649 = vst [vmem:[%s10562_s29 + $0x6b8] sm:$0xff] %v1648_v23  ;;  %v1650_v24 = vld [vmem:[%s10557_s28 + $0xd80] sm:$0xff]  ;;  %v1652_v25 = vld [vmem:[%s10557_s28 + $0xd90] sm:$0xff] }
  0x82   : > { %v1654_v26 = vld [vmem:[%s10557_s28 + $0xda0] sm:$0xff]  ;;  %1651 = vst [vmem:[%s10562_s29 + $0x6c0] sm:$0xff] %v1650_v24  ;;  %1653 = vst [vmem:[%s10562_s29 + $0x6c8] sm:$0xff] %v1652_v25  ;;  %v1656_v27 = vld [vmem:[%s10557_s28 + $0xdb0] sm:$0xff] }
  0x83   : > { %1655 = vst [vmem:[%s10562_s29 + $0x6d0] sm:$0xff] %v1654_v26  ;;  %v1658_v28 = vld [vmem:[%s10557_s28 + $0xdc0] sm:$0xff]  ;;  %v1660_v29 = vld [vmem:[%s10557_s28 + $0xdd0] sm:$0xff]  ;;  %1657 = vst [vmem:[%s10562_s29 + $0x6d8] sm:$0xff] %v1656_v27 }
  0x84   : > { %1659 = vst [vmem:[%s10562_s29 + $0x6e0] sm:$0xff] %v1658_v28  ;;  %1661 = vst [vmem:[%s10562_s29 + $0x6e8] sm:$0xff] %v1660_v29  ;;  %v1662_v30 = vld [vmem:[%s10557_s28 + $0xde0] sm:$0xff]  ;;  %v1664_v31 = vld [vmem:[%s10557_s28 + $0xdf0] sm:$0xff] }
  0x85   : > { %v1666_v32 = vld [vmem:[%s10557_s28 + $0xe00] sm:$0xff]  ;;  %1663 = vst [vmem:[%s10562_s29 + $0x6f0] sm:$0xff] %v1662_v30  ;;  %1665 = vst [vmem:[%s10562_s29 + $0x6f8] sm:$0xff] %v1664_v31  ;;  %v1668_v33 = vld [vmem:[%s10557_s28 + $0xe10] sm:$0xff] }
  0x86   : > { %1667 = vst [vmem:[%s10562_s29 + $0x700] sm:$0xff] %v1666_v32  ;;  %v1670_v34 = vld [vmem:[%s10557_s28 + $0xe20] sm:$0xff]  ;;  %v1672_v35 = vld [vmem:[%s10557_s28 + $0xe30] sm:$0xff]  ;;  %1669 = vst [vmem:[%s10562_s29 + $0x708] sm:$0xff] %v1668_v33 }
  0x87   : > { %1671 = vst [vmem:[%s10562_s29 + $0x710] sm:$0xff] %v1670_v34  ;;  %1673 = vst [vmem:[%s10562_s29 + $0x718] sm:$0xff] %v1672_v35  ;;  %v1674_v36 = vld [vmem:[%s10557_s28 + $0xe40] sm:$0xff]  ;;  %v1676_v37 = vld [vmem:[%s10557_s28 + $0xe50] sm:$0xff] }
  0x88   : > { %v1678_v38 = vld [vmem:[%s10557_s28 + $0xe60] sm:$0xff]  ;;  %1675 = vst [vmem:[%s10562_s29 + $0x720] sm:$0xff] %v1674_v36  ;;  %1677 = vst [vmem:[%s10562_s29 + $0x728] sm:$0xff] %v1676_v37  ;;  %v1680_v39 = vld [vmem:[%s10557_s28 + $0xe70] sm:$0xff] }
  0x89   : > { %1679 = vst [vmem:[%s10562_s29 + $0x730] sm:$0xff] %v1678_v38  ;;  %v1682_v40 = vld [vmem:[%s10557_s28 + $0xe80] sm:$0xff]  ;;  %v1684_v41 = vld [vmem:[%s10557_s28 + $0xe90] sm:$0xff]  ;;  %1681 = vst [vmem:[%s10562_s29 + $0x738] sm:$0xff] %v1680_v39 }
  0x8a   : > { %1683 = vst [vmem:[%s10562_s29 + $0x740] sm:$0xff] %v1682_v40  ;;  %1685 = vst [vmem:[%s10562_s29 + $0x748] sm:$0xff] %v1684_v41  ;;  %v1686_v42 = vld [vmem:[%s10557_s28 + $0xea0] sm:$0xff]  ;;  %v1688_v43 = vld [vmem:[%s10557_s28 + $0xeb0] sm:$0xff] }
  0x8b   : > { %v1690_v44 = vld [vmem:[%s10557_s28 + $0xec0] sm:$0xff]  ;;  %1687 = vst [vmem:[%s10562_s29 + $0x750] sm:$0xff] %v1686_v42  ;;  %1689 = vst [vmem:[%s10562_s29 + $0x758] sm:$0xff] %v1688_v43  ;;  %v1692_v45 = vld [vmem:[%s10557_s28 + $0xed0] sm:$0xff] }
  0x8c   : > { %1691 = vst [vmem:[%s10562_s29 + $0x760] sm:$0xff] %v1690_v44  ;;  %v1694_v46 = vld [vmem:[%s10557_s28 + $0xee0] sm:$0xff]  ;;  %v1696_v47 = vld [vmem:[%s10557_s28 + $0xef0] sm:$0xff]  ;;  %1693 = vst [vmem:[%s10562_s29 + $0x768] sm:$0xff] %v1692_v45 }
  0x8d   : > { %1695 = vst [vmem:[%s10562_s29 + $0x770] sm:$0xff] %v1694_v46  ;;  %1697 = vst [vmem:[%s10562_s29 + $0x778] sm:$0xff] %v1696_v47  ;;  %v1698_v48 = vld [vmem:[%s10557_s28 + $0xf00] sm:$0xff]  ;;  %v1700_v49 = vld [vmem:[%s10557_s28 + $0xf10] sm:$0xff] }
  0x8e   : > { %v1702_v50 = vld [vmem:[%s10557_s28 + $0xf20] sm:$0xff]  ;;  %1699 = vst [vmem:[%s10562_s29 + $0x780] sm:$0xff] %v1698_v48  ;;  %1701 = vst [vmem:[%s10562_s29 + $0x788] sm:$0xff] %v1700_v49  ;;  %v1704_v51 = vld [vmem:[%s10557_s28 + $0xf30] sm:$0xff] }
  0x8f   : > { %1703 = vst [vmem:[%s10562_s29 + $0x790] sm:$0xff] %v1702_v50  ;;  %v1706_v52 = vld [vmem:[%s10557_s28 + $0xf40] sm:$0xff]  ;;  %v1708_v53 = vld [vmem:[%s10557_s28 + $0xf50] sm:$0xff]  ;;  %1705 = vst [vmem:[%s10562_s29 + $0x798] sm:$0xff] %v1704_v51 }
  0x90   : > { %1707 = vst [vmem:[%s10562_s29 + $0x7a0] sm:$0xff] %v1706_v52  ;;  %1709 = vst [vmem:[%s10562_s29 + $0x7a8] sm:$0xff] %v1708_v53  ;;  %v1710_v54 = vld [vmem:[%s10557_s28 + $0xf60] sm:$0xff]  ;;  %v1712_v55 = vld [vmem:[%s10557_s28 + $0xf70] sm:$0xff] }
  0x91   : > { %v1714_v56 = vld [vmem:[%s10557_s28 + $0xf80] sm:$0xff]  ;;  %1711 = vst [vmem:[%s10562_s29 + $0x7b0] sm:$0xff] %v1710_v54  ;;  %1713 = vst [vmem:[%s10562_s29 + $0x7b8] sm:$0xff] %v1712_v55  ;;  %v1716_v57 = vld [vmem:[%s10557_s28 + $0xf90] sm:$0xff] }
  0x92   : > { %1715 = vst [vmem:[%s10562_s29 + $0x7c0] sm:$0xff] %v1714_v56  ;;  %v1718_v58 = vld [vmem:[%s10557_s28 + $0xfa0] sm:$0xff]  ;;  %v1720_v59 = vld [vmem:[%s10557_s28 + $0xfb0] sm:$0xff]  ;;  %1717 = vst [vmem:[%s10562_s29 + $0x7c8] sm:$0xff] %v1716_v57 }
  0x93   : > { %1719 = vst [vmem:[%s10562_s29 + $0x7d0] sm:$0xff] %v1718_v58  ;;  %1721 = vst [vmem:[%s10562_s29 + $0x7d8] sm:$0xff] %v1720_v59  ;;  %v1722_v60 = vld [vmem:[%s10557_s28 + $0xfc0] sm:$0xff]  ;;  %v1724_v61 = vld [vmem:[%s10557_s28 + $0xfd0] sm:$0xff] }
  0x94   : > { %v1726_v62 = vld [vmem:[%s10557_s28 + $0xfe0] sm:$0xff]  ;;  %1723 = vst [vmem:[%s10562_s29 + $0x7e0] sm:$0xff] %v1722_v60  ;;  %1725 = vst [vmem:[%s10562_s29 + $0x7e8] sm:$0xff] %v1724_v61  ;;  %v1728_v63 = vld [vmem:[%s10557_s28 + $0xff0] sm:$0xff] }
  0x95   : > { %1727 = vst [vmem:[%s10562_s29 + $0x7f0] sm:$0xff] %v1726_v62  ;;  %v1730_v0 = vld [vmem:[%s10557_s28 + $0x1000] sm:$0xff]  ;;  %v1732_v1 = vld [vmem:[%s10557_s28 + $0x1010] sm:$0xff]  ;;  %1729 = vst [vmem:[%s10562_s29 + $0x7f8] sm:$0xff] %v1728_v63 }
  0x96   : > { %1731 = vst [vmem:[%s10562_s29 + $0x800] sm:$0xff] %v1730_v0  ;;  %1733 = vst [vmem:[%s10562_s29 + $0x808] sm:$0xff] %v1732_v1  ;;  %v1734_v2 = vld [vmem:[%s10557_s28 + $0x1020] sm:$0xff]  ;;  %v1736_v3 = vld [vmem:[%s10557_s28 + $0x1030] sm:$0xff] }
  0x97   : > { %v1738_v4 = vld [vmem:[%s10557_s28 + $0x1040] sm:$0xff]  ;;  %1735 = vst [vmem:[%s10562_s29 + $0x810] sm:$0xff] %v1734_v2  ;;  %1737 = vst [vmem:[%s10562_s29 + $0x818] sm:$0xff] %v1736_v3  ;;  %v1740_v5 = vld [vmem:[%s10557_s28 + $0x1050] sm:$0xff] }
  0x98   : > { %1739 = vst [vmem:[%s10562_s29 + $0x820] sm:$0xff] %v1738_v4  ;;  %v1742_v6 = vld [vmem:[%s10557_s28 + $0x1060] sm:$0xff]  ;;  %v1744_v7 = vld [vmem:[%s10557_s28 + $0x1070] sm:$0xff]  ;;  %1741 = vst [vmem:[%s10562_s29 + $0x828] sm:$0xff] %v1740_v5 }
  0x99   : > { %1743 = vst [vmem:[%s10562_s29 + $0x830] sm:$0xff] %v1742_v6  ;;  %1745 = vst [vmem:[%s10562_s29 + $0x838] sm:$0xff] %v1744_v7  ;;  %v1746_v8 = vld [vmem:[%s10557_s28 + $0x1080] sm:$0xff]  ;;  %v1748_v9 = vld [vmem:[%s10557_s28 + $0x1090] sm:$0xff] }
  0x9a   : > { %v1750_v10 = vld [vmem:[%s10557_s28 + $0x10a0] sm:$0xff]  ;;  %1747 = vst [vmem:[%s10562_s29 + $0x840] sm:$0xff] %v1746_v8  ;;  %1749 = vst [vmem:[%s10562_s29 + $0x848] sm:$0xff] %v1748_v9  ;;  %v1752_v11 = vld [vmem:[%s10557_s28 + $0x10b0] sm:$0xff] }
  0x9b   : > { %1751 = vst [vmem:[%s10562_s29 + $0x850] sm:$0xff] %v1750_v10  ;;  %v1754_v12 = vld [vmem:[%s10557_s28 + $0x10c0] sm:$0xff]  ;;  %v1756_v13 = vld [vmem:[%s10557_s28 + $0x10d0] sm:$0xff]  ;;  %1753 = vst [vmem:[%s10562_s29 + $0x858] sm:$0xff] %v1752_v11 }
  0x9c   : > { %1755 = vst [vmem:[%s10562_s29 + $0x860] sm:$0xff] %v1754_v12  ;;  %1757 = vst [vmem:[%s10562_s29 + $0x868] sm:$0xff] %v1756_v13  ;;  %v1758_v14 = vld [vmem:[%s10557_s28 + $0x10e0] sm:$0xff]  ;;  %v1760_v15 = vld [vmem:[%s10557_s28 + $0x10f0] sm:$0xff] }
  0x9d   : > { %v1762_v16 = vld [vmem:[%s10557_s28 + $0x1100] sm:$0xff]  ;;  %1759 = vst [vmem:[%s10562_s29 + $0x870] sm:$0xff] %v1758_v14  ;;  %1761 = vst [vmem:[%s10562_s29 + $0x878] sm:$0xff] %v1760_v15  ;;  %v1764_v17 = vld [vmem:[%s10557_s28 + $0x1110] sm:$0xff] }
  0x9e   : > { %1763 = vst [vmem:[%s10562_s29 + $0x880] sm:$0xff] %v1762_v16  ;;  %v1766_v18 = vld [vmem:[%s10557_s28 + $0x1120] sm:$0xff]  ;;  %v1768_v19 = vld [vmem:[%s10557_s28 + $0x1130] sm:$0xff]  ;;  %1765 = vst [vmem:[%s10562_s29 + $0x888] sm:$0xff] %v1764_v17 }
  0x9f   : > { %1767 = vst [vmem:[%s10562_s29 + $0x890] sm:$0xff] %v1766_v18  ;;  %1769 = vst [vmem:[%s10562_s29 + $0x898] sm:$0xff] %v1768_v19  ;;  %v1770_v20 = vld [vmem:[%s10557_s28 + $0x1140] sm:$0xff]  ;;  %v1772_v21 = vld [vmem:[%s10557_s28 + $0x1150] sm:$0xff] }
  0xa0   : > { %v1774_v22 = vld [vmem:[%s10557_s28 + $0x1160] sm:$0xff]  ;;  %1771 = vst [vmem:[%s10562_s29 + $0x8a0] sm:$0xff] %v1770_v20  ;;  %1773 = vst [vmem:[%s10562_s29 + $0x8a8] sm:$0xff] %v1772_v21  ;;  %v1776_v23 = vld [vmem:[%s10557_s28 + $0x1170] sm:$0xff] }
  0xa1   : > { %1775 = vst [vmem:[%s10562_s29 + $0x8b0] sm:$0xff] %v1774_v22  ;;  %v1778_v24 = vld [vmem:[%s10557_s28 + $0x1180] sm:$0xff]  ;;  %v1780_v25 = vld [vmem:[%s10557_s28 + $0x1190] sm:$0xff]  ;;  %1777 = vst [vmem:[%s10562_s29 + $0x8b8] sm:$0xff] %v1776_v23 }
  0xa2   : > { %1779 = vst [vmem:[%s10562_s29 + $0x8c0] sm:$0xff] %v1778_v24  ;;  %1781 = vst [vmem:[%s10562_s29 + $0x8c8] sm:$0xff] %v1780_v25  ;;  %v1782_v26 = vld [vmem:[%s10557_s28 + $0x11a0] sm:$0xff]  ;;  %v1784_v27 = vld [vmem:[%s10557_s28 + $0x11b0] sm:$0xff] }
  0xa3   : > { %v1786_v28 = vld [vmem:[%s10557_s28 + $0x11c0] sm:$0xff]  ;;  %1783 = vst [vmem:[%s10562_s29 + $0x8d0] sm:$0xff] %v1782_v26  ;;  %1785 = vst [vmem:[%s10562_s29 + $0x8d8] sm:$0xff] %v1784_v27  ;;  %v1788_v29 = vld [vmem:[%s10557_s28 + $0x11d0] sm:$0xff] }
  0xa4   : > { %1787 = vst [vmem:[%s10562_s29 + $0x8e0] sm:$0xff] %v1786_v28  ;;  %v1790_v30 = vld [vmem:[%s10557_s28 + $0x11e0] sm:$0xff]  ;;  %v1792_v31 = vld [vmem:[%s10557_s28 + $0x11f0] sm:$0xff]  ;;  %1789 = vst [vmem:[%s10562_s29 + $0x8e8] sm:$0xff] %v1788_v29 }
  0xa5   : > { %1791 = vst [vmem:[%s10562_s29 + $0x8f0] sm:$0xff] %v1790_v30  ;;  %1793 = vst [vmem:[%s10562_s29 + $0x8f8] sm:$0xff] %v1792_v31  ;;  %v1794_v32 = vld [vmem:[%s10557_s28 + $0x1200] sm:$0xff]  ;;  %v1796_v33 = vld [vmem:[%s10557_s28 + $0x1210] sm:$0xff] }
  0xa6   : > { %v1798_v34 = vld [vmem:[%s10557_s28 + $0x1220] sm:$0xff]  ;;  %1795 = vst [vmem:[%s10562_s29 + $0x900] sm:$0xff] %v1794_v32  ;;  %1797 = vst [vmem:[%s10562_s29 + $0x908] sm:$0xff] %v1796_v33  ;;  %v1800_v35 = vld [vmem:[%s10557_s28 + $0x1230] sm:$0xff] }
  0xa7   : > { %1799 = vst [vmem:[%s10562_s29 + $0x910] sm:$0xff] %v1798_v34  ;;  %v1802_v36 = vld [vmem:[%s10557_s28 + $0x1240] sm:$0xff]  ;;  %v1804_v37 = vld [vmem:[%s10557_s28 + $0x1250] sm:$0xff]  ;;  %1801 = vst [vmem:[%s10562_s29 + $0x918] sm:$0xff] %v1800_v35 }
  0xa8   : > { %1803 = vst [vmem:[%s10562_s29 + $0x920] sm:$0xff] %v1802_v36  ;;  %1805 = vst [vmem:[%s10562_s29 + $0x928] sm:$0xff] %v1804_v37  ;;  %v1806_v38 = vld [vmem:[%s10557_s28 + $0x1260] sm:$0xff]  ;;  %v1808_v39 = vld [vmem:[%s10557_s28 + $0x1270] sm:$0xff] }
  0xa9   : > { %v1810_v40 = vld [vmem:[%s10557_s28 + $0x1280] sm:$0xff]  ;;  %1807 = vst [vmem:[%s10562_s29 + $0x930] sm:$0xff] %v1806_v38  ;;  %1809 = vst [vmem:[%s10562_s29 + $0x938] sm:$0xff] %v1808_v39  ;;  %v1812_v41 = vld [vmem:[%s10557_s28 + $0x1290] sm:$0xff] }
  0xaa   : > { %1811 = vst [vmem:[%s10562_s29 + $0x940] sm:$0xff] %v1810_v40  ;;  %v1814_v42 = vld [vmem:[%s10557_s28 + $0x12a0] sm:$0xff]  ;;  %v1816_v43 = vld [vmem:[%s10557_s28 + $0x12b0] sm:$0xff]  ;;  %1813 = vst [vmem:[%s10562_s29 + $0x948] sm:$0xff] %v1812_v41 }
  0xab   : > { %1815 = vst [vmem:[%s10562_s29 + $0x950] sm:$0xff] %v1814_v42  ;;  %1817 = vst [vmem:[%s10562_s29 + $0x958] sm:$0xff] %v1816_v43  ;;  %v1818_v44 = vld [vmem:[%s10557_s28 + $0x12c0] sm:$0xff]  ;;  %v1820_v45 = vld [vmem:[%s10557_s28 + $0x12d0] sm:$0xff] }
  0xac   : > { %v1822_v46 = vld [vmem:[%s10557_s28 + $0x12e0] sm:$0xff]  ;;  %1819 = vst [vmem:[%s10562_s29 + $0x960] sm:$0xff] %v1818_v44  ;;  %1821 = vst [vmem:[%s10562_s29 + $0x968] sm:$0xff] %v1820_v45  ;;  %v1824_v47 = vld [vmem:[%s10557_s28 + $0x12f0] sm:$0xff] }
  0xad   : > { %1823 = vst [vmem:[%s10562_s29 + $0x970] sm:$0xff] %v1822_v46  ;;  %v1826_v48 = vld [vmem:[%s10557_s28 + $0x1300] sm:$0xff]  ;;  %v1828_v49 = vld [vmem:[%s10557_s28 + $0x1310] sm:$0xff]  ;;  %1825 = vst [vmem:[%s10562_s29 + $0x978] sm:$0xff] %v1824_v47 }
  0xae   : > { %1827 = vst [vmem:[%s10562_s29 + $0x980] sm:$0xff] %v1826_v48  ;;  %1829 = vst [vmem:[%s10562_s29 + $0x988] sm:$0xff] %v1828_v49  ;;  %v1830_v50 = vld [vmem:[%s10557_s28 + $0x1320] sm:$0xff]  ;;  %v1832_v51 = vld [vmem:[%s10557_s28 + $0x1330] sm:$0xff] }
  0xaf   : > { %v1834_v52 = vld [vmem:[%s10557_s28 + $0x1340] sm:$0xff]  ;;  %1831 = vst [vmem:[%s10562_s29 + $0x990] sm:$0xff] %v1830_v50  ;;  %1833 = vst [vmem:[%s10562_s29 + $0x998] sm:$0xff] %v1832_v51  ;;  %v1836_v53 = vld [vmem:[%s10557_s28 + $0x1350] sm:$0xff] }
  0xb0   : > { %1835 = vst [vmem:[%s10562_s29 + $0x9a0] sm:$0xff] %v1834_v52  ;;  %v1838_v54 = vld [vmem:[%s10557_s28 + $0x1360] sm:$0xff]  ;;  %v1840_v55 = vld [vmem:[%s10557_s28 + $0x1370] sm:$0xff]  ;;  %1837 = vst [vmem:[%s10562_s29 + $0x9a8] sm:$0xff] %v1836_v53 }
  0xb1   : > { %1839 = vst [vmem:[%s10562_s29 + $0x9b0] sm:$0xff] %v1838_v54  ;;  %1841 = vst [vmem:[%s10562_s29 + $0x9b8] sm:$0xff] %v1840_v55  ;;  %v1842_v56 = vld [vmem:[%s10557_s28 + $0x1380] sm:$0xff]  ;;  %v1844_v57 = vld [vmem:[%s10557_s28 + $0x1390] sm:$0xff] }
  0xb2   : > { %v1846_v58 = vld [vmem:[%s10557_s28 + $0x13a0] sm:$0xff]  ;;  %1843 = vst [vmem:[%s10562_s29 + $0x9c0] sm:$0xff] %v1842_v56  ;;  %1845 = vst [vmem:[%s10562_s29 + $0x9c8] sm:$0xff] %v1844_v57  ;;  %v1848_v59 = vld [vmem:[%s10557_s28 + $0x13b0] sm:$0xff] }
  0xb3   : > { %1847 = vst [vmem:[%s10562_s29 + $0x9d0] sm:$0xff] %v1846_v58  ;;  %v1850_v60 = vld [vmem:[%s10557_s28 + $0x13c0] sm:$0xff]  ;;  %v1852_v61 = vld [vmem:[%s10557_s28 + $0x13d0] sm:$0xff]  ;;  %1849 = vst [vmem:[%s10562_s29 + $0x9d8] sm:$0xff] %v1848_v59 }
  0xb4   : > { %1851 = vst [vmem:[%s10562_s29 + $0x9e0] sm:$0xff] %v1850_v60  ;;  %1853 = vst [vmem:[%s10562_s29 + $0x9e8] sm:$0xff] %v1852_v61  ;;  %v1854_v62 = vld [vmem:[%s10557_s28 + $0x13e0] sm:$0xff]  ;;  %v1856_v63 = vld [vmem:[%s10557_s28 + $0x13f0] sm:$0xff] }
  0xb5   : > { %v1858_v0 = vld [vmem:[%s10557_s28 + $0x1400] sm:$0xff]  ;;  %1855 = vst [vmem:[%s10562_s29 + $0x9f0] sm:$0xff] %v1854_v62  ;;  %1857 = vst [vmem:[%s10562_s29 + $0x9f8] sm:$0xff] %v1856_v63  ;;  %v1860_v1 = vld [vmem:[%s10557_s28 + $0x1410] sm:$0xff] }
  0xb6   : > { %1859 = vst [vmem:[%s10562_s29 + $0xa00] sm:$0xff] %v1858_v0  ;;  %v1862_v2 = vld [vmem:[%s10557_s28 + $0x1420] sm:$0xff]  ;;  %v1864_v3 = vld [vmem:[%s10557_s28 + $0x1430] sm:$0xff]  ;;  %1861 = vst [vmem:[%s10562_s29 + $0xa08] sm:$0xff] %v1860_v1 }
  0xb7   : > { %1863 = vst [vmem:[%s10562_s29 + $0xa10] sm:$0xff] %v1862_v2  ;;  %1865 = vst [vmem:[%s10562_s29 + $0xa18] sm:$0xff] %v1864_v3  ;;  %v1866_v4 = vld [vmem:[%s10557_s28 + $0x1440] sm:$0xff]  ;;  %v1868_v5 = vld [vmem:[%s10557_s28 + $0x1450] sm:$0xff] }
  0xb8   : > { %v1870_v6 = vld [vmem:[%s10557_s28 + $0x1460] sm:$0xff]  ;;  %1867 = vst [vmem:[%s10562_s29 + $0xa20] sm:$0xff] %v1866_v4  ;;  %1869 = vst [vmem:[%s10562_s29 + $0xa28] sm:$0xff] %v1868_v5  ;;  %v1872_v7 = vld [vmem:[%s10557_s28 + $0x1470] sm:$0xff] }
  0xb9   : > { %1871 = vst [vmem:[%s10562_s29 + $0xa30] sm:$0xff] %v1870_v6  ;;  %v1874_v8 = vld [vmem:[%s10557_s28 + $0x1480] sm:$0xff]  ;;  %v1876_v9 = vld [vmem:[%s10557_s28 + $0x1490] sm:$0xff]  ;;  %1873 = vst [vmem:[%s10562_s29 + $0xa38] sm:$0xff] %v1872_v7 }
  0xba   : > { %1875 = vst [vmem:[%s10562_s29 + $0xa40] sm:$0xff] %v1874_v8  ;;  %1877 = vst [vmem:[%s10562_s29 + $0xa48] sm:$0xff] %v1876_v9  ;;  %v1878_v10 = vld [vmem:[%s10557_s28 + $0x14a0] sm:$0xff]  ;;  %v1880_v11 = vld [vmem:[%s10557_s28 + $0x14b0] sm:$0xff] }
  0xbb   : > { %v1882_v12 = vld [vmem:[%s10557_s28 + $0x14c0] sm:$0xff]  ;;  %1879 = vst [vmem:[%s10562_s29 + $0xa50] sm:$0xff] %v1878_v10  ;;  %1881 = vst [vmem:[%s10562_s29 + $0xa58] sm:$0xff] %v1880_v11  ;;  %v1884_v13 = vld [vmem:[%s10557_s28 + $0x14d0] sm:$0xff] }
  0xbc   : > { %1883 = vst [vmem:[%s10562_s29 + $0xa60] sm:$0xff] %v1882_v12  ;;  %v1886_v14 = vld [vmem:[%s10557_s28 + $0x14e0] sm:$0xff]  ;;  %v1888_v15 = vld [vmem:[%s10557_s28 + $0x14f0] sm:$0xff]  ;;  %1885 = vst [vmem:[%s10562_s29 + $0xa68] sm:$0xff] %v1884_v13 }
  0xbd   : > { %1887 = vst [vmem:[%s10562_s29 + $0xa70] sm:$0xff] %v1886_v14  ;;  %1889 = vst [vmem:[%s10562_s29 + $0xa78] sm:$0xff] %v1888_v15  ;;  %v1890_v16 = vld [vmem:[%s10557_s28 + $0x1500] sm:$0xff]  ;;  %v1892_v17 = vld [vmem:[%s10557_s28 + $0x1510] sm:$0xff] }
  0xbe   : > { %v1894_v18 = vld [vmem:[%s10557_s28 + $0x1520] sm:$0xff]  ;;  %1891 = vst [vmem:[%s10562_s29 + $0xa80] sm:$0xff] %v1890_v16  ;;  %1893 = vst [vmem:[%s10562_s29 + $0xa88] sm:$0xff] %v1892_v17  ;;  %v1896_v19 = vld [vmem:[%s10557_s28 + $0x1530] sm:$0xff] }
  0xbf   : > { %1895 = vst [vmem:[%s10562_s29 + $0xa90] sm:$0xff] %v1894_v18  ;;  %v1898_v20 = vld [vmem:[%s10557_s28 + $0x1540] sm:$0xff]  ;;  %v1900_v21 = vld [vmem:[%s10557_s28 + $0x1550] sm:$0xff]  ;;  %1897 = vst [vmem:[%s10562_s29 + $0xa98] sm:$0xff] %v1896_v19 }
  0xc0   : > { %1899 = vst [vmem:[%s10562_s29 + $0xaa0] sm:$0xff] %v1898_v20  ;;  %1901 = vst [vmem:[%s10562_s29 + $0xaa8] sm:$0xff] %v1900_v21  ;;  %v1902_v22 = vld [vmem:[%s10557_s28 + $0x1560] sm:$0xff]  ;;  %v1904_v23 = vld [vmem:[%s10557_s28 + $0x1570] sm:$0xff] }
  0xc1   : > { %v1906_v24 = vld [vmem:[%s10557_s28 + $0x1580] sm:$0xff]  ;;  %1903 = vst [vmem:[%s10562_s29 + $0xab0] sm:$0xff] %v1902_v22  ;;  %1905 = vst [vmem:[%s10562_s29 + $0xab8] sm:$0xff] %v1904_v23  ;;  %v1908_v25 = vld [vmem:[%s10557_s28 + $0x1590] sm:$0xff] }
  0xc2   : > { %1907 = vst [vmem:[%s10562_s29 + $0xac0] sm:$0xff] %v1906_v24  ;;  %v1910_v26 = vld [vmem:[%s10557_s28 + $0x15a0] sm:$0xff]  ;;  %v1912_v27 = vld [vmem:[%s10557_s28 + $0x15b0] sm:$0xff]  ;;  %1909 = vst [vmem:[%s10562_s29 + $0xac8] sm:$0xff] %v1908_v25 }
  0xc3   : > { %1911 = vst [vmem:[%s10562_s29 + $0xad0] sm:$0xff] %v1910_v26  ;;  %1913 = vst [vmem:[%s10562_s29 + $0xad8] sm:$0xff] %v1912_v27  ;;  %v1914_v28 = vld [vmem:[%s10557_s28 + $0x15c0] sm:$0xff]  ;;  %v1916_v29 = vld [vmem:[%s10557_s28 + $0x15d0] sm:$0xff] }
  0xc4   : > { %v1918_v30 = vld [vmem:[%s10557_s28 + $0x15e0] sm:$0xff]  ;;  %1915 = vst [vmem:[%s10562_s29 + $0xae0] sm:$0xff] %v1914_v28  ;;  %1917 = vst [vmem:[%s10562_s29 + $0xae8] sm:$0xff] %v1916_v29  ;;  %v1920_v31 = vld [vmem:[%s10557_s28 + $0x15f0] sm:$0xff] }
  0xc5   : > { %1919 = vst [vmem:[%s10562_s29 + $0xaf0] sm:$0xff] %v1918_v30  ;;  %v1922_v32 = vld [vmem:[%s10557_s28 + $0x1600] sm:$0xff]  ;;  %v1924_v33 = vld [vmem:[%s10557_s28 + $0x1610] sm:$0xff]  ;;  %1921 = vst [vmem:[%s10562_s29 + $0xaf8] sm:$0xff] %v1920_v31 }
  0xc6   : > { %1923 = vst [vmem:[%s10562_s29 + $0xb00] sm:$0xff] %v1922_v32  ;;  %1925 = vst [vmem:[%s10562_s29 + $0xb08] sm:$0xff] %v1924_v33  ;;  %v1926_v34 = vld [vmem:[%s10557_s28 + $0x1620] sm:$0xff]  ;;  %v1928_v35 = vld [vmem:[%s10557_s28 + $0x1630] sm:$0xff] }
  0xc7   : > { %v1930_v36 = vld [vmem:[%s10557_s28 + $0x1640] sm:$0xff]  ;;  %1927 = vst [vmem:[%s10562_s29 + $0xb10] sm:$0xff] %v1926_v34  ;;  %1929 = vst [vmem:[%s10562_s29 + $0xb18] sm:$0xff] %v1928_v35  ;;  %v1932_v37 = vld [vmem:[%s10557_s28 + $0x1650] sm:$0xff] }
  0xc8   : > { %1931 = vst [vmem:[%s10562_s29 + $0xb20] sm:$0xff] %v1930_v36  ;;  %v1934_v38 = vld [vmem:[%s10557_s28 + $0x1660] sm:$0xff]  ;;  %v1936_v39 = vld [vmem:[%s10557_s28 + $0x1670] sm:$0xff]  ;;  %1933 = vst [vmem:[%s10562_s29 + $0xb28] sm:$0xff] %v1932_v37 }
  0xc9   : > { %1935 = vst [vmem:[%s10562_s29 + $0xb30] sm:$0xff] %v1934_v38  ;;  %1937 = vst [vmem:[%s10562_s29 + $0xb38] sm:$0xff] %v1936_v39  ;;  %v1938_v40 = vld [vmem:[%s10557_s28 + $0x1680] sm:$0xff]  ;;  %v1940_v41 = vld [vmem:[%s10557_s28 + $0x1690] sm:$0xff] }
  0xca   : > { %v1942_v42 = vld [vmem:[%s10557_s28 + $0x16a0] sm:$0xff]  ;;  %1939 = vst [vmem:[%s10562_s29 + $0xb40] sm:$0xff] %v1938_v40  ;;  %1941 = vst [vmem:[%s10562_s29 + $0xb48] sm:$0xff] %v1940_v41  ;;  %v1944_v43 = vld [vmem:[%s10557_s28 + $0x16b0] sm:$0xff] }
  0xcb   : > { %1943 = vst [vmem:[%s10562_s29 + $0xb50] sm:$0xff] %v1942_v42  ;;  %v1946_v44 = vld [vmem:[%s10557_s28 + $0x16c0] sm:$0xff]  ;;  %v1948_v45 = vld [vmem:[%s10557_s28 + $0x16d0] sm:$0xff]  ;;  %1945 = vst [vmem:[%s10562_s29 + $0xb58] sm:$0xff] %v1944_v43 }
  0xcc   : > { %1947 = vst [vmem:[%s10562_s29 + $0xb60] sm:$0xff] %v1946_v44  ;;  %1949 = vst [vmem:[%s10562_s29 + $0xb68] sm:$0xff] %v1948_v45  ;;  %v1950_v46 = vld [vmem:[%s10557_s28 + $0x16e0] sm:$0xff]  ;;  %v1952_v47 = vld [vmem:[%s10557_s28 + $0x16f0] sm:$0xff] }
  0xcd   : > { %v1954_v48 = vld [vmem:[%s10557_s28 + $0x1700] sm:$0xff]  ;;  %1951 = vst [vmem:[%s10562_s29 + $0xb70] sm:$0xff] %v1950_v46  ;;  %1953 = vst [vmem:[%s10562_s29 + $0xb78] sm:$0xff] %v1952_v47  ;;  %v1956_v49 = vld [vmem:[%s10557_s28 + $0x1710] sm:$0xff] }
  0xce   : > { %1955 = vst [vmem:[%s10562_s29 + $0xb80] sm:$0xff] %v1954_v48  ;;  %v1958_v50 = vld [vmem:[%s10557_s28 + $0x1720] sm:$0xff]  ;;  %v1960_v51 = vld [vmem:[%s10557_s28 + $0x1730] sm:$0xff]  ;;  %1957 = vst [vmem:[%s10562_s29 + $0xb88] sm:$0xff] %v1956_v49 }
  0xcf   : > { %1959 = vst [vmem:[%s10562_s29 + $0xb90] sm:$0xff] %v1958_v50  ;;  %1961 = vst [vmem:[%s10562_s29 + $0xb98] sm:$0xff] %v1960_v51  ;;  %v1962_v52 = vld [vmem:[%s10557_s28 + $0x1740] sm:$0xff]  ;;  %v1964_v53 = vld [vmem:[%s10557_s28 + $0x1750] sm:$0xff] }
  0xd0   : > { %v1966_v54 = vld [vmem:[%s10557_s28 + $0x1760] sm:$0xff]  ;;  %1963 = vst [vmem:[%s10562_s29 + $0xba0] sm:$0xff] %v1962_v52  ;;  %1965 = vst [vmem:[%s10562_s29 + $0xba8] sm:$0xff] %v1964_v53  ;;  %v1968_v55 = vld [vmem:[%s10557_s28 + $0x1770] sm:$0xff] }
  0xd1   : > { %1967 = vst [vmem:[%s10562_s29 + $0xbb0] sm:$0xff] %v1966_v54  ;;  %v1970_v56 = vld [vmem:[%s10557_s28 + $0x1780] sm:$0xff]  ;;  %v1972_v57 = vld [vmem:[%s10557_s28 + $0x1790] sm:$0xff]  ;;  %1969 = vst [vmem:[%s10562_s29 + $0xbb8] sm:$0xff] %v1968_v55 }
  0xd2   : > { %1971 = vst [vmem:[%s10562_s29 + $0xbc0] sm:$0xff] %v1970_v56  ;;  %1973 = vst [vmem:[%s10562_s29 + $0xbc8] sm:$0xff] %v1972_v57  ;;  %v1974_v58 = vld [vmem:[%s10557_s28 + $0x17a0] sm:$0xff]  ;;  %v1976_v59 = vld [vmem:[%s10557_s28 + $0x17b0] sm:$0xff] }
  0xd3   : > { %v1978_v60 = vld [vmem:[%s10557_s28 + $0x17c0] sm:$0xff]  ;;  %1975 = vst [vmem:[%s10562_s29 + $0xbd0] sm:$0xff] %v1974_v58  ;;  %1977 = vst [vmem:[%s10562_s29 + $0xbd8] sm:$0xff] %v1976_v59  ;;  %v1980_v61 = vld [vmem:[%s10557_s28 + $0x17d0] sm:$0xff] }
  0xd4   : > { %1979 = vst [vmem:[%s10562_s29 + $0xbe0] sm:$0xff] %v1978_v60  ;;  %v1982_v62 = vld [vmem:[%s10557_s28 + $0x17e0] sm:$0xff]  ;;  %v1984_v63 = vld [vmem:[%s10557_s28 + $0x17f0] sm:$0xff]  ;;  %1981 = vst [vmem:[%s10562_s29 + $0xbe8] sm:$0xff] %v1980_v61 }
  0xd5   : > { %1983 = vst [vmem:[%s10562_s29 + $0xbf0] sm:$0xff] %v1982_v62  ;;  %1985 = vst [vmem:[%s10562_s29 + $0xbf8] sm:$0xff] %v1984_v63  ;;  %v1986_v0 = vld [vmem:[%s10557_s28 + $0x1800] sm:$0xff]  ;;  %v1988_v1 = vld [vmem:[%s10557_s28 + $0x1810] sm:$0xff] }
  0xd6   : > { %v1990_v2 = vld [vmem:[%s10557_s28 + $0x1820] sm:$0xff]  ;;  %1987 = vst [vmem:[%s10562_s29 + $0xc00] sm:$0xff] %v1986_v0  ;;  %1989 = vst [vmem:[%s10562_s29 + $0xc08] sm:$0xff] %v1988_v1  ;;  %v1992_v3 = vld [vmem:[%s10557_s28 + $0x1830] sm:$0xff] }
  0xd7   : > { %1991 = vst [vmem:[%s10562_s29 + $0xc10] sm:$0xff] %v1990_v2  ;;  %v1994_v4 = vld [vmem:[%s10557_s28 + $0x1840] sm:$0xff]  ;;  %v1996_v5 = vld [vmem:[%s10557_s28 + $0x1850] sm:$0xff]  ;;  %1993 = vst [vmem:[%s10562_s29 + $0xc18] sm:$0xff] %v1992_v3 }
  0xd8   : > { %1995 = vst [vmem:[%s10562_s29 + $0xc20] sm:$0xff] %v1994_v4  ;;  %1997 = vst [vmem:[%s10562_s29 + $0xc28] sm:$0xff] %v1996_v5  ;;  %v1998_v6 = vld [vmem:[%s10557_s28 + $0x1860] sm:$0xff]  ;;  %v2000_v7 = vld [vmem:[%s10557_s28 + $0x1870] sm:$0xff] }
  0xd9   : > { %v2002_v8 = vld [vmem:[%s10557_s28 + $0x1880] sm:$0xff]  ;;  %1999 = vst [vmem:[%s10562_s29 + $0xc30] sm:$0xff] %v1998_v6  ;;  %2001 = vst [vmem:[%s10562_s29 + $0xc38] sm:$0xff] %v2000_v7  ;;  %v2004_v9 = vld [vmem:[%s10557_s28 + $0x1890] sm:$0xff] }
  0xda   : > { %2003 = vst [vmem:[%s10562_s29 + $0xc40] sm:$0xff] %v2002_v8  ;;  %v2006_v10 = vld [vmem:[%s10557_s28 + $0x18a0] sm:$0xff]  ;;  %v2008_v11 = vld [vmem:[%s10557_s28 + $0x18b0] sm:$0xff]  ;;  %2005 = vst [vmem:[%s10562_s29 + $0xc48] sm:$0xff] %v2004_v9 }
  0xdb   : > { %2007 = vst [vmem:[%s10562_s29 + $0xc50] sm:$0xff] %v2006_v10  ;;  %2009 = vst [vmem:[%s10562_s29 + $0xc58] sm:$0xff] %v2008_v11  ;;  %v2010_v12 = vld [vmem:[%s10557_s28 + $0x18c0] sm:$0xff]  ;;  %v2012_v13 = vld [vmem:[%s10557_s28 + $0x18d0] sm:$0xff] }
  0xdc   : > { %v2014_v14 = vld [vmem:[%s10557_s28 + $0x18e0] sm:$0xff]  ;;  %2011 = vst [vmem:[%s10562_s29 + $0xc60] sm:$0xff] %v2010_v12  ;;  %2013 = vst [vmem:[%s10562_s29 + $0xc68] sm:$0xff] %v2012_v13  ;;  %v2016_v15 = vld [vmem:[%s10557_s28 + $0x18f0] sm:$0xff] }
  0xdd   : > { %2015 = vst [vmem:[%s10562_s29 + $0xc70] sm:$0xff] %v2014_v14  ;;  %v2018_v16 = vld [vmem:[%s10557_s28 + $0x1900] sm:$0xff]  ;;  %v2020_v17 = vld [vmem:[%s10557_s28 + $0x1910] sm:$0xff]  ;;  %2017 = vst [vmem:[%s10562_s29 + $0xc78] sm:$0xff] %v2016_v15 }
  0xde   : > { %2019 = vst [vmem:[%s10562_s29 + $0xc80] sm:$0xff] %v2018_v16  ;;  %2021 = vst [vmem:[%s10562_s29 + $0xc88] sm:$0xff] %v2020_v17  ;;  %v2022_v18 = vld [vmem:[%s10557_s28 + $0x1920] sm:$0xff]  ;;  %v2024_v19 = vld [vmem:[%s10557_s28 + $0x1930] sm:$0xff] }
  0xdf   : > { %v2026_v20 = vld [vmem:[%s10557_s28 + $0x1940] sm:$0xff]  ;;  %2023 = vst [vmem:[%s10562_s29 + $0xc90] sm:$0xff] %v2022_v18  ;;  %2025 = vst [vmem:[%s10562_s29 + $0xc98] sm:$0xff] %v2024_v19  ;;  %v2028_v21 = vld [vmem:[%s10557_s28 + $0x1950] sm:$0xff] }
  0xe0   : > { %2027 = vst [vmem:[%s10562_s29 + $0xca0] sm:$0xff] %v2026_v20  ;;  %v2030_v22 = vld [vmem:[%s10557_s28 + $0x1960] sm:$0xff]  ;;  %v2032_v23 = vld [vmem:[%s10557_s28 + $0x1970] sm:$0xff]  ;;  %2029 = vst [vmem:[%s10562_s29 + $0xca8] sm:$0xff] %v2028_v21 }
  0xe1   : > { %2031 = vst [vmem:[%s10562_s29 + $0xcb0] sm:$0xff] %v2030_v22  ;;  %2033 = vst [vmem:[%s10562_s29 + $0xcb8] sm:$0xff] %v2032_v23  ;;  %v2034_v24 = vld [vmem:[%s10557_s28 + $0x1980] sm:$0xff]  ;;  %v2036_v25 = vld [vmem:[%s10557_s28 + $0x1990] sm:$0xff] }
  0xe2   : > { %v2038_v26 = vld [vmem:[%s10557_s28 + $0x19a0] sm:$0xff]  ;;  %2035 = vst [vmem:[%s10562_s29 + $0xcc0] sm:$0xff] %v2034_v24  ;;  %2037 = vst [vmem:[%s10562_s29 + $0xcc8] sm:$0xff] %v2036_v25  ;;  %v2040_v27 = vld [vmem:[%s10557_s28 + $0x19b0] sm:$0xff] }
  0xe3   : > { %2039 = vst [vmem:[%s10562_s29 + $0xcd0] sm:$0xff] %v2038_v26  ;;  %v2042_v28 = vld [vmem:[%s10557_s28 + $0x19c0] sm:$0xff]  ;;  %v2044_v29 = vld [vmem:[%s10557_s28 + $0x19d0] sm:$0xff]  ;;  %2041 = vst [vmem:[%s10562_s29 + $0xcd8] sm:$0xff] %v2040_v27 }
  0xe4   : > { %2043 = vst [vmem:[%s10562_s29 + $0xce0] sm:$0xff] %v2042_v28  ;;  %2045 = vst [vmem:[%s10562_s29 + $0xce8] sm:$0xff] %v2044_v29  ;;  %v2046_v30 = vld [vmem:[%s10557_s28 + $0x19e0] sm:$0xff]  ;;  %v2048_v31 = vld [vmem:[%s10557_s28 + $0x19f0] sm:$0xff] }
  0xe5   : > { %v2050_v32 = vld [vmem:[%s10557_s28 + $0x1a00] sm:$0xff]  ;;  %2047 = vst [vmem:[%s10562_s29 + $0xcf0] sm:$0xff] %v2046_v30  ;;  %2049 = vst [vmem:[%s10562_s29 + $0xcf8] sm:$0xff] %v2048_v31  ;;  %v2052_v33 = vld [vmem:[%s10557_s28 + $0x1a10] sm:$0xff] }
  0xe6   : > { %2051 = vst [vmem:[%s10562_s29 + $0xd00] sm:$0xff] %v2050_v32  ;;  %v2054_v34 = vld [vmem:[%s10557_s28 + $0x1a20] sm:$0xff]  ;;  %v2056_v35 = vld [vmem:[%s10557_s28 + $0x1a30] sm:$0xff]  ;;  %2053 = vst [vmem:[%s10562_s29 + $0xd08] sm:$0xff] %v2052_v33 }
  0xe7   : > { %2055 = vst [vmem:[%s10562_s29 + $0xd10] sm:$0xff] %v2054_v34  ;;  %2057 = vst [vmem:[%s10562_s29 + $0xd18] sm:$0xff] %v2056_v35  ;;  %v2058_v36 = vld [vmem:[%s10557_s28 + $0x1a40] sm:$0xff]  ;;  %v2060_v37 = vld [vmem:[%s10557_s28 + $0x1a50] sm:$0xff] }
  0xe8   : > { %v2062_v38 = vld [vmem:[%s10557_s28 + $0x1a60] sm:$0xff]  ;;  %2059 = vst [vmem:[%s10562_s29 + $0xd20] sm:$0xff] %v2058_v36  ;;  %2061 = vst [vmem:[%s10562_s29 + $0xd28] sm:$0xff] %v2060_v37  ;;  %v2064_v39 = vld [vmem:[%s10557_s28 + $0x1a70] sm:$0xff] }
  0xe9   : > { %2063 = vst [vmem:[%s10562_s29 + $0xd30] sm:$0xff] %v2062_v38  ;;  %v2066_v40 = vld [vmem:[%s10557_s28 + $0x1a80] sm:$0xff]  ;;  %v2068_v41 = vld [vmem:[%s10557_s28 + $0x1a90] sm:$0xff]  ;;  %2065 = vst [vmem:[%s10562_s29 + $0xd38] sm:$0xff] %v2064_v39 }
  0xea   : > { %2067 = vst [vmem:[%s10562_s29 + $0xd40] sm:$0xff] %v2066_v40  ;;  %2069 = vst [vmem:[%s10562_s29 + $0xd48] sm:$0xff] %v2068_v41  ;;  %v2070_v42 = vld [vmem:[%s10557_s28 + $0x1aa0] sm:$0xff]  ;;  %v2072_v43 = vld [vmem:[%s10557_s28 + $0x1ab0] sm:$0xff] }
  0xeb   : > { %v2074_v44 = vld [vmem:[%s10557_s28 + $0x1ac0] sm:$0xff]  ;;  %2071 = vst [vmem:[%s10562_s29 + $0xd50] sm:$0xff] %v2070_v42  ;;  %2073 = vst [vmem:[%s10562_s29 + $0xd58] sm:$0xff] %v2072_v43  ;;  %v2076_v45 = vld [vmem:[%s10557_s28 + $0x1ad0] sm:$0xff] }
  0xec   : > { %2075 = vst [vmem:[%s10562_s29 + $0xd60] sm:$0xff] %v2074_v44  ;;  %v2078_v46 = vld [vmem:[%s10557_s28 + $0x1ae0] sm:$0xff]  ;;  %v2080_v47 = vld [vmem:[%s10557_s28 + $0x1af0] sm:$0xff]  ;;  %2077 = vst [vmem:[%s10562_s29 + $0xd68] sm:$0xff] %v2076_v45 }
  0xed   : > { %2079 = vst [vmem:[%s10562_s29 + $0xd70] sm:$0xff] %v2078_v46  ;;  %2081 = vst [vmem:[%s10562_s29 + $0xd78] sm:$0xff] %v2080_v47  ;;  %v2082_v48 = vld [vmem:[%s10557_s28 + $0x1b00] sm:$0xff]  ;;  %v2084_v49 = vld [vmem:[%s10557_s28 + $0x1b10] sm:$0xff] }
  0xee   : > { %v2086_v50 = vld [vmem:[%s10557_s28 + $0x1b20] sm:$0xff]  ;;  %2083 = vst [vmem:[%s10562_s29 + $0xd80] sm:$0xff] %v2082_v48  ;;  %2085 = vst [vmem:[%s10562_s29 + $0xd88] sm:$0xff] %v2084_v49  ;;  %v2088_v51 = vld [vmem:[%s10557_s28 + $0x1b30] sm:$0xff] }
  0xef   : > { %2087 = vst [vmem:[%s10562_s29 + $0xd90] sm:$0xff] %v2086_v50  ;;  %v2090_v52 = vld [vmem:[%s10557_s28 + $0x1b40] sm:$0xff]  ;;  %v2092_v53 = vld [vmem:[%s10557_s28 + $0x1b50] sm:$0xff]  ;;  %2089 = vst [vmem:[%s10562_s29 + $0xd98] sm:$0xff] %v2088_v51 }
  0xf0   : > { %2091 = vst [vmem:[%s10562_s29 + $0xda0] sm:$0xff] %v2090_v52  ;;  %2093 = vst [vmem:[%s10562_s29 + $0xda8] sm:$0xff] %v2092_v53  ;;  %v2094_v54 = vld [vmem:[%s10557_s28 + $0x1b60] sm:$0xff]  ;;  %v2096_v55 = vld [vmem:[%s10557_s28 + $0x1b70] sm:$0xff] }
  0xf1   : > { %v2098_v56 = vld [vmem:[%s10557_s28 + $0x1b80] sm:$0xff]  ;;  %2095 = vst [vmem:[%s10562_s29 + $0xdb0] sm:$0xff] %v2094_v54  ;;  %2097 = vst [vmem:[%s10562_s29 + $0xdb8] sm:$0xff] %v2096_v55  ;;  %v2100_v57 = vld [vmem:[%s10557_s28 + $0x1b90] sm:$0xff] }
  0xf2   : > { %2099 = vst [vmem:[%s10562_s29 + $0xdc0] sm:$0xff] %v2098_v56  ;;  %v2102_v58 = vld [vmem:[%s10557_s28 + $0x1ba0] sm:$0xff]  ;;  %v2104_v59 = vld [vmem:[%s10557_s28 + $0x1bb0] sm:$0xff]  ;;  %2101 = vst [vmem:[%s10562_s29 + $0xdc8] sm:$0xff] %v2100_v57 }
  0xf3   : > { %2103 = vst [vmem:[%s10562_s29 + $0xdd0] sm:$0xff] %v2102_v58  ;;  %2105 = vst [vmem:[%s10562_s29 + $0xdd8] sm:$0xff] %v2104_v59  ;;  %v2106_v60 = vld [vmem:[%s10557_s28 + $0x1bc0] sm:$0xff]  ;;  %v2108_v61 = vld [vmem:[%s10557_s28 + $0x1bd0] sm:$0xff] }
  0xf4   : > { %v2110_v62 = vld [vmem:[%s10557_s28 + $0x1be0] sm:$0xff]  ;;  %2107 = vst [vmem:[%s10562_s29 + $0xde0] sm:$0xff] %v2106_v60  ;;  %2109 = vst [vmem:[%s10562_s29 + $0xde8] sm:$0xff] %v2108_v61  ;;  %v2112_v63 = vld [vmem:[%s10557_s28 + $0x1bf0] sm:$0xff] }
  0xf5   : > { %2111 = vst [vmem:[%s10562_s29 + $0xdf0] sm:$0xff] %v2110_v62  ;;  %v2114_v0 = vld [vmem:[%s10557_s28 + $0x1c00] sm:$0xff]  ;;  %v2116_v1 = vld [vmem:[%s10557_s28 + $0x1c10] sm:$0xff]  ;;  %2113 = vst [vmem:[%s10562_s29 + $0xdf8] sm:$0xff] %v2112_v63 }
  0xf6   : > { %2115 = vst [vmem:[%s10562_s29 + $0xe00] sm:$0xff] %v2114_v0  ;;  %2117 = vst [vmem:[%s10562_s29 + $0xe08] sm:$0xff] %v2116_v1  ;;  %v2118_v2 = vld [vmem:[%s10557_s28 + $0x1c20] sm:$0xff]  ;;  %v2120_v3 = vld [vmem:[%s10557_s28 + $0x1c30] sm:$0xff] }
  0xf7   : > { %v2122_v4 = vld [vmem:[%s10557_s28 + $0x1c40] sm:$0xff]  ;;  %2119 = vst [vmem:[%s10562_s29 + $0xe10] sm:$0xff] %v2118_v2  ;;  %2121 = vst [vmem:[%s10562_s29 + $0xe18] sm:$0xff] %v2120_v3  ;;  %v2124_v5 = vld [vmem:[%s10557_s28 + $0x1c50] sm:$0xff] }
  0xf8   : > { %2123 = vst [vmem:[%s10562_s29 + $0xe20] sm:$0xff] %v2122_v4  ;;  %v2126_v6 = vld [vmem:[%s10557_s28 + $0x1c60] sm:$0xff]  ;;  %v2128_v7 = vld [vmem:[%s10557_s28 + $0x1c70] sm:$0xff]  ;;  %2125 = vst [vmem:[%s10562_s29 + $0xe28] sm:$0xff] %v2124_v5 }
  0xf9   : > { %2127 = vst [vmem:[%s10562_s29 + $0xe30] sm:$0xff] %v2126_v6  ;;  %2129 = vst [vmem:[%s10562_s29 + $0xe38] sm:$0xff] %v2128_v7  ;;  %v2130_v8 = vld [vmem:[%s10557_s28 + $0x1c80] sm:$0xff]  ;;  %v2132_v9 = vld [vmem:[%s10557_s28 + $0x1c90] sm:$0xff] }
  0xfa   : > { %v2134_v10 = vld [vmem:[%s10557_s28 + $0x1ca0] sm:$0xff]  ;;  %2131 = vst [vmem:[%s10562_s29 + $0xe40] sm:$0xff] %v2130_v8  ;;  %2133 = vst [vmem:[%s10562_s29 + $0xe48] sm:$0xff] %v2132_v9  ;;  %v2136_v11 = vld [vmem:[%s10557_s28 + $0x1cb0] sm:$0xff] }
  0xfb   : > { %2135 = vst [vmem:[%s10562_s29 + $0xe50] sm:$0xff] %v2134_v10  ;;  %v2138_v12 = vld [vmem:[%s10557_s28 + $0x1cc0] sm:$0xff]  ;;  %v2140_v13 = vld [vmem:[%s10557_s28 + $0x1cd0] sm:$0xff]  ;;  %2137 = vst [vmem:[%s10562_s29 + $0xe58] sm:$0xff] %v2136_v11 }
  0xfc   : > { %2139 = vst [vmem:[%s10562_s29 + $0xe60] sm:$0xff] %v2138_v12  ;;  %2141 = vst [vmem:[%s10562_s29 + $0xe68] sm:$0xff] %v2140_v13  ;;  %v2142_v14 = vld [vmem:[%s10557_s28 + $0x1ce0] sm:$0xff]  ;;  %v2144_v15 = vld [vmem:[%s10557_s28 + $0x1cf0] sm:$0xff] }
  0xfd   : > { %v2146_v16 = vld [vmem:[%s10557_s28 + $0x1d00] sm:$0xff]  ;;  %2143 = vst [vmem:[%s10562_s29 + $0xe70] sm:$0xff] %v2142_v14  ;;  %2145 = vst [vmem:[%s10562_s29 + $0xe78] sm:$0xff] %v2144_v15  ;;  %v2148_v17 = vld [vmem:[%s10557_s28 + $0x1d10] sm:$0xff] }
  0xfe   : > { %2147 = vst [vmem:[%s10562_s29 + $0xe80] sm:$0xff] %v2146_v16  ;;  %v2150_v18 = vld [vmem:[%s10557_s28 + $0x1d20] sm:$0xff]  ;;  %v2152_v19 = vld [vmem:[%s10557_s28 + $0x1d30] sm:$0xff]  ;;  %2149 = vst [vmem:[%s10562_s29 + $0xe88] sm:$0xff] %v2148_v17 }
  0xff   : > { %2151 = vst [vmem:[%s10562_s29 + $0xe90] sm:$0xff] %v2150_v18  ;;  %2153 = vst [vmem:[%s10562_s29 + $0xe98] sm:$0xff] %v2152_v19  ;;  %v2154_v20 = vld [vmem:[%s10557_s28 + $0x1d40] sm:$0xff]  ;;  %v2156_v21 = vld [vmem:[%s10557_s28 + $0x1d50] sm:$0xff] }
 0x100   : > { %v2158_v22 = vld [vmem:[%s10557_s28 + $0x1d60] sm:$0xff]  ;;  %2155 = vst [vmem:[%s10562_s29 + $0xea0] sm:$0xff] %v2154_v20  ;;  %2157 = vst [vmem:[%s10562_s29 + $0xea8] sm:$0xff] %v2156_v21  ;;  %v2160_v23 = vld [vmem:[%s10557_s28 + $0x1d70] sm:$0xff] }
 0x101   : > { %2159 = vst [vmem:[%s10562_s29 + $0xeb0] sm:$0xff] %v2158_v22  ;;  %v2162_v24 = vld [vmem:[%s10557_s28 + $0x1d80] sm:$0xff]  ;;  %v2164_v25 = vld [vmem:[%s10557_s28 + $0x1d90] sm:$0xff]  ;;  %2161 = vst [vmem:[%s10562_s29 + $0xeb8] sm:$0xff] %v2160_v23 }
 0x102   : > { %2163 = vst [vmem:[%s10562_s29 + $0xec0] sm:$0xff] %v2162_v24  ;;  %2165 = vst [vmem:[%s10562_s29 + $0xec8] sm:$0xff] %v2164_v25  ;;  %v2166_v26 = vld [vmem:[%s10557_s28 + $0x1da0] sm:$0xff]  ;;  %v2168_v27 = vld [vmem:[%s10557_s28 + $0x1db0] sm:$0xff] }
 0x103   : > { %v2170_v28 = vld [vmem:[%s10557_s28 + $0x1dc0] sm:$0xff]  ;;  %2167 = vst [vmem:[%s10562_s29 + $0xed0] sm:$0xff] %v2166_v26  ;;  %2169 = vst [vmem:[%s10562_s29 + $0xed8] sm:$0xff] %v2168_v27  ;;  %v2172_v29 = vld [vmem:[%s10557_s28 + $0x1dd0] sm:$0xff] }
 0x104   : > { %2171 = vst [vmem:[%s10562_s29 + $0xee0] sm:$0xff] %v2170_v28  ;;  %v2174_v30 = vld [vmem:[%s10557_s28 + $0x1de0] sm:$0xff]  ;;  %v2176_v31 = vld [vmem:[%s10557_s28 + $0x1df0] sm:$0xff]  ;;  %2173 = vst [vmem:[%s10562_s29 + $0xee8] sm:$0xff] %v2172_v29 }
 0x105   : > { %2175 = vst [vmem:[%s10562_s29 + $0xef0] sm:$0xff] %v2174_v30  ;;  %2177 = vst [vmem:[%s10562_s29 + $0xef8] sm:$0xff] %v2176_v31  ;;  %v2178_v32 = vld [vmem:[%s10557_s28 + $0x1e00] sm:$0xff]  ;;  %v2180_v33 = vld [vmem:[%s10557_s28 + $0x1e10] sm:$0xff] }
 0x106   : > { %v2182_v34 = vld [vmem:[%s10557_s28 + $0x1e20] sm:$0xff]  ;;  %2179 = vst [vmem:[%s10562_s29 + $0xf00] sm:$0xff] %v2178_v32  ;;  %2181 = vst [vmem:[%s10562_s29 + $0xf08] sm:$0xff] %v2180_v33  ;;  %v2184_v35 = vld [vmem:[%s10557_s28 + $0x1e30] sm:$0xff] }
 0x107   : > { %2183 = vst [vmem:[%s10562_s29 + $0xf10] sm:$0xff] %v2182_v34  ;;  %v2186_v36 = vld [vmem:[%s10557_s28 + $0x1e40] sm:$0xff]  ;;  %v2188_v37 = vld [vmem:[%s10557_s28 + $0x1e50] sm:$0xff]  ;;  %2185 = vst [vmem:[%s10562_s29 + $0xf18] sm:$0xff] %v2184_v35 }
 0x108   : > { %2187 = vst [vmem:[%s10562_s29 + $0xf20] sm:$0xff] %v2186_v36  ;;  %2189 = vst [vmem:[%s10562_s29 + $0xf28] sm:$0xff] %v2188_v37  ;;  %v2190_v38 = vld [vmem:[%s10557_s28 + $0x1e60] sm:$0xff]  ;;  %v2192_v39 = vld [vmem:[%s10557_s28 + $0x1e70] sm:$0xff] }
 0x109   : > { %v2194_v40 = vld [vmem:[%s10557_s28 + $0x1e80] sm:$0xff]  ;;  %2191 = vst [vmem:[%s10562_s29 + $0xf30] sm:$0xff] %v2190_v38  ;;  %2193 = vst [vmem:[%s10562_s29 + $0xf38] sm:$0xff] %v2192_v39  ;;  %v2196_v41 = vld [vmem:[%s10557_s28 + $0x1e90] sm:$0xff] }
 0x10a   : > { %2195 = vst [vmem:[%s10562_s29 + $0xf40] sm:$0xff] %v2194_v40  ;;  %v2198_v42 = vld [vmem:[%s10557_s28 + $0x1ea0] sm:$0xff]  ;;  %v2200_v43 = vld [vmem:[%s10557_s28 + $0x1eb0] sm:$0xff]  ;;  %2197 = vst [vmem:[%s10562_s29 + $0xf48] sm:$0xff] %v2196_v41 }
 0x10b   : > { %2199 = vst [vmem:[%s10562_s29 + $0xf50] sm:$0xff] %v2198_v42  ;;  %2201 = vst [vmem:[%s10562_s29 + $0xf58] sm:$0xff] %v2200_v43  ;;  %v2202_v44 = vld [vmem:[%s10557_s28 + $0x1ec0] sm:$0xff]  ;;  %v2204_v45 = vld [vmem:[%s10557_s28 + $0x1ed0] sm:$0xff] }
 0x10c   : > { %v2206_v46 = vld [vmem:[%s10557_s28 + $0x1ee0] sm:$0xff]  ;;  %2203 = vst [vmem:[%s10562_s29 + $0xf60] sm:$0xff] %v2202_v44  ;;  %2205 = vst [vmem:[%s10562_s29 + $0xf68] sm:$0xff] %v2204_v45  ;;  %v2208_v47 = vld [vmem:[%s10557_s28 + $0x1ef0] sm:$0xff] }
 0x10d   : > { %2207 = vst [vmem:[%s10562_s29 + $0xf70] sm:$0xff] %v2206_v46  ;;  %v2210_v48 = vld [vmem:[%s10557_s28 + $0x1f00] sm:$0xff]  ;;  %v2212_v49 = vld [vmem:[%s10557_s28 + $0x1f10] sm:$0xff]  ;;  %2209 = vst [vmem:[%s10562_s29 + $0xf78] sm:$0xff] %v2208_v47 }
 0x10e   : > { %2211 = vst [vmem:[%s10562_s29 + $0xf80] sm:$0xff] %v2210_v48  ;;  %2213 = vst [vmem:[%s10562_s29 + $0xf88] sm:$0xff] %v2212_v49  ;;  %v2214_v50 = vld [vmem:[%s10557_s28 + $0x1f20] sm:$0xff]  ;;  %v2216_v51 = vld [vmem:[%s10557_s28 + $0x1f30] sm:$0xff] }
 0x10f   : > { %v2218_v52 = vld [vmem:[%s10557_s28 + $0x1f40] sm:$0xff]  ;;  %2215 = vst [vmem:[%s10562_s29 + $0xf90] sm:$0xff] %v2214_v50  ;;  %2217 = vst [vmem:[%s10562_s29 + $0xf98] sm:$0xff] %v2216_v51  ;;  %v2220_v53 = vld [vmem:[%s10557_s28 + $0x1f50] sm:$0xff] }
 0x110   : > { %2219 = vst [vmem:[%s10562_s29 + $0xfa0] sm:$0xff] %v2218_v52  ;;  %v2222_v54 = vld [vmem:[%s10557_s28 + $0x1f60] sm:$0xff]  ;;  %v2224_v55 = vld [vmem:[%s10557_s28 + $0x1f70] sm:$0xff]  ;;  %2221 = vst [vmem:[%s10562_s29 + $0xfa8] sm:$0xff] %v2220_v53 }
 0x111   : > { %2223 = vst [vmem:[%s10562_s29 + $0xfb0] sm:$0xff] %v2222_v54  ;;  %2225 = vst [vmem:[%s10562_s29 + $0xfb8] sm:$0xff] %v2224_v55  ;;  %v2226_v56 = vld [vmem:[%s10557_s28 + $0x1f80] sm:$0xff]  ;;  %v2228_v57 = vld [vmem:[%s10557_s28 + $0x1f90] sm:$0xff] }
 0x112   : > { %v2230_v58 = vld [vmem:[%s10557_s28 + $0x1fa0] sm:$0xff]  ;;  %2227 = vst [vmem:[%s10562_s29 + $0xfc0] sm:$0xff] %v2226_v56  ;;  %2229 = vst [vmem:[%s10562_s29 + $0xfc8] sm:$0xff] %v2228_v57  ;;  %v2232_v59 = vld [vmem:[%s10557_s28 + $0x1fb0] sm:$0xff] }
 0x113   : > { %2231 = vst [vmem:[%s10562_s29 + $0xfd0] sm:$0xff] %v2230_v58  ;;  %v2234_v60 = vld [vmem:[%s10557_s28 + $0x1fc0] sm:$0xff]  ;;  %v2236_v61 = vld [vmem:[%s10557_s28 + $0x1fd0] sm:$0xff]  ;;  %2233 = vst [vmem:[%s10562_s29 + $0xfd8] sm:$0xff] %v2232_v59 }
 0x114   : > { %2235 = vst [vmem:[%s10562_s29 + $0xfe0] sm:$0xff] %v2234_v60  ;;  %2237 = vst [vmem:[%s10562_s29 + $0xfe8] sm:$0xff] %v2236_v61  ;;  %v2238_v62 = vld [vmem:[%s10557_s28 + $0x1fe0] sm:$0xff]  ;;  %v2240_v63 = vld [vmem:[%s10557_s28 + $0x1ff0] sm:$0xff] }
 0x115   : > { %2239 = vst [vmem:[%s10562_s29 + $0xff0] sm:$0xff] %v2238_v62  ;;  %2241 = vst [vmem:[%s10562_s29 + $0xff8] sm:$0xff] %v2240_v63 }
 0x116 PF: > { %p8918_p8 = scmp.ge.s32.totalorder %s10487_s16, 1  ;;  %p4338_p9 = scmp.lt.s32.totalorder %s10487_s16, 3 }
 0x118   : > { %p4339_p10 = pnand %p8918_p8, %p4338_p9 }
 0x119   : > { %s4345_s30 = sand.u32 (!%p4339_p10), 1, %s10471_s12   ;;  %v11591_v0 = vld [vmem:[%s12457_s0] sm:$0xff] (!%p4339_p10) }
 0x11a   : > { %4342 = sbr.rel (%p4339_p10) target bundleno = 1041 (0x411), region = 80  ;;  %v11596_v1 = vld [vmem:[%s12457_s0 + $0x80] sm:$0xff] (!%p4339_p10)  ;;  %s8919_s10 = sshll.u32 (!%p4339_p10), %s4345_s30, 12 }
 0x11b   : > { %v11601_v2 = vld [vmem:[%s12457_s0 + $0x40] sm:$0xff] (!%p4339_p10)  ;;  %v8922_v3 = vcombine.low (!%p4339_p10), %v11591_v0, %v11596_v1  ;;  %v8923_v4 = vcombine.high (!%p4339_p10), %v11591_v0, %v11596_v1  ;;  %s11618_s19 = scalar_lea.vmem (!%p4339_p10), [#allocation2], %s8919_s10  ;;  %s8920_s26 = sshll.u32 (!%p4339_p10), %s4345_s30, 5 }
 0x11c   : > { %v11612_v5 = vld [vmem:[%s12457_s0 + $0xc0] sm:$0xff] (!%p4339_p10)  ;;  %v9687_v12 = vld [vmem:[%s11618_s19 + $0x14] ss:$8 sps:$4 sm:$0xff] (!%p4339_p10)   ;;  %v9691_v14 = vld [vmem:[%s11618_s19 + $0x10] ss:$8 sps:$4 sm:$0xff] (!%p4339_p10)   ;;  %s4376_s12 = scalar_lea.vmem (!%p4339_p10), [#allocation3], %s8920_s26 }
 0x11d   : > { %v8938_v6 = vcombine.low (!%p4339_p10), %v11601_v2, %v11612_v5  ;;  %v8939_v7 = vcombine.high (!%p4339_p10), %v11601_v2, %v11612_v5  ;;  %v9681_v8 = vld [vmem:[%s11618_s19 + $0x4] ss:$8 sps:$4 sm:$0xff] (!%p4339_p10)   ;;  %7892 = vmatprep.mubr.bf16.mxu1 (!%p4339_p10), %v8923_v4  ;;  %v9685_v10 = vld [vmem:[%s11618_s19] ss:$8 sps:$4 sm:$0xff] (!%p4339_p10)   ;;  %v9689_v13 = vld [vmem:[%s11618_s19 + $0x814] ss:$8 sps:$4 sm:$0xff] (!%p4339_p10)  }
 0x11e   : > { %v9683_v9 = vld [vmem:[%s11618_s19 + $0x804] ss:$8 sps:$4 sm:$0xff] (!%p4339_p10)   ;;  %7860 = vmatprep.subr.bf16.mxu1 (!%p4339_p10), %v9681_v8  ;;  %v9686_v11 = vld [vmem:[%s11618_s19 + $0x800] ss:$8 sps:$4 sm:$0xff] (!%p4339_p10)   ;;  %v9692_v15 = vld [vmem:[%s11618_s19 + $0x810] ss:$8 sps:$4 sm:$0xff] (!%p4339_p10)  }
 0x11f   : > { %8316 = vmatprep.mubr.bf16.mxu0 (!%p4339_p10), %v8939_v7  ;;  %8284 = vmatprep.subr.bf16.mxu0 (!%p4339_p10), %v9683_v9  ;;  %v9693_v16 = vld [vmem:[%s11618_s19 + $0x24] ss:$8 sps:$4 sm:$0xff] (!%p4339_p10)   ;;  %v9697_v18 = vld [vmem:[%s11618_s19 + $0x20] ss:$8 sps:$4 sm:$0xff] (!%p4339_p10)   ;;  %v9699_v20 = vld [vmem:[%s11618_s19 + $0x34] ss:$8 sps:$4 sm:$0xff] (!%p4339_p10)  }
 0x120   : > { %7861 = vmatpush1.bf16.msra.mxu1 (!%p4339_p10), %v9685_v10  ;;  %8285 = vmatpush1.bf16.msra.mxu0 (!%p4339_p10), %v9686_v11  ;;  %v9695_v17 = vld [vmem:[%s11618_s19 + $0x824] ss:$8 sps:$4 sm:$0xff] (!%p4339_p10)   ;;  %v9698_v19 = vld [vmem:[%s11618_s19 + $0x820] ss:$8 sps:$4 sm:$0xff] (!%p4339_p10)   ;;  %v9701_v21 = vld [vmem:[%s11618_s19 + $0x834] ss:$8 sps:$4 sm:$0xff] (!%p4339_p10)  }
 0x121   : > { %7862 = vmatprep.subr.bf16.mxu1 %v9687_v12  ;;  %8286 = vmatprep.subr.bf16.mxu0 %v9689_v13  ;;  %v9703_v22 = vld [vmem:[%s11618_s19 + $0x30] ss:$8 sps:$4 sm:$0xff]   ;;  %v9705_v24 = vld [vmem:[%s11618_s19 + $0x44] ss:$8 sps:$4 sm:$0xff]   ;;  %v9709_v26 = vld [vmem:[%s11618_s19 + $0x40] ss:$8 sps:$4 sm:$0xff]  }
 0x122   : > { %v9704_v23 = vld [vmem:[%s11618_s19 + $0x830] ss:$8 sps:$4 sm:$0xff]   ;;  %v9707_v25 = vld [vmem:[%s11618_s19 + $0x844] ss:$8 sps:$4 sm:$0xff]   ;;  %v9710_v27 = vld [vmem:[%s11618_s19 + $0x840] ss:$8 sps:$4 sm:$0xff]  }
 0x123   : > { %v9711_v28 = vld [vmem:[%s11618_s19 + $0x54] ss:$8 sps:$4 sm:$0xff]   ;;  %v9715_v30 = vld [vmem:[%s11618_s19 + $0x50] ss:$8 sps:$4 sm:$0xff]   ;;  %v9717_v32 = vld [vmem:[%s11618_s19 + $0x64] ss:$8 sps:$4 sm:$0xff]  }
 0x124   : > { %7863 = vmatpush1.bf16.msra.mxu1 %v9691_v14  ;;  %8287 = vmatpush1.bf16.msra.mxu0 %v9692_v15  ;;  %v9713_v29 = vld [vmem:[%s11618_s19 + $0x854] ss:$8 sps:$4 sm:$0xff]   ;;  %v9716_v31 = vld [vmem:[%s11618_s19 + $0x850] ss:$8 sps:$4 sm:$0xff]   ;;  %v9719_v33 = vld [vmem:[%s11618_s19 + $0x864] ss:$8 sps:$4 sm:$0xff]  }
 0x125   : > { %7864 = vmatprep.subr.bf16.mxu1 %v9693_v16  ;;  %8288 = vmatprep.subr.bf16.mxu0 %v9695_v17  ;;  %v9721_v34 = vld [vmem:[%s11618_s19 + $0x60] ss:$8 sps:$4 sm:$0xff]   ;;  %v9723_v36 = vld [vmem:[%s11618_s19 + $0x74] ss:$8 sps:$4 sm:$0xff]   ;;  %v9727_v38 = vld [vmem:[%s11618_s19 + $0x70] ss:$8 sps:$4 sm:$0xff]  }
 0x126   : > { %v9722_v35 = vld [vmem:[%s11618_s19 + $0x860] ss:$8 sps:$4 sm:$0xff]   ;;  %v9725_v37 = vld [vmem:[%s11618_s19 + $0x874] ss:$8 sps:$4 sm:$0xff]   ;;  %v9728_v39 = vld [vmem:[%s11618_s19 + $0x870] ss:$8 sps:$4 sm:$0xff]  }
 0x127   : > { %v9729_v40 = vld [vmem:[%s11618_s19 + $0x84] ss:$8 sps:$4 sm:$0xff]   ;;  %v9733_v42 = vld [vmem:[%s11618_s19 + $0x80] ss:$8 sps:$4 sm:$0xff]   ;;  %v9735_v44 = vld [vmem:[%s11618_s19 + $0x94] ss:$8 sps:$4 sm:$0xff]  }
 0x128   : > { %7865 = vmatpush1.bf16.msra.mxu1 %v9697_v18  ;;  %8289 = vmatpush1.bf16.msra.mxu0 %v9698_v19  ;;  %v9731_v41 = vld [vmem:[%s11618_s19 + $0x884] ss:$8 sps:$4 sm:$0xff]   ;;  %v9734_v43 = vld [vmem:[%s11618_s19 + $0x880] ss:$8 sps:$4 sm:$0xff]   ;;  %v9737_v45 = vld [vmem:[%s11618_s19 + $0x894] ss:$8 sps:$4 sm:$0xff]  }
 0x129   : > { %7866 = vmatprep.subr.bf16.mxu1 %v9699_v20  ;;  %8290 = vmatprep.subr.bf16.mxu0 %v9701_v21  ;;  %v9739_v46 = vld [vmem:[%s11618_s19 + $0x90] ss:$8 sps:$4 sm:$0xff]   ;;  %v9741_v48 = vld [vmem:[%s11618_s19 + $0xa4] ss:$8 sps:$4 sm:$0xff]   ;;  %v9745_v50 = vld [vmem:[%s11618_s19 + $0xa0] ss:$8 sps:$4 sm:$0xff]  }
 0x12a   : > { %v9740_v47 = vld [vmem:[%s11618_s19 + $0x890] ss:$8 sps:$4 sm:$0xff]   ;;  %v9743_v49 = vld [vmem:[%s11618_s19 + $0x8a4] ss:$8 sps:$4 sm:$0xff]   ;;  %v9746_v51 = vld [vmem:[%s11618_s19 + $0x8a0] ss:$8 sps:$4 sm:$0xff]  }
 0x12b   : > { %v9747_v52 = vld [vmem:[%s11618_s19 + $0xb4] ss:$8 sps:$4 sm:$0xff]   ;;  %v9751_v54 = vld [vmem:[%s11618_s19 + $0xb0] ss:$8 sps:$4 sm:$0xff]   ;;  %v9753_v56 = vld [vmem:[%s11618_s19 + $0xc4] ss:$8 sps:$4 sm:$0xff]  }
 0x12c   : > { %7867 = vmatpush1.bf16.msra.mxu1 %v9703_v22  ;;  %8291 = vmatpush1.bf16.msra.mxu0 %v9704_v23  ;;  %v9749_v53 = vld [vmem:[%s11618_s19 + $0x8b4] ss:$8 sps:$4 sm:$0xff]   ;;  %v9752_v55 = vld [vmem:[%s11618_s19 + $0x8b0] ss:$8 sps:$4 sm:$0xff]   ;;  %v9755_v57 = vld [vmem:[%s11618_s19 + $0x8c4] ss:$8 sps:$4 sm:$0xff]  }
 0x12d   : > { %7868 = vmatprep.subr.bf16.mxu1 %v9705_v24  ;;  %8292 = vmatprep.subr.bf16.mxu0 %v9707_v25  ;;  %v9757_v58 = vld [vmem:[%s11618_s19 + $0xc0] ss:$8 sps:$4 sm:$0xff]   ;;  %v9759_v60 = vld [vmem:[%s11618_s19 + $0xd4] ss:$8 sps:$4 sm:$0xff]   ;;  %v9763_v62 = vld [vmem:[%s11618_s19 + $0xd0] ss:$8 sps:$4 sm:$0xff]  }
 0x12e   : > { %v9758_v59 = vld [vmem:[%s11618_s19 + $0x8c0] ss:$8 sps:$4 sm:$0xff]   ;;  %v9761_v61 = vld [vmem:[%s11618_s19 + $0x8d4] ss:$8 sps:$4 sm:$0xff]   ;;  %v9764_v63 = vld [vmem:[%s11618_s19 + $0x8d0] ss:$8 sps:$4 sm:$0xff]  }
 0x12f   : > { %v9765_v4 = vld [vmem:[%s11618_s19 + $0xe4] ss:$8 sps:$4 sm:$0xff]   ;;  %v9769_v8 = vld [vmem:[%s11618_s19 + $0xe0] ss:$8 sps:$4 sm:$0xff]   ;;  %v9771_v10 = vld [vmem:[%s11618_s19 + $0xf4] ss:$8 sps:$4 sm:$0xff]  }
 0x130   : > { %7869 = vmatpush1.bf16.msra.mxu1 %v9709_v26  ;;  %8293 = vmatpush1.bf16.msra.mxu0 %v9710_v27  ;;  %v9767_v7 = vld [vmem:[%s11618_s19 + $0x8e4] ss:$8 sps:$4 sm:$0xff]   ;;  %v9770_v9 = vld [vmem:[%s11618_s19 + $0x8e0] ss:$8 sps:$4 sm:$0xff]   ;;  %v9773_v11 = vld [vmem:[%s11618_s19 + $0x8f4] ss:$8 sps:$4 sm:$0xff]  }
 0x131   : > { %7870 = vmatprep.subr.bf16.mxu1 %v9711_v28  ;;  %8294 = vmatprep.subr.bf16.mxu0 %v9713_v29  ;;  %v9775_v12 = vld [vmem:[%s11618_s19 + $0xf0] ss:$8 sps:$4 sm:$0xff]   ;;  %v9779_v14 = vld [vmem:[%s11618_s19 + $0x104] ss:$8 sps:$4 sm:$0xff]   ;;  %v9777_v20 = vld [vmem:[%s11618_s19 + $0x100] ss:$8 sps:$4 sm:$0xff]  }
 0x132   : > { %v9776_v13 = vld [vmem:[%s11618_s19 + $0x8f0] ss:$8 sps:$4 sm:$0xff]   ;;  %v9782_v15 = vld [vmem:[%s11618_s19 + $0x904] ss:$8 sps:$4 sm:$0xff]   ;;  %v9780_v21 = vld [vmem:[%s11618_s19 + $0x900] ss:$8 sps:$4 sm:$0xff]  }
 0x133   : > { %v4424_v16 = vld [vmem:[%s12457_s0 + $0x100] sm:$0xff]  ;;  %v9785_v22 = vld [vmem:[%s11618_s19 + $0x114] ss:$8 sps:$4 sm:$0xff]   ;;  %v9783_v26 = vld [vmem:[%s11618_s19 + $0x110] ss:$8 sps:$4 sm:$0xff]   ;;  %s9512_s30 = sshll.u32 (%p10544_p6), %s10479_s14, 3 }
 0x134   : > { %7871 = vmatpush1.bf16.msra.mxu1 %v9715_v30  ;;  %8295 = vmatpush1.bf16.msra.mxu0 %v9716_v31  ;;  %v4440_v17 = vld [vmem:[%s12457_s0 + $0x180] sm:$0xff]  ;;  %v9788_v23 = vld [vmem:[%s11618_s19 + $0x914] ss:$8 sps:$4 sm:$0xff]   ;;  %v9786_v27 = vld [vmem:[%s11618_s19 + $0x910] ss:$8 sps:$4 sm:$0xff]   ;;  %s8764_s29 = scalar_lea.vmem (%p10544_p6), %s12460_s3, %s9512_s30 }
 0x135   : > { %7872 = vmatprep.subr.bf16.mxu1 %v9717_v32  ;;  %8296 = vmatprep.subr.bf16.mxu0 %v9719_v33  ;;  %v4432_v18 = vld [vmem:[%s12457_s0 + $0x140] sm:$0xff]  ;;  %v8955_v24 = vcombine.high %v4424_v16, %v4440_v17  ;;  %v9797_v5 = vld [vmem:[%s11618_s19 + $0x134] ss:$8 sps:$4 sm:$0xff]   ;;  %v9795_v30 = vld [vmem:[%s11618_s19 + $0x130] ss:$8 sps:$4 sm:$0xff]  }
 0x136   : > { %v4448_v19 = vld [vmem:[%s12457_s0 + $0x1c0] sm:$0xff]  ;;  %v9798_v31 = vld [vmem:[%s11618_s19 + $0x930] ss:$8 sps:$4 sm:$0xff]  }
 0x137   : > { %v8971_v25 = vcombine.high %v4432_v18, %v4448_v19  ;;  %v9791_v28 = vld [vmem:[%s11618_s19 + $0x124] ss:$8 sps:$4 sm:$0xff]   ;;  %v9789_v0 = vld [vmem:[%s11618_s19 + $0x120] ss:$8 sps:$4 sm:$0xff]   ;;  %v8970_v2 = vcombine.low %v4432_v18, %v4448_v19  ;;  %v9855_v18 = vld [vmem:[%s11618_s19 + $0x1d0] ss:$8 sps:$4 sm:$0xff]  }
 0x138   : > { %7873 = vmatpush1.bf16.msra.mxu1 %v9721_v34  ;;  %8297 = vmatpush1.bf16.msra.mxu0 %v9722_v35  ;;  %v9794_v29 = vld [vmem:[%s11618_s19 + $0x924] ss:$8 sps:$4 sm:$0xff]   ;;  %v9792_v1 = vld [vmem:[%s11618_s19 + $0x920] ss:$8 sps:$4 sm:$0xff]   ;;  %v9858_v19 = vld [vmem:[%s11618_s19 + $0x9d0] ss:$8 sps:$4 sm:$0xff]  }
 0x139   : > { %7874 = vmatprep.subr.bf16.mxu1 %v9723_v36  ;;  %8298 = vmatprep.subr.bf16.mxu0 %v9725_v37  ;;  %v9803_v32 = vld [vmem:[%s11618_s19 + $0x144] ss:$8 sps:$4 sm:$0xff]   ;;  %v9801_v34 = vld [vmem:[%s11618_s19 + $0x140] ss:$8 sps:$4 sm:$0xff]   ;;  %v9809_v36 = vld [vmem:[%s11618_s19 + $0x154] ss:$8 sps:$4 sm:$0xff]  }
 0x13a   : > { %v9806_v33 = vld [vmem:[%s11618_s19 + $0x944] ss:$8 sps:$4 sm:$0xff]   ;;  %v9804_v35 = vld [vmem:[%s11618_s19 + $0x940] ss:$8 sps:$4 sm:$0xff]   ;;  %v9812_v37 = vld [vmem:[%s11618_s19 + $0x954] ss:$8 sps:$4 sm:$0xff]  }
 0x13c   : > { %7875 = vmatpush1.bf16.msra.mxu1 %v9727_v38  ;;  %8299 = vmatpush1.bf16.msra.mxu0 %v9728_v39  ;;  %v9807_v38 = vld [vmem:[%s11618_s19 + $0x150] ss:$8 sps:$4 sm:$0xff]  }
 0x13d   : > { %7876 = vmatprep.subr.bf16.mxu1 %v9729_v40  ;;  %8300 = vmatprep.subr.bf16.mxu0 %v9731_v41  ;;  %v9810_v39 = vld [vmem:[%s11618_s19 + $0x950] ss:$8 sps:$4 sm:$0xff]   ;;  %v9815_v40 = vld [vmem:[%s11618_s19 + $0x164] ss:$8 sps:$4 sm:$0xff]  }
 0x13e   : > { %v9818_v41 = vld [vmem:[%s11618_s19 + $0x964] ss:$8 sps:$4 sm:$0xff]  }
 0x140   : > { %7877 = vmatpush1.bf16.msra.mxu1 %v9733_v42  ;;  %8301 = vmatpush1.bf16.msra.mxu0 %v9734_v43  ;;  %v11731_v42 = vld [vmem:[%s12457_s0 + $0x8] sm:$0xff] }
 0x141   : > { %7878 = vmatprep.subr.bf16.mxu1 %v9735_v44  ;;  %8302 = vmatprep.subr.bf16.mxu0 %v9737_v45  ;;  %v11736_v43 = vld [vmem:[%s12457_s0 + $0x88] sm:$0xff] }
 0x142   : > { %v9813_v44 = vld [vmem:[%s11618_s19 + $0x160] ss:$8 sps:$4 sm:$0xff]   ;;  %v8925_v45 = vcombine.high %v11731_v42, %v11736_v43 }
 0x144   : > { %7879 = vmatpush1.bf16.msra.mxu1 %v9739_v46  ;;  %8303 = vmatpush1.bf16.msra.mxu0 %v9740_v47  ;;  %v9816_v46 = vld [vmem:[%s11618_s19 + $0x960] ss:$8 sps:$4 sm:$0xff]  }
 0x145   : > { %7880 = vmatprep.subr.bf16.mxu1 %v9741_v48  ;;  %8304 = vmatprep.subr.bf16.mxu0 %v9743_v49  ;;  %v11745_v47 = vld [vmem:[%s12457_s0 + $0x48] sm:$0xff]  ;;  %v9821_v49 = vld [vmem:[%s11618_s19 + $0x174] ss:$8 sps:$4 sm:$0xff]  }
 0x146   : > { %v11750_v48 = vld [vmem:[%s12457_s0 + $0xc8] sm:$0xff] }
 0x148   : > { %7881 = vmatpush1.bf16.msra.mxu1 %v9745_v50  ;;  %8305 = vmatpush1.bf16.msra.mxu0 %v9746_v51  ;;  %v8941_v50 = vcombine.high %v11745_v47, %v11750_v48  ;;  %v9824_v51 = vld [vmem:[%s11618_s19 + $0x974] ss:$8 sps:$4 sm:$0xff]  }
 0x149   : > { %7882 = vmatprep.subr.bf16.mxu1 %v9747_v52  ;;  %8306 = vmatprep.subr.bf16.mxu0 %v9749_v53  ;;  %v9819_v52 = vld [vmem:[%s11618_s19 + $0x170] ss:$8 sps:$4 sm:$0xff]  }
 0x14a   : > { %v9822_v53 = vld [vmem:[%s11618_s19 + $0x970] ss:$8 sps:$4 sm:$0xff]  }
 0x14c   : > { %7883 = vmatpush1.bf16.msra.mxu1 %v9751_v54  ;;  %8307 = vmatpush1.bf16.msra.mxu0 %v9752_v55  ;;  %v9827_v54 = vld [vmem:[%s11618_s19 + $0x184] ss:$8 sps:$4 sm:$0xff]  }
 0x14d   : > { %7884 = vmatprep.subr.bf16.mxu1 %v9753_v56  ;;  %8308 = vmatprep.subr.bf16.mxu0 %v9755_v57  ;;  %v9830_v55 = vld [vmem:[%s11618_s19 + $0x984] ss:$8 sps:$4 sm:$0xff]   ;;  %v9825_v56 = vld [vmem:[%s11618_s19 + $0x180] ss:$8 sps:$4 sm:$0xff]  }
 0x14e   : > { %v9828_v57 = vld [vmem:[%s11618_s19 + $0x980] ss:$8 sps:$4 sm:$0xff]  }
 0x150   : > { %7885 = vmatpush1.bf16.msra.mxu1 %v9757_v58  ;;  %8309 = vmatpush1.bf16.msra.mxu0 %v9758_v59  ;;  %v9833_v58 = vld [vmem:[%s11618_s19 + $0x194] ss:$8 sps:$4 sm:$0xff]  }
 0x151   : > { %7886 = vmatprep.subr.bf16.mxu1 %v9759_v60  ;;  %8310 = vmatprep.subr.bf16.mxu0 %v9761_v61  ;;  %v9836_v59 = vld [vmem:[%s11618_s19 + $0x994] ss:$8 sps:$4 sm:$0xff]   ;;  %v9831_v60 = vld [vmem:[%s11618_s19 + $0x190] ss:$8 sps:$4 sm:$0xff]  }
 0x152   : > { %v9834_v61 = vld [vmem:[%s11618_s19 + $0x990] ss:$8 sps:$4 sm:$0xff]  }
 0x154   : > { %7887 = vmatpush1.bf16.msra.mxu1 %v9763_v62  ;;  %8311 = vmatpush1.bf16.msra.mxu0 %v9764_v63  ;;  %v9839_v62 = vld [vmem:[%s11618_s19 + $0x1a4] ss:$8 sps:$4 sm:$0xff]  }
 0x155   : > { %7888 = vmatprep.subr.bf16.mxu1 %v9765_v4  ;;  %8312 = vmatprep.subr.bf16.mxu0 %v9767_v7  ;;  %v9842_v63 = vld [vmem:[%s11618_s19 + $0x9a4] ss:$8 sps:$4 sm:$0xff]   ;;  %v9837_v4 = vld [vmem:[%s11618_s19 + $0x1a0] ss:$8 sps:$4 sm:$0xff]  }
 0x156   : > { %v9840_v7 = vld [vmem:[%s11618_s19 + $0x9a0] ss:$8 sps:$4 sm:$0xff]  }
 0x158   : > { %7889 = vmatpush1.bf16.msra.mxu1 %v9769_v8  ;;  %8313 = vmatpush1.bf16.msra.mxu0 %v9770_v9  ;;  %v9845_v8 = vld [vmem:[%s11618_s19 + $0x1b4] ss:$8 sps:$4 sm:$0xff]  }
 0x159   : > { %7890 = vmatprep.subr.bf16.mxu1 %v9771_v10  ;;  %8314 = vmatprep.subr.bf16.mxu0 %v9773_v11  ;;  %v9848_v9 = vld [vmem:[%s11618_s19 + $0x9b4] ss:$8 sps:$4 sm:$0xff]   ;;  %v9843_v10 = vld [vmem:[%s11618_s19 + $0x1b0] ss:$8 sps:$4 sm:$0xff]  }
 0x15a   : > { %v9846_v11 = vld [vmem:[%s11618_s19 + $0x9b0] ss:$8 sps:$4 sm:$0xff]  }
 0x15c   : > { %7891 = vmatpush1.bf16.msra.mxu1 %v9775_v12  ;;  %8315 = vmatpush1.bf16.msra.mxu0 %v9776_v13  ;;  %v9851_v12 = vld [vmem:[%s11618_s19 + $0x1c4] ss:$8 sps:$4 sm:$0xff]  }
 0x15d   : > { %7913 = vmatprep.subr.bf16.mxu1 %v9779_v14  ;;  %8337 = vmatprep.subr.bf16.mxu0 %v9782_v15  ;;  %v9854_v13 = vld [vmem:[%s11618_s19 + $0x9c4] ss:$8 sps:$4 sm:$0xff]   ;;  %v9849_v14 = vld [vmem:[%s11618_s19 + $0x1c0] ss:$8 sps:$4 sm:$0xff]  }
 0x15e   : > { %v9852_v15 = vld [vmem:[%s11618_s19 + $0x9c0] ss:$8 sps:$4 sm:$0xff]  }
 0x15f   : > { %7893 = vmatmul.mubr.bf16.vlgmr.msra.gmra.mrb[0].mxu1 %v8922_v3  ;;  %8317 = vmatmul.mubr.bf16.vlgmr.msra.gmra.mrb[0].mxu0 %v8938_v6  ;;  %v8954_v3 = vcombine.low %v4424_v16, %v4440_v17  ;;  %v9800_v6 = vld [vmem:[%s11618_s19 + $0x934] ss:$8 sps:$4 sm:$0xff]  }
 0x160   : > { %7914 = vmatpush1.bf16.msra.mxu1 %v9777_v20  ;;  %8338 = vmatpush1.bf16.msra.mxu0 %v9780_v21  ;;  %v9857_v16 = vld [vmem:[%s11618_s19 + $0x1d4] ss:$8 sps:$4 sm:$0xff]   ;;  %v9863_v20 = vld [vmem:[%s11618_s19 + $0x1e4] ss:$8 sps:$4 sm:$0xff]  }
 0x161   : > { %7915 = vmatprep.subr.bf16.mxu1 %v9785_v22  ;;  %8339 = vmatprep.subr.bf16.mxu0 %v9788_v23  ;;  %v9860_v17 = vld [vmem:[%s11618_s19 + $0x9d4] ss:$8 sps:$4 sm:$0xff]   ;;  %v9866_v21 = vld [vmem:[%s11618_s19 + $0x9e4] ss:$8 sps:$4 sm:$0xff]   ;;  %v9861_v22 = vld [vmem:[%s11618_s19 + $0x1e0] ss:$8 sps:$4 sm:$0xff]  }
 0x162   : > { %7902 = vmatprep.mubr.bf16.mxu1 %v8955_v24  ;;  %8326 = vmatprep.mubr.bf16.mxu0 %v8971_v25  ;;  %v9864_v23 = vld [vmem:[%s11618_s19 + $0x9e0] ss:$8 sps:$4 sm:$0xff]   ;;  %v9869_v24 = vld [vmem:[%s11618_s19 + $0x1f4] ss:$8 sps:$4 sm:$0xff]  }
 0x163   : > { %v9872_v25 = vld [vmem:[%s11618_s19 + $0x9f4] ss:$8 sps:$4 sm:$0xff]  }
 0x164   : > { %7916 = vmatpush1.bf16.msra.mxu1 %v9783_v26  ;;  %8340 = vmatpush1.bf16.msra.mxu0 %v9786_v27  ;;  %v9867_v26 = vld [vmem:[%s11618_s19 + $0x1f0] ss:$8 sps:$4 sm:$0xff]  }
 0x165   : > { %7917 = vmatprep.subr.bf16.mxu1 %v9791_v28  ;;  %8341 = vmatprep.subr.bf16.mxu0 %v9794_v29  ;;  %v9870_v27 = vld [vmem:[%s11618_s19 + $0x9f0] ss:$8 sps:$4 sm:$0xff]   ;;  %v9875_v28 = vld [vmem:[%s11618_s19 + $0x204] ss:$8 sps:$4 sm:$0xff]  }
 0x166   : > { %v9878_v29 = vld [vmem:[%s11618_s19 + $0xa04] ss:$8 sps:$4 sm:$0xff]  }
 0x167   : > { %7903 = vmatmul.mubr.bf16.gmra.mrb[4].mxu1 %v8954_v3  ;;  %8327 = vmatmul.mubr.bf16.gmra.mrb[4].mxu0 %v8970_v2  ;;  %v4425_v3 = vld [vmem:[%s12457_s0 + $0x108] sm:$0xff] }
 0x168   : > { %7918 = vmatpush1.bf16.msra.mxu1 %v9789_v0  ;;  %8342 = vmatpush1.bf16.msra.mxu0 %v9792_v1  ;;  %v9873_v0 = vld [vmem:[%s11618_s19 + $0x200] ss:$8 sps:$4 sm:$0xff]  }
 0x169   : > { %7919 = vmatprep.subr.bf16.mxu1 %v9797_v5  ;;  %8343 = vmatprep.subr.bf16.mxu0 %v9800_v6  ;;  %v9876_v1 = vld [vmem:[%s11618_s19 + $0xa00] ss:$8 sps:$4 sm:$0xff]   ;;  %v8924_v5 = vcombine.low %v11731_v42, %v11736_v43  ;;  %v8940_v6 = vcombine.low %v11745_v47, %v11750_v48  ;;  %v11821_v42 = vld [vmem:[%s12457_s0 + $0x10] sm:$0xff] }
 0x16a   : > { %7945 = vmatprep.mubr.bf16.mxu1 %v8925_v45  ;;  %8369 = vmatprep.mubr.bf16.mxu0 %v8941_v50  ;;  %v4441_v2 = vld [vmem:[%s12457_s0 + $0x188] sm:$0xff]  ;;  %v11826_v43 = vld [vmem:[%s12457_s0 + $0x90] sm:$0xff] }
 0x16b   : > { %v11836_v47 = vld [vmem:[%s12457_s0 + $0xd0] sm:$0xff]  ;;  %v8927_v50 = vcombine.high %v11821_v42, %v11826_v43 }
 0x16c   : > { %7920 = vmatpush1.bf16.msra.mxu1 %v9795_v30  ;;  %8344 = vmatpush1.bf16.msra.mxu0 %v9798_v31  ;;  %v4433_v30 = vld [vmem:[%s12457_s0 + $0x148] sm:$0xff]  ;;  %v9893_v48 = vld [vmem:[%s11618_s19 + $0x234] ss:$8 sps:$4 sm:$0xff]  }
 0x16d   : > { %7921 = vmatprep.subr.bf16.mxu1 %v9803_v32  ;;  %8345 = vmatprep.subr.bf16.mxu0 %v9806_v33  ;;  %v4449_v31 = vld [vmem:[%s12457_s0 + $0x1c8] sm:$0xff]  ;;  %v9881_v32 = vld [vmem:[%s11618_s19 + $0x214] ss:$8 sps:$4 sm:$0xff]  }
 0x16e   : > { %v9884_v33 = vld [vmem:[%s11618_s19 + $0xa14] ss:$8 sps:$4 sm:$0xff]   ;;  %v8972_v45 = vcombine.low %v4433_v30, %v4449_v31 }
 0x170   : > { %7922 = vmatpush1.bf16.msra.mxu1 %v9801_v34  ;;  %8346 = vmatpush1.bf16.msra.mxu0 %v9804_v35  ;;  %v8957_v34 = vcombine.high %v4425_v3, %v4441_v2  ;;  %v8973_v35 = vcombine.high %v4433_v30, %v4449_v31  ;;  %v9959_v30 = vld [vmem:[%s11618_s19 + $0x2e4] ss:$8 sps:$4 sm:$0xff]  }
 0x171   : > { %7923 = vmatprep.subr.bf16.mxu1 %v9809_v36  ;;  %8347 = vmatprep.subr.bf16.mxu0 %v9812_v37  ;;  %v9879_v36 = vld [vmem:[%s11618_s19 + $0x210] ss:$8 sps:$4 sm:$0xff]   ;;  %v9962_v31 = vld [vmem:[%s11618_s19 + $0xae4] ss:$8 sps:$4 sm:$0xff]  }
 0x172   : > { %v9882_v37 = vld [vmem:[%s11618_s19 + $0xa10] ss:$8 sps:$4 sm:$0xff]  }
 0x174   : > { %7924 = vmatpush1.bf16.msra.mxu1 %v9807_v38  ;;  %8348 = vmatpush1.bf16.msra.mxu0 %v9810_v39  ;;  %v9887_v38 = vld [vmem:[%s11618_s19 + $0x224] ss:$8 sps:$4 sm:$0xff]  }
 0x175   : > { %7925 = vmatprep.subr.bf16.mxu1 %v9815_v40  ;;  %8349 = vmatprep.subr.bf16.mxu0 %v9818_v41  ;;  %v9890_v39 = vld [vmem:[%s11618_s19 + $0xa24] ss:$8 sps:$4 sm:$0xff]   ;;  %v9885_v40 = vld [vmem:[%s11618_s19 + $0x220] ss:$8 sps:$4 sm:$0xff]  }
 0x176   : > { %v9888_v41 = vld [vmem:[%s11618_s19 + $0xa20] ss:$8 sps:$4 sm:$0xff]  }
 0x178   : > { %7926 = vmatpush1.bf16.msra.mxu1 %v9813_v44  ;;  %8350 = vmatpush1.bf16.msra.mxu0 %v9816_v46  ;;  %v8956_v44 = vcombine.low %v4425_v3, %v4441_v2  ;;  %v11831_v46 = vld [vmem:[%s12457_s0 + $0x50] sm:$0xff] }
 0x179   : > { %7927 = vmatprep.subr.bf16.mxu1 %v9821_v49  ;;  %8351 = vmatprep.subr.bf16.mxu0 %v9824_v51  ;;  %v9896_v49 = vld [vmem:[%s11618_s19 + $0xa34] ss:$8 sps:$4 sm:$0xff]   ;;  %v8943_v51 = vcombine.high %v11831_v46, %v11836_v47 }
 0x17a   : > { %v9953_v3 = vld [vmem:[%s11618_s19 + $0x2d4] ss:$8 sps:$4 sm:$0xff]  }
 0x17b   : > { %v9956_v2 = vld [vmem:[%s11618_s19 + $0xad4] ss:$8 sps:$4 sm:$0xff]  }
 0x17c   : > { %7928 = vmatpush1.bf16.msra.mxu1 %v9819_v52  ;;  %8352 = vmatpush1.bf16.msra.mxu0 %v9822_v53  ;;  %v9891_v52 = vld [vmem:[%s11618_s19 + $0x230] ss:$8 sps:$4 sm:$0xff]  }
 0x17d   : > { %7929 = vmatprep.subr.bf16.mxu1 %v9827_v54  ;;  %8353 = vmatprep.subr.bf16.mxu0 %v9830_v55  ;;  %v9894_v53 = vld [vmem:[%s11618_s19 + $0xa30] ss:$8 sps:$4 sm:$0xff]   ;;  %v9899_v54 = vld [vmem:[%s11618_s19 + $0x244] ss:$8 sps:$4 sm:$0xff]  }
 0x17e   : > { %v9902_v55 = vld [vmem:[%s11618_s19 + $0xa44] ss:$8 sps:$4 sm:$0xff]  }
 0x180   : > { %7930 = vmatpush1.bf16.msra.mxu1 %v9825_v56  ;;  %8354 = vmatpush1.bf16.msra.mxu0 %v9828_v57  ;;  %v9897_v56 = vld [vmem:[%s11618_s19 + $0x240] ss:$8 sps:$4 sm:$0xff]  }
 0x181   : > { %7931 = vmatprep.subr.bf16.mxu1 %v9833_v58  ;;  %8355 = vmatprep.subr.bf16.mxu0 %v9836_v59  ;;  %v9900_v57 = vld [vmem:[%s11618_s19 + $0xa40] ss:$8 sps:$4 sm:$0xff]   ;;  %v9905_v58 = vld [vmem:[%s11618_s19 + $0x254] ss:$8 sps:$4 sm:$0xff]  }
 0x182   : > { %v9908_v59 = vld [vmem:[%s11618_s19 + $0xa54] ss:$8 sps:$4 sm:$0xff]  }
 0x184   : > { %7932 = vmatpush1.bf16.msra.mxu1 %v9831_v60  ;;  %8356 = vmatpush1.bf16.msra.mxu0 %v9834_v61  ;;  %v9903_v60 = vld [vmem:[%s11618_s19 + $0x250] ss:$8 sps:$4 sm:$0xff]  }
 0x185   : > { %7933 = vmatprep.subr.bf16.mxu1 %v9839_v62  ;;  %8357 = vmatprep.subr.bf16.mxu0 %v9842_v63  ;;  %v9906_v61 = vld [vmem:[%s11618_s19 + $0xa50] ss:$8 sps:$4 sm:$0xff]   ;;  %v9911_v62 = vld [vmem:[%s11618_s19 + $0x264] ss:$8 sps:$4 sm:$0xff]  }
 0x186   : > { %v9914_v63 = vld [vmem:[%s11618_s19 + $0xa64] ss:$8 sps:$4 sm:$0xff]  }
 0x188   : > { %7934 = vmatpush1.bf16.msra.mxu1 %v9837_v4  ;;  %8358 = vmatpush1.bf16.msra.mxu0 %v9840_v7  ;;  %v9909_v4 = vld [vmem:[%s11618_s19 + $0x260] ss:$8 sps:$4 sm:$0xff]  }
 0x189   : > { %7935 = vmatprep.subr.bf16.mxu1 %v9845_v8  ;;  %8359 = vmatprep.subr.bf16.mxu0 %v9848_v9  ;;  %v9912_v7 = vld [vmem:[%s11618_s19 + $0xa60] ss:$8 sps:$4 sm:$0xff]   ;;  %v9917_v8 = vld [vmem:[%s11618_s19 + $0x274] ss:$8 sps:$4 sm:$0xff]  }
 0x18a   : > { %v9920_v9 = vld [vmem:[%s11618_s19 + $0xa74] ss:$8 sps:$4 sm:$0xff]  }
 0x18c   : > { %7936 = vmatpush1.bf16.msra.mxu1 %v9843_v10  ;;  %8360 = vmatpush1.bf16.msra.mxu0 %v9846_v11  ;;  %v9915_v10 = vld [vmem:[%s11618_s19 + $0x270] ss:$8 sps:$4 sm:$0xff]  }
 0x18d   : > { %7937 = vmatprep.subr.bf16.mxu1 %v9851_v12  ;;  %8361 = vmatprep.subr.bf16.mxu0 %v9854_v13  ;;  %v9918_v11 = vld [vmem:[%s11618_s19 + $0xa70] ss:$8 sps:$4 sm:$0xff]   ;;  %v9923_v12 = vld [vmem:[%s11618_s19 + $0x284] ss:$8 sps:$4 sm:$0xff]  }
 0x18e   : > { %v9926_v13 = vld [vmem:[%s11618_s19 + $0xa84] ss:$8 sps:$4 sm:$0xff]  }
 0x190   : > { %7938 = vmatpush1.bf16.msra.mxu1 %v9849_v14  ;;  %8362 = vmatpush1.bf16.msra.mxu0 %v9852_v15  ;;  %v9921_v14 = vld [vmem:[%s11618_s19 + $0x280] ss:$8 sps:$4 sm:$0xff]  }
 0x191   : > { %7939 = vmatprep.subr.bf16.mxu1 %v9857_v16  ;;  %8363 = vmatprep.subr.bf16.mxu0 %v9860_v17  ;;  %v9924_v15 = vld [vmem:[%s11618_s19 + $0xa80] ss:$8 sps:$4 sm:$0xff]   ;;  %v9929_v16 = vld [vmem:[%s11618_s19 + $0x294] ss:$8 sps:$4 sm:$0xff]  }
 0x192   : > { %v9932_v17 = vld [vmem:[%s11618_s19 + $0xa94] ss:$8 sps:$4 sm:$0xff]  }
 0x194   : > { %7940 = vmatpush1.bf16.msra.mxu1 %v9855_v18  ;;  %8364 = vmatpush1.bf16.msra.mxu0 %v9858_v19  ;;  %v9927_v18 = vld [vmem:[%s11618_s19 + $0x290] ss:$8 sps:$4 sm:$0xff]  }
 0x195   : > { %7941 = vmatprep.subr.bf16.mxu1 %v9863_v20  ;;  %8365 = vmatprep.subr.bf16.mxu0 %v9866_v21  ;;  %v9930_v19 = vld [vmem:[%s11618_s19 + $0xa90] ss:$8 sps:$4 sm:$0xff]   ;;  %v9935_v20 = vld [vmem:[%s11618_s19 + $0x2a4] ss:$8 sps:$4 sm:$0xff]  }
 0x196   : > { %v9938_v21 = vld [vmem:[%s11618_s19 + $0xaa4] ss:$8 sps:$4 sm:$0xff]  }
 0x198   : > { %7942 = vmatpush1.bf16.msra.mxu1 %v9861_v22  ;;  %8366 = vmatpush1.bf16.msra.mxu0 %v9864_v23  ;;  %v9933_v22 = vld [vmem:[%s11618_s19 + $0x2a0] ss:$8 sps:$4 sm:$0xff]  }
 0x199   : > { %7943 = vmatprep.subr.bf16.mxu1 %v9869_v24  ;;  %8367 = vmatprep.subr.bf16.mxu0 %v9872_v25  ;;  %v9936_v23 = vld [vmem:[%s11618_s19 + $0xaa0] ss:$8 sps:$4 sm:$0xff]   ;;  %v9941_v24 = vld [vmem:[%s11618_s19 + $0x2b4] ss:$8 sps:$4 sm:$0xff]  }
 0x19a   : > { %v9944_v25 = vld [vmem:[%s11618_s19 + $0xab4] ss:$8 sps:$4 sm:$0xff]  }
 0x19c   : > { %7944 = vmatpush1.bf16.msra.mxu1 %v9867_v26  ;;  %8368 = vmatpush1.bf16.msra.mxu0 %v9870_v27  ;;  %v9939_v26 = vld [vmem:[%s11618_s19 + $0x2b0] ss:$8 sps:$4 sm:$0xff]  }
 0x19d   : > { %7966 = vmatprep.subr.bf16.mxu1 %v9875_v28  ;;  %8390 = vmatprep.subr.bf16.mxu0 %v9878_v29  ;;  %v9942_v27 = vld [vmem:[%s11618_s19 + $0xab0] ss:$8 sps:$4 sm:$0xff]   ;;  %v9947_v28 = vld [vmem:[%s11618_s19 + $0x2c4] ss:$8 sps:$4 sm:$0xff]  }
 0x19e   : > { %v9950_v29 = vld [vmem:[%s11618_s19 + $0xac4] ss:$8 sps:$4 sm:$0xff]  }
 0x19f   : > { %7946 = vmatmul.mubr.bf16.vlgmr.msra.gmra.mrb[0].mxu1 %v8924_v5  ;;  %8370 = vmatmul.mubr.bf16.vlgmr.msra.gmra.mrb[0].mxu0 %v8940_v6  ;;  %v9951_v5 = vld [vmem:[%s11618_s19 + $0x2d0] ss:$8 sps:$4 sm:$0xff]  }
 0x1a0   : > { %7967 = vmatpush1.bf16.msra.mxu1 %v9873_v0  ;;  %8391 = vmatpush1.bf16.msra.mxu0 %v9876_v1  ;;  %v9945_v0 = vld [vmem:[%s11618_s19 + $0x2c0] ss:$8 sps:$4 sm:$0xff]   ;;  %v9954_v6 = vld [vmem:[%s11618_s19 + $0xad0] ss:$8 sps:$4 sm:$0xff]  }
 0x1a1   : > { %7968 = vmatprep.subr.bf16.mxu1 %v9881_v32  ;;  %8392 = vmatprep.subr.bf16.mxu0 %v9884_v33  ;;  %v9948_v1 = vld [vmem:[%s11618_s19 + $0xac0] ss:$8 sps:$4 sm:$0xff]  }
 0x1a2   : > { %7955 = vmatprep.mubr.bf16.mxu1 %v8957_v34  ;;  %8379 = vmatprep.mubr.bf16.mxu0 %v8973_v35  ;;  %v9957_v32 = vld [vmem:[%s11618_s19 + $0x2e0] ss:$8 sps:$4 sm:$0xff]   ;;  %v9965_v34 = vld [vmem:[%s11618_s19 + $0x2f4] ss:$8 sps:$4 sm:$0xff]  }
 0x1a3   : > { %v9960_v33 = vld [vmem:[%s11618_s19 + $0xae0] ss:$8 sps:$4 sm:$0xff]   ;;  %v9968_v35 = vld [vmem:[%s11618_s19 + $0xaf4] ss:$8 sps:$4 sm:$0xff]  }
 0x1a4   : > { %7969 = vmatpush1.bf16.msra.mxu1 %v9879_v36  ;;  %8393 = vmatpush1.bf16.msra.mxu0 %v9882_v37  ;;  %v9963_v36 = vld [vmem:[%s11618_s19 + $0x2f0] ss:$8 sps:$4 sm:$0xff]  }
 0x1a5   : > { %7970 = vmatprep.subr.bf16.mxu1 %v9887_v38  ;;  %8394 = vmatprep.subr.bf16.mxu0 %v9890_v39  ;;  %v9966_v37 = vld [vmem:[%s11618_s19 + $0xaf0] ss:$8 sps:$4 sm:$0xff]   ;;  %v9971_v38 = vld [vmem:[%s11618_s19 + $0x304] ss:$8 sps:$4 sm:$0xff]  }
 0x1a6   : > { %v9974_v39 = vld [vmem:[%s11618_s19 + $0xb04] ss:$8 sps:$4 sm:$0xff]  }
 0x1a7   : > { %7956 = vmatmul.mubr.bf16.gmra.mrb[4].mxu1 %v8956_v44  ;;  %8380 = vmatmul.mubr.bf16.gmra.mrb[4].mxu0 %v8972_v45  ;;  %v4426_v44 = vld [vmem:[%s12457_s0 + $0x110] sm:$0xff] }
 0x1a8   : > { %7971 = vmatpush1.bf16.msra.mxu1 %v9885_v40  ;;  %8395 = vmatpush1.bf16.msra.mxu0 %v9888_v41  ;;  %v9969_v40 = vld [vmem:[%s11618_s19 + $0x300] ss:$8 sps:$4 sm:$0xff]   ;;  %v4442_v45 = vld [vmem:[%s12457_s0 + $0x190] sm:$0xff] }
 0x1a9   : > { %7972 = vmatprep.subr.bf16.mxu1 %v9893_v48  ;;  %8396 = vmatprep.subr.bf16.mxu0 %v9896_v49  ;;  %v9972_v41 = vld [vmem:[%s11618_s19 + $0xb00] ss:$8 sps:$4 sm:$0xff]   ;;  %v8926_v48 = vcombine.low %v11821_v42, %v11826_v43  ;;  %v8942_v49 = vcombine.low %v11831_v46, %v11836_v47  ;;  %v9980_v42 = vld [vmem:[%s11618_s19 + $0xb14] ss:$8 sps:$4 sm:$0xff]   ;;  %v8959_v43 = vcombine.high %v4426_v44, %v4442_v45  ;;  %v9975_v47 = vld [vmem:[%s11618_s19 + $0x310] ss:$8 sps:$4 sm:$0xff]  }
 0x1aa   : > { %7998 = vmatprep.mubr.bf16.mxu1 %v8927_v50  ;;  %8422 = vmatprep.mubr.bf16.mxu0 %v8943_v51  ;;  %v4434_v50 = vld [vmem:[%s12457_s0 + $0x150] sm:$0xff] }
 0x1ab   : > { %v4450_v51 = vld [vmem:[%s12457_s0 + $0x1d0] sm:$0xff] }
 0x1ac   : > { %7973 = vmatpush1.bf16.msra.mxu1 %v9891_v52  ;;  %8397 = vmatpush1.bf16.msra.mxu0 %v9894_v53  ;;  %v9977_v52 = vld [vmem:[%s11618_s19 + $0x314] ss:$8 sps:$4 sm:$0xff]   ;;  %v8975_v46 = vcombine.high %v4434_v50, %v4450_v51  ;;  %v9978_v53 = vld [vmem:[%s11618_s19 + $0xb10] ss:$8 sps:$4 sm:$0xff]  }
 0x1ad   : > { %7974 = vmatprep.subr.bf16.mxu1 %v9899_v54  ;;  %8398 = vmatprep.subr.bf16.mxu0 %v9902_v55  ;;  %v9983_v54 = vld [vmem:[%s11618_s19 + $0x324] ss:$8 sps:$4 sm:$0xff]  }
 0x1ae   : > { %v9986_v55 = vld [vmem:[%s11618_s19 + $0xb24] ss:$8 sps:$4 sm:$0xff]  }
 0x1b0   : > { %7975 = vmatpush1.bf16.msra.mxu1 %v9897_v56  ;;  %8399 = vmatpush1.bf16.msra.mxu0 %v9900_v57  ;;  %v9981_v56 = vld [vmem:[%s11618_s19 + $0x320] ss:$8 sps:$4 sm:$0xff]  }
 0x1b1   : > { %7976 = vmatprep.subr.bf16.mxu1 %v9905_v58  ;;  %8400 = vmatprep.subr.bf16.mxu0 %v9908_v59  ;;  %v9984_v57 = vld [vmem:[%s11618_s19 + $0xb20] ss:$8 sps:$4 sm:$0xff]   ;;  %v11925_v58 = vld [vmem:[%s12457_s0 + $0x18] sm:$0xff] }
 0x1b2   : > { %v11930_v59 = vld [vmem:[%s12457_s0 + $0x98] sm:$0xff] }
 0x1b4   : > { %7977 = vmatpush1.bf16.msra.mxu1 %v9903_v60  ;;  %8401 = vmatpush1.bf16.msra.mxu0 %v9906_v61  ;;  %v8958_v60 = vcombine.low %v4426_v44, %v4442_v45  ;;  %v8974_v61 = vcombine.low %v4434_v50, %v4450_v51  ;;  %v10049_v44 = vld [vmem:[%s11618_s19 + $0x3d4] ss:$8 sps:$4 sm:$0xff]   ;;  %v10055_v50 = vld [vmem:[%s11618_s19 + $0x3e4] ss:$8 sps:$4 sm:$0xff]  }
 0x1b5   : > { %7978 = vmatprep.subr.bf16.mxu1 %v9911_v62  ;;  %8402 = vmatprep.subr.bf16.mxu0 %v9914_v63  ;;  %v11935_v62 = vld [vmem:[%s12457_s0 + $0x58] sm:$0xff]  ;;  %v10058_v51 = vld [vmem:[%s11618_s19 + $0xbe4] ss:$8 sps:$4 sm:$0xff]  }
 0x1b6   : > { %v11940_v63 = vld [vmem:[%s12457_s0 + $0xd8] sm:$0xff] }
 0x1b7   : > { %v10052_v45 = vld [vmem:[%s11618_s19 + $0xbd4] ss:$8 sps:$4 sm:$0xff]  }
 0x1b8   : > { %7979 = vmatpush1.bf16.msra.mxu1 %v9909_v4  ;;  %8403 = vmatpush1.bf16.msra.mxu0 %v9912_v7  ;;  %v9989_v4 = vld [vmem:[%s11618_s19 + $0x334] ss:$8 sps:$4 sm:$0xff]  }
 0x1b9   : > { %7980 = vmatprep.subr.bf16.mxu1 %v9917_v8  ;;  %8404 = vmatprep.subr.bf16.mxu0 %v9920_v9  ;;  %v9992_v7 = vld [vmem:[%s11618_s19 + $0xb34] ss:$8 sps:$4 sm:$0xff]   ;;  %v8929_v8 = vcombine.high %v11925_v58, %v11930_v59  ;;  %v8945_v9 = vcombine.high %v11935_v62, %v11940_v63 }
 0x1bc   : > { %7981 = vmatpush1.bf16.msra.mxu1 %v9915_v10  ;;  %8405 = vmatpush1.bf16.msra.mxu0 %v9918_v11  ;;  %v9987_v10 = vld [vmem:[%s11618_s19 + $0x330] ss:$8 sps:$4 sm:$0xff]  }
 0x1bd   : > { %7982 = vmatprep.subr.bf16.mxu1 %v9923_v12  ;;  %8406 = vmatprep.subr.bf16.mxu0 %v9926_v13  ;;  %v9990_v11 = vld [vmem:[%s11618_s19 + $0xb30] ss:$8 sps:$4 sm:$0xff]   ;;  %v9995_v12 = vld [vmem:[%s11618_s19 + $0x344] ss:$8 sps:$4 sm:$0xff]  }
 0x1be   : > { %v9998_v13 = vld [vmem:[%s11618_s19 + $0xb44] ss:$8 sps:$4 sm:$0xff]  }
 0x1c0   : > { %7983 = vmatpush1.bf16.msra.mxu1 %v9921_v14  ;;  %8407 = vmatpush1.bf16.msra.mxu0 %v9924_v15  ;;  %v9993_v14 = vld [vmem:[%s11618_s19 + $0x340] ss:$8 sps:$4 sm:$0xff]  }
 0x1c1   : > { %7984 = vmatprep.subr.bf16.mxu1 %v9929_v16  ;;  %8408 = vmatprep.subr.bf16.mxu0 %v9932_v17  ;;  %v9996_v15 = vld [vmem:[%s11618_s19 + $0xb40] ss:$8 sps:$4 sm:$0xff]   ;;  %v10001_v16 = vld [vmem:[%s11618_s19 + $0x354] ss:$8 sps:$4 sm:$0xff]  }
 0x1c2   : > { %v10004_v17 = vld [vmem:[%s11618_s19 + $0xb54] ss:$8 sps:$4 sm:$0xff]  }
 0x1c4   : > { %7985 = vmatpush1.bf16.msra.mxu1 %v9927_v18  ;;  %8409 = vmatpush1.bf16.msra.mxu0 %v9930_v19  ;;  %v9999_v18 = vld [vmem:[%s11618_s19 + $0x350] ss:$8 sps:$4 sm:$0xff]  }
 0x1c5   : > { %7986 = vmatprep.subr.bf16.mxu1 %v9935_v20  ;;  %8410 = vmatprep.subr.bf16.mxu0 %v9938_v21  ;;  %v10002_v19 = vld [vmem:[%s11618_s19 + $0xb50] ss:$8 sps:$4 sm:$0xff]   ;;  %v10007_v20 = vld [vmem:[%s11618_s19 + $0x364] ss:$8 sps:$4 sm:$0xff]  }
 0x1c6   : > { %v10010_v21 = vld [vmem:[%s11618_s19 + $0xb64] ss:$8 sps:$4 sm:$0xff]  }
 0x1c8   : > { %7987 = vmatpush1.bf16.msra.mxu1 %v9933_v22  ;;  %8411 = vmatpush1.bf16.msra.mxu0 %v9936_v23  ;;  %v10005_v22 = vld [vmem:[%s11618_s19 + $0x360] ss:$8 sps:$4 sm:$0xff]  }
 0x1c9   : > { %7988 = vmatprep.subr.bf16.mxu1 %v9941_v24  ;;  %8412 = vmatprep.subr.bf16.mxu0 %v9944_v25  ;;  %v10008_v23 = vld [vmem:[%s11618_s19 + $0xb60] ss:$8 sps:$4 sm:$0xff]   ;;  %v10013_v24 = vld [vmem:[%s11618_s19 + $0x374] ss:$8 sps:$4 sm:$0xff]  }
 0x1ca   : > { %v10016_v25 = vld [vmem:[%s11618_s19 + $0xb74] ss:$8 sps:$4 sm:$0xff]  }
 0x1cc   : > { %7989 = vmatpush1.bf16.msra.mxu1 %v9939_v26  ;;  %8413 = vmatpush1.bf16.msra.mxu0 %v9942_v27  ;;  %v10011_v26 = vld [vmem:[%s11618_s19 + $0x370] ss:$8 sps:$4 sm:$0xff]  }
 0x1cd   : > { %7990 = vmatprep.subr.bf16.mxu1 %v9947_v28  ;;  %8414 = vmatprep.subr.bf16.mxu0 %v9950_v29  ;;  %v10014_v27 = vld [vmem:[%s11618_s19 + $0xb70] ss:$8 sps:$4 sm:$0xff]   ;;  %v10019_v28 = vld [vmem:[%s11618_s19 + $0x384] ss:$8 sps:$4 sm:$0xff]  }
 0x1ce   : > { %v10022_v29 = vld [vmem:[%s11618_s19 + $0xb84] ss:$8 sps:$4 sm:$0xff]  }
 0x1d0   : > { %7991 = vmatpush1.bf16.msra.mxu1 %v9945_v0  ;;  %8415 = vmatpush1.bf16.msra.mxu0 %v9948_v1  ;;  %v10017_v0 = vld [vmem:[%s11618_s19 + $0x380] ss:$8 sps:$4 sm:$0xff]  }
 0x1d1   : > { %7992 = vmatprep.subr.bf16.mxu1 %v9953_v3  ;;  %8416 = vmatprep.subr.bf16.mxu0 %v9956_v2  ;;  %v10020_v1 = vld [vmem:[%s11618_s19 + $0xb80] ss:$8 sps:$4 sm:$0xff]   ;;  %v10025_v3 = vld [vmem:[%s11618_s19 + $0x394] ss:$8 sps:$4 sm:$0xff]  }
 0x1d2   : > { %v10028_v2 = vld [vmem:[%s11618_s19 + $0xb94] ss:$8 sps:$4 sm:$0xff]  }
 0x1d4   : > { %7993 = vmatpush1.bf16.msra.mxu1 %v9951_v5  ;;  %8417 = vmatpush1.bf16.msra.mxu0 %v9954_v6  ;;  %v10023_v5 = vld [vmem:[%s11618_s19 + $0x390] ss:$8 sps:$4 sm:$0xff]  }
 0x1d5   : > { %7994 = vmatprep.subr.bf16.mxu1 %v9959_v30  ;;  %8418 = vmatprep.subr.bf16.mxu0 %v9962_v31  ;;  %v10026_v6 = vld [vmem:[%s11618_s19 + $0xb90] ss:$8 sps:$4 sm:$0xff]   ;;  %v10031_v30 = vld [vmem:[%s11618_s19 + $0x3a4] ss:$8 sps:$4 sm:$0xff]  }
 0x1d6   : > { %v10034_v31 = vld [vmem:[%s11618_s19 + $0xba4] ss:$8 sps:$4 sm:$0xff]  }
 0x1d8   : > { %7995 = vmatpush1.bf16.msra.mxu1 %v9957_v32  ;;  %8419 = vmatpush1.bf16.msra.mxu0 %v9960_v33  ;;  %v10029_v32 = vld [vmem:[%s11618_s19 + $0x3a0] ss:$8 sps:$4 sm:$0xff]  }
 0x1d9   : > { %7996 = vmatprep.subr.bf16.mxu1 %v9965_v34  ;;  %8420 = vmatprep.subr.bf16.mxu0 %v9968_v35  ;;  %v10032_v33 = vld [vmem:[%s11618_s19 + $0xba0] ss:$8 sps:$4 sm:$0xff]   ;;  %v10037_v34 = vld [vmem:[%s11618_s19 + $0x3b4] ss:$8 sps:$4 sm:$0xff]  }
 0x1da   : > { %v10040_v35 = vld [vmem:[%s11618_s19 + $0xbb4] ss:$8 sps:$4 sm:$0xff]  }
 0x1dc   : > { %7997 = vmatpush1.bf16.msra.mxu1 %v9963_v36  ;;  %8421 = vmatpush1.bf16.msra.mxu0 %v9966_v37  ;;  %v10035_v36 = vld [vmem:[%s11618_s19 + $0x3b0] ss:$8 sps:$4 sm:$0xff]  }
 0x1dd   : > { %8019 = vmatprep.subr.bf16.mxu1 %v9971_v38  ;;  %8443 = vmatprep.subr.bf16.mxu0 %v9974_v39  ;;  %v10038_v37 = vld [vmem:[%s11618_s19 + $0xbb0] ss:$8 sps:$4 sm:$0xff]   ;;  %v10043_v38 = vld [vmem:[%s11618_s19 + $0x3c4] ss:$8 sps:$4 sm:$0xff]  }
 0x1de   : > { %v10046_v39 = vld [vmem:[%s11618_s19 + $0xbc4] ss:$8 sps:$4 sm:$0xff]  }
 0x1df   : > { %7999 = vmatmul.mubr.bf16.vlgmr.msra.gmra.mrb[0].mxu1 %v8926_v48  ;;  %8423 = vmatmul.mubr.bf16.vlgmr.msra.gmra.mrb[0].mxu0 %v8942_v49  ;;  %v10047_v48 = vld [vmem:[%s11618_s19 + $0x3d0] ss:$8 sps:$4 sm:$0xff]  }
 0x1e0   : > { %8020 = vmatpush1.bf16.msra.mxu1 %v9969_v40  ;;  %8444 = vmatpush1.bf16.msra.mxu0 %v9972_v41  ;;  %v10041_v40 = vld [vmem:[%s11618_s19 + $0x3c0] ss:$8 sps:$4 sm:$0xff]   ;;  %v10050_v49 = vld [vmem:[%s11618_s19 + $0xbd0] ss:$8 sps:$4 sm:$0xff]  }
 0x1e1   : > { %8021 = vmatprep.subr.bf16.mxu1 %v9977_v52  ;;  %8445 = vmatprep.subr.bf16.mxu0 %v9980_v42  ;;  %v10044_v41 = vld [vmem:[%s11618_s19 + $0xbc0] ss:$8 sps:$4 sm:$0xff]  }
 0x1e2   : > { %8008 = vmatprep.mubr.bf16.mxu1 %v8959_v43  ;;  %8432 = vmatprep.mubr.bf16.mxu0 %v8975_v46  ;;  %v10053_v52 = vld [vmem:[%s11618_s19 + $0x3e0] ss:$8 sps:$4 sm:$0xff]   ;;  %v10061_v43 = vld [vmem:[%s11618_s19 + $0x3f4] ss:$8 sps:$4 sm:$0xff]  }
 0x1e3   : > { %v10056_v42 = vld [vmem:[%s11618_s19 + $0xbe0] ss:$8 sps:$4 sm:$0xff]   ;;  %v10064_v46 = vld [vmem:[%s11618_s19 + $0xbf4] ss:$8 sps:$4 sm:$0xff]  }
 0x1e4   : > { %8022 = vmatpush1.bf16.msra.mxu1 %v9975_v47  ;;  %8446 = vmatpush1.bf16.msra.mxu0 %v9978_v53  ;;  %v10059_v47 = vld [vmem:[%s11618_s19 + $0x3f0] ss:$8 sps:$4 sm:$0xff]  }
 0x1e5   : > { %8023 = vmatprep.subr.bf16.mxu1 %v9983_v54  ;;  %8447 = vmatprep.subr.bf16.mxu0 %v9986_v55  ;;  %v10062_v53 = vld [vmem:[%s11618_s19 + $0xbf0] ss:$8 sps:$4 sm:$0xff]   ;;  %v10067_v54 = vld [vmem:[%s11618_s19 + $0x404] ss:$8 sps:$4 sm:$0xff]  }
 0x1e6   : > { %v10070_v55 = vld [vmem:[%s11618_s19 + $0xc04] ss:$8 sps:$4 sm:$0xff]  }
 0x1e7   : > { %8009 = vmatmul.mubr.bf16.gmra.mrb[4].mxu1 %v8958_v60  ;;  %8433 = vmatmul.mubr.bf16.gmra.mrb[4].mxu0 %v8974_v61  ;;  %v4427_v60 = vld [vmem:[%s12457_s0 + $0x118] sm:$0xff] }
 0x1e8   : > { %8024 = vmatpush1.bf16.msra.mxu1 %v9981_v56  ;;  %8448 = vmatpush1.bf16.msra.mxu0 %v9984_v57  ;;  %v10065_v56 = vld [vmem:[%s11618_s19 + $0x400] ss:$8 sps:$4 sm:$0xff]   ;;  %v4443_v61 = vld [vmem:[%s12457_s0 + $0x198] sm:$0xff] }
 0x1e9   : > { %8025 = vmatprep.subr.bf16.mxu1 %v9989_v4  ;;  %8449 = vmatprep.subr.bf16.mxu0 %v9992_v7  ;;  %v10068_v57 = vld [vmem:[%s11618_s19 + $0xc00] ss:$8 sps:$4 sm:$0xff]   ;;  %v8928_v4 = vcombine.low %v11925_v58, %v11930_v59  ;;  %v8944_v7 = vcombine.low %v11935_v62, %v11940_v63  ;;  %v10076_v58 = vld [vmem:[%s11618_s19 + $0xc14] ss:$8 sps:$4 sm:$0xff]   ;;  %v8961_v59 = vcombine.high %v4427_v60, %v4443_v61  ;;  %v10071_v63 = vld [vmem:[%s11618_s19 + $0x410] ss:$8 sps:$4 sm:$0xff]  }
 0x1ea   : > { %8051 = vmatprep.mubr.bf16.mxu1 %v8929_v8  ;;  %8475 = vmatprep.mubr.bf16.mxu0 %v8945_v9  ;;  %v4435_v8 = vld [vmem:[%s12457_s0 + $0x158] sm:$0xff] }
 0x1eb   : > { %v4451_v9 = vld [vmem:[%s12457_s0 + $0x1d8] sm:$0xff] }
 0x1ec   : > { %8026 = vmatpush1.bf16.msra.mxu1 %v9987_v10  ;;  %8450 = vmatpush1.bf16.msra.mxu0 %v9990_v11  ;;  %v10073_v10 = vld [vmem:[%s11618_s19 + $0x414] ss:$8 sps:$4 sm:$0xff]   ;;  %v8977_v62 = vcombine.high %v4435_v8, %v4451_v9  ;;  %v10074_v11 = vld [vmem:[%s11618_s19 + $0xc10] ss:$8 sps:$4 sm:$0xff]  }
 0x1ed   : > { %8027 = vmatprep.subr.bf16.mxu1 %v9995_v12  ;;  %8451 = vmatprep.subr.bf16.mxu0 %v9998_v13  ;;  %v10079_v12 = vld [vmem:[%s11618_s19 + $0x424] ss:$8 sps:$4 sm:$0xff]  }
 0x1ee   : > { %v10082_v13 = vld [vmem:[%s11618_s19 + $0xc24] ss:$8 sps:$4 sm:$0xff]  }
 0x1f0   : > { %8028 = vmatpush1.bf16.msra.mxu1 %v9993_v14  ;;  %8452 = vmatpush1.bf16.msra.mxu0 %v9996_v15  ;;  %v10077_v14 = vld [vmem:[%s11618_s19 + $0x420] ss:$8 sps:$4 sm:$0xff]  }
 0x1f1   : > { %8029 = vmatprep.subr.bf16.mxu1 %v10001_v16  ;;  %8453 = vmatprep.subr.bf16.mxu0 %v10004_v17  ;;  %v10080_v15 = vld [vmem:[%s11618_s19 + $0xc20] ss:$8 sps:$4 sm:$0xff]  }
 0x1f2   : > { %v12029_v16 = vld [vmem:[%s12457_s0 + $0x20] sm:$0xff] }
 0x1f3   : > { %v12034_v17 = vld [vmem:[%s12457_s0 + $0xa0] sm:$0xff] }
 0x1f4   : > { %8030 = vmatpush1.bf16.msra.mxu1 %v9999_v18  ;;  %8454 = vmatpush1.bf16.msra.mxu0 %v10002_v19  ;;  %v8960_v18 = vcombine.low %v4427_v60, %v4443_v61  ;;  %v8976_v19 = vcombine.low %v4435_v8, %v4451_v9  ;;  %v10145_v60 = vld [vmem:[%s11618_s19 + $0x4d4] ss:$8 sps:$4 sm:$0xff]   ;;  %v10151_v8 = vld [vmem:[%s11618_s19 + $0x4e4] ss:$8 sps:$4 sm:$0xff]  }
 0x1f5   : > { %8031 = vmatprep.subr.bf16.mxu1 %v10007_v20  ;;  %8455 = vmatprep.subr.bf16.mxu0 %v10010_v21  ;;  %v12039_v20 = vld [vmem:[%s12457_s0 + $0x60] sm:$0xff]  ;;  %v10148_v61 = vld [vmem:[%s11618_s19 + $0xcd4] ss:$8 sps:$4 sm:$0xff]  }
 0x1f6   : > { %v12044_v21 = vld [vmem:[%s12457_s0 + $0xe0] sm:$0xff] }
 0x1f7   : > { %v10154_v9 = vld [vmem:[%s11618_s19 + $0xce4] ss:$8 sps:$4 sm:$0xff]  }
 0x1f8   : > { %8032 = vmatpush1.bf16.msra.mxu1 %v10005_v22  ;;  %8456 = vmatpush1.bf16.msra.mxu0 %v10008_v23  ;;  %v10085_v22 = vld [vmem:[%s11618_s19 + $0x434] ss:$8 sps:$4 sm:$0xff]  }
 0x1f9   : > { %8033 = vmatprep.subr.bf16.mxu1 %v10013_v24  ;;  %8457 = vmatprep.subr.bf16.mxu0 %v10016_v25  ;;  %v10088_v23 = vld [vmem:[%s11618_s19 + $0xc34] ss:$8 sps:$4 sm:$0xff]   ;;  %v8931_v24 = vcombine.high %v12029_v16, %v12034_v17  ;;  %v8947_v25 = vcombine.high %v12039_v20, %v12044_v21 }
 0x1fc   : > { %8034 = vmatpush1.bf16.msra.mxu1 %v10011_v26  ;;  %8458 = vmatpush1.bf16.msra.mxu0 %v10014_v27  ;;  %v10083_v26 = vld [vmem:[%s11618_s19 + $0x430] ss:$8 sps:$4 sm:$0xff]  }
 0x1fd   : > { %8035 = vmatprep.subr.bf16.mxu1 %v10019_v28  ;;  %8459 = vmatprep.subr.bf16.mxu0 %v10022_v29  ;;  %v10086_v27 = vld [vmem:[%s11618_s19 + $0xc30] ss:$8 sps:$4 sm:$0xff]   ;;  %v10091_v28 = vld [vmem:[%s11618_s19 + $0x444] ss:$8 sps:$4 sm:$0xff]  }
 0x1fe   : > { %v10094_v29 = vld [vmem:[%s11618_s19 + $0xc44] ss:$8 sps:$4 sm:$0xff]  }
 0x200   : > { %8036 = vmatpush1.bf16.msra.mxu1 %v10017_v0  ;;  %8460 = vmatpush1.bf16.msra.mxu0 %v10020_v1  ;;  %v10089_v0 = vld [vmem:[%s11618_s19 + $0x440] ss:$8 sps:$4 sm:$0xff]  }
 0x201   : > { %8037 = vmatprep.subr.bf16.mxu1 %v10025_v3  ;;  %8461 = vmatprep.subr.bf16.mxu0 %v10028_v2  ;;  %v10092_v1 = vld [vmem:[%s11618_s19 + $0xc40] ss:$8 sps:$4 sm:$0xff]   ;;  %v10097_v3 = vld [vmem:[%s11618_s19 + $0x454] ss:$8 sps:$4 sm:$0xff]  }
 0x202   : > { %v10100_v2 = vld [vmem:[%s11618_s19 + $0xc54] ss:$8 sps:$4 sm:$0xff]  }
 0x204   : > { %8038 = vmatpush1.bf16.msra.mxu1 %v10023_v5  ;;  %8462 = vmatpush1.bf16.msra.mxu0 %v10026_v6  ;;  %v10095_v5 = vld [vmem:[%s11618_s19 + $0x450] ss:$8 sps:$4 sm:$0xff]  }
 0x205   : > { %8039 = vmatprep.subr.bf16.mxu1 %v10031_v30  ;;  %8463 = vmatprep.subr.bf16.mxu0 %v10034_v31  ;;  %v10098_v6 = vld [vmem:[%s11618_s19 + $0xc50] ss:$8 sps:$4 sm:$0xff]   ;;  %v10103_v30 = vld [vmem:[%s11618_s19 + $0x464] ss:$8 sps:$4 sm:$0xff]  }
 0x206   : > { %v10106_v31 = vld [vmem:[%s11618_s19 + $0xc64] ss:$8 sps:$4 sm:$0xff]  }
 0x208   : > { %8040 = vmatpush1.bf16.msra.mxu1 %v10029_v32  ;;  %8464 = vmatpush1.bf16.msra.mxu0 %v10032_v33  ;;  %v10101_v32 = vld [vmem:[%s11618_s19 + $0x460] ss:$8 sps:$4 sm:$0xff]  }
 0x209   : > { %8041 = vmatprep.subr.bf16.mxu1 %v10037_v34  ;;  %8465 = vmatprep.subr.bf16.mxu0 %v10040_v35  ;;  %v10104_v33 = vld [vmem:[%s11618_s19 + $0xc60] ss:$8 sps:$4 sm:$0xff]   ;;  %v10109_v34 = vld [vmem:[%s11618_s19 + $0x474] ss:$8 sps:$4 sm:$0xff]  }
 0x20a   : > { %v10112_v35 = vld [vmem:[%s11618_s19 + $0xc74] ss:$8 sps:$4 sm:$0xff]  }
 0x20c   : > { %8042 = vmatpush1.bf16.msra.mxu1 %v10035_v36  ;;  %8466 = vmatpush1.bf16.msra.mxu0 %v10038_v37  ;;  %v10107_v36 = vld [vmem:[%s11618_s19 + $0x470] ss:$8 sps:$4 sm:$0xff]  }
 0x20d   : > { %8043 = vmatprep.subr.bf16.mxu1 %v10043_v38  ;;  %8467 = vmatprep.subr.bf16.mxu0 %v10046_v39  ;;  %v10110_v37 = vld [vmem:[%s11618_s19 + $0xc70] ss:$8 sps:$4 sm:$0xff]   ;;  %v10115_v38 = vld [vmem:[%s11618_s19 + $0x484] ss:$8 sps:$4 sm:$0xff]  }
 0x20e   : > { %v10118_v39 = vld [vmem:[%s11618_s19 + $0xc84] ss:$8 sps:$4 sm:$0xff]  }
 0x210   : > { %8044 = vmatpush1.bf16.msra.mxu1 %v10041_v40  ;;  %8468 = vmatpush1.bf16.msra.mxu0 %v10044_v41  ;;  %v10113_v40 = vld [vmem:[%s11618_s19 + $0x480] ss:$8 sps:$4 sm:$0xff]  }
 0x211   : > { %8045 = vmatprep.subr.bf16.mxu1 %v10049_v44  ;;  %8469 = vmatprep.subr.bf16.mxu0 %v10052_v45  ;;  %v10116_v41 = vld [vmem:[%s11618_s19 + $0xc80] ss:$8 sps:$4 sm:$0xff]   ;;  %v10121_v44 = vld [vmem:[%s11618_s19 + $0x494] ss:$8 sps:$4 sm:$0xff]  }
 0x212   : > { %v10124_v45 = vld [vmem:[%s11618_s19 + $0xc94] ss:$8 sps:$4 sm:$0xff]  }
 0x214   : > { %8046 = vmatpush1.bf16.msra.mxu1 %v10047_v48  ;;  %8470 = vmatpush1.bf16.msra.mxu0 %v10050_v49  ;;  %v10119_v48 = vld [vmem:[%s11618_s19 + $0x490] ss:$8 sps:$4 sm:$0xff]  }
 0x215   : > { %8047 = vmatprep.subr.bf16.mxu1 %v10055_v50  ;;  %8471 = vmatprep.subr.bf16.mxu0 %v10058_v51  ;;  %v10122_v49 = vld [vmem:[%s11618_s19 + $0xc90] ss:$8 sps:$4 sm:$0xff]   ;;  %v10127_v50 = vld [vmem:[%s11618_s19 + $0x4a4] ss:$8 sps:$4 sm:$0xff]  }
 0x216   : > { %v10130_v51 = vld [vmem:[%s11618_s19 + $0xca4] ss:$8 sps:$4 sm:$0xff]  }
 0x218   : > { %8048 = vmatpush1.bf16.msra.mxu1 %v10053_v52  ;;  %8472 = vmatpush1.bf16.msra.mxu0 %v10056_v42  ;;  %v10125_v52 = vld [vmem:[%s11618_s19 + $0x4a0] ss:$8 sps:$4 sm:$0xff]  }
 0x219   : > { %8049 = vmatprep.subr.bf16.mxu1 %v10061_v43  ;;  %8473 = vmatprep.subr.bf16.mxu0 %v10064_v46  ;;  %v10128_v42 = vld [vmem:[%s11618_s19 + $0xca0] ss:$8 sps:$4 sm:$0xff]   ;;  %v10133_v43 = vld [vmem:[%s11618_s19 + $0x4b4] ss:$8 sps:$4 sm:$0xff]  }
 0x21a   : > { %v10136_v46 = vld [vmem:[%s11618_s19 + $0xcb4] ss:$8 sps:$4 sm:$0xff]  }
 0x21c   : > { %8050 = vmatpush1.bf16.msra.mxu1 %v10059_v47  ;;  %8474 = vmatpush1.bf16.msra.mxu0 %v10062_v53  ;;  %v10131_v47 = vld [vmem:[%s11618_s19 + $0x4b0] ss:$8 sps:$4 sm:$0xff]  }
 0x21d   : > { %8072 = vmatprep.subr.bf16.mxu1 %v10067_v54  ;;  %8496 = vmatprep.subr.bf16.mxu0 %v10070_v55  ;;  %v10134_v53 = vld [vmem:[%s11618_s19 + $0xcb0] ss:$8 sps:$4 sm:$0xff]   ;;  %v10139_v54 = vld [vmem:[%s11618_s19 + $0x4c4] ss:$8 sps:$4 sm:$0xff]  }
 0x21e   : > { %v10142_v55 = vld [vmem:[%s11618_s19 + $0xcc4] ss:$8 sps:$4 sm:$0xff]  }
 0x21f   : > { %8052 = vmatmul.mubr.bf16.vlgmr.msra.gmra.mrb[0].mxu1 %v8928_v4  ;;  %8476 = vmatmul.mubr.bf16.vlgmr.msra.gmra.mrb[0].mxu0 %v8944_v7  ;;  %v10143_v4 = vld [vmem:[%s11618_s19 + $0x4d0] ss:$8 sps:$4 sm:$0xff]  }
 0x220   : > { %8073 = vmatpush1.bf16.msra.mxu1 %v10065_v56  ;;  %8497 = vmatpush1.bf16.msra.mxu0 %v10068_v57  ;;  %v10137_v56 = vld [vmem:[%s11618_s19 + $0x4c0] ss:$8 sps:$4 sm:$0xff]   ;;  %v10146_v7 = vld [vmem:[%s11618_s19 + $0xcd0] ss:$8 sps:$4 sm:$0xff]  }
 0x221   : > { %8074 = vmatprep.subr.bf16.mxu1 %v10073_v10  ;;  %8498 = vmatprep.subr.bf16.mxu0 %v10076_v58  ;;  %v10140_v57 = vld [vmem:[%s11618_s19 + $0xcc0] ss:$8 sps:$4 sm:$0xff]  }
 0x222   : > { %8061 = vmatprep.mubr.bf16.mxu1 %v8961_v59  ;;  %8485 = vmatprep.mubr.bf16.mxu0 %v8977_v62  ;;  %v10149_v10 = vld [vmem:[%s11618_s19 + $0x4e0] ss:$8 sps:$4 sm:$0xff]   ;;  %v10157_v59 = vld [vmem:[%s11618_s19 + $0x4f4] ss:$8 sps:$4 sm:$0xff]  }
 0x223   : > { %v10152_v58 = vld [vmem:[%s11618_s19 + $0xce0] ss:$8 sps:$4 sm:$0xff]   ;;  %v10160_v62 = vld [vmem:[%s11618_s19 + $0xcf4] ss:$8 sps:$4 sm:$0xff]  }
 0x224   : > { %8075 = vmatpush1.bf16.msra.mxu1 %v10071_v63  ;;  %8499 = vmatpush1.bf16.msra.mxu0 %v10074_v11  ;;  %v10155_v63 = vld [vmem:[%s11618_s19 + $0x4f0] ss:$8 sps:$4 sm:$0xff]  }
 0x225   : > { %8076 = vmatprep.subr.bf16.mxu1 %v10079_v12  ;;  %8500 = vmatprep.subr.bf16.mxu0 %v10082_v13  ;;  %v10158_v11 = vld [vmem:[%s11618_s19 + $0xcf0] ss:$8 sps:$4 sm:$0xff]   ;;  %v10163_v12 = vld [vmem:[%s11618_s19 + $0x504] ss:$8 sps:$4 sm:$0xff]  }
 0x226   : > { %v10166_v13 = vld [vmem:[%s11618_s19 + $0xd04] ss:$8 sps:$4 sm:$0xff]  }
 0x227   : > { %8062 = vmatmul.mubr.bf16.gmra.mrb[4].mxu1 %v8960_v18  ;;  %8486 = vmatmul.mubr.bf16.gmra.mrb[4].mxu0 %v8976_v19  ;;  %v4436_v18 = vld [vmem:[%s12457_s0 + $0x160] sm:$0xff] }
 0x228   : > { %8077 = vmatpush1.bf16.msra.mxu1 %v10077_v14  ;;  %8501 = vmatpush1.bf16.msra.mxu0 %v10080_v15  ;;  %v4428_v14 = vld [vmem:[%s12457_s0 + $0x120] sm:$0xff] }
 0x229   : > { %8078 = vmatprep.subr.bf16.mxu1 %v10085_v22  ;;  %8502 = vmatprep.subr.bf16.mxu0 %v10088_v23  ;;  %v4444_v15 = vld [vmem:[%s12457_s0 + $0x1a0] sm:$0xff]  ;;  %v8930_v22 = vcombine.low %v12029_v16, %v12034_v17  ;;  %v8946_v23 = vcombine.low %v12039_v20, %v12044_v21  ;;  %v12131_v20 = vld [vmem:[%s12457_s0 + $0x28] sm:$0xff] }
 0x22a   : > { %8104 = vmatprep.mubr.bf16.mxu1 %v8931_v24  ;;  %8528 = vmatprep.mubr.bf16.mxu0 %v8947_v25  ;;  %v4452_v19 = vld [vmem:[%s12457_s0 + $0x1e0] sm:$0xff]  ;;  %v12136_v21 = vld [vmem:[%s12457_s0 + $0xa8] sm:$0xff] }
 0x22b   : > { %v10161_v24 = vld [vmem:[%s11618_s19 + $0x500] ss:$8 sps:$4 sm:$0xff]   ;;  %v10175_v16 = vld [vmem:[%s11618_s19 + $0x524] ss:$8 sps:$4 sm:$0xff]  }
 0x22c   : > { %8079 = vmatpush1.bf16.msra.mxu1 %v10083_v26  ;;  %8503 = vmatpush1.bf16.msra.mxu0 %v10086_v27  ;;  %v10164_v25 = vld [vmem:[%s11618_s19 + $0xd00] ss:$8 sps:$4 sm:$0xff]   ;;  %v10169_v26 = vld [vmem:[%s11618_s19 + $0x514] ss:$8 sps:$4 sm:$0xff]   ;;  %v10178_v17 = vld [vmem:[%s11618_s19 + $0xd24] ss:$8 sps:$4 sm:$0xff]  }
 0x22d   : > { %8080 = vmatprep.subr.bf16.mxu1 %v10091_v28  ;;  %8504 = vmatprep.subr.bf16.mxu0 %v10094_v29  ;;  %v10172_v27 = vld [vmem:[%s11618_s19 + $0xd14] ss:$8 sps:$4 sm:$0xff]   ;;  %v10167_v28 = vld [vmem:[%s11618_s19 + $0x510] ss:$8 sps:$4 sm:$0xff]  }
 0x22e   : > { %v10170_v29 = vld [vmem:[%s11618_s19 + $0xd10] ss:$8 sps:$4 sm:$0xff]  }
 0x230   : > { %8081 = vmatpush1.bf16.msra.mxu1 %v10089_v0  ;;  %8505 = vmatpush1.bf16.msra.mxu0 %v10092_v1  ;;  %v8963_v0 = vcombine.high %v4428_v14, %v4444_v15  ;;  %v8979_v1 = vcombine.high %v4436_v18, %v4452_v19 }
 0x231   : > { %8082 = vmatprep.subr.bf16.mxu1 %v10097_v3  ;;  %8506 = vmatprep.subr.bf16.mxu0 %v10100_v2  ;;  %v12141_v3 = vld [vmem:[%s12457_s0 + $0x68] sm:$0xff] }
 0x232   : > { %v12146_v2 = vld [vmem:[%s12457_s0 + $0xe8] sm:$0xff] }
 0x234   : > { %8083 = vmatpush1.bf16.msra.mxu1 %v10095_v5  ;;  %8507 = vmatpush1.bf16.msra.mxu0 %v10098_v6  ;;  %v8962_v5 = vcombine.low %v4428_v14, %v4444_v15  ;;  %v8978_v6 = vcombine.low %v4436_v18, %v4452_v19  ;;  %v10233_v14 = vld [vmem:[%s11618_s19 + $0x5c0] ss:$8 sps:$4 sm:$0xff]   ;;  %v10241_v18 = vld [vmem:[%s11618_s19 + $0x5d4] ss:$8 sps:$4 sm:$0xff]  }
 0x235   : > { %8084 = vmatprep.subr.bf16.mxu1 %v10103_v30  ;;  %8508 = vmatprep.subr.bf16.mxu0 %v10106_v31  ;;  %v10173_v30 = vld [vmem:[%s11618_s19 + $0x520] ss:$8 sps:$4 sm:$0xff]   ;;  %v10244_v19 = vld [vmem:[%s11618_s19 + $0xdd4] ss:$8 sps:$4 sm:$0xff]  }
 0x236   : > { %v10176_v31 = vld [vmem:[%s11618_s19 + $0xd20] ss:$8 sps:$4 sm:$0xff]  }
 0x237   : > { %v10236_v15 = vld [vmem:[%s11618_s19 + $0xdc0] ss:$8 sps:$4 sm:$0xff]  }
 0x238   : > { %8085 = vmatpush1.bf16.msra.mxu1 %v10101_v32  ;;  %8509 = vmatpush1.bf16.msra.mxu0 %v10104_v33  ;;  %v10181_v32 = vld [vmem:[%s11618_s19 + $0x534] ss:$8 sps:$4 sm:$0xff]  }
 0x239   : > { %8086 = vmatprep.subr.bf16.mxu1 %v10109_v34  ;;  %8510 = vmatprep.subr.bf16.mxu0 %v10112_v35  ;;  %v10184_v33 = vld [vmem:[%s11618_s19 + $0xd34] ss:$8 sps:$4 sm:$0xff]   ;;  %v8933_v34 = vcombine.high %v12131_v20, %v12136_v21  ;;  %v8949_v35 = vcombine.high %v12141_v3, %v12146_v2 }
 0x23c   : > { %8087 = vmatpush1.bf16.msra.mxu1 %v10107_v36  ;;  %8511 = vmatpush1.bf16.msra.mxu0 %v10110_v37  ;;  %v10179_v36 = vld [vmem:[%s11618_s19 + $0x530] ss:$8 sps:$4 sm:$0xff]  }
 0x23d   : > { %8088 = vmatprep.subr.bf16.mxu1 %v10115_v38  ;;  %8512 = vmatprep.subr.bf16.mxu0 %v10118_v39  ;;  %v10182_v37 = vld [vmem:[%s11618_s19 + $0xd30] ss:$8 sps:$4 sm:$0xff]   ;;  %v10187_v38 = vld [vmem:[%s11618_s19 + $0x544] ss:$8 sps:$4 sm:$0xff]  }
 0x23e   : > { %v10190_v39 = vld [vmem:[%s11618_s19 + $0xd44] ss:$8 sps:$4 sm:$0xff]  }
 0x240   : > { %8089 = vmatpush1.bf16.msra.mxu1 %v10113_v40  ;;  %8513 = vmatpush1.bf16.msra.mxu0 %v10116_v41  ;;  %v10185_v40 = vld [vmem:[%s11618_s19 + $0x540] ss:$8 sps:$4 sm:$0xff]  }
 0x241   : > { %8090 = vmatprep.subr.bf16.mxu1 %v10121_v44  ;;  %8514 = vmatprep.subr.bf16.mxu0 %v10124_v45  ;;  %v10188_v41 = vld [vmem:[%s11618_s19 + $0xd40] ss:$8 sps:$4 sm:$0xff]   ;;  %v10193_v44 = vld [vmem:[%s11618_s19 + $0x554] ss:$8 sps:$4 sm:$0xff]  }
 0x242   : > { %v10196_v45 = vld [vmem:[%s11618_s19 + $0xd54] ss:$8 sps:$4 sm:$0xff]  }
 0x244   : > { %8091 = vmatpush1.bf16.msra.mxu1 %v10119_v48  ;;  %8515 = vmatpush1.bf16.msra.mxu0 %v10122_v49  ;;  %v10191_v48 = vld [vmem:[%s11618_s19 + $0x550] ss:$8 sps:$4 sm:$0xff]  }
 0x245   : > { %8092 = vmatprep.subr.bf16.mxu1 %v10127_v50  ;;  %8516 = vmatprep.subr.bf16.mxu0 %v10130_v51  ;;  %v10194_v49 = vld [vmem:[%s11618_s19 + $0xd50] ss:$8 sps:$4 sm:$0xff]   ;;  %v10199_v50 = vld [vmem:[%s11618_s19 + $0x564] ss:$8 sps:$4 sm:$0xff]  }
 0x246   : > { %v10202_v51 = vld [vmem:[%s11618_s19 + $0xd64] ss:$8 sps:$4 sm:$0xff]  }
 0x248   : > { %8093 = vmatpush1.bf16.msra.mxu1 %v10125_v52  ;;  %8517 = vmatpush1.bf16.msra.mxu0 %v10128_v42  ;;  %v10197_v52 = vld [vmem:[%s11618_s19 + $0x560] ss:$8 sps:$4 sm:$0xff]  }
 0x249   : > { %8094 = vmatprep.subr.bf16.mxu1 %v10133_v43  ;;  %8518 = vmatprep.subr.bf16.mxu0 %v10136_v46  ;;  %v10200_v42 = vld [vmem:[%s11618_s19 + $0xd60] ss:$8 sps:$4 sm:$0xff]   ;;  %v10205_v43 = vld [vmem:[%s11618_s19 + $0x574] ss:$8 sps:$4 sm:$0xff]  }
 0x24a   : > { %v10208_v46 = vld [vmem:[%s11618_s19 + $0xd74] ss:$8 sps:$4 sm:$0xff]  }
 0x24c   : > { %8095 = vmatpush1.bf16.msra.mxu1 %v10131_v47  ;;  %8519 = vmatpush1.bf16.msra.mxu0 %v10134_v53  ;;  %v10203_v47 = vld [vmem:[%s11618_s19 + $0x570] ss:$8 sps:$4 sm:$0xff]  }
 0x24d   : > { %8096 = vmatprep.subr.bf16.mxu1 %v10139_v54  ;;  %8520 = vmatprep.subr.bf16.mxu0 %v10142_v55  ;;  %v10206_v53 = vld [vmem:[%s11618_s19 + $0xd70] ss:$8 sps:$4 sm:$0xff]   ;;  %v10211_v54 = vld [vmem:[%s11618_s19 + $0x584] ss:$8 sps:$4 sm:$0xff]  }
 0x24e   : > { %v10214_v55 = vld [vmem:[%s11618_s19 + $0xd84] ss:$8 sps:$4 sm:$0xff]  }
 0x250   : > { %8097 = vmatpush1.bf16.msra.mxu1 %v10137_v56  ;;  %8521 = vmatpush1.bf16.msra.mxu0 %v10140_v57  ;;  %v10209_v56 = vld [vmem:[%s11618_s19 + $0x580] ss:$8 sps:$4 sm:$0xff]  }
 0x251   : > { %8098 = vmatprep.subr.bf16.mxu1 %v10145_v60  ;;  %8522 = vmatprep.subr.bf16.mxu0 %v10148_v61  ;;  %v10212_v57 = vld [vmem:[%s11618_s19 + $0xd80] ss:$8 sps:$4 sm:$0xff]   ;;  %v10217_v60 = vld [vmem:[%s11618_s19 + $0x594] ss:$8 sps:$4 sm:$0xff]  }
 0x252   : > { %v10220_v61 = vld [vmem:[%s11618_s19 + $0xd94] ss:$8 sps:$4 sm:$0xff]  }
 0x254   : > { %8099 = vmatpush1.bf16.msra.mxu1 %v10143_v4  ;;  %8523 = vmatpush1.bf16.msra.mxu0 %v10146_v7  ;;  %v10215_v4 = vld [vmem:[%s11618_s19 + $0x590] ss:$8 sps:$4 sm:$0xff]  }
 0x255   : > { %8100 = vmatprep.subr.bf16.mxu1 %v10151_v8  ;;  %8524 = vmatprep.subr.bf16.mxu0 %v10154_v9  ;;  %v10218_v7 = vld [vmem:[%s11618_s19 + $0xd90] ss:$8 sps:$4 sm:$0xff]   ;;  %v10223_v8 = vld [vmem:[%s11618_s19 + $0x5a4] ss:$8 sps:$4 sm:$0xff]  }
 0x256   : > { %v10226_v9 = vld [vmem:[%s11618_s19 + $0xda4] ss:$8 sps:$4 sm:$0xff]  }
 0x258   : > { %8101 = vmatpush1.bf16.msra.mxu1 %v10149_v10  ;;  %8525 = vmatpush1.bf16.msra.mxu0 %v10152_v58  ;;  %v10221_v10 = vld [vmem:[%s11618_s19 + $0x5a0] ss:$8 sps:$4 sm:$0xff]  }
 0x259   : > { %8102 = vmatprep.subr.bf16.mxu1 %v10157_v59  ;;  %8526 = vmatprep.subr.bf16.mxu0 %v10160_v62  ;;  %v10224_v58 = vld [vmem:[%s11618_s19 + $0xda0] ss:$8 sps:$4 sm:$0xff]   ;;  %v10229_v59 = vld [vmem:[%s11618_s19 + $0x5b4] ss:$8 sps:$4 sm:$0xff]  }
 0x25a   : > { %v10232_v62 = vld [vmem:[%s11618_s19 + $0xdb4] ss:$8 sps:$4 sm:$0xff]  }
 0x25c   : > { %8103 = vmatpush1.bf16.msra.mxu1 %v10155_v63  ;;  %8527 = vmatpush1.bf16.msra.mxu0 %v10158_v11  ;;  %v10227_v63 = vld [vmem:[%s11618_s19 + $0x5b0] ss:$8 sps:$4 sm:$0xff]  }
 0x25d   : > { %8125 = vmatprep.subr.bf16.mxu1 %v10163_v12  ;;  %8549 = vmatprep.subr.bf16.mxu0 %v10166_v13  ;;  %v10230_v11 = vld [vmem:[%s11618_s19 + $0xdb0] ss:$8 sps:$4 sm:$0xff]   ;;  %v10235_v12 = vld [vmem:[%s11618_s19 + $0x5c4] ss:$8 sps:$4 sm:$0xff]  }
 0x25e   : > { %v10238_v13 = vld [vmem:[%s11618_s19 + $0xdc4] ss:$8 sps:$4 sm:$0xff]  }
 0x25f   : > { %8105 = vmatmul.mubr.bf16.vlgmr.msra.gmra.mrb[0].mxu1 %v8930_v22  ;;  %8529 = vmatmul.mubr.bf16.vlgmr.msra.gmra.mrb[0].mxu0 %v8946_v23  ;;  %v10239_v22 = vld [vmem:[%s11618_s19 + $0x5d0] ss:$8 sps:$4 sm:$0xff]  }
 0x260   : > { %8126 = vmatpush1.bf16.msra.mxu1 %v10161_v24  ;;  %8550 = vmatpush1.bf16.msra.mxu0 %v10164_v25  ;;  %v10242_v23 = vld [vmem:[%s11618_s19 + $0xdd0] ss:$8 sps:$4 sm:$0xff]   ;;  %v10247_v24 = vld [vmem:[%s11618_s19 + $0x5e4] ss:$8 sps:$4 sm:$0xff]  }
 0x261   : > { %8127 = vmatprep.subr.bf16.mxu1 %v10169_v26  ;;  %8551 = vmatprep.subr.bf16.mxu0 %v10172_v27  ;;  %v10250_v25 = vld [vmem:[%s11618_s19 + $0xde4] ss:$8 sps:$4 sm:$0xff]   ;;  %v10245_v26 = vld [vmem:[%s11618_s19 + $0x5e0] ss:$8 sps:$4 sm:$0xff]  }
 0x262   : > { %8114 = vmatprep.mubr.bf16.mxu1 %v8963_v0  ;;  %8538 = vmatprep.mubr.bf16.mxu0 %v8979_v1  ;;  %v10248_v27 = vld [vmem:[%s11618_s19 + $0xde0] ss:$8 sps:$4 sm:$0xff]   ;;  %v10251_v0 = vld [vmem:[%s11618_s19 + $0x5f0] ss:$8 sps:$4 sm:$0xff]  }
 0x263   : > { %v10254_v1 = vld [vmem:[%s11618_s19 + $0xdf0] ss:$8 sps:$4 sm:$0xff]  }
 0x264   : > { %8128 = vmatpush1.bf16.msra.mxu1 %v10167_v28  ;;  %8552 = vmatpush1.bf16.msra.mxu0 %v10170_v29  ;;  %v10253_v28 = vld [vmem:[%s11618_s19 + $0x5f4] ss:$8 sps:$4 sm:$0xff]  }
 0x265   : > { %8129 = vmatprep.subr.bf16.mxu1 %v10175_v16  ;;  %8553 = vmatprep.subr.bf16.mxu0 %v10178_v17  ;;  %v10256_v29 = vld [vmem:[%s11618_s19 + $0xdf4] ss:$8 sps:$4 sm:$0xff]   ;;  %v10259_v16 = vld [vmem:[%s11618_s19 + $0x604] ss:$8 sps:$4 sm:$0xff]  }
 0x266   : > { %v10262_v17 = vld [vmem:[%s11618_s19 + $0xe04] ss:$8 sps:$4 sm:$0xff]  }
 0x267   : > { %8115 = vmatmul.mubr.bf16.gmra.mrb[4].mxu1 %v8962_v5  ;;  %8539 = vmatmul.mubr.bf16.gmra.mrb[4].mxu0 %v8978_v6  ;;  %v4429_v5 = vld [vmem:[%s12457_s0 + $0x128] sm:$0xff]  ;;  %v8932_v6 = vcombine.low %v12131_v20, %v12136_v21 }
 0x268   : > { %8130 = vmatpush1.bf16.msra.mxu1 %v10173_v30  ;;  %8554 = vmatpush1.bf16.msra.mxu0 %v10176_v31  ;;  %v8948_v30 = vcombine.low %v12141_v3, %v12146_v2  ;;  %v4445_v31 = vld [vmem:[%s12457_s0 + $0x1a8] sm:$0xff]  ;;  %v10265_v3 = vld [vmem:[%s11618_s19 + $0x614] ss:$8 sps:$4 sm:$0xff]  }
 0x269   : > { %8131 = vmatprep.subr.bf16.mxu1 %v10181_v32  ;;  %8555 = vmatprep.subr.bf16.mxu0 %v10184_v33  ;;  %v4437_v32 = vld [vmem:[%s12457_s0 + $0x168] sm:$0xff]  ;;  %v10268_v2 = vld [vmem:[%s11618_s19 + $0xe14] ss:$8 sps:$4 sm:$0xff]  }
 0x26a   : > { %8157 = vmatprep.mubr.bf16.mxu1 %v8933_v34  ;;  %8581 = vmatprep.mubr.bf16.mxu0 %v8949_v35  ;;  %v4453_v33 = vld [vmem:[%s12457_s0 + $0x1e8] sm:$0xff]  ;;  %v8965_v34 = vcombine.high %v4429_v5, %v4445_v31 }
 0x26b   : > { %v10257_v20 = vld [vmem:[%s11618_s19 + $0x600] ss:$8 sps:$4 sm:$0xff]   ;;  %v8981_v35 = vcombine.high %v4437_v32, %v4453_v33 }
 0x26c   : > { %8132 = vmatpush1.bf16.msra.mxu1 %v10179_v36  ;;  %8556 = vmatpush1.bf16.msra.mxu0 %v10182_v37  ;;  %v10260_v21 = vld [vmem:[%s11618_s19 + $0xe00] ss:$8 sps:$4 sm:$0xff]   ;;  %v10263_v36 = vld [vmem:[%s11618_s19 + $0x610] ss:$8 sps:$4 sm:$0xff]  }
 0x26d   : > { %8133 = vmatprep.subr.bf16.mxu1 %v10187_v38  ;;  %8557 = vmatprep.subr.bf16.mxu0 %v10190_v39  ;;  %v10266_v37 = vld [vmem:[%s11618_s19 + $0xe10] ss:$8 sps:$4 sm:$0xff]   ;;  %v10271_v38 = vld [vmem:[%s11618_s19 + $0x624] ss:$8 sps:$4 sm:$0xff]  }
 0x26e   : > { %v10274_v39 = vld [vmem:[%s11618_s19 + $0xe24] ss:$8 sps:$4 sm:$0xff]  }
 0x270   : > { %8134 = vmatpush1.bf16.msra.mxu1 %v10185_v40  ;;  %8558 = vmatpush1.bf16.msra.mxu0 %v10188_v41  ;;  %v12235_v40 = vld [vmem:[%s12457_s0 + $0x30] sm:$0xff]  ;;  %v8964_v41 = vcombine.low %v4429_v5, %v4445_v31  ;;  %v10329_v5 = vld [vmem:[%s11618_s19 + $0x6c0] ss:$8 sps:$4 sm:$0xff]  }
 0x271   : > { %8135 = vmatprep.subr.bf16.mxu1 %v10193_v44  ;;  %8559 = vmatprep.subr.bf16.mxu0 %v10196_v45  ;;  %v8980_v44 = vcombine.low %v4437_v32, %v4453_v33  ;;  %v12240_v45 = vld [vmem:[%s12457_s0 + $0xb0] sm:$0xff] }
 0x272   : > { %v10340_v31 = vld [vmem:[%s11618_s19 + $0xed4] ss:$8 sps:$4 sm:$0xff]   ;;  %v10335_v32 = vld [vmem:[%s11618_s19 + $0x6d0] ss:$8 sps:$4 sm:$0xff]  }
 0x273   : > { %v10338_v33 = vld [vmem:[%s11618_s19 + $0xed0] ss:$8 sps:$4 sm:$0xff]  }
 0x274   : > { %8136 = vmatpush1.bf16.msra.mxu1 %v10191_v48  ;;  %8560 = vmatpush1.bf16.msra.mxu0 %v10194_v49  ;;  %v12245_v48 = vld [vmem:[%s12457_s0 + $0x70] sm:$0xff] }
 0x275   : > { %8137 = vmatprep.subr.bf16.mxu1 %v10199_v50  ;;  %8561 = vmatprep.subr.bf16.mxu0 %v10202_v51  ;;  %v12250_v49 = vld [vmem:[%s12457_s0 + $0xf0] sm:$0xff]  ;;  %v10269_v50 = vld [vmem:[%s11618_s19 + $0x620] ss:$8 sps:$4 sm:$0xff]  }
 0x276   : > { %v10272_v51 = vld [vmem:[%s11618_s19 + $0xe20] ss:$8 sps:$4 sm:$0xff]  }
 0x278   : > { %8138 = vmatpush1.bf16.msra.mxu1 %v10197_v52  ;;  %8562 = vmatpush1.bf16.msra.mxu0 %v10200_v42  ;;  %v10277_v52 = vld [vmem:[%s11618_s19 + $0x634] ss:$8 sps:$4 sm:$0xff]  }
 0x279   : > { %8139 = vmatprep.subr.bf16.mxu1 %v10205_v43  ;;  %8563 = vmatprep.subr.bf16.mxu0 %v10208_v46  ;;  %v10280_v42 = vld [vmem:[%s11618_s19 + $0xe34] ss:$8 sps:$4 sm:$0xff]   ;;  %v8935_v43 = vcombine.high %v12235_v40, %v12240_v45  ;;  %v8951_v46 = vcombine.high %v12245_v48, %v12250_v49 }
 0x27c   : > { %8140 = vmatpush1.bf16.msra.mxu1 %v10203_v47  ;;  %8564 = vmatpush1.bf16.msra.mxu0 %v10206_v53  ;;  %v10275_v47 = vld [vmem:[%s11618_s19 + $0x630] ss:$8 sps:$4 sm:$0xff]  }
 0x27d   : > { %8141 = vmatprep.subr.bf16.mxu1 %v10211_v54  ;;  %8565 = vmatprep.subr.bf16.mxu0 %v10214_v55  ;;  %v10278_v53 = vld [vmem:[%s11618_s19 + $0xe30] ss:$8 sps:$4 sm:$0xff]   ;;  %v10283_v54 = vld [vmem:[%s11618_s19 + $0x644] ss:$8 sps:$4 sm:$0xff]  }
 0x27e   : > { %v10286_v55 = vld [vmem:[%s11618_s19 + $0xe44] ss:$8 sps:$4 sm:$0xff]  }
 0x280   : > { %8142 = vmatpush1.bf16.msra.mxu1 %v10209_v56  ;;  %8566 = vmatpush1.bf16.msra.mxu0 %v10212_v57  ;;  %v10281_v56 = vld [vmem:[%s11618_s19 + $0x640] ss:$8 sps:$4 sm:$0xff]  }
 0x281   : > { %8143 = vmatprep.subr.bf16.mxu1 %v10217_v60  ;;  %8567 = vmatprep.subr.bf16.mxu0 %v10220_v61  ;;  %v10284_v57 = vld [vmem:[%s11618_s19 + $0xe40] ss:$8 sps:$4 sm:$0xff]   ;;  %v10289_v60 = vld [vmem:[%s11618_s19 + $0x654] ss:$8 sps:$4 sm:$0xff]  }
 0x282   : > { %v10292_v61 = vld [vmem:[%s11618_s19 + $0xe54] ss:$8 sps:$4 sm:$0xff]  }
 0x284   : > { %8144 = vmatpush1.bf16.msra.mxu1 %v10215_v4  ;;  %8568 = vmatpush1.bf16.msra.mxu0 %v10218_v7  ;;  %v10287_v4 = vld [vmem:[%s11618_s19 + $0x650] ss:$8 sps:$4 sm:$0xff]  }
 0x285   : > { %8145 = vmatprep.subr.bf16.mxu1 %v10223_v8  ;;  %8569 = vmatprep.subr.bf16.mxu0 %v10226_v9  ;;  %v10290_v7 = vld [vmem:[%s11618_s19 + $0xe50] ss:$8 sps:$4 sm:$0xff]   ;;  %v10295_v8 = vld [vmem:[%s11618_s19 + $0x664] ss:$8 sps:$4 sm:$0xff]  }
 0x286   : > { %v10298_v9 = vld [vmem:[%s11618_s19 + $0xe64] ss:$8 sps:$4 sm:$0xff]  }
 0x288   : > { %8146 = vmatpush1.bf16.msra.mxu1 %v10221_v10  ;;  %8570 = vmatpush1.bf16.msra.mxu0 %v10224_v58  ;;  %v10293_v10 = vld [vmem:[%s11618_s19 + $0x660] ss:$8 sps:$4 sm:$0xff]  }
 0x289   : > { %8147 = vmatprep.subr.bf16.mxu1 %v10229_v59  ;;  %8571 = vmatprep.subr.bf16.mxu0 %v10232_v62  ;;  %v10296_v58 = vld [vmem:[%s11618_s19 + $0xe60] ss:$8 sps:$4 sm:$0xff]   ;;  %v10301_v59 = vld [vmem:[%s11618_s19 + $0x674] ss:$8 sps:$4 sm:$0xff]  }
 0x28a   : > { %v10304_v62 = vld [vmem:[%s11618_s19 + $0xe74] ss:$8 sps:$4 sm:$0xff]  }
 0x28c   : > { %8148 = vmatpush1.bf16.msra.mxu1 %v10227_v63  ;;  %8572 = vmatpush1.bf16.msra.mxu0 %v10230_v11  ;;  %v10299_v63 = vld [vmem:[%s11618_s19 + $0x670] ss:$8 sps:$4 sm:$0xff]  }
 0x28d   : > { %8149 = vmatprep.subr.bf16.mxu1 %v10235_v12  ;;  %8573 = vmatprep.subr.bf16.mxu0 %v10238_v13  ;;  %v10302_v11 = vld [vmem:[%s11618_s19 + $0xe70] ss:$8 sps:$4 sm:$0xff]   ;;  %v10307_v12 = vld [vmem:[%s11618_s19 + $0x684] ss:$8 sps:$4 sm:$0xff]  }
 0x28e   : > { %v10310_v13 = vld [vmem:[%s11618_s19 + $0xe84] ss:$8 sps:$4 sm:$0xff]  }
 0x290   : > { %8150 = vmatpush1.bf16.msra.mxu1 %v10233_v14  ;;  %8574 = vmatpush1.bf16.msra.mxu0 %v10236_v15  ;;  %v10305_v14 = vld [vmem:[%s11618_s19 + $0x680] ss:$8 sps:$4 sm:$0xff]  }
 0x291   : > { %8151 = vmatprep.subr.bf16.mxu1 %v10241_v18  ;;  %8575 = vmatprep.subr.bf16.mxu0 %v10244_v19  ;;  %v10308_v15 = vld [vmem:[%s11618_s19 + $0xe80] ss:$8 sps:$4 sm:$0xff]   ;;  %v10313_v18 = vld [vmem:[%s11618_s19 + $0x694] ss:$8 sps:$4 sm:$0xff]  }
 0x292   : > { %v10316_v19 = vld [vmem:[%s11618_s19 + $0xe94] ss:$8 sps:$4 sm:$0xff]  }
 0x294   : > { %8152 = vmatpush1.bf16.msra.mxu1 %v10239_v22  ;;  %8576 = vmatpush1.bf16.msra.mxu0 %v10242_v23  ;;  %v10311_v22 = vld [vmem:[%s11618_s19 + $0x690] ss:$8 sps:$4 sm:$0xff]  }
 0x295   : > { %8153 = vmatprep.subr.bf16.mxu1 %v10247_v24  ;;  %8577 = vmatprep.subr.bf16.mxu0 %v10250_v25  ;;  %v10314_v23 = vld [vmem:[%s11618_s19 + $0xe90] ss:$8 sps:$4 sm:$0xff]   ;;  %v10319_v24 = vld [vmem:[%s11618_s19 + $0x6a4] ss:$8 sps:$4 sm:$0xff]  }
 0x296   : > { %v10322_v25 = vld [vmem:[%s11618_s19 + $0xea4] ss:$8 sps:$4 sm:$0xff]  }
 0x298   : > { %8154 = vmatpush1.bf16.msra.mxu1 %v10245_v26  ;;  %8578 = vmatpush1.bf16.msra.mxu0 %v10248_v27  ;;  %v10317_v26 = vld [vmem:[%s11618_s19 + $0x6a0] ss:$8 sps:$4 sm:$0xff]  }
 0x299   : > { %8155 = vmatprep.subr.bf16.mxu1 %v10253_v28  ;;  %8579 = vmatprep.subr.bf16.mxu0 %v10256_v29  ;;  %v10320_v27 = vld [vmem:[%s11618_s19 + $0xea0] ss:$8 sps:$4 sm:$0xff]   ;;  %v10325_v28 = vld [vmem:[%s11618_s19 + $0x6b4] ss:$8 sps:$4 sm:$0xff]  }
 0x29a   : > { %v10328_v29 = vld [vmem:[%s11618_s19 + $0xeb4] ss:$8 sps:$4 sm:$0xff]  }
 0x29c   : > { %8156 = vmatpush1.bf16.msra.mxu1 %v10251_v0  ;;  %8580 = vmatpush1.bf16.msra.mxu0 %v10254_v1  ;;  %v10323_v0 = vld [vmem:[%s11618_s19 + $0x6b0] ss:$8 sps:$4 sm:$0xff]  }
 0x29d   : > { %8178 = vmatprep.subr.bf16.mxu1 %v10259_v16  ;;  %8602 = vmatprep.subr.bf16.mxu0 %v10262_v17  ;;  %v10326_v1 = vld [vmem:[%s11618_s19 + $0xeb0] ss:$8 sps:$4 sm:$0xff]   ;;  %v10331_v16 = vld [vmem:[%s11618_s19 + $0x6c4] ss:$8 sps:$4 sm:$0xff]  }
 0x29e   : > { %v10334_v17 = vld [vmem:[%s11618_s19 + $0xec4] ss:$8 sps:$4 sm:$0xff]  }
 0x29f   : > { %8158 = vmatmul.mubr.bf16.vlgmr.msra.gmra.mrb[0].mxu1 %v8932_v6  ;;  %8582 = vmatmul.mubr.bf16.vlgmr.msra.gmra.mrb[0].mxu0 %v8948_v30  ;;  %v10332_v6 = vld [vmem:[%s11618_s19 + $0xec0] ss:$8 sps:$4 sm:$0xff]   ;;  %v10337_v30 = vld [vmem:[%s11618_s19 + $0x6d4] ss:$8 sps:$4 sm:$0xff]  }
 0x2a0   : > { %8179 = vmatpush1.bf16.msra.mxu1 %v10257_v20  ;;  %8603 = vmatpush1.bf16.msra.mxu0 %v10260_v21  ;;  %v10343_v20 = vld [vmem:[%s11618_s19 + $0x6e4] ss:$8 sps:$4 sm:$0xff]  }
 0x2a1   : > { %8180 = vmatprep.subr.bf16.mxu1 %v10265_v3  ;;  %8604 = vmatprep.subr.bf16.mxu0 %v10268_v2  ;;  %v10346_v21 = vld [vmem:[%s11618_s19 + $0xee4] ss:$8 sps:$4 sm:$0xff]   ;;  %v10341_v3 = vld [vmem:[%s11618_s19 + $0x6e0] ss:$8 sps:$4 sm:$0xff]  }
 0x2a2   : > { %8167 = vmatprep.mubr.bf16.mxu1 %v8965_v34  ;;  %8591 = vmatprep.mubr.bf16.mxu0 %v8981_v35  ;;  %v10344_v2 = vld [vmem:[%s11618_s19 + $0xee0] ss:$8 sps:$4 sm:$0xff]   ;;  %v10349_v34 = vld [vmem:[%s11618_s19 + $0x6f4] ss:$8 sps:$4 sm:$0xff]  }
 0x2a3   : > { %v10352_v35 = vld [vmem:[%s11618_s19 + $0xef4] ss:$8 sps:$4 sm:$0xff]  }
 0x2a4   : > { %8181 = vmatpush1.bf16.msra.mxu1 %v10263_v36  ;;  %8605 = vmatpush1.bf16.msra.mxu0 %v10266_v37  ;;  %v10347_v36 = vld [vmem:[%s11618_s19 + $0x6f0] ss:$8 sps:$4 sm:$0xff]  }
 0x2a5   : > { %8182 = vmatprep.subr.bf16.mxu1 %v10271_v38  ;;  %8606 = vmatprep.subr.bf16.mxu0 %v10274_v39  ;;  %v10350_v37 = vld [vmem:[%s11618_s19 + $0xef0] ss:$8 sps:$4 sm:$0xff]   ;;  %v10355_v38 = vld [vmem:[%s11618_s19 + $0x704] ss:$8 sps:$4 sm:$0xff]  }
 0x2a6   : > { %v10358_v39 = vld [vmem:[%s11618_s19 + $0xf04] ss:$8 sps:$4 sm:$0xff]  }
 0x2a7   : > { %8168 = vmatmul.mubr.bf16.gmra.mrb[4].mxu1 %v8964_v41  ;;  %8592 = vmatmul.mubr.bf16.gmra.mrb[4].mxu0 %v8980_v44  ;;  %v4430_v41 = vld [vmem:[%s12457_s0 + $0x130] sm:$0xff]  ;;  %v8934_v44 = vcombine.low %v12235_v40, %v12240_v45  ;;  %v10353_v40 = vld [vmem:[%s11618_s19 + $0x700] ss:$8 sps:$4 sm:$0xff]  }
 0x2a8   : > { %8183 = vmatpush1.bf16.msra.mxu1 %v10269_v50  ;;  %8607 = vmatpush1.bf16.msra.mxu0 %v10272_v51  ;;  %v8950_v50 = vcombine.low %v12245_v48, %v12250_v49  ;;  %v4446_v51 = vld [vmem:[%s12457_s0 + $0x1b0] sm:$0xff]  ;;  %v10356_v45 = vld [vmem:[%s11618_s19 + $0xf00] ss:$8 sps:$4 sm:$0xff]  }
 0x2a9   : > { %8184 = vmatprep.subr.bf16.mxu1 %v10277_v52  ;;  %8608 = vmatprep.subr.bf16.mxu0 %v10280_v42  ;;  %v4438_v52 = vld [vmem:[%s12457_s0 + $0x170] sm:$0xff] }
 0x2aa   : > { %8210 = vmatprep.mubr.bf16.mxu1 %v8935_v43  ;;  %8634 = vmatprep.mubr.bf16.mxu0 %v8951_v46  ;;  %v4454_v42 = vld [vmem:[%s12457_s0 + $0x1f0] sm:$0xff]  ;;  %v8967_v43 = vcombine.high %v4430_v41, %v4446_v51 }
 0x2ab   : > { %v10361_v48 = vld [vmem:[%s11618_s19 + $0x714] ss:$8 sps:$4 sm:$0xff]   ;;  %v8983_v46 = vcombine.high %v4438_v52, %v4454_v42 }
 0x2ac   : > { %8185 = vmatpush1.bf16.msra.mxu1 %v10275_v47  ;;  %8609 = vmatpush1.bf16.msra.mxu0 %v10278_v53  ;;  %v10364_v49 = vld [vmem:[%s11618_s19 + $0xf14] ss:$8 sps:$4 sm:$0xff]   ;;  %v10359_v47 = vld [vmem:[%s11618_s19 + $0x710] ss:$8 sps:$4 sm:$0xff]  }
 0x2ad   : > { %8186 = vmatprep.subr.bf16.mxu1 %v10283_v54  ;;  %8610 = vmatprep.subr.bf16.mxu0 %v10286_v55  ;;  %v10362_v53 = vld [vmem:[%s11618_s19 + $0xf10] ss:$8 sps:$4 sm:$0xff]   ;;  %v10367_v54 = vld [vmem:[%s11618_s19 + $0x724] ss:$8 sps:$4 sm:$0xff]  }
 0x2ae   : > { %v10370_v55 = vld [vmem:[%s11618_s19 + $0xf24] ss:$8 sps:$4 sm:$0xff]  }
 0x2b0   : > { %8187 = vmatpush1.bf16.msra.mxu1 %v10281_v56  ;;  %8611 = vmatpush1.bf16.msra.mxu0 %v10284_v57  ;;  %v12339_v56 = vld [vmem:[%s12457_s0 + $0x38] sm:$0xff]  ;;  %v8966_v57 = vcombine.low %v4430_v41, %v4446_v51  ;;  %v10425_v41 = vld [vmem:[%s11618_s19 + $0x7c0] ss:$8 sps:$4 sm:$0xff]  }
 0x2b1   : > { %8188 = vmatprep.subr.bf16.mxu1 %v10289_v60  ;;  %8612 = vmatprep.subr.bf16.mxu0 %v10292_v61  ;;  %v8982_v60 = vcombine.low %v4438_v52, %v4454_v42  ;;  %v12344_v61 = vld [vmem:[%s12457_s0 + $0xb8] sm:$0xff] }
 0x2b2   : > { %v10436_v51 = vld [vmem:[%s11618_s19 + $0xfd4] ss:$8 sps:$4 sm:$0xff]   ;;  %v10431_v52 = vld [vmem:[%s11618_s19 + $0x7d0] ss:$8 sps:$4 sm:$0xff]  }
 0x2b3   : > { %v10434_v42 = vld [vmem:[%s11618_s19 + $0xfd0] ss:$8 sps:$4 sm:$0xff]  }
 0x2b4   : > { %8189 = vmatpush1.bf16.msra.mxu1 %v10287_v4  ;;  %8613 = vmatpush1.bf16.msra.mxu0 %v10290_v7  ;;  %v12349_v4 = vld [vmem:[%s12457_s0 + $0x78] sm:$0xff] }
 0x2b5   : > { %8190 = vmatprep.subr.bf16.mxu1 %v10295_v8  ;;  %8614 = vmatprep.subr.bf16.mxu0 %v10298_v9  ;;  %v12354_v7 = vld [vmem:[%s12457_s0 + $0xf8] sm:$0xff]  ;;  %v10365_v8 = vld [vmem:[%s11618_s19 + $0x720] ss:$8 sps:$4 sm:$0xff]  }
 0x2b6   : > { %v10368_v9 = vld [vmem:[%s11618_s19 + $0xf20] ss:$8 sps:$4 sm:$0xff]  }
 0x2b8   : > { %8191 = vmatpush1.bf16.msra.mxu1 %v10293_v10  ;;  %8615 = vmatpush1.bf16.msra.mxu0 %v10296_v58  ;;  %v10373_v10 = vld [vmem:[%s11618_s19 + $0x734] ss:$8 sps:$4 sm:$0xff]  }
 0x2b9   : > { %8192 = vmatprep.subr.bf16.mxu1 %v10301_v59  ;;  %8616 = vmatprep.subr.bf16.mxu0 %v10304_v62  ;;  %v10376_v58 = vld [vmem:[%s11618_s19 + $0xf34] ss:$8 sps:$4 sm:$0xff]   ;;  %v8937_v59 = vcombine.high %v12339_v56, %v12344_v61  ;;  %v8953_v62 = vcombine.high %v12349_v4, %v12354_v7 }
 0x2bc   : > { %8193 = vmatpush1.bf16.msra.mxu1 %v10299_v63  ;;  %8617 = vmatpush1.bf16.msra.mxu0 %v10302_v11  ;;  %v10371_v63 = vld [vmem:[%s11618_s19 + $0x730] ss:$8 sps:$4 sm:$0xff]  }
 0x2bd   : > { %8194 = vmatprep.subr.bf16.mxu1 %v10307_v12  ;;  %8618 = vmatprep.subr.bf16.mxu0 %v10310_v13  ;;  %v10374_v11 = vld [vmem:[%s11618_s19 + $0xf30] ss:$8 sps:$4 sm:$0xff]   ;;  %v10379_v12 = vld [vmem:[%s11618_s19 + $0x744] ss:$8 sps:$4 sm:$0xff]  }
 0x2be   : > { %v10382_v13 = vld [vmem:[%s11618_s19 + $0xf44] ss:$8 sps:$4 sm:$0xff]  }
 0x2c0   : > { %8195 = vmatpush1.bf16.msra.mxu1 %v10305_v14  ;;  %8619 = vmatpush1.bf16.msra.mxu0 %v10308_v15  ;;  %v10377_v14 = vld [vmem:[%s11618_s19 + $0x740] ss:$8 sps:$4 sm:$0xff]  }
 0x2c1   : > { %8196 = vmatprep.subr.bf16.mxu1 %v10313_v18  ;;  %8620 = vmatprep.subr.bf16.mxu0 %v10316_v19  ;;  %v10380_v15 = vld [vmem:[%s11618_s19 + $0xf40] ss:$8 sps:$4 sm:$0xff]   ;;  %v10385_v18 = vld [vmem:[%s11618_s19 + $0x754] ss:$8 sps:$4 sm:$0xff]  }
 0x2c2   : > { %v10388_v19 = vld [vmem:[%s11618_s19 + $0xf54] ss:$8 sps:$4 sm:$0xff]  }
 0x2c4   : > { %8197 = vmatpush1.bf16.msra.mxu1 %v10311_v22  ;;  %8621 = vmatpush1.bf16.msra.mxu0 %v10314_v23  ;;  %v10383_v22 = vld [vmem:[%s11618_s19 + $0x750] ss:$8 sps:$4 sm:$0xff]  }
 0x2c5   : > { %8198 = vmatprep.subr.bf16.mxu1 %v10319_v24  ;;  %8622 = vmatprep.subr.bf16.mxu0 %v10322_v25  ;;  %v10386_v23 = vld [vmem:[%s11618_s19 + $0xf50] ss:$8 sps:$4 sm:$0xff]   ;;  %v10391_v24 = vld [vmem:[%s11618_s19 + $0x764] ss:$8 sps:$4 sm:$0xff]  }
 0x2c6   : > { %v10394_v25 = vld [vmem:[%s11618_s19 + $0xf64] ss:$8 sps:$4 sm:$0xff]  }
 0x2c8   : > { %8199 = vmatpush1.bf16.msra.mxu1 %v10317_v26  ;;  %8623 = vmatpush1.bf16.msra.mxu0 %v10320_v27  ;;  %v10389_v26 = vld [vmem:[%s11618_s19 + $0x760] ss:$8 sps:$4 sm:$0xff]  }
 0x2c9   : > { %8200 = vmatprep.subr.bf16.mxu1 %v10325_v28  ;;  %8624 = vmatprep.subr.bf16.mxu0 %v10328_v29  ;;  %v10392_v27 = vld [vmem:[%s11618_s19 + $0xf60] ss:$8 sps:$4 sm:$0xff]   ;;  %v10397_v28 = vld [vmem:[%s11618_s19 + $0x774] ss:$8 sps:$4 sm:$0xff]  }
 0x2ca   : > { %v10400_v29 = vld [vmem:[%s11618_s19 + $0xf74] ss:$8 sps:$4 sm:$0xff]  }
 0x2cc   : > { %8201 = vmatpush1.bf16.msra.mxu1 %v10323_v0  ;;  %8625 = vmatpush1.bf16.msra.mxu0 %v10326_v1  ;;  %v10395_v0 = vld [vmem:[%s11618_s19 + $0x770] ss:$8 sps:$4 sm:$0xff]  }
 0x2cd   : > { %8202 = vmatprep.subr.bf16.mxu1 %v10331_v16  ;;  %8626 = vmatprep.subr.bf16.mxu0 %v10334_v17  ;;  %v10398_v1 = vld [vmem:[%s11618_s19 + $0xf70] ss:$8 sps:$4 sm:$0xff]   ;;  %v10403_v16 = vld [vmem:[%s11618_s19 + $0x784] ss:$8 sps:$4 sm:$0xff]  }
 0x2ce   : > { %v10406_v17 = vld [vmem:[%s11618_s19 + $0xf84] ss:$8 sps:$4 sm:$0xff]  }
 0x2d0   : > { %8203 = vmatpush1.bf16.msra.mxu1 %v10329_v5  ;;  %8627 = vmatpush1.bf16.msra.mxu0 %v10332_v6  ;;  %v10401_v5 = vld [vmem:[%s11618_s19 + $0x780] ss:$8 sps:$4 sm:$0xff]  }
 0x2d1   : > { %8204 = vmatprep.subr.bf16.mxu1 %v10337_v30  ;;  %8628 = vmatprep.subr.bf16.mxu0 %v10340_v31  ;;  %v10404_v6 = vld [vmem:[%s11618_s19 + $0xf80] ss:$8 sps:$4 sm:$0xff]   ;;  %v10409_v30 = vld [vmem:[%s11618_s19 + $0x794] ss:$8 sps:$4 sm:$0xff]  }
 0x2d2   : > { %v10412_v31 = vld [vmem:[%s11618_s19 + $0xf94] ss:$8 sps:$4 sm:$0xff]  }
 0x2d4   : > { %8205 = vmatpush1.bf16.msra.mxu1 %v10335_v32  ;;  %8629 = vmatpush1.bf16.msra.mxu0 %v10338_v33  ;;  %v10407_v32 = vld [vmem:[%s11618_s19 + $0x790] ss:$8 sps:$4 sm:$0xff]  }
 0x2d5   : > { %8206 = vmatprep.subr.bf16.mxu1 %v10343_v20  ;;  %8630 = vmatprep.subr.bf16.mxu0 %v10346_v21  ;;  %v10410_v33 = vld [vmem:[%s11618_s19 + $0xf90] ss:$8 sps:$4 sm:$0xff]   ;;  %v10415_v20 = vld [vmem:[%s11618_s19 + $0x7a4] ss:$8 sps:$4 sm:$0xff]  }
 0x2d6   : > { %v10418_v21 = vld [vmem:[%s11618_s19 + $0xfa4] ss:$8 sps:$4 sm:$0xff]  }
 0x2d8   : > { %8207 = vmatpush1.bf16.msra.mxu1 %v10341_v3  ;;  %8631 = vmatpush1.bf16.msra.mxu0 %v10344_v2  ;;  %v10413_v3 = vld [vmem:[%s11618_s19 + $0x7a0] ss:$8 sps:$4 sm:$0xff]  }
 0x2d9   : > { %8208 = vmatprep.subr.bf16.mxu1 %v10349_v34  ;;  %8632 = vmatprep.subr.bf16.mxu0 %v10352_v35  ;;  %v10416_v2 = vld [vmem:[%s11618_s19 + $0xfa0] ss:$8 sps:$4 sm:$0xff]   ;;  %v10421_v34 = vld [vmem:[%s11618_s19 + $0x7b4] ss:$8 sps:$4 sm:$0xff]  }
 0x2da   : > { %v10424_v35 = vld [vmem:[%s11618_s19 + $0xfb4] ss:$8 sps:$4 sm:$0xff]  }
 0x2dc   : > { %8209 = vmatpush1.bf16.msra.mxu1 %v10347_v36  ;;  %8633 = vmatpush1.bf16.msra.mxu0 %v10350_v37  ;;  %v10419_v36 = vld [vmem:[%s11618_s19 + $0x7b0] ss:$8 sps:$4 sm:$0xff]  }
 0x2dd   : > { %8231 = vmatprep.subr.bf16.mxu1 %v10355_v38  ;;  %8655 = vmatprep.subr.bf16.mxu0 %v10358_v39  ;;  %v10422_v37 = vld [vmem:[%s11618_s19 + $0xfb0] ss:$8 sps:$4 sm:$0xff]   ;;  %v10427_v38 = vld [vmem:[%s11618_s19 + $0x7c4] ss:$8 sps:$4 sm:$0xff]  }
 0x2de   : > { %v10430_v39 = vld [vmem:[%s11618_s19 + $0xfc4] ss:$8 sps:$4 sm:$0xff]  }
 0x2df   : > { %8211 = vmatmul.mubr.bf16.vlgmr.msra.gmra.mrb[0].mxu1 %v8934_v44  ;;  %8635 = vmatmul.mubr.bf16.vlgmr.msra.gmra.mrb[0].mxu0 %v8950_v50  ;;  %v10428_v44 = vld [vmem:[%s11618_s19 + $0xfc0] ss:$8 sps:$4 sm:$0xff]   ;;  %v10433_v50 = vld [vmem:[%s11618_s19 + $0x7d4] ss:$8 sps:$4 sm:$0xff]  }
 0x2e0   : > { %8232 = vmatpush1.bf16.msra.mxu1 %v10353_v40  ;;  %8656 = vmatpush1.bf16.msra.mxu0 %v10356_v45  ;;  %v10439_v40 = vld [vmem:[%s11618_s19 + $0x7e4] ss:$8 sps:$4 sm:$0xff]  }
 0x2e1   : > { %8233 = vmatprep.subr.bf16.mxu1 %v10361_v48  ;;  %8657 = vmatprep.subr.bf16.mxu0 %v10364_v49  ;;  %v10442_v45 = vld [vmem:[%s11618_s19 + $0xfe4] ss:$8 sps:$4 sm:$0xff]   ;;  %v10437_v48 = vld [vmem:[%s11618_s19 + $0x7e0] ss:$8 sps:$4 sm:$0xff]  }
 0x2e2   : > { %8220 = vmatprep.mubr.bf16.mxu1 %v8967_v43  ;;  %8644 = vmatprep.mubr.bf16.mxu0 %v8983_v46  ;;  %v10440_v49 = vld [vmem:[%s11618_s19 + $0xfe0] ss:$8 sps:$4 sm:$0xff]   ;;  %v10445_v43 = vld [vmem:[%s11618_s19 + $0x7f4] ss:$8 sps:$4 sm:$0xff]  }
 0x2e3   : > { %v10448_v46 = vld [vmem:[%s11618_s19 + $0xff4] ss:$8 sps:$4 sm:$0xff]  }
 0x2e4   : > { %8234 = vmatpush1.bf16.msra.mxu1 %v10359_v47  ;;  %8658 = vmatpush1.bf16.msra.mxu0 %v10362_v53  ;;  %v10443_v47 = vld [vmem:[%s11618_s19 + $0x7f0] ss:$8 sps:$4 sm:$0xff]  }
 0x2e5   : > { %8235 = vmatprep.subr.bf16.mxu1 %v10367_v54  ;;  %8659 = vmatprep.subr.bf16.mxu0 %v10370_v55  ;;  %v10446_v53 = vld [vmem:[%s11618_s19 + $0xff0] ss:$8 sps:$4 sm:$0xff]   ;;  %s8921_s19 = sshll.u32 %s10479_s14, 1 }
 0x2e6   : > { %v4431_v54 = vld [vmem:[%s12457_s0 + $0x138] sm:$0xff]  ;;  %p4386_p11 = scmp.lt.s32.totalorder %s8921_s19, 3 }
 0x2e7   : > { %8221 = vmatmul.mubr.bf16.gmra.mrb[4].mxu1 %v8966_v57  ;;  %8645 = vmatmul.mubr.bf16.gmra.mrb[4].mxu0 %v8982_v60  ;;  %v4447_v55 = vld [vmem:[%s12457_s0 + $0x1b8] sm:$0xff] }
 0x2e8   : > { %8236 = vmatpush1.bf16.msra.mxu1 %v10365_v8  ;;  %8660 = vmatpush1.bf16.msra.mxu0 %v10368_v9  ;;  %v4439_v57 = vld [vmem:[%s12457_s0 + $0x178] sm:$0xff]  ;;  %v8936_v8 = vcombine.low %v12339_v56, %v12344_v61  ;;  %v8952_v9 = vcombine.low %v12349_v4, %v12354_v7  ;;  %s12469_s19 = smov (!%p4386_p11, %s8921_s19), 3 }
 0x2e9   : > { %8237 = vmatprep.subr.bf16.mxu1 %v10373_v10  ;;  %8661 = vmatprep.subr.bf16.mxu0 %v10376_v58  ;;  %v4455_v60 = vld [vmem:[%s12457_s0 + $0x1f8] sm:$0xff]  ;;  %v8969_v10 = vcombine.high %v4431_v54, %v4447_v55  ;;  %s4388_s25 = scalar_lea.vmem %s12459_s2, %s12469_s19 }
 0x2ea   : > { %8263 = vmatprep.mubr.bf16.mxu1 %v8937_v59  ;;  %8687 = vmatprep.mubr.bf16.mxu0 %v8953_v62  ;;  %v8985_v58 = vcombine.high %v4439_v57, %v4455_v60  ;;  %v8968_v59 = vcombine.low %v4431_v54, %v4447_v55  ;;  %v8984_v62 = vcombine.low %v4439_v57, %v4455_v60  ;;  %v4968_v4 = vld [vmem:[%s4388_s25] sm:$0x3] }
 0x2ec   : > { %8238 = vmatpush1.bf16.msra.mxu1 %v10371_v63  ;;  %8662 = vmatpush1.bf16.msra.mxu0 %v10374_v11  ;;  %v4970_v63 = vlaneseq }
 0x2ed   : > { %8239 = vmatprep.subr.bf16.mxu1 %v10379_v12  ;;  %8663 = vmatprep.subr.bf16.mxu0 %v10382_v13 }
 0x2ee   : > { %v4971_v56 = vshrl.u32 %v4970_v63, 7 }
 0x2f0   : > { %8240 = vmatpush1.bf16.msra.mxu1 %v10377_v14  ;;  %8664 = vmatpush1.bf16.msra.mxu0 %v10380_v15  ;;  %v4972_v61 = vsub.s32 0, %v4971_v56  ;;  %v4976_v7 = vsub.s32 1, %v4971_v56 }
 0x2f1   : > { %8241 = vmatprep.subr.bf16.mxu1 %v10385_v18  ;;  %8665 = vmatprep.subr.bf16.mxu0 %v10388_v19 }
 0x2f2   : > { %v4973_v11 = vrot.slane %v4968_v4, %v4972_v61  ;;  %v4977_v12 = vrot.slane %v4968_v4, %v4976_v7 }
 0x2f4   : > { %8242 = vmatpush1.bf16.msra.mxu1 %v10383_v22  ;;  %8666 = vmatpush1.bf16.msra.mxu0 %v10386_v23 }
 0x2f5   : > { %8243 = vmatprep.subr.bf16.mxu1 %v10391_v24  ;;  %8667 = vmatprep.subr.bf16.mxu0 %v10394_v25 }
 0x2f8   : > { %8244 = vmatpush1.bf16.msra.mxu1 %v10389_v26  ;;  %8668 = vmatpush1.bf16.msra.mxu0 %v10392_v27 }
 0x2f9   : > { %8245 = vmatprep.subr.bf16.mxu1 %v10397_v28  ;;  %8669 = vmatprep.subr.bf16.mxu0 %v10400_v29 }
 0x2fc   : > { %8246 = vmatpush1.bf16.msra.mxu1 %v10395_v0  ;;  %8670 = vmatpush1.bf16.msra.mxu0 %v10398_v1 }
 0x2fd   : > { %8247 = vmatprep.subr.bf16.mxu1 %v10403_v16  ;;  %8671 = vmatprep.subr.bf16.mxu0 %v10406_v17 }
 0x300   : > { %8248 = vmatpush1.bf16.msra.mxu1 %v10401_v5  ;;  %8672 = vmatpush1.bf16.msra.mxu0 %v10404_v6 }
 0x301   : > { %8249 = vmatprep.subr.bf16.mxu1 %v10409_v30  ;;  %8673 = vmatprep.subr.bf16.mxu0 %v10412_v31 }
 0x304   : > { %8250 = vmatpush1.bf16.msra.mxu1 %v10407_v32  ;;  %8674 = vmatpush1.bf16.msra.mxu0 %v10410_v33 }
 0x305   : > { %8251 = vmatprep.subr.bf16.mxu1 %v10415_v20  ;;  %8675 = vmatprep.subr.bf16.mxu0 %v10418_v21 }
 0x308   : > { %8252 = vmatpush1.bf16.msra.mxu1 %v10413_v3  ;;  %8676 = vmatpush1.bf16.msra.mxu0 %v10416_v2 }
 0x309   : > { %8253 = vmatprep.subr.bf16.mxu1 %v10421_v34  ;;  %8677 = vmatprep.subr.bf16.mxu0 %v10424_v35 }
 0x30c   : > { %8254 = vmatpush1.bf16.msra.mxu1 %v10419_v36  ;;  %8678 = vmatpush1.bf16.msra.mxu0 %v10422_v37 }
 0x30d   : > { %8255 = vmatprep.subr.bf16.mxu1 %v10427_v38  ;;  %8679 = vmatprep.subr.bf16.mxu0 %v10430_v39 }
 0x310   : > { %8256 = vmatpush1.bf16.msra.mxu1 %v10425_v41  ;;  %8680 = vmatpush1.bf16.msra.mxu0 %v10428_v44 }
 0x311   : > { %8257 = vmatprep.subr.bf16.mxu1 %v10433_v50  ;;  %8681 = vmatprep.subr.bf16.mxu0 %v10436_v51 }
 0x314   : > { %8258 = vmatpush1.bf16.msra.mxu1 %v10431_v52  ;;  %8682 = vmatpush1.bf16.msra.mxu0 %v10434_v42 }
 0x315   : > { %8259 = vmatprep.subr.bf16.mxu1 %v10439_v40  ;;  %8683 = vmatprep.subr.bf16.mxu0 %v10442_v45 }
 0x318   : > { %8260 = vmatpush1.bf16.msra.mxu1 %v10437_v48  ;;  %8684 = vmatpush1.bf16.msra.mxu0 %v10440_v49 }
 0x319   : > { %8261 = vmatprep.subr.bf16.mxu1 %v10445_v43  ;;  %8685 = vmatprep.subr.bf16.mxu0 %v10448_v46 }
 0x31c   : > { %8262 = vmatpush1.bf16.msra.mxu1 %v10443_v47  ;;  %8686 = vmatpush1.bf16.msra.mxu0 %v10446_v53 }
 0x31f   : > { %8264 = vmatmul.mubr.bf16.vlgmr.msra.gmra.mrb[0].mxu1 %v8936_v8  ;;  %8688 = vmatmul.mubr.bf16.vlgmr.msra.gmra.mrb[0].mxu0 %v8952_v9 }
 0x320   : > { %8273 = vmatprep.mubr.bf16.mxu1 %v8969_v10  ;;  %8697 = vmatprep.mubr.bf16.mxu0 %v8985_v58 }
 0x327   : > { %8274 = vmatmul.mubr.bf16.gmra.mrb[4].mxu1 %v8968_v59  ;;  %8698 = vmatmul.mubr.bf16.gmra.mrb[4].mxu0 %v8984_v62 }
 0x3f2   : > { %v8265_v13 = vpop.f32.mrb[0].mxu1  ;;  %v8689_v14 = vpop.f32.mrb[0].mxu0 }
 0x3f3   : > { %v9513_v15 = vadd.f32 %v8265_v13, %v4973_v11  ;;  %v8267_v18 = vpop.f32.mrb[1].mxu1  ;;  %v8691_v19 = vpop.f32.mrb[1].mxu0 }
 0x3f4   : > { %v9515_v22 = vadd.f32 %v8267_v18, %v4977_v12  ;;  %v8269_v23 = vpop.f32.mrb[2].mxu1  ;;  %v8693_v24 = vpop.f32.mrb[2].mxu0 }
 0x3f5   : > { %v9514_v25 = vadd.f32 %v9513_v15, %v8689_v14  ;;  %v9517_v26 = vadd.f32 %v8269_v23, %v4973_v11  ;;  %v8271_v27 = vpop.f32.mrb[3].mxu1  ;;  %v8695_v28 = vpop.f32.mrb[3].mxu0 }
 0x3f6   : > { %v9516_v29 = vadd.f32 %v9515_v22, %v8691_v19  ;;  %v9519_v0 = vadd.f32 %v8271_v27, %v4977_v12 }
 0x3f7   : > { %v8708_v1 = vmul.f32 0.2, %v9514_v25  ;;  %v9518_v16 = vadd.f32 %v9517_v26, %v8693_v24 }
 0x3f8   : > { %v8709_v17 = vmul.f32 0.2, %v9516_v29  ;;  %v9520_v5 = vadd.f32 %v9519_v0, %v8695_v28 }
 0x3f9   : > { %v8716_v6 = vmax.f32 %v9514_v25, %v8708_v1  ;;  %v8710_v30 = vmul.f32 0.2, %v9518_v16 }
 0x3fa   : > { %v8717_v31 = vmax.f32 %v9516_v29, %v8709_v17  ;;  %v8711_v32 = vmul.f32 0.2, %v9520_v5  ;;  %v8275_v33 = vpop.f32.mrb[4].mxu1  ;;  %v8699_v20 = vpop.f32.mrb[4].mxu0 }
 0x3fb   : > { %v8718_v21 = vmax.f32 %v9518_v16, %v8710_v30  ;;  %v9521_v3 = vadd.f32 %v8275_v33, %v4973_v11  ;;  %v8277_v2 = vpop.f32.mrb[5].mxu1  ;;  %v8701_v34 = vpop.f32.mrb[5].mxu0 }
 0x3fc   : > { %v9508_v35 = vpack.c.bf16 %v8717_v31, %v8716_v6  ;;  %v8719_v36 = vmax.f32 %v9520_v5, %v8711_v32  ;;  %v9523_v37 = vadd.f32 %v8277_v2, %v4977_v12  ;;  %v8279_v38 = vpop.f32.mrb[6].mxu1  ;;  %v8703_v39 = vpop.f32.mrb[6].mxu0 }
 0x3fd   : > { %v9522_v41 = vadd.f32 %v9521_v3, %v8699_v20  ;;  %v9525_v44 = vadd.f32 %v8279_v38, %v4973_v11  ;;  %v8281_v50 = vpop.f32.mrb[7].mxu1  ;;  %v8705_v51 = vpop.f32.mrb[7].mxu0 }
 0x3fe   : > { %8748 = vst [vmem:[%s4376_s12] sm:$0xff] %v9508_v35  ;;  %v9509_v52 = vpack.c.bf16 %v8719_v36, %v8718_v21  ;;  %v9524_v42 = vadd.f32 %v9523_v37, %v8701_v34  ;;  %v9527_v40 = vadd.f32 %v8281_v50, %v4977_v12 }
 0x3ff   : > { %v8712_v45 = vmul.f32 0.2, %v9522_v41  ;;  %v9526_v48 = vadd.f32 %v9525_v44, %v8703_v39 }
 0x400   : > { %8749 = vst [vmem:[%s4376_s12 + $0x8] sm:$0xff] %v9509_v52  ;;  %v8713_v49 = vmul.f32 0.2, %v9524_v42  ;;  %v9528_v43 = vadd.f32 %v9527_v40, %v8705_v51 }
 0x401   : > { %v8720_v46 = vmax.f32 %v9522_v41, %v8712_v45  ;;  %v8714_v47 = vmul.f32 0.2, %v9526_v48 }
 0x402   : > { %v8721_v53 = vmax.f32 %v9524_v42, %v8713_v49  ;;  %v8715_v54 = vmul.f32 0.2, %v9528_v43  ;;  %8758 = sbr.rel (!%p10544_p6) target bundleno = 1041 (0x411), region = 88 }
 0x403   : > { %v8722_v55 = vmax.f32 %v9526_v48, %v8714_v47 }
 0x404   : > { %v9510_v57 = vpack.c.bf16 %v8721_v53, %v8720_v46  ;;  %v8723_v60 = vmax.f32 %v9528_v43, %v8715_v54 }
 0x405   : > { %v8798_v9 = vld [vmem:[%s4376_s12] sm:$0xff] (%p10544_p6) }
 0x406   : > { %8750 = vst [vmem:[%s4376_s12 + $0x10] sm:$0xff] %v9510_v57  ;;  %v9511_v8 = vpack.c.bf16 %v8723_v60, %v8722_v55  ;;  %8799 = vst [vmem:[%s8764_s29] sm:$0xff] (%p10544_p6), %v8798_v9 }
 0x407   : > { %v8800_v10 = vld [vmem:[%s4376_s12 + $0x8] sm:$0xff] (%p10544_p6) }
 0x408   : > { %8751 = vst [vmem:[%s4376_s12 + $0x18] sm:$0xff] %v9511_v8  ;;  %8801 = vst [vmem:[%s8764_s29 + $0x10] sm:$0xff] (%p10544_p6), %v8800_v10 }
 0x40d   : > { %v8802_v58 = vld [vmem:[%s4376_s12 + $0x10] sm:$0xff] }
 0x40e   : > { %8803 = vst [vmem:[%s8764_s29 + $0x20] sm:$0xff] %v8802_v58 }
 0x40f   : > { %v8804_v59 = vld [vmem:[%s4376_s12 + $0x18] sm:$0xff] }
 0x410   : > { %8805 = vst [vmem:[%s8764_s29 + $0x30] sm:$0xff] %v8804_v59 }
 0x411 PF: > { %s13_s16 = sadd.s32 1, %s10487_s16   ;;  %s12462_s12 = smov %s10475_s13 }
 0x412   : > { %p10_p12 = scmp.ge.s32.totalorder %s13_s16, 4   ;;  %s12463_s13 = smov %s10549_s22 }
 0x413   : > { %s12464_s14 = smov %s10483_s15  ;;  %s12465_s15 = smov %s12467_s17 }
 0x414   :  { %12 = sbr.rel (!%p10_p12) target bundleno = 3 (0x3), region = 169 }

</bundles_post_ra>
